<compile_context>
chip_gen: v5e
topology: v5e:2x2
jax: 0.10.0
libtpu: 0.0.40
codegen_flags: <defaults>
</compile_context>

<pallas_src>
import functools

import jax
import jax.numpy as jnp
from jax.experimental import pallas as pl
from jax.experimental.pallas import tpu as pltpu


def _round_up(x, m):
    return ((x + m - 1) // m) * m


# --------------------------------------------------------------------------
# Pallas kernel 1: (M,N,K)-tiled matmul. bf16 A/B on the MXU, f32 VMEM scratch
# accumulator, fused per-column BN scale/bias + optional residual + ReLU
# epilogue, bf16 output block written only at the last K step.
# --------------------------------------------------------------------------
def _matmul_bn_kernel(a_ref, b_ref, s_ref, c_ref, *refs, relu, has_res):
    if has_res:
        r_ref, o_ref, acc_ref = refs
    else:
        o_ref, acc_ref = refs
    k = pl.program_id(2)

    @pl.when(k == 0)
    def _():
        acc_ref[...] = jnp.zeros_like(acc_ref)

    acc_ref[...] += jnp.dot(a_ref[...], b_ref[...],
                            preferred_element_type=jnp.float32)

    @pl.when(k == pl.num_programs(2) - 1)
    def _():
        y = acc_ref[...] * s_ref[...] + c_ref[...]
        if has_res:
            y = y + r_ref[...].astype(jnp.float32)
        if relu:
            y = jnp.maximum(y, 0.0)
        o_ref[...] = y.astype(o_ref.dtype)


def _select_tiles(M, N, K):
    """Pick (tm, Mp, tn, Np, tk, Kp).

    - tm multiple of 16 (bf16 sublane packing), up to 512 for large M.
    - tn prefers 512/256 (v6e/v7x 256x256 MXU), minimum 128.
    - K: minimal padding to 128; one K step when K <= 1024, else 512/256/128.
    - Guarantee >= 2 blocks on the parallel (M,N) axes when possible so both
      v7x TensorCores get work.
    """
    if M >= 1024:
        tm = 512
    elif M >= 512:
        tm = 256
    else:
        tm = _round_up(max(M, 1), 16)
    Mp = _round_up(M, tm)

    Np = _round_up(N, 128)
    tn = 512 if Np % 512 == 0 else (256 if Np % 256 == 0 else 128)

    Kp = _round_up(K, 128)
    if Kp <= 1024:
        tk = Kp
    else:
        tk = 512 if Kp % 512 == 0 else (256 if Kp % 256 == 0 else 128)

    def _n_parallel():
        return (Mp // tm) * (Np // tn)

    while _n_parallel() < 2:
        if tn > 128:
            tn //= 2
        elif tm > 16:
            tm = max(16, (tm // 32) * 16)
            Mp = _round_up(M, tm)
        else:
            break

    return tm, Mp, tn, Np, tk, Kp


def matmul_scale_bias(a, b, scale, bias, relu=False, residual=None):
    """out = maybe_relu(a @ b * scale + bias [+ residual]), bf16 output.

    a:(M,K), b:(K,N) (cast to bf16 for the MXU), scale/bias:(N,) f32,
    residual:(M,N) or None (kept bf16, added in f32 in the epilogue).
    """
    M, K = a.shape
    _, N = b.shape
    tm, Mp, tn, Np, tk, Kp = _select_tiles(M, N, K)

    a_p = jnp.pad(a.astype(jnp.bfloat16), ((0, Mp - M), (0, Kp - K)))
    b_p = jnp.pad(b.astype(jnp.bfloat16), ((0, Kp - K), (0, Np - N)))
    s_p = jnp.pad(scale.reshape(1, N).astype(jnp.float32), ((0, 0), (0, Np - N)))
    c_p = jnp.pad(bias.reshape(1, N).astype(jnp.float32), ((0, 0), (0, Np - N)))

    in_specs = [
        pl.BlockSpec((tm, tk), lambda i, j, k: (i, k)),
        pl.BlockSpec((tk, tn), lambda i, j, k: (k, j)),
        pl.BlockSpec((1, tn), lambda i, j, k: (0, j)),
        pl.BlockSpec((1, tn), lambda i, j, k: (0, j)),
    ]
    inputs = [a_p, b_p, s_p, c_p]
    has_res = residual is not None
    if has_res:
        r_p = jnp.pad(residual.astype(jnp.bfloat16),
                      ((0, Mp - M), (0, Np - N)))
        in_specs.append(pl.BlockSpec((tm, tn), lambda i, j, k: (i, j)))
        inputs.append(r_p)

    out = pl.pallas_call(
        functools.partial(_matmul_bn_kernel, relu=relu, has_res=has_res),
        out_shape=jax.ShapeDtypeStruct((Mp, Np), jnp.bfloat16),
        grid_spec=pltpu.PrefetchScalarGridSpec(
            num_scalar_prefetch=0,
            grid=(Mp // tm, Np // tn, Kp // tk),
            in_specs=in_specs,
            out_specs=pl.BlockSpec((tm, tn), lambda i, j, k: (i, j)),
            scratch_shapes=[pltpu.VMEM((tm, tn), jnp.float32)],
        ),
        compiler_params=pltpu.CompilerParams(
            dimension_semantics=("parallel", "parallel", "arbitrary"),
            vmem_limit_bytes=48 * 1024 * 1024),
    )(*inputs)
    return out[:M, :N]


# --------------------------------------------------------------------------
# Pallas kernel 2: MaxPool 3x3 stride 2 pad 1. The padded NHWC input is split
# into four 2x2 phase arrays in XLA (same total bytes as the input — no 9x
# stack); the 9 taps become static unit-stride slices inside the kernel.
# --------------------------------------------------------------------------
def _maxpool_kernel(p00_ref, p01_ref, p10_ref, p11_ref, o_ref, *, oh, ow):
    # out[p, q] = max_{i,j in 0..2} x_pad[2p+i, 2q+j]
    m = p00_ref[0, 0:oh, 0:ow, :]
    m = jnp.maximum(m, p00_ref[0, 0:oh, 1:ow + 1, :])
    m = jnp.maximum(m, p00_ref[0, 1:oh + 1, 0:ow, :])
    m = jnp.maximum(m, p00_ref[0, 1:oh + 1, 1:ow + 1, :])
    m = jnp.maximum(m, p01_ref[0, 0:oh, 0:ow, :])
    m = jnp.maximum(m, p01_ref[0, 1:oh + 1, 0:ow, :])
    m = jnp.maximum(m, p10_ref[0, 0:oh, 0:ow, :])
    m = jnp.maximum(m, p10_ref[0, 0:oh, 1:ow + 1, :])
    m = jnp.maximum(m, p11_ref[0, 0:oh, 0:ow, :])
    o_ref[0] = m


def maxpool_3x3_s2_p1(x):  # x: NHWC (bf16)
    N, H, W, C = x.shape
    oh = (H + 2 - 3) // 2 + 1
    ow = (W + 2 - 3) // 2 + 1
    # bf16-safe "very negative" pad value (input is post-ReLU anyway).
    pad_val = float(jnp.finfo(x.dtype).min)
    Hp, Wp = H + 2, W + 2
    Hp_e, Wp_e = Hp + (Hp % 2), Wp + (Wp % 2)
    xp = jnp.pad(x, ((0, 0), (1, Hp_e - H - 1), (1, Wp_e - W - 1), (0, 0)),
                 constant_values=pad_val)
    Hh, Wh = Hp_e // 2, Wp_e // 2  # == oh + 1, ow + 1
    phases = [xp[:, a::2, b::2, :] for a in (0, 1) for b in (0, 1)]

    out = pl.pallas_call(
        functools.partial(_maxpool_kernel, oh=oh, ow=ow),
        out_shape=jax.ShapeDtypeStruct((N, oh, ow, C), x.dtype),
        grid_spec=pltpu.PrefetchScalarGridSpec(
            num_scalar_prefetch=0,
            grid=(N,),
            in_specs=[pl.BlockSpec((1, Hh, Wh, C), lambda n: (n, 0, 0, 0))] * 4,
            out_specs=pl.BlockSpec((1, oh, ow, C), lambda n: (n, 0, 0, 0)),
        ),
        compiler_params=pltpu.CompilerParams(
            dimension_semantics=("parallel",)),
    )(*phases)
    return out


# --------------------------------------------------------------------------
# Pallas kernel 3: fused global-average-pool + final FC (single grid step).
# --------------------------------------------------------------------------
def _gap_fc_kernel(x_ref, w_ref, b_ref, o_ref, *, inv):
    feat = jnp.sum(x_ref[...].astype(jnp.float32), axis=1) * inv      # (N, C)
    y = jnp.dot(feat.astype(jnp.bfloat16), w_ref[...],
                preferred_element_type=jnp.float32)
    o_ref[...] = y + b_ref[...]


def gap_fc(x, fc_w, fc_b):  # x: NHWC bf16 -> (N, num_classes) f32 logits
    N, H, W, C = x.shape
    HW = H * W
    nc = fc_w.shape[0]
    NCp = _round_up(nc, 128)
    x2 = x.reshape(N, HW, C)
    w = jnp.pad(fc_w.T.astype(jnp.bfloat16), ((0, 0), (0, NCp - nc)))
    b = jnp.pad(fc_b.reshape(1, nc).astype(jnp.float32),
                ((0, 0), (0, NCp - nc)))
    out = pl.pallas_call(
        functools.partial(_gap_fc_kernel, inv=1.0 / HW),
        out_shape=jax.ShapeDtypeStruct((N, NCp), jnp.float32),
        grid_spec=pltpu.PrefetchScalarGridSpec(
            num_scalar_prefetch=0,
            grid=(1,),
            in_specs=[
                pl.BlockSpec((N, HW, C), lambda i: (0, 0, 0)),
                pl.BlockSpec((C, NCp), lambda i: (0, 0)),
                pl.BlockSpec((1, NCp), lambda i: (0, 0)),
            ],
            out_specs=pl.BlockSpec((N, NCp), lambda i: (0, 0)),
        ),
    )(x2, w, b)
    return out[:, :nc]


# --------------------------------------------------------------------------
# Conv (bf16 im2col glue for 3x3/7x7, direct for 1x1) + folded BN (+ReLU/res)
# --------------------------------------------------------------------------
def _im2col(x, kh, kw, stride, pad):  # x: NHWC (bf16)
    N, H, W, C = x.shape
    xp = jnp.pad(x, ((0, 0), (pad, pad), (pad, pad), (0, 0)))
    oh = (H + 2 * pad - kh) // stride + 1
    ow = (W + 2 * pad - kw) // stride + 1
    cols = []
    for i in range(kh):
        for j in range(kw):
            s = jax.lax.slice(
                xp, (0, i, j, 0),
                (N, i + (oh - 1) * stride + 1, j + (ow - 1) * stride + 1, C),
                (1, stride, stride, 1))
            cols.append(s)
    col = jnp.concatenate(cols, axis=-1)  # (N, oh, ow, kh*kw*C) bf16
    return col.reshape(N * oh * ow, kh * kw * C), oh, ow


def conv_bn(x, w, scale, bias, stride, pad, relu, residual=None):
    # w: (out_c, in_c, kh, kw) torch layout; x: NHWC bf16; residual: NHWC/None.
    out_c, in_c, kh, kw = w.shape
    N = x.shape[0]
    if kh == 1 and kw == 1 and pad == 0:
        xs = x[:, ::stride, ::stride, :] if stride > 1 else x
        oh, ow = xs.shape[1], xs.shape[2]
        col = xs.reshape(N * oh * ow, in_c)
        w2 = w.reshape(out_c, in_c).T
    else:
        col, oh, ow = _im2col(x, kh, kw, stride, pad)
        w2 = jnp.transpose(w, (2, 3, 1, 0)).reshape(kh * kw * in_c, out_c)
    res2 = None if residual is None else residual.reshape(N * oh * ow, out_c)
    y = matmul_scale_bias(col, w2, scale, bias, relu=relu, residual=res2)
    return y.reshape(N, oh, ow, out_c)


def basic_block(x, p, stride):
    if "down_w" in p:
        identity = conv_bn(x, p["down_w"], p["down_s"], p["down_b"],
                           stride, 0, relu=False)
    else:
        identity = x
    out = conv_bn(x, p["conv1_w"], p["bn1_s"], p["bn1_b"], stride, 1, relu=True)
    # conv2 + BN + residual add + ReLU fused into a single matmul epilogue.
    out = conv_bn(out, p["conv2_w"], p["bn2_s"], p["bn2_b"], 1, 1, relu=True,
                  residual=identity)
    return out


def electronics_classifier_forward(params, x_nchw):
    x = jnp.transpose(x_nchw, (0, 2, 3, 1)).astype(jnp.bfloat16)  # NCHW -> NHWC
    x = conv_bn(x, params["conv1_w"], params["bn1_s"], params["bn1_b"],
                stride=2, pad=3, relu=True)
    x = maxpool_3x3_s2_p1(x)
    for li in range(4):
        for bi in range(2):
            stride = 2 if (li > 0 and bi == 0) else 1
            x = basic_block(x, params[f"layer{li + 1}"][bi], stride)
    return gap_fc(x, params["fc_w"], params["fc_b"])  # (N, num_classes) f32


# --------------------------------------------------------------------------
# Deterministic synthetic parameter init (ResNet-18 shapes, fc -> num_classes)
# --------------------------------------------------------------------------
def init_params(key, num_classes):
    keys = iter(jax.random.split(key, 128))

    def conv(out_c, in_c, kh, kw):
        fan_in = in_c * kh * kw
        return (jax.random.normal(next(keys), (out_c, in_c, kh, kw),
                                  jnp.float32) * jnp.sqrt(2.0 / fan_in))

    def bn(c):  # folded eval-mode BN: scale = gamma/sqrt(var+eps), bias = beta - mean*scale
        s = 1.0 + 0.05 * jax.random.normal(next(keys), (c,), jnp.float32)
        b = 0.05 * jax.random.normal(next(keys), (c,), jnp.float32)
        return s, b

    params = {"conv1_w": conv(64, 3, 7, 7)}
    params["bn1_s"], params["bn1_b"] = bn(64)
    in_c = 64
    for li, out_c in enumerate([64, 128, 256, 512]):
        blocks = []
        for bi in range(2):
            stride = 2 if (li > 0 and bi == 0) else 1
            p = {"conv1_w": conv(out_c, in_c, 3, 3)}
            p["bn1_s"], p["bn1_b"] = bn(out_c)
            p["conv2_w"] = conv(out_c, out_c, 3, 3)
            p["bn2_s"], p["bn2_b"] = bn(out_c)
            if stride != 1 or in_c != out_c:
                p["down_w"] = conv(out_c, in_c, 1, 1)
                p["down_s"], p["down_b"] = bn(out_c)
            blocks.append(p)
            in_c = out_c
        params[f"layer{li + 1}"] = blocks
    params["fc_w"] = (jax.random.normal(next(keys), (num_classes, 512),
                                        jnp.float32) / jnp.sqrt(512.0))
    params["fc_b"] = 0.01 * jax.random.normal(next(keys), (num_classes,),
                                              jnp.float32)
    return params


if __name__ == "__main__":
    num_classes = 10
    key = jax.random.PRNGKey(0)
    pkey, xkey = jax.random.split(key)
    params = init_params(pkey, num_classes)
    # Small input consistent with ResNet-18 (NCHW, 3 channels).
    x = jax.random.normal(xkey, (2, 3, 32, 32), jnp.float32)

    fwd = jax.jit(electronics_classifier_forward)
    logits = fwd(params, x)
    jax.block_until_ready(logits)
    assert logits.shape == (2, num_classes), logits.shape
    assert bool(jnp.all(jnp.isfinite(logits)))
    print("KERNEL_OK")
</pallas_src>

<mosaic_0001>
module attributes {stable_mosaic.version = 11 : i64} {
  func.func @_maxpool_kernel(%arg0: i32, %arg1: memref<1x9x9x64xbf16, #tpu.memory_space<vmem>>, %arg2: memref<1x9x9x64xbf16, #tpu.memory_space<vmem>>, %arg3: memref<1x9x9x64xbf16, #tpu.memory_space<vmem>>, %arg4: memref<1x9x9x64xbf16, #tpu.memory_space<vmem>>, %arg5: memref<1x8x8x64xbf16, #tpu.memory_space<vmem>>) attributes {dimension_semantics = [#tpu.dimension_semantics<parallel>], iteration_bounds = array<i64: 2>, scalar_prefetch = 0 : i64, scratch_operands = 0 : i64, tpu.core_type = #tpu.core_type<tc>, window_params = [{transform_indices = @transform_0, window_bounds = array<i64: 1, 9, 9, 64>}, {transform_indices = @transform_1, window_bounds = array<i64: 1, 9, 9, 64>}, {transform_indices = @transform_2, window_bounds = array<i64: 1, 9, 9, 64>}, {transform_indices = @transform_3, window_bounds = array<i64: 1, 9, 9, 64>}, {transform_indices = @transform_4, window_bounds = array<i64: 1, 8, 8, 64>}]} {
    %c0 = arith.constant 0 : index
    %c0_0 = arith.constant 0 : index
    %c0_1 = arith.constant 0 : index
    %c0_2 = arith.constant 0 : index
    %0 = vector.load %arg1[%c0, %c0_0, %c0_1, %c0_2] : memref<1x9x9x64xbf16, #tpu.memory_space<vmem>>, vector<1x8x8x64xbf16>
    %1 = vector.shape_cast %0 : vector<1x8x8x64xbf16> to vector<8x8x64xbf16>
    %c0_3 = arith.constant 0 : index
    %c0_4 = arith.constant 0 : index
    %c1 = arith.constant 1 : index
    %c0_5 = arith.constant 0 : index
    %2 = vector.load %arg1[%c0_3, %c0_4, %c1, %c0_5] : memref<1x9x9x64xbf16, #tpu.memory_space<vmem>>, vector<1x8x8x64xbf16>
    %3 = vector.shape_cast %2 : vector<1x8x8x64xbf16> to vector<8x8x64xbf16>
    %4 = arith.maximumf %1, %3 : vector<8x8x64xbf16>
    %c0_6 = arith.constant 0 : index
    %c1_7 = arith.constant 1 : index
    %c0_8 = arith.constant 0 : index
    %c0_9 = arith.constant 0 : index
    %5 = vector.load %arg1[%c0_6, %c1_7, %c0_8, %c0_9] : memref<1x9x9x64xbf16, #tpu.memory_space<vmem>>, vector<1x8x8x64xbf16>
    %6 = vector.shape_cast %5 : vector<1x8x8x64xbf16> to vector<8x8x64xbf16>
    %7 = arith.maximumf %4, %6 : vector<8x8x64xbf16>
    %c0_10 = arith.constant 0 : index
    %c1_11 = arith.constant 1 : index
    %c1_12 = arith.constant 1 : index
    %c0_13 = arith.constant 0 : index
    %8 = vector.load %arg1[%c0_10, %c1_11, %c1_12, %c0_13] : memref<1x9x9x64xbf16, #tpu.memory_space<vmem>>, vector<1x8x8x64xbf16>
    %9 = vector.shape_cast %8 : vector<1x8x8x64xbf16> to vector<8x8x64xbf16>
    %10 = arith.maximumf %7, %9 : vector<8x8x64xbf16>
    %c0_14 = arith.constant 0 : index
    %c0_15 = arith.constant 0 : index
    %c0_16 = arith.constant 0 : index
    %c0_17 = arith.constant 0 : index
    %11 = vector.load %arg2[%c0_14, %c0_15, %c0_16, %c0_17] : memref<1x9x9x64xbf16, #tpu.memory_space<vmem>>, vector<1x8x8x64xbf16>
    %12 = vector.shape_cast %11 : vector<1x8x8x64xbf16> to vector<8x8x64xbf16>
    %13 = arith.maximumf %10, %12 : vector<8x8x64xbf16>
    %c0_18 = arith.constant 0 : index
    %c1_19 = arith.constant 1 : index
    %c0_20 = arith.constant 0 : index
    %c0_21 = arith.constant 0 : index
    %14 = vector.load %arg2[%c0_18, %c1_19, %c0_20, %c0_21] : memref<1x9x9x64xbf16, #tpu.memory_space<vmem>>, vector<1x8x8x64xbf16>
    %15 = vector.shape_cast %14 : vector<1x8x8x64xbf16> to vector<8x8x64xbf16>
    %16 = arith.maximumf %13, %15 : vector<8x8x64xbf16>
    %c0_22 = arith.constant 0 : index
    %c0_23 = arith.constant 0 : index
    %c0_24 = arith.constant 0 : index
    %c0_25 = arith.constant 0 : index
    %17 = vector.load %arg3[%c0_22, %c0_23, %c0_24, %c0_25] : memref<1x9x9x64xbf16, #tpu.memory_space<vmem>>, vector<1x8x8x64xbf16>
    %18 = vector.shape_cast %17 : vector<1x8x8x64xbf16> to vector<8x8x64xbf16>
    %19 = arith.maximumf %16, %18 : vector<8x8x64xbf16>
    %c0_26 = arith.constant 0 : index
    %c0_27 = arith.constant 0 : index
    %c1_28 = arith.constant 1 : index
    %c0_29 = arith.constant 0 : index
    %20 = vector.load %arg3[%c0_26, %c0_27, %c1_28, %c0_29] : memref<1x9x9x64xbf16, #tpu.memory_space<vmem>>, vector<1x8x8x64xbf16>
    %21 = vector.shape_cast %20 : vector<1x8x8x64xbf16> to vector<8x8x64xbf16>
    %22 = arith.maximumf %19, %21 : vector<8x8x64xbf16>
    %c0_30 = arith.constant 0 : index
    %c0_31 = arith.constant 0 : index
    %c0_32 = arith.constant 0 : index
    %c0_33 = arith.constant 0 : index
    %23 = vector.load %arg4[%c0_30, %c0_31, %c0_32, %c0_33] : memref<1x9x9x64xbf16, #tpu.memory_space<vmem>>, vector<1x8x8x64xbf16>
    %24 = vector.shape_cast %23 : vector<1x8x8x64xbf16> to vector<8x8x64xbf16>
    %25 = arith.maximumf %22, %24 : vector<8x8x64xbf16>
    %c0_34 = arith.constant 0 : index
    %c0_35 = arith.constant 0 : index
    %c0_36 = arith.constant 0 : index
    %c0_37 = arith.constant 0 : index
    %26 = vector.load %arg5[%c0_34, %c0_35, %c0_36, %c0_37] : memref<1x8x8x64xbf16, #tpu.memory_space<vmem>>, vector<1x8x8x64xbf16>
    %27 = vector.shape_cast %26 : vector<1x8x8x64xbf16> to vector<8x8x64xbf16>
    %28 = vector.shape_cast %25 : vector<8x8x64xbf16> to vector<1x8x8x64xbf16>
    tpu.vector_store %arg5[%c0_34, %c0_35, %c0_36, %c0_37], %28 {strides = array<i32>} : memref<1x8x8x64xbf16, #tpu.memory_space<vmem>>, vector<1x8x8x64xbf16>,
    return
  }
  func.func @transform_0(%arg0: i32) -> (i32, i32, i32, i32) {
    %c0_i32 = arith.constant 0 : i32
    %c0_i32_0 = arith.constant 0 : i32
    %c0_i32_1 = arith.constant 0 : i32
    %c0_i32_2 = arith.constant 0 : i32
    return %arg0, %c0_i32, %c0_i32_0, %c0_i32_1 : i32, i32, i32, i32
  }
  func.func @transform_1(%arg0: i32) -> (i32, i32, i32, i32) {
    %c0_i32 = arith.constant 0 : i32
    %c0_i32_0 = arith.constant 0 : i32
    %c0_i32_1 = arith.constant 0 : i32
    %c0_i32_2 = arith.constant 0 : i32
    return %arg0, %c0_i32, %c0_i32_0, %c0_i32_1 : i32, i32, i32, i32
  }
  func.func @transform_2(%arg0: i32) -> (i32, i32, i32, i32) {
    %c0_i32 = arith.constant 0 : i32
    %c0_i32_0 = arith.constant 0 : i32
    %c0_i32_1 = arith.constant 0 : i32
    %c0_i32_2 = arith.constant 0 : i32
    return %arg0, %c0_i32, %c0_i32_0, %c0_i32_1 : i32, i32, i32, i32
  }
  func.func @transform_3(%arg0: i32) -> (i32, i32, i32, i32) {
    %c0_i32 = arith.constant 0 : i32
    %c0_i32_0 = arith.constant 0 : i32
    %c0_i32_1 = arith.constant 0 : i32
    %c0_i32_2 = arith.constant 0 : i32
    return %arg0, %c0_i32, %c0_i32_0, %c0_i32_1 : i32, i32, i32, i32
  }
  func.func @transform_4(%arg0: i32) -> (i32, i32, i32, i32) {
    %c0_i32 = arith.constant 0 : i32
    %c0_i32_0 = arith.constant 0 : i32
    %c0_i32_1 = arith.constant 0 : i32
    %c0_i32_2 = arith.constant 0 : i32
    return %arg0, %c0_i32, %c0_i32_0, %c0_i32_1 : i32, i32, i32, i32
  }
}

module attributes {stable_mosaic.version = 11 : i64} {
  func.func @_matmul_bn_kernel(%arg0: i32, %arg1: i32, %arg2: i32, %arg3: memref<256x256xbf16, #tpu.memory_space<vmem>>, %arg4: memref<256x128xbf16, #tpu.memory_space<vmem>>, %arg5: memref<1x128xf32, #tpu.memory_space<vmem>>, %arg6: memref<1x128xf32, #tpu.memory_space<vmem>>, %arg7: memref<256x128xbf16, #tpu.memory_space<vmem>>, %arg8: memref<256x128xf32, #tpu.memory_space<vmem>>) attributes {dimension_semantics = [#tpu.dimension_semantics<parallel>, #tpu.dimension_semantics<parallel>, #tpu.dimension_semantics<arbitrary>], iteration_bounds = array<i64: 2, 1, 1>, scalar_prefetch = 0 : i64, scratch_operands = 1 : i64, tpu.core_type = #tpu.core_type<tc>, window_params = [{transform_indices = @transform_0, window_bounds = array<i64: 256, 256>}, {transform_indices = @transform_1, window_bounds = array<i64: 256, 128>}, {transform_indices = @transform_2, window_bounds = array<i64: 1, 128>}, {transform_indices = @transform_3, window_bounds = array<i64: 1, 128>}, {transform_indices = @transform_4, window_bounds = array<i64: 256, 128>}]} {
    %c0_i32 = arith.constant 0 : i32
    %0 = arith.cmpi eq, %arg2, %c0_i32 : i32
    %1 = arith.extui %0 : i1 to i32
    %c0_i32_0 = arith.constant 0 : i32
    %2 = arith.cmpi ne, %1, %c0_i32_0 : i32
    scf.if %2 {
      %cst_10 = arith.constant 0.000000e+00 : f32
      %12 = vector.broadcast %cst_10 : f32 to vector<256x128xf32>
      %c0_11 = arith.constant 0 : index
      %c0_12 = arith.constant 0 : index
      %13 = vector.load %arg8[%c0_11, %c0_12] : memref<256x128xf32, #tpu.memory_space<vmem>>, vector<256x128xf32>
      tpu.vector_store %arg8[%c0_11, %c0_12], %12 {strides = array<i32>} : memref<256x128xf32, #tpu.memory_space<vmem>>, vector<256x128xf32>,
    } else {
    }
    %c0 = arith.constant 0 : index
    %c0_1 = arith.constant 0 : index
    %3 = vector.load %arg8[%c0, %c0_1] : memref<256x128xf32, #tpu.memory_space<vmem>>, vector<256x128xf32>
    %c0_2 = arith.constant 0 : index
    %c0_3 = arith.constant 0 : index
    %4 = vector.load %arg3[%c0_2, %c0_3] : memref<256x256xbf16, #tpu.memory_space<vmem>>, vector<256x256xbf16>
    %c0_4 = arith.constant 0 : index
    %c0_5 = arith.constant 0 : index
    %5 = vector.load %arg4[%c0_4, %c0_5] : memref<256x128xbf16, #tpu.memory_space<vmem>>, vector<256x128xbf16>
    %cst = arith.constant dense<0.000000e+00> : vector<256x128xf32>
    %6 = tpu.matmul %4, %5, %cst {dimension_numbers = #tpu.dot_dimension_numbers<[1], [0], [0], [1], [0, 0, 1, 1], [], []>} : vector<256x256xbf16>, vector<256x128xbf16>, vector<256x128xf32> -> vector<256x128xf32>
    %7 = arith.addf %3, %6 : vector<256x128xf32>
    %c0_6 = arith.constant 0 : index
    %c0_7 = arith.constant 0 : index
    %8 = vector.load %arg8[%c0_6, %c0_7] : memref<256x128xf32, #tpu.memory_space<vmem>>, vector<256x128xf32>
    tpu.vector_store %arg8[%c0_6, %c0_7], %7 {strides = array<i32>} : memref<256x128xf32, #tpu.memory_space<vmem>>, vector<256x128xf32>,
    %c0_i32_8 = arith.constant 0 : i32
    %9 = arith.cmpi eq, %arg2, %c0_i32_8 : i32
    %10 = arith.extui %9 : i1 to i32
    %c0_i32_9 = arith.constant 0 : i32
    %11 = arith.cmpi ne, %10, %c0_i32_9 : i32
    scf.if %11 {
      %c0_10 = arith.constant 0 : index
      %c0_11 = arith.constant 0 : index
      %12 = vector.load %arg8[%c0_10, %c0_11] : memref<256x128xf32, #tpu.memory_space<vmem>>, vector<256x128xf32>
      %c0_12 = arith.constant 0 : index
      %c0_13 = arith.constant 0 : index
      %13 = vector.load %arg5[%c0_12, %c0_13] : memref<1x128xf32, #tpu.memory_space<vmem>>, vector<1x128xf32>
      %14 = vector.broadcast %13 : vector<1x128xf32> to vector<256x128xf32>
      %15 = arith.mulf %12, %14 : vector<256x128xf32>
      %c0_14 = arith.constant 0 : index
      %c0_15 = arith.constant 0 : index
      %16 = vector.load %arg6[%c0_14, %c0_15] : memref<1x128xf32, #tpu.memory_space<vmem>>, vector<1x128xf32>
      %17 = vector.broadcast %16 : vector<1x128xf32> to vector<256x128xf32>
      %18 = arith.addf %15, %17 : vector<256x128xf32>
      %cst_16 = arith.constant 0.000000e+00 : f32
      %19 = vector.broadcast %cst_16 : f32 to vector<256x128xf32>
      %20 = arith.maximumf %18, %19 : vector<256x128xf32>
      %21 = arith.truncf %20 : vector<256x128xf32> to vector<256x128xbf16>
      %c0_17 = arith.constant 0 : index
      %c0_18 = arith.constant 0 : index
      %22 = vector.load %arg7[%c0_17, %c0_18] : memref<256x128xbf16, #tpu.memory_space<vmem>>, vector<256x128xbf16>
      tpu.vector_store %arg7[%c0_17, %c0_18], %21 {strides = array<i32>} : memref<256x128xbf16, #tpu.memory_space<vmem>>, vector<256x128xbf16>,
    } else {
    }
    return
  }
  func.func @transform_0(%arg0: i32, %arg1: i32, %arg2: i32) -> (i32, i32) {
    %c0_i32 = arith.constant 0 : i32
    return %arg0, %arg2 : i32, i32
  }
  func.func @transform_1(%arg0: i32, %arg1: i32, %arg2: i32) -> (i32, i32) {
    %c0_i32 = arith.constant 0 : i32
    return %arg2, %arg1 : i32, i32
  }
  func.func @transform_2(%arg0: i32, %arg1: i32, %arg2: i32) -> (i32, i32) {
    %c0_i32 = arith.constant 0 : i32
    %c0_i32_0 = arith.constant 0 : i32
    return %c0_i32, %arg1 : i32, i32
  }
  func.func @transform_3(%arg0: i32, %arg1: i32, %arg2: i32) -> (i32, i32) {
    %c0_i32 = arith.constant 0 : i32
    %c0_i32_0 = arith.constant 0 : i32
    return %c0_i32, %arg1 : i32, i32
  }
  func.func @transform_4(%arg0: i32, %arg1: i32, %arg2: i32) -> (i32, i32) {
    %c0_i32 = arith.constant 0 : i32
    return %arg0, %arg1 : i32, i32
  }
}

module attributes {stable_mosaic.version = 11 : i64} {
  func.func @_matmul_bn_kernel(%arg0: i32, %arg1: i32, %arg2: i32, %arg3: memref<64x640xbf16, #tpu.memory_space<vmem>>, %arg4: memref<640x128xbf16, #tpu.memory_space<vmem>>, %arg5: memref<1x128xf32, #tpu.memory_space<vmem>>, %arg6: memref<1x128xf32, #tpu.memory_space<vmem>>, %arg7: memref<64x128xbf16, #tpu.memory_space<vmem>>, %arg8: memref<64x128xf32, #tpu.memory_space<vmem>>) attributes {dimension_semantics = [#tpu.dimension_semantics<parallel>, #tpu.dimension_semantics<parallel>, #tpu.dimension_semantics<arbitrary>], iteration_bounds = array<i64: 2, 1, 1>, scalar_prefetch = 0 : i64, scratch_operands = 1 : i64, tpu.core_type = #tpu.core_type<tc>, window_params = [{transform_indices = @transform_0, window_bounds = array<i64: 64, 640>}, {transform_indices = @transform_1, window_bounds = array<i64: 640, 128>}, {transform_indices = @transform_2, window_bounds = array<i64: 1, 128>}, {transform_indices = @transform_3, window_bounds = array<i64: 1, 128>}, {transform_indices = @transform_4, window_bounds = array<i64: 64, 128>}]} {
    %c0_i32 = arith.constant 0 : i32
    %0 = arith.cmpi eq, %arg2, %c0_i32 : i32
    %1 = arith.extui %0 : i1 to i32
    %c0_i32_0 = arith.constant 0 : i32
    %2 = arith.cmpi ne, %1, %c0_i32_0 : i32
    scf.if %2 {
      %cst_10 = arith.constant 0.000000e+00 : f32
      %12 = vector.broadcast %cst_10 : f32 to vector<64x128xf32>
      %c0_11 = arith.constant 0 : index
      %c0_12 = arith.constant 0 : index
      %13 = vector.load %arg8[%c0_11, %c0_12] : memref<64x128xf32, #tpu.memory_space<vmem>>, vector<64x128xf32>
      tpu.vector_store %arg8[%c0_11, %c0_12], %12 {strides = array<i32>} : memref<64x128xf32, #tpu.memory_space<vmem>>, vector<64x128xf32>,
    } else {
    }
    %c0 = arith.constant 0 : index
    %c0_1 = arith.constant 0 : index
    %3 = vector.load %arg8[%c0, %c0_1] : memref<64x128xf32, #tpu.memory_space<vmem>>, vector<64x128xf32>
    %c0_2 = arith.constant 0 : index
    %c0_3 = arith.constant 0 : index
    %4 = vector.load %arg3[%c0_2, %c0_3] : memref<64x640xbf16, #tpu.memory_space<vmem>>, vector<64x640xbf16>
    %c0_4 = arith.constant 0 : index
    %c0_5 = arith.constant 0 : index
    %5 = vector.load %arg4[%c0_4, %c0_5] : memref<640x128xbf16, #tpu.memory_space<vmem>>, vector<640x128xbf16>
    %cst = arith.constant dense<0.000000e+00> : vector<64x128xf32>
    %6 = tpu.matmul %4, %5, %cst {dimension_numbers = #tpu.dot_dimension_numbers<[1], [0], [0], [1], [0, 0, 1, 1], [], []>} : vector<64x640xbf16>, vector<640x128xbf16>, vector<64x128xf32> -> vector<64x128xf32>
    %7 = arith.addf %3, %6 : vector<64x128xf32>
    %c0_6 = arith.constant 0 : index
    %c0_7 = arith.constant 0 : index
    %8 = vector.load %arg8[%c0_6, %c0_7] : memref<64x128xf32, #tpu.memory_space<vmem>>, vector<64x128xf32>
    tpu.vector_store %arg8[%c0_6, %c0_7], %7 {strides = array<i32>} : memref<64x128xf32, #tpu.memory_space<vmem>>, vector<64x128xf32>,
    %c0_i32_8 = arith.constant 0 : i32
    %9 = arith.cmpi eq, %arg2, %c0_i32_8 : i32
    %10 = arith.extui %9 : i1 to i32
    %c0_i32_9 = arith.constant 0 : i32
    %11 = arith.cmpi ne, %10, %c0_i32_9 : i32
    scf.if %11 {
      %c0_10 = arith.constant 0 : index
      %c0_11 = arith.constant 0 : index
      %12 = vector.load %arg8[%c0_10, %c0_11] : memref<64x128xf32, #tpu.memory_space<vmem>>, vector<64x128xf32>
      %c0_12 = arith.constant 0 : index
      %c0_13 = arith.constant 0 : index
      %13 = vector.load %arg5[%c0_12, %c0_13] : memref<1x128xf32, #tpu.memory_space<vmem>>, vector<1x128xf32>
      %14 = vector.broadcast %13 : vector<1x128xf32> to vector<64x128xf32>
      %15 = arith.mulf %12, %14 : vector<64x128xf32>
      %c0_14 = arith.constant 0 : index
      %c0_15 = arith.constant 0 : index
      %16 = vector.load %arg6[%c0_14, %c0_15] : memref<1x128xf32, #tpu.memory_space<vmem>>, vector<1x128xf32>
      %17 = vector.broadcast %16 : vector<1x128xf32> to vector<64x128xf32>
      %18 = arith.addf %15, %17 : vector<64x128xf32>
      %cst_16 = arith.constant 0.000000e+00 : f32
      %19 = vector.broadcast %cst_16 : f32 to vector<64x128xf32>
      %20 = arith.maximumf %18, %19 : vector<64x128xf32>
      %21 = arith.truncf %20 : vector<64x128xf32> to vector<64x128xbf16>
      %c0_17 = arith.constant 0 : index
      %c0_18 = arith.constant 0 : index
      %22 = vector.load %arg7[%c0_17, %c0_18] : memref<64x128xbf16, #tpu.memory_space<vmem>>, vector<64x128xbf16>
      tpu.vector_store %arg7[%c0_17, %c0_18], %21 {strides = array<i32>} : memref<64x128xbf16, #tpu.memory_space<vmem>>, vector<64x128xbf16>,
    } else {
    }
    return
  }
  func.func @transform_0(%arg0: i32, %arg1: i32, %arg2: i32) -> (i32, i32) {
    %c0_i32 = arith.constant 0 : i32
    return %arg0, %arg2 : i32, i32
  }
  func.func @transform_1(%arg0: i32, %arg1: i32, %arg2: i32) -> (i32, i32) {
    %c0_i32 = arith.constant 0 : i32
    return %arg2, %arg1 : i32, i32
  }
  func.func @transform_2(%arg0: i32, %arg1: i32, %arg2: i32) -> (i32, i32) {
    %c0_i32 = arith.constant 0 : i32
    %c0_i32_0 = arith.constant 0 : i32
    return %c0_i32, %arg1 : i32, i32
  }
  func.func @transform_3(%arg0: i32, %arg1: i32, %arg2: i32) -> (i32, i32) {
    %c0_i32 = arith.constant 0 : i32
    %c0_i32_0 = arith.constant 0 : i32
    return %c0_i32, %arg1 : i32, i32
  }
  func.func @transform_4(%arg0: i32, %arg1: i32, %arg2: i32) -> (i32, i32) {
    %c0_i32 = arith.constant 0 : i32
    return %arg0, %arg1 : i32, i32
  }
}

module attributes {stable_mosaic.version = 11 : i64} {
  func.func @_matmul_bn_kernel(%arg0: i32, %arg1: i32, %arg2: i32, %arg3: memref<64x640xbf16, #tpu.memory_space<vmem>>, %arg4: memref<640x128xbf16, #tpu.memory_space<vmem>>, %arg5: memref<1x128xf32, #tpu.memory_space<vmem>>, %arg6: memref<1x128xf32, #tpu.memory_space<vmem>>, %arg7: memref<64x128xbf16, #tpu.memory_space<vmem>>, %arg8: memref<64x128xbf16, #tpu.memory_space<vmem>>, %arg9: memref<64x128xf32, #tpu.memory_space<vmem>>) attributes {dimension_semantics = [#tpu.dimension_semantics<parallel>, #tpu.dimension_semantics<parallel>, #tpu.dimension_semantics<arbitrary>], iteration_bounds = array<i64: 2, 1, 1>, scalar_prefetch = 0 : i64, scratch_operands = 1 : i64, tpu.core_type = #tpu.core_type<tc>, window_params = [{transform_indices = @transform_0, window_bounds = array<i64: 64, 640>}, {transform_indices = @transform_1, window_bounds = array<i64: 640, 128>}, {transform_indices = @transform_2, window_bounds = array<i64: 1, 128>}, {transform_indices = @transform_3, window_bounds = array<i64: 1, 128>}, {transform_indices = @transform_4, window_bounds = array<i64: 64, 128>}, {transform_indices = @transform_5, window_bounds = array<i64: 64, 128>}]} {
    %c0_i32 = arith.constant 0 : i32
    %0 = arith.cmpi eq, %arg2, %c0_i32 : i32
    %1 = arith.extui %0 : i1 to i32
    %c0_i32_0 = arith.constant 0 : i32
    %2 = arith.cmpi ne, %1, %c0_i32_0 : i32
    scf.if %2 {
      %cst_10 = arith.constant 0.000000e+00 : f32
      %12 = vector.broadcast %cst_10 : f32 to vector<64x128xf32>
      %c0_11 = arith.constant 0 : index
      %c0_12 = arith.constant 0 : index
      %13 = vector.load %arg9[%c0_11, %c0_12] : memref<64x128xf32, #tpu.memory_space<vmem>>, vector<64x128xf32>
      tpu.vector_store %arg9[%c0_11, %c0_12], %12 {strides = array<i32>} : memref<64x128xf32, #tpu.memory_space<vmem>>, vector<64x128xf32>,
    } else {
    }
    %c0 = arith.constant 0 : index
    %c0_1 = arith.constant 0 : index
    %3 = vector.load %arg9[%c0, %c0_1] : memref<64x128xf32, #tpu.memory_space<vmem>>, vector<64x128xf32>
    %c0_2 = arith.constant 0 : index
    %c0_3 = arith.constant 0 : index
    %4 = vector.load %arg3[%c0_2, %c0_3] : memref<64x640xbf16, #tpu.memory_space<vmem>>, vector<64x640xbf16>
    %c0_4 = arith.constant 0 : index
    %c0_5 = arith.constant 0 : index
    %5 = vector.load %arg4[%c0_4, %c0_5] : memref<640x128xbf16, #tpu.memory_space<vmem>>, vector<640x128xbf16>
    %cst = arith.constant dense<0.000000e+00> : vector<64x128xf32>
    %6 = tpu.matmul %4, %5, %cst {dimension_numbers = #tpu.dot_dimension_numbers<[1], [0], [0], [1], [0, 0, 1, 1], [], []>} : vector<64x640xbf16>, vector<640x128xbf16>, vector<64x128xf32> -> vector<64x128xf32>
    %7 = arith.addf %3, %6 : vector<64x128xf32>
    %c0_6 = arith.constant 0 : index
    %c0_7 = arith.constant 0 : index
    %8 = vector.load %arg9[%c0_6, %c0_7] : memref<64x128xf32, #tpu.memory_space<vmem>>, vector<64x128xf32>
    tpu.vector_store %arg9[%c0_6, %c0_7], %7 {strides = array<i32>} : memref<64x128xf32, #tpu.memory_space<vmem>>, vector<64x128xf32>,
    %c0_i32_8 = arith.constant 0 : i32
    %9 = arith.cmpi eq, %arg2, %c0_i32_8 : i32
    %10 = arith.extui %9 : i1 to i32
    %c0_i32_9 = arith.constant 0 : i32
    %11 = arith.cmpi ne, %10, %c0_i32_9 : i32
    scf.if %11 {
      %c0_10 = arith.constant 0 : index
      %c0_11 = arith.constant 0 : index
      %12 = vector.load %arg9[%c0_10, %c0_11] : memref<64x128xf32, #tpu.memory_space<vmem>>, vector<64x128xf32>
      %c0_12 = arith.constant 0 : index
      %c0_13 = arith.constant 0 : index
      %13 = vector.load %arg5[%c0_12, %c0_13] : memref<1x128xf32, #tpu.memory_space<vmem>>, vector<1x128xf32>
      %14 = vector.broadcast %13 : vector<1x128xf32> to vector<64x128xf32>
      %15 = arith.mulf %12, %14 : vector<64x128xf32>
      %c0_14 = arith.constant 0 : index
      %c0_15 = arith.constant 0 : index
      %16 = vector.load %arg6[%c0_14, %c0_15] : memref<1x128xf32, #tpu.memory_space<vmem>>, vector<1x128xf32>
      %17 = vector.broadcast %16 : vector<1x128xf32> to vector<64x128xf32>
      %18 = arith.addf %15, %17 : vector<64x128xf32>
      %c0_16 = arith.constant 0 : index
      %c0_17 = arith.constant 0 : index
      %19 = vector.load %arg7[%c0_16, %c0_17] : memref<64x128xbf16, #tpu.memory_space<vmem>>, vector<64x128xbf16>
      %20 = arith.extf %19 : vector<64x128xbf16> to vector<64x128xf32>
      %21 = arith.addf %18, %20 : vector<64x128xf32>
      %cst_18 = arith.constant 0.000000e+00 : f32
      %22 = vector.broadcast %cst_18 : f32 to vector<64x128xf32>
      %23 = arith.maximumf %21, %22 : vector<64x128xf32>
      %24 = arith.truncf %23 : vector<64x128xf32> to vector<64x128xbf16>
      %c0_19 = arith.constant 0 : index
      %c0_20 = arith.constant 0 : index
      %25 = vector.load %arg8[%c0_19, %c0_20] : memref<64x128xbf16, #tpu.memory_space<vmem>>, vector<64x128xbf16>
      tpu.vector_store %arg8[%c0_19, %c0_20], %24 {strides = array<i32>} : memref<64x128xbf16, #tpu.memory_space<vmem>>, vector<64x128xbf16>,
    } else {
    }
    return
  }
  func.func @transform_0(%arg0: i32, %arg1: i32, %arg2: i32) -> (i32, i32) {
    %c0_i32 = arith.constant 0 : i32
    return %arg0, %arg2 : i32, i32
  }
  func.func @transform_1(%arg0: i32, %arg1: i32, %arg2: i32) -> (i32, i32) {
    %c0_i32 = arith.constant 0 : i32
    return %arg2, %arg1 : i32, i32
  }
  func.func @transform_2(%arg0: i32, %arg1: i32, %arg2: i32) -> (i32, i32) {
    %c0_i32 = arith.constant 0 : i32
    %c0_i32_0 = arith.constant 0 : i32
    return %c0_i32, %arg1 : i32, i32
  }
  func.func @transform_3(%arg0: i32, %arg1: i32, %arg2: i32) -> (i32, i32) {
    %c0_i32 = arith.constant 0 : i32
    %c0_i32_0 = arith.constant 0 : i32
    return %c0_i32, %arg1 : i32, i32
  }
  func.func @transform_4(%arg0: i32, %arg1: i32, %arg2: i32) -> (i32, i32) {
    %c0_i32 = arith.constant 0 : i32
    return %arg0, %arg1 : i32, i32
  }
  func.func @transform_5(%arg0: i32, %arg1: i32, %arg2: i32) -> (i32, i32) {
    %c0_i32 = arith.constant 0 : i32
    return %arg0, %arg1 : i32, i32
  }
}

module attributes {stable_mosaic.version = 11 : i64} {
  func.func @_matmul_bn_kernel(%arg0: i32, %arg1: i32, %arg2: i32, %arg3: memref<16x640xbf16, #tpu.memory_space<vmem>>, %arg4: memref<640x128xbf16, #tpu.memory_space<vmem>>, %arg5: memref<1x128xf32, #tpu.memory_space<vmem>>, %arg6: memref<1x128xf32, #tpu.memory_space<vmem>>, %arg7: memref<16x128xbf16, #tpu.memory_space<vmem>>, %arg8: memref<16x128xf32, #tpu.memory_space<vmem>>) attributes {dimension_semantics = [#tpu.dimension_semantics<parallel>, #tpu.dimension_semantics<parallel>, #tpu.dimension_semantics<arbitrary>], iteration_bounds = array<i64: 2, 1, 1>, scalar_prefetch = 0 : i64, scratch_operands = 1 : i64, tpu.core_type = #tpu.core_type<tc>, window_params = [{transform_indices = @transform_0, window_bounds = array<i64: 16, 640>}, {transform_indices = @transform_1, window_bounds = array<i64: 640, 128>}, {transform_indices = @transform_2, window_bounds = array<i64: 1, 128>}, {transform_indices = @transform_3, window_bounds = array<i64: 1, 128>}, {transform_indices = @transform_4, window_bounds = array<i64: 16, 128>}]} {
    %c0_i32 = arith.constant 0 : i32
    %0 = arith.cmpi eq, %arg2, %c0_i32 : i32
    %1 = arith.extui %0 : i1 to i32
    %c0_i32_0 = arith.constant 0 : i32
    %2 = arith.cmpi ne, %1, %c0_i32_0 : i32
    scf.if %2 {
      %cst_10 = arith.constant 0.000000e+00 : f32
      %12 = vector.broadcast %cst_10 : f32 to vector<16x128xf32>
      %c0_11 = arith.constant 0 : index
      %c0_12 = arith.constant 0 : index
      %13 = vector.load %arg8[%c0_11, %c0_12] : memref<16x128xf32, #tpu.memory_space<vmem>>, vector<16x128xf32>
      tpu.vector_store %arg8[%c0_11, %c0_12], %12 {strides = array<i32>} : memref<16x128xf32, #tpu.memory_space<vmem>>, vector<16x128xf32>,
    } else {
    }
    %c0 = arith.constant 0 : index
    %c0_1 = arith.constant 0 : index
    %3 = vector.load %arg8[%c0, %c0_1] : memref<16x128xf32, #tpu.memory_space<vmem>>, vector<16x128xf32>
    %c0_2 = arith.constant 0 : index
    %c0_3 = arith.constant 0 : index
    %4 = vector.load %arg3[%c0_2, %c0_3] : memref<16x640xbf16, #tpu.memory_space<vmem>>, vector<16x640xbf16>
    %c0_4 = arith.constant 0 : index
    %c0_5 = arith.constant 0 : index
    %5 = vector.load %arg4[%c0_4, %c0_5] : memref<640x128xbf16, #tpu.memory_space<vmem>>, vector<640x128xbf16>
    %cst = arith.constant dense<0.000000e+00> : vector<16x128xf32>
    %6 = tpu.matmul %4, %5, %cst {dimension_numbers = #tpu.dot_dimension_numbers<[1], [0], [0], [1], [0, 0, 1, 1], [], []>} : vector<16x640xbf16>, vector<640x128xbf16>, vector<16x128xf32> -> vector<16x128xf32>
    %7 = arith.addf %3, %6 : vector<16x128xf32>
    %c0_6 = arith.constant 0 : index
    %c0_7 = arith.constant 0 : index
    %8 = vector.load %arg8[%c0_6, %c0_7] : memref<16x128xf32, #tpu.memory_space<vmem>>, vector<16x128xf32>
    tpu.vector_store %arg8[%c0_6, %c0_7], %7 {strides = array<i32>} : memref<16x128xf32, #tpu.memory_space<vmem>>, vector<16x128xf32>,
    %c0_i32_8 = arith.constant 0 : i32
    %9 = arith.cmpi eq, %arg2, %c0_i32_8 : i32
    %10 = arith.extui %9 : i1 to i32
    %c0_i32_9 = arith.constant 0 : i32
    %11 = arith.cmpi ne, %10, %c0_i32_9 : i32
    scf.if %11 {
      %c0_10 = arith.constant 0 : index
      %c0_11 = arith.constant 0 : index
      %12 = vector.load %arg8[%c0_10, %c0_11] : memref<16x128xf32, #tpu.memory_space<vmem>>, vector<16x128xf32>
      %c0_12 = arith.constant 0 : index
      %c0_13 = arith.constant 0 : index
      %13 = vector.load %arg5[%c0_12, %c0_13] : memref<1x128xf32, #tpu.memory_space<vmem>>, vector<1x128xf32>
      %14 = vector.broadcast %13 : vector<1x128xf32> to vector<16x128xf32>
      %15 = arith.mulf %12, %14 : vector<16x128xf32>
      %c0_14 = arith.constant 0 : index
      %c0_15 = arith.constant 0 : index
      %16 = vector.load %arg6[%c0_14, %c0_15] : memref<1x128xf32, #tpu.memory_space<vmem>>, vector<1x128xf32>
      %17 = vector.broadcast %16 : vector<1x128xf32> to vector<16x128xf32>
      %18 = arith.addf %15, %17 : vector<16x128xf32>
      %cst_16 = arith.constant 0.000000e+00 : f32
      %19 = vector.broadcast %cst_16 : f32 to vector<16x128xf32>
      %20 = arith.maximumf %18, %19 : vector<16x128xf32>
      %21 = arith.truncf %20 : vector<16x128xf32> to vector<16x128xbf16>
      %c0_17 = arith.constant 0 : index
      %c0_18 = arith.constant 0 : index
      %22 = vector.load %arg7[%c0_17, %c0_18] : memref<16x128xbf16, #tpu.memory_space<vmem>>, vector<16x128xbf16>
      tpu.vector_store %arg7[%c0_17, %c0_18], %21 {strides = array<i32>} : memref<16x128xbf16, #tpu.memory_space<vmem>>, vector<16x128xbf16>,
    } else {
    }
    return
  }
  func.func @transform_0(%arg0: i32, %arg1: i32, %arg2: i32) -> (i32, i32) {
    %c0_i32 = arith.constant 0 : i32
    return %arg0, %arg2 : i32, i32
  }
  func.func @transform_1(%arg0: i32, %arg1: i32, %arg2: i32) -> (i32, i32) {
    %c0_i32 = arith.constant 0 : i32
    return %arg2, %arg1 : i32, i32
  }
  func.func @transform_2(%arg0: i32, %arg1: i32, %arg2: i32) -> (i32, i32) {
    %c0_i32 = arith.constant 0 : i32
    %c0_i32_0 = arith.constant 0 : i32
    return %c0_i32, %arg1 : i32, i32
  }
  func.func @transform_3(%arg0: i32, %arg1: i32, %arg2: i32) -> (i32, i32) {
    %c0_i32 = arith.constant 0 : i32
    %c0_i32_0 = arith.constant 0 : i32
    return %c0_i32, %arg1 : i32, i32
  }
  func.func @transform_4(%arg0: i32, %arg1: i32, %arg2: i32) -> (i32, i32) {
    %c0_i32 = arith.constant 0 : i32
    return %arg0, %arg1 : i32, i32
  }
}

module attributes {stable_mosaic.version = 11 : i64} {
  func.func @_matmul_bn_kernel(%arg0: i32, %arg1: i32, %arg2: i32, %arg3: memref<16x128xbf16, #tpu.memory_space<vmem>>, %arg4: memref<128x128xbf16, #tpu.memory_space<vmem>>, %arg5: memref<1x128xf32, #tpu.memory_space<vmem>>, %arg6: memref<1x128xf32, #tpu.memory_space<vmem>>, %arg7: memref<16x128xbf16, #tpu.memory_space<vmem>>, %arg8: memref<16x128xf32, #tpu.memory_space<vmem>>) attributes {dimension_semantics = [#tpu.dimension_semantics<parallel>, #tpu.dimension_semantics<parallel>, #tpu.dimension_semantics<arbitrary>], iteration_bounds = array<i64: 2, 1, 1>, scalar_prefetch = 0 : i64, scratch_operands = 1 : i64, tpu.core_type = #tpu.core_type<tc>, window_params = [{transform_indices = @transform_0, window_bounds = array<i64: 16, 128>}, {transform_indices = @transform_1, window_bounds = array<i64: 128, 128>}, {transform_indices = @transform_2, window_bounds = array<i64: 1, 128>}, {transform_indices = @transform_3, window_bounds = array<i64: 1, 128>}, {transform_indices = @transform_4, window_bounds = array<i64: 16, 128>}]} {
    %c0_i32 = arith.constant 0 : i32
    %0 = arith.cmpi eq, %arg2, %c0_i32 : i32
    %1 = arith.extui %0 : i1 to i32
    %c0_i32_0 = arith.constant 0 : i32
    %2 = arith.cmpi ne, %1, %c0_i32_0 : i32
    scf.if %2 {
      %cst_10 = arith.constant 0.000000e+00 : f32
      %12 = vector.broadcast %cst_10 : f32 to vector<16x128xf32>
      %c0_11 = arith.constant 0 : index
      %c0_12 = arith.constant 0 : index
      %13 = vector.load %arg8[%c0_11, %c0_12] : memref<16x128xf32, #tpu.memory_space<vmem>>, vector<16x128xf32>
      tpu.vector_store %arg8[%c0_11, %c0_12], %12 {strides = array<i32>} : memref<16x128xf32, #tpu.memory_space<vmem>>, vector<16x128xf32>,
    } else {
    }
    %c0 = arith.constant 0 : index
    %c0_1 = arith.constant 0 : index
    %3 = vector.load %arg8[%c0, %c0_1] : memref<16x128xf32, #tpu.memory_space<vmem>>, vector<16x128xf32>
    %c0_2 = arith.constant 0 : index
    %c0_3 = arith.constant 0 : index
    %4 = vector.load %arg3[%c0_2, %c0_3] : memref<16x128xbf16, #tpu.memory_space<vmem>>, vector<16x128xbf16>
    %c0_4 = arith.constant 0 : index
    %c0_5 = arith.constant 0 : index
    %5 = vector.load %arg4[%c0_4, %c0_5] : memref<128x128xbf16, #tpu.memory_space<vmem>>, vector<128x128xbf16>
    %cst = arith.constant dense<0.000000e+00> : vector<16x128xf32>
    %6 = tpu.matmul %4, %5, %cst {dimension_numbers = #tpu.dot_dimension_numbers<[1], [0], [0], [1], [0, 0, 1, 1], [], []>} : vector<16x128xbf16>, vector<128x128xbf16>, vector<16x128xf32> -> vector<16x128xf32>
    %7 = arith.addf %3, %6 : vector<16x128xf32>
    %c0_6 = arith.constant 0 : index
    %c0_7 = arith.constant 0 : index
    %8 = vector.load %arg8[%c0_6, %c0_7] : memref<16x128xf32, #tpu.memory_space<vmem>>, vector<16x128xf32>
    tpu.vector_store %arg8[%c0_6, %c0_7], %7 {strides = array<i32>} : memref<16x128xf32, #tpu.memory_space<vmem>>, vector<16x128xf32>,
    %c0_i32_8 = arith.constant 0 : i32
    %9 = arith.cmpi eq, %arg2, %c0_i32_8 : i32
    %10 = arith.extui %9 : i1 to i32
    %c0_i32_9 = arith.constant 0 : i32
    %11 = arith.cmpi ne, %10, %c0_i32_9 : i32
    scf.if %11 {
      %c0_10 = arith.constant 0 : index
      %c0_11 = arith.constant 0 : index
      %12 = vector.load %arg8[%c0_10, %c0_11] : memref<16x128xf32, #tpu.memory_space<vmem>>, vector<16x128xf32>
      %c0_12 = arith.constant 0 : index
      %c0_13 = arith.constant 0 : index
      %13 = vector.load %arg5[%c0_12, %c0_13] : memref<1x128xf32, #tpu.memory_space<vmem>>, vector<1x128xf32>
      %14 = vector.broadcast %13 : vector<1x128xf32> to vector<16x128xf32>
      %15 = arith.mulf %12, %14 : vector<16x128xf32>
      %c0_14 = arith.constant 0 : index
      %c0_15 = arith.constant 0 : index
      %16 = vector.load %arg6[%c0_14, %c0_15] : memref<1x128xf32, #tpu.memory_space<vmem>>, vector<1x128xf32>
      %17 = vector.broadcast %16 : vector<1x128xf32> to vector<16x128xf32>
      %18 = arith.addf %15, %17 : vector<16x128xf32>
      %19 = arith.truncf %18 : vector<16x128xf32> to vector<16x128xbf16>
      %c0_16 = arith.constant 0 : index
      %c0_17 = arith.constant 0 : index
      %20 = vector.load %arg7[%c0_16, %c0_17] : memref<16x128xbf16, #tpu.memory_space<vmem>>, vector<16x128xbf16>
      tpu.vector_store %arg7[%c0_16, %c0_17], %19 {strides = array<i32>} : memref<16x128xbf16, #tpu.memory_space<vmem>>, vector<16x128xbf16>,
    } else {
    }
    return
  }
  func.func @transform_0(%arg0: i32, %arg1: i32, %arg2: i32) -> (i32, i32) {
    %c0_i32 = arith.constant 0 : i32
    return %arg0, %arg2 : i32, i32
  }
  func.func @transform_1(%arg0: i32, %arg1: i32, %arg2: i32) -> (i32, i32) {
    %c0_i32 = arith.constant 0 : i32
    return %arg2, %arg1 : i32, i32
  }
  func.func @transform_2(%arg0: i32, %arg1: i32, %arg2: i32) -> (i32, i32) {
    %c0_i32 = arith.constant 0 : i32
    %c0_i32_0 = arith.constant 0 : i32
    return %c0_i32, %arg1 : i32, i32
  }
  func.func @transform_3(%arg0: i32, %arg1: i32, %arg2: i32) -> (i32, i32) {
    %c0_i32 = arith.constant 0 : i32
    %c0_i32_0 = arith.constant 0 : i32
    return %c0_i32, %arg1 : i32, i32
  }
  func.func @transform_4(%arg0: i32, %arg1: i32, %arg2: i32) -> (i32, i32) {
    %c0_i32 = arith.constant 0 : i32
    return %arg0, %arg1 : i32, i32
  }
}

module attributes {stable_mosaic.version = 11 : i64} {
  func.func @_matmul_bn_kernel(%arg0: i32, %arg1: i32, %arg2: i32, %arg3: memref<16x128xbf16, #tpu.memory_space<vmem>>, %arg4: memref<128x128xbf16, #tpu.memory_space<vmem>>, %arg5: memref<1x128xf32, #tpu.memory_space<vmem>>, %arg6: memref<1x128xf32, #tpu.memory_space<vmem>>, %arg7: memref<16x128xbf16, #tpu.memory_space<vmem>>, %arg8: memref<16x128xbf16, #tpu.memory_space<vmem>>, %arg9: memref<16x128xf32, #tpu.memory_space<vmem>>) attributes {dimension_semantics = [#tpu.dimension_semantics<parallel>, #tpu.dimension_semantics<parallel>, #tpu.dimension_semantics<arbitrary>], iteration_bounds = array<i64: 2, 1, 9>, scalar_prefetch = 0 : i64, scratch_operands = 1 : i64, tpu.core_type = #tpu.core_type<tc>, window_params = [{transform_indices = @transform_0, window_bounds = array<i64: 16, 128>}, {transform_indices = @transform_1, window_bounds = array<i64: 128, 128>}, {transform_indices = @transform_2, window_bounds = array<i64: 1, 128>}, {transform_indices = @transform_3, window_bounds = array<i64: 1, 128>}, {transform_indices = @transform_4, window_bounds = array<i64: 16, 128>}, {transform_indices = @transform_5, window_bounds = array<i64: 16, 128>}]} {
    %c0_i32 = arith.constant 0 : i32
    %0 = arith.cmpi eq, %arg2, %c0_i32 : i32
    %1 = arith.extui %0 : i1 to i32
    %c0_i32_0 = arith.constant 0 : i32
    %2 = arith.cmpi ne, %1, %c0_i32_0 : i32
    scf.if %2 {
      %cst_9 = arith.constant 0.000000e+00 : f32
      %12 = vector.broadcast %cst_9 : f32 to vector<16x128xf32>
      %c0_10 = arith.constant 0 : index
      %c0_11 = arith.constant 0 : index
      %13 = vector.load %arg9[%c0_10, %c0_11] : memref<16x128xf32, #tpu.memory_space<vmem>>, vector<16x128xf32>
      tpu.vector_store %arg9[%c0_10, %c0_11], %12 {strides = array<i32>} : memref<16x128xf32, #tpu.memory_space<vmem>>, vector<16x128xf32>,
    } else {
    }
    %c0 = arith.constant 0 : index
    %c0_1 = arith.constant 0 : index
    %3 = vector.load %arg9[%c0, %c0_1] : memref<16x128xf32, #tpu.memory_space<vmem>>, vector<16x128xf32>
    %c0_2 = arith.constant 0 : index
    %c0_3 = arith.constant 0 : index
    %4 = vector.load %arg3[%c0_2, %c0_3] : memref<16x128xbf16, #tpu.memory_space<vmem>>, vector<16x128xbf16>
    %c0_4 = arith.constant 0 : index
    %c0_5 = arith.constant 0 : index
    %5 = vector.load %arg4[%c0_4, %c0_5] : memref<128x128xbf16, #tpu.memory_space<vmem>>, vector<128x128xbf16>
    %cst = arith.constant dense<0.000000e+00> : vector<16x128xf32>
    %6 = tpu.matmul %4, %5, %cst {dimension_numbers = #tpu.dot_dimension_numbers<[1], [0], [0], [1], [0, 0, 1, 1], [], []>} : vector<16x128xbf16>, vector<128x128xbf16>, vector<16x128xf32> -> vector<16x128xf32>
    %7 = arith.addf %3, %6 : vector<16x128xf32>
    %c0_6 = arith.constant 0 : index
    %c0_7 = arith.constant 0 : index
    %8 = vector.load %arg9[%c0_6, %c0_7] : memref<16x128xf32, #tpu.memory_space<vmem>>, vector<16x128xf32>
    tpu.vector_store %arg9[%c0_6, %c0_7], %7 {strides = array<i32>} : memref<16x128xf32, #tpu.memory_space<vmem>>, vector<16x128xf32>,
    %c8_i32 = arith.constant 8 : i32
    %9 = arith.cmpi eq, %arg2, %c8_i32 : i32
    %10 = arith.extui %9 : i1 to i32
    %c0_i32_8 = arith.constant 0 : i32
    %11 = arith.cmpi ne, %10, %c0_i32_8 : i32
    scf.if %11 {
      %c0_9 = arith.constant 0 : index
      %c0_10 = arith.constant 0 : index
      %12 = vector.load %arg9[%c0_9, %c0_10] : memref<16x128xf32, #tpu.memory_space<vmem>>, vector<16x128xf32>
      %c0_11 = arith.constant 0 : index
      %c0_12 = arith.constant 0 : index
      %13 = vector.load %arg5[%c0_11, %c0_12] : memref<1x128xf32, #tpu.memory_space<vmem>>, vector<1x128xf32>
      %14 = vector.broadcast %13 : vector<1x128xf32> to vector<16x128xf32>
      %15 = arith.mulf %12, %14 : vector<16x128xf32>
      %c0_13 = arith.constant 0 : index
      %c0_14 = arith.constant 0 : index
      %16 = vector.load %arg6[%c0_13, %c0_14] : memref<1x128xf32, #tpu.memory_space<vmem>>, vector<1x128xf32>
      %17 = vector.broadcast %16 : vector<1x128xf32> to vector<16x128xf32>
      %18 = arith.addf %15, %17 : vector<16x128xf32>
      %c0_15 = arith.constant 0 : index
      %c0_16 = arith.constant 0 : index
      %19 = vector.load %arg7[%c0_15, %c0_16] : memref<16x128xbf16, #tpu.memory_space<vmem>>, vector<16x128xbf16>
      %20 = arith.extf %19 : vector<16x128xbf16> to vector<16x128xf32>
      %21 = arith.addf %18, %20 : vector<16x128xf32>
      %cst_17 = arith.constant 0.000000e+00 : f32
      %22 = vector.broadcast %cst_17 : f32 to vector<16x128xf32>
      %23 = arith.maximumf %21, %22 : vector<16x128xf32>
      %24 = arith.truncf %23 : vector<16x128xf32> to vector<16x128xbf16>
      %c0_18 = arith.constant 0 : index
      %c0_19 = arith.constant 0 : index
      %25 = vector.load %arg8[%c0_18, %c0_19] : memref<16x128xbf16, #tpu.memory_space<vmem>>, vector<16x128xbf16>
      tpu.vector_store %arg8[%c0_18, %c0_19], %24 {strides = array<i32>} : memref<16x128xbf16, #tpu.memory_space<vmem>>, vector<16x128xbf16>,
    } else {
    }
    return
  }
  func.func @transform_0(%arg0: i32, %arg1: i32, %arg2: i32) -> (i32, i32) {
    %c0_i32 = arith.constant 0 : i32
    return %arg0, %arg2 : i32, i32
  }
  func.func @transform_1(%arg0: i32, %arg1: i32, %arg2: i32) -> (i32, i32) {
    %c0_i32 = arith.constant 0 : i32
    return %arg2, %arg1 : i32, i32
  }
  func.func @transform_2(%arg0: i32, %arg1: i32, %arg2: i32) -> (i32, i32) {
    %c0_i32 = arith.constant 0 : i32
    %c0_i32_0 = arith.constant 0 : i32
    return %c0_i32, %arg1 : i32, i32
  }
  func.func @transform_3(%arg0: i32, %arg1: i32, %arg2: i32) -> (i32, i32) {
    %c0_i32 = arith.constant 0 : i32
    %c0_i32_0 = arith.constant 0 : i32
    return %c0_i32, %arg1 : i32, i32
  }
  func.func @transform_4(%arg0: i32, %arg1: i32, %arg2: i32) -> (i32, i32) {
    %c0_i32 = arith.constant 0 : i32
    return %arg0, %arg1 : i32, i32
  }
  func.func @transform_5(%arg0: i32, %arg1: i32, %arg2: i32) -> (i32, i32) {
    %c0_i32 = arith.constant 0 : i32
    return %arg0, %arg1 : i32, i32
  }
}

module attributes {stable_mosaic.version = 11 : i64} {
  func.func @_matmul_bn_kernel(%arg0: i32, %arg1: i32, %arg2: i32, %arg3: memref<16x128xbf16, #tpu.memory_space<vmem>>, %arg4: memref<128x128xbf16, #tpu.memory_space<vmem>>, %arg5: memref<1x128xf32, #tpu.memory_space<vmem>>, %arg6: memref<1x128xf32, #tpu.memory_space<vmem>>, %arg7: memref<16x128xbf16, #tpu.memory_space<vmem>>, %arg8: memref<16x128xf32, #tpu.memory_space<vmem>>) attributes {dimension_semantics = [#tpu.dimension_semantics<parallel>, #tpu.dimension_semantics<parallel>, #tpu.dimension_semantics<arbitrary>], iteration_bounds = array<i64: 2, 1, 9>, scalar_prefetch = 0 : i64, scratch_operands = 1 : i64, tpu.core_type = #tpu.core_type<tc>, window_params = [{transform_indices = @transform_0, window_bounds = array<i64: 16, 128>}, {transform_indices = @transform_1, window_bounds = array<i64: 128, 128>}, {transform_indices = @transform_2, window_bounds = array<i64: 1, 128>}, {transform_indices = @transform_3, window_bounds = array<i64: 1, 128>}, {transform_indices = @transform_4, window_bounds = array<i64: 16, 128>}]} {
    %c0_i32 = arith.constant 0 : i32
    %0 = arith.cmpi eq, %arg2, %c0_i32 : i32
    %1 = arith.extui %0 : i1 to i32
    %c0_i32_0 = arith.constant 0 : i32
    %2 = arith.cmpi ne, %1, %c0_i32_0 : i32
    scf.if %2 {
      %cst_9 = arith.constant 0.000000e+00 : f32
      %12 = vector.broadcast %cst_9 : f32 to vector<16x128xf32>
      %c0_10 = arith.constant 0 : index
      %c0_11 = arith.constant 0 : index
      %13 = vector.load %arg8[%c0_10, %c0_11] : memref<16x128xf32, #tpu.memory_space<vmem>>, vector<16x128xf32>
      tpu.vector_store %arg8[%c0_10, %c0_11], %12 {strides = array<i32>} : memref<16x128xf32, #tpu.memory_space<vmem>>, vector<16x128xf32>,
    } else {
    }
    %c0 = arith.constant 0 : index
    %c0_1 = arith.constant 0 : index
    %3 = vector.load %arg8[%c0, %c0_1] : memref<16x128xf32, #tpu.memory_space<vmem>>, vector<16x128xf32>
    %c0_2 = arith.constant 0 : index
    %c0_3 = arith.constant 0 : index
    %4 = vector.load %arg3[%c0_2, %c0_3] : memref<16x128xbf16, #tpu.memory_space<vmem>>, vector<16x128xbf16>
    %c0_4 = arith.constant 0 : index
    %c0_5 = arith.constant 0 : index
    %5 = vector.load %arg4[%c0_4, %c0_5] : memref<128x128xbf16, #tpu.memory_space<vmem>>, vector<128x128xbf16>
    %cst = arith.constant dense<0.000000e+00> : vector<16x128xf32>
    %6 = tpu.matmul %4, %5, %cst {dimension_numbers = #tpu.dot_dimension_numbers<[1], [0], [0], [1], [0, 0, 1, 1], [], []>} : vector<16x128xbf16>, vector<128x128xbf16>, vector<16x128xf32> -> vector<16x128xf32>
    %7 = arith.addf %3, %6 : vector<16x128xf32>
    %c0_6 = arith.constant 0 : index
    %c0_7 = arith.constant 0 : index
    %8 = vector.load %arg8[%c0_6, %c0_7] : memref<16x128xf32, #tpu.memory_space<vmem>>, vector<16x128xf32>
    tpu.vector_store %arg8[%c0_6, %c0_7], %7 {strides = array<i32>} : memref<16x128xf32, #tpu.memory_space<vmem>>, vector<16x128xf32>,
    %c8_i32 = arith.constant 8 : i32
    %9 = arith.cmpi eq, %arg2, %c8_i32 : i32
    %10 = arith.extui %9 : i1 to i32
    %c0_i32_8 = arith.constant 0 : i32
    %11 = arith.cmpi ne, %10, %c0_i32_8 : i32
    scf.if %11 {
      %c0_9 = arith.constant 0 : index
      %c0_10 = arith.constant 0 : index
      %12 = vector.load %arg8[%c0_9, %c0_10] : memref<16x128xf32, #tpu.memory_space<vmem>>, vector<16x128xf32>
      %c0_11 = arith.constant 0 : index
      %c0_12 = arith.constant 0 : index
      %13 = vector.load %arg5[%c0_11, %c0_12] : memref<1x128xf32, #tpu.memory_space<vmem>>, vector<1x128xf32>
      %14 = vector.broadcast %13 : vector<1x128xf32> to vector<16x128xf32>
      %15 = arith.mulf %12, %14 : vector<16x128xf32>
      %c0_13 = arith.constant 0 : index
      %c0_14 = arith.constant 0 : index
      %16 = vector.load %arg6[%c0_13, %c0_14] : memref<1x128xf32, #tpu.memory_space<vmem>>, vector<1x128xf32>
      %17 = vector.broadcast %16 : vector<1x128xf32> to vector<16x128xf32>
      %18 = arith.addf %15, %17 : vector<16x128xf32>
      %cst_15 = arith.constant 0.000000e+00 : f32
      %19 = vector.broadcast %cst_15 : f32 to vector<16x128xf32>
      %20 = arith.maximumf %18, %19 : vector<16x128xf32>
      %21 = arith.truncf %20 : vector<16x128xf32> to vector<16x128xbf16>
      %c0_16 = arith.constant 0 : index
      %c0_17 = arith.constant 0 : index
      %22 = vector.load %arg7[%c0_16, %c0_17] : memref<16x128xbf16, #tpu.memory_space<vmem>>, vector<16x128xbf16>
      tpu.vector_store %arg7[%c0_16, %c0_17], %21 {strides = array<i32>} : memref<16x128xbf16, #tpu.memory_space<vmem>>, vector<16x128xbf16>,
    } else {
    }
    return
  }
  func.func @transform_0(%arg0: i32, %arg1: i32, %arg2: i32) -> (i32, i32) {
    %c0_i32 = arith.constant 0 : i32
    return %arg0, %arg2 : i32, i32
  }
  func.func @transform_1(%arg0: i32, %arg1: i32, %arg2: i32) -> (i32, i32) {
    %c0_i32 = arith.constant 0 : i32
    return %arg2, %arg1 : i32, i32
  }
  func.func @transform_2(%arg0: i32, %arg1: i32, %arg2: i32) -> (i32, i32) {
    %c0_i32 = arith.constant 0 : i32
    %c0_i32_0 = arith.constant 0 : i32
    return %c0_i32, %arg1 : i32, i32
  }
  func.func @transform_3(%arg0: i32, %arg1: i32, %arg2: i32) -> (i32, i32) {
    %c0_i32 = arith.constant 0 : i32
    %c0_i32_0 = arith.constant 0 : i32
    return %c0_i32, %arg1 : i32, i32
  }
  func.func @transform_4(%arg0: i32, %arg1: i32, %arg2: i32) -> (i32, i32) {
    %c0_i32 = arith.constant 0 : i32
    return %arg0, %arg1 : i32, i32
  }
}

module attributes {stable_mosaic.version = 11 : i64} {
  func.func @_matmul_bn_kernel(%arg0: i32, %arg1: i32, %arg2: i32, %arg3: memref<16x128xbf16, #tpu.memory_space<vmem>>, %arg4: memref<128x128xbf16, #tpu.memory_space<vmem>>, %arg5: memref<1x128xf32, #tpu.memory_space<vmem>>, %arg6: memref<1x128xf32, #tpu.memory_space<vmem>>, %arg7: memref<16x128xbf16, #tpu.memory_space<vmem>>, %arg8: memref<16x128xf32, #tpu.memory_space<vmem>>) attributes {dimension_semantics = [#tpu.dimension_semantics<parallel>, #tpu.dimension_semantics<parallel>, #tpu.dimension_semantics<arbitrary>], iteration_bounds = array<i64: 1, 2, 9>, scalar_prefetch = 0 : i64, scratch_operands = 1 : i64, tpu.core_type = #tpu.core_type<tc>, window_params = [{transform_indices = @transform_0, window_bounds = array<i64: 16, 128>}, {transform_indices = @transform_1, window_bounds = array<i64: 128, 128>}, {transform_indices = @transform_2, window_bounds = array<i64: 1, 128>}, {transform_indices = @transform_3, window_bounds = array<i64: 1, 128>}, {transform_indices = @transform_4, window_bounds = array<i64: 16, 128>}]} {
    %c0_i32 = arith.constant 0 : i32
    %0 = arith.cmpi eq, %arg2, %c0_i32 : i32
    %1 = arith.extui %0 : i1 to i32
    %c0_i32_0 = arith.constant 0 : i32
    %2 = arith.cmpi ne, %1, %c0_i32_0 : i32
    scf.if %2 {
      %cst_9 = arith.constant 0.000000e+00 : f32
      %12 = vector.broadcast %cst_9 : f32 to vector<16x128xf32>
      %c0_10 = arith.constant 0 : index
      %c0_11 = arith.constant 0 : index
      %13 = vector.load %arg8[%c0_10, %c0_11] : memref<16x128xf32, #tpu.memory_space<vmem>>, vector<16x128xf32>
      tpu.vector_store %arg8[%c0_10, %c0_11], %12 {strides = array<i32>} : memref<16x128xf32, #tpu.memory_space<vmem>>, vector<16x128xf32>,
    } else {
    }
    %c0 = arith.constant 0 : index
    %c0_1 = arith.constant 0 : index
    %3 = vector.load %arg8[%c0, %c0_1] : memref<16x128xf32, #tpu.memory_space<vmem>>, vector<16x128xf32>
    %c0_2 = arith.constant 0 : index
    %c0_3 = arith.constant 0 : index
    %4 = vector.load %arg3[%c0_2, %c0_3] : memref<16x128xbf16, #tpu.memory_space<vmem>>, vector<16x128xbf16>
    %c0_4 = arith.constant 0 : index
    %c0_5 = arith.constant 0 : index
    %5 = vector.load %arg4[%c0_4, %c0_5] : memref<128x128xbf16, #tpu.memory_space<vmem>>, vector<128x128xbf16>
    %cst = arith.constant dense<0.000000e+00> : vector<16x128xf32>
    %6 = tpu.matmul %4, %5, %cst {dimension_numbers = #tpu.dot_dimension_numbers<[1], [0], [0], [1], [0, 0, 1, 1], [], []>} : vector<16x128xbf16>, vector<128x128xbf16>, vector<16x128xf32> -> vector<16x128xf32>
    %7 = arith.addf %3, %6 : vector<16x128xf32>
    %c0_6 = arith.constant 0 : index
    %c0_7 = arith.constant 0 : index
    %8 = vector.load %arg8[%c0_6, %c0_7] : memref<16x128xf32, #tpu.memory_space<vmem>>, vector<16x128xf32>
    tpu.vector_store %arg8[%c0_6, %c0_7], %7 {strides = array<i32>} : memref<16x128xf32, #tpu.memory_space<vmem>>, vector<16x128xf32>,
    %c8_i32 = arith.constant 8 : i32
    %9 = arith.cmpi eq, %arg2, %c8_i32 : i32
    %10 = arith.extui %9 : i1 to i32
    %c0_i32_8 = arith.constant 0 : i32
    %11 = arith.cmpi ne, %10, %c0_i32_8 : i32
    scf.if %11 {
      %c0_9 = arith.constant 0 : index
      %c0_10 = arith.constant 0 : index
      %12 = vector.load %arg8[%c0_9, %c0_10] : memref<16x128xf32, #tpu.memory_space<vmem>>, vector<16x128xf32>
      %c0_11 = arith.constant 0 : index
      %c0_12 = arith.constant 0 : index
      %13 = vector.load %arg5[%c0_11, %c0_12] : memref<1x128xf32, #tpu.memory_space<vmem>>, vector<1x128xf32>
      %14 = vector.broadcast %13 : vector<1x128xf32> to vector<16x128xf32>
      %15 = arith.mulf %12, %14 : vector<16x128xf32>
      %c0_13 = arith.constant 0 : index
      %c0_14 = arith.constant 0 : index
      %16 = vector.load %arg6[%c0_13, %c0_14] : memref<1x128xf32, #tpu.memory_space<vmem>>, vector<1x128xf32>
      %17 = vector.broadcast %16 : vector<1x128xf32> to vector<16x128xf32>
      %18 = arith.addf %15, %17 : vector<16x128xf32>
      %cst_15 = arith.constant 0.000000e+00 : f32
      %19 = vector.broadcast %cst_15 : f32 to vector<16x128xf32>
      %20 = arith.maximumf %18, %19 : vector<16x128xf32>
      %21 = arith.truncf %20 : vector<16x128xf32> to vector<16x128xbf16>
      %c0_16 = arith.constant 0 : index
      %c0_17 = arith.constant 0 : index
      %22 = vector.load %arg7[%c0_16, %c0_17] : memref<16x128xbf16, #tpu.memory_space<vmem>>, vector<16x128xbf16>
      tpu.vector_store %arg7[%c0_16, %c0_17], %21 {strides = array<i32>} : memref<16x128xbf16, #tpu.memory_space<vmem>>, vector<16x128xbf16>,
    } else {
    }
    return
  }
  func.func @transform_0(%arg0: i32, %arg1: i32, %arg2: i32) -> (i32, i32) {
    %c0_i32 = arith.constant 0 : i32
    return %arg0, %arg2 : i32, i32
  }
  func.func @transform_1(%arg0: i32, %arg1: i32, %arg2: i32) -> (i32, i32) {
    %c0_i32 = arith.constant 0 : i32
    return %arg2, %arg1 : i32, i32
  }
  func.func @transform_2(%arg0: i32, %arg1: i32, %arg2: i32) -> (i32, i32) {
    %c0_i32 = arith.constant 0 : i32
    %c0_i32_0 = arith.constant 0 : i32
    return %c0_i32, %arg1 : i32, i32
  }
  func.func @transform_3(%arg0: i32, %arg1: i32, %arg2: i32) -> (i32, i32) {
    %c0_i32 = arith.constant 0 : i32
    %c0_i32_0 = arith.constant 0 : i32
    return %c0_i32, %arg1 : i32, i32
  }
  func.func @transform_4(%arg0: i32, %arg1: i32, %arg2: i32) -> (i32, i32) {
    %c0_i32 = arith.constant 0 : i32
    return %arg0, %arg1 : i32, i32
  }
}

module attributes {stable_mosaic.version = 11 : i64} {
  func.func @_matmul_bn_kernel(%arg0: i32, %arg1: i32, %arg2: i32, %arg3: memref<16x128xbf16, #tpu.memory_space<vmem>>, %arg4: memref<128x128xbf16, #tpu.memory_space<vmem>>, %arg5: memref<1x128xf32, #tpu.memory_space<vmem>>, %arg6: memref<1x128xf32, #tpu.memory_space<vmem>>, %arg7: memref<16x128xbf16, #tpu.memory_space<vmem>>, %arg8: memref<16x128xf32, #tpu.memory_space<vmem>>) attributes {dimension_semantics = [#tpu.dimension_semantics<parallel>, #tpu.dimension_semantics<parallel>, #tpu.dimension_semantics<arbitrary>], iteration_bounds = array<i64: 1, 2, 1>, scalar_prefetch = 0 : i64, scratch_operands = 1 : i64, tpu.core_type = #tpu.core_type<tc>, window_params = [{transform_indices = @transform_0, window_bounds = array<i64: 16, 128>}, {transform_indices = @transform_1, window_bounds = array<i64: 128, 128>}, {transform_indices = @transform_2, window_bounds = array<i64: 1, 128>}, {transform_indices = @transform_3, window_bounds = array<i64: 1, 128>}, {transform_indices = @transform_4, window_bounds = array<i64: 16, 128>}]} {
    %c0_i32 = arith.constant 0 : i32
    %0 = arith.cmpi eq, %arg2, %c0_i32 : i32
    %1 = arith.extui %0 : i1 to i32
    %c0_i32_0 = arith.constant 0 : i32
    %2 = arith.cmpi ne, %1, %c0_i32_0 : i32
    scf.if %2 {
      %cst_10 = arith.constant 0.000000e+00 : f32
      %12 = vector.broadcast %cst_10 : f32 to vector<16x128xf32>
      %c0_11 = arith.constant 0 : index
      %c0_12 = arith.constant 0 : index
      %13 = vector.load %arg8[%c0_11, %c0_12] : memref<16x128xf32, #tpu.memory_space<vmem>>, vector<16x128xf32>
      tpu.vector_store %arg8[%c0_11, %c0_12], %12 {strides = array<i32>} : memref<16x128xf32, #tpu.memory_space<vmem>>, vector<16x128xf32>,
    } else {
    }
    %c0 = arith.constant 0 : index
    %c0_1 = arith.constant 0 : index
    %3 = vector.load %arg8[%c0, %c0_1] : memref<16x128xf32, #tpu.memory_space<vmem>>, vector<16x128xf32>
    %c0_2 = arith.constant 0 : index
    %c0_3 = arith.constant 0 : index
    %4 = vector.load %arg3[%c0_2, %c0_3] : memref<16x128xbf16, #tpu.memory_space<vmem>>, vector<16x128xbf16>
    %c0_4 = arith.constant 0 : index
    %c0_5 = arith.constant 0 : index
    %5 = vector.load %arg4[%c0_4, %c0_5] : memref<128x128xbf16, #tpu.memory_space<vmem>>, vector<128x128xbf16>
    %cst = arith.constant dense<0.000000e+00> : vector<16x128xf32>
    %6 = tpu.matmul %4, %5, %cst {dimension_numbers = #tpu.dot_dimension_numbers<[1], [0], [0], [1], [0, 0, 1, 1], [], []>} : vector<16x128xbf16>, vector<128x128xbf16>, vector<16x128xf32> -> vector<16x128xf32>
    %7 = arith.addf %3, %6 : vector<16x128xf32>
    %c0_6 = arith.constant 0 : index
    %c0_7 = arith.constant 0 : index
    %8 = vector.load %arg8[%c0_6, %c0_7] : memref<16x128xf32, #tpu.memory_space<vmem>>, vector<16x128xf32>
    tpu.vector_store %arg8[%c0_6, %c0_7], %7 {strides = array<i32>} : memref<16x128xf32, #tpu.memory_space<vmem>>, vector<16x128xf32>,
    %c0_i32_8 = arith.constant 0 : i32
    %9 = arith.cmpi eq, %arg2, %c0_i32_8 : i32
    %10 = arith.extui %9 : i1 to i32
    %c0_i32_9 = arith.constant 0 : i32
    %11 = arith.cmpi ne, %10, %c0_i32_9 : i32
    scf.if %11 {
      %c0_10 = arith.constant 0 : index
      %c0_11 = arith.constant 0 : index
      %12 = vector.load %arg8[%c0_10, %c0_11] : memref<16x128xf32, #tpu.memory_space<vmem>>, vector<16x128xf32>
      %c0_12 = arith.constant 0 : index
      %c0_13 = arith.constant 0 : index
      %13 = vector.load %arg5[%c0_12, %c0_13] : memref<1x128xf32, #tpu.memory_space<vmem>>, vector<1x128xf32>
      %14 = vector.broadcast %13 : vector<1x128xf32> to vector<16x128xf32>
      %15 = arith.mulf %12, %14 : vector<16x128xf32>
      %c0_14 = arith.constant 0 : index
      %c0_15 = arith.constant 0 : index
      %16 = vector.load %arg6[%c0_14, %c0_15] : memref<1x128xf32, #tpu.memory_space<vmem>>, vector<1x128xf32>
      %17 = vector.broadcast %16 : vector<1x128xf32> to vector<16x128xf32>
      %18 = arith.addf %15, %17 : vector<16x128xf32>
      %19 = arith.truncf %18 : vector<16x128xf32> to vector<16x128xbf16>
      %c0_16 = arith.constant 0 : index
      %c0_17 = arith.constant 0 : index
      %20 = vector.load %arg7[%c0_16, %c0_17] : memref<16x128xbf16, #tpu.memory_space<vmem>>, vector<16x128xbf16>
      tpu.vector_store %arg7[%c0_16, %c0_17], %19 {strides = array<i32>} : memref<16x128xbf16, #tpu.memory_space<vmem>>, vector<16x128xbf16>,
    } else {
    }
    return
  }
  func.func @transform_0(%arg0: i32, %arg1: i32, %arg2: i32) -> (i32, i32) {
    %c0_i32 = arith.constant 0 : i32
    return %arg0, %arg2 : i32, i32
  }
  func.func @transform_1(%arg0: i32, %arg1: i32, %arg2: i32) -> (i32, i32) {
    %c0_i32 = arith.constant 0 : i32
    return %arg2, %arg1 : i32, i32
  }
  func.func @transform_2(%arg0: i32, %arg1: i32, %arg2: i32) -> (i32, i32) {
    %c0_i32 = arith.constant 0 : i32
    %c0_i32_0 = arith.constant 0 : i32
    return %c0_i32, %arg1 : i32, i32
  }
  func.func @transform_3(%arg0: i32, %arg1: i32, %arg2: i32) -> (i32, i32) {
    %c0_i32 = arith.constant 0 : i32
    %c0_i32_0 = arith.constant 0 : i32
    return %c0_i32, %arg1 : i32, i32
  }
  func.func @transform_4(%arg0: i32, %arg1: i32, %arg2: i32) -> (i32, i32) {
    %c0_i32 = arith.constant 0 : i32
    return %arg0, %arg1 : i32, i32
  }
}

module attributes {stable_mosaic.version = 11 : i64} {
  func.func @_matmul_bn_kernel(%arg0: i32, %arg1: i32, %arg2: i32, %arg3: memref<16x256xbf16, #tpu.memory_space<vmem>>, %arg4: memref<256x128xbf16, #tpu.memory_space<vmem>>, %arg5: memref<1x128xf32, #tpu.memory_space<vmem>>, %arg6: memref<1x128xf32, #tpu.memory_space<vmem>>, %arg7: memref<16x128xbf16, #tpu.memory_space<vmem>>, %arg8: memref<16x128xbf16, #tpu.memory_space<vmem>>, %arg9: memref<16x128xf32, #tpu.memory_space<vmem>>) attributes {dimension_semantics = [#tpu.dimension_semantics<parallel>, #tpu.dimension_semantics<parallel>, #tpu.dimension_semantics<arbitrary>], iteration_bounds = array<i64: 1, 2, 9>, scalar_prefetch = 0 : i64, scratch_operands = 1 : i64, tpu.core_type = #tpu.core_type<tc>, window_params = [{transform_indices = @transform_0, window_bounds = array<i64: 16, 256>}, {transform_indices = @transform_1, window_bounds = array<i64: 256, 128>}, {transform_indices = @transform_2, window_bounds = array<i64: 1, 128>}, {transform_indices = @transform_3, window_bounds = array<i64: 1, 128>}, {transform_indices = @transform_4, window_bounds = array<i64: 16, 128>}, {transform_indices = @transform_5, window_bounds = array<i64: 16, 128>}]} {
    %c0_i32 = arith.constant 0 : i32
    %0 = arith.cmpi eq, %arg2, %c0_i32 : i32
    %1 = arith.extui %0 : i1 to i32
    %c0_i32_0 = arith.constant 0 : i32
    %2 = arith.cmpi ne, %1, %c0_i32_0 : i32
    scf.if %2 {
      %cst_9 = arith.constant 0.000000e+00 : f32
      %12 = vector.broadcast %cst_9 : f32 to vector<16x128xf32>
      %c0_10 = arith.constant 0 : index
      %c0_11 = arith.constant 0 : index
      %13 = vector.load %arg9[%c0_10, %c0_11] : memref<16x128xf32, #tpu.memory_space<vmem>>, vector<16x128xf32>
      tpu.vector_store %arg9[%c0_10, %c0_11], %12 {strides = array<i32>} : memref<16x128xf32, #tpu.memory_space<vmem>>, vector<16x128xf32>,
    } else {
    }
    %c0 = arith.constant 0 : index
    %c0_1 = arith.constant 0 : index
    %3 = vector.load %arg9[%c0, %c0_1] : memref<16x128xf32, #tpu.memory_space<vmem>>, vector<16x128xf32>
    %c0_2 = arith.constant 0 : index
    %c0_3 = arith.constant 0 : index
    %4 = vector.load %arg3[%c0_2, %c0_3] : memref<16x256xbf16, #tpu.memory_space<vmem>>, vector<16x256xbf16>
    %c0_4 = arith.constant 0 : index
    %c0_5 = arith.constant 0 : index
    %5 = vector.load %arg4[%c0_4, %c0_5] : memref<256x128xbf16, #tpu.memory_space<vmem>>, vector<256x128xbf16>
    %cst = arith.constant dense<0.000000e+00> : vector<16x128xf32>
    %6 = tpu.matmul %4, %5, %cst {dimension_numbers = #tpu.dot_dimension_numbers<[1], [0], [0], [1], [0, 0, 1, 1], [], []>} : vector<16x256xbf16>, vector<256x128xbf16>, vector<16x128xf32> -> vector<16x128xf32>
    %7 = arith.addf %3, %6 : vector<16x128xf32>
    %c0_6 = arith.constant 0 : index
    %c0_7 = arith.constant 0 : index
    %8 = vector.load %arg9[%c0_6, %c0_7] : memref<16x128xf32, #tpu.memory_space<vmem>>, vector<16x128xf32>
    tpu.vector_store %arg9[%c0_6, %c0_7], %7 {strides = array<i32>} : memref<16x128xf32, #tpu.memory_space<vmem>>, vector<16x128xf32>,
    %c8_i32 = arith.constant 8 : i32
    %9 = arith.cmpi eq, %arg2, %c8_i32 : i32
    %10 = arith.extui %9 : i1 to i32
    %c0_i32_8 = arith.constant 0 : i32
    %11 = arith.cmpi ne, %10, %c0_i32_8 : i32
    scf.if %11 {
      %c0_9 = arith.constant 0 : index
      %c0_10 = arith.constant 0 : index
      %12 = vector.load %arg9[%c0_9, %c0_10] : memref<16x128xf32, #tpu.memory_space<vmem>>, vector<16x128xf32>
      %c0_11 = arith.constant 0 : index
      %c0_12 = arith.constant 0 : index
      %13 = vector.load %arg5[%c0_11, %c0_12] : memref<1x128xf32, #tpu.memory_space<vmem>>, vector<1x128xf32>
      %14 = vector.broadcast %13 : vector<1x128xf32> to vector<16x128xf32>
      %15 = arith.mulf %12, %14 : vector<16x128xf32>
      %c0_13 = arith.constant 0 : index
      %c0_14 = arith.constant 0 : index
      %16 = vector.load %arg6[%c0_13, %c0_14] : memref<1x128xf32, #tpu.memory_space<vmem>>, vector<1x128xf32>
      %17 = vector.broadcast %16 : vector<1x128xf32> to vector<16x128xf32>
      %18 = arith.addf %15, %17 : vector<16x128xf32>
      %c0_15 = arith.constant 0 : index
      %c0_16 = arith.constant 0 : index
      %19 = vector.load %arg7[%c0_15, %c0_16] : memref<16x128xbf16, #tpu.memory_space<vmem>>, vector<16x128xbf16>
      %20 = arith.extf %19 : vector<16x128xbf16> to vector<16x128xf32>
      %21 = arith.addf %18, %20 : vector<16x128xf32>
      %cst_17 = arith.constant 0.000000e+00 : f32
      %22 = vector.broadcast %cst_17 : f32 to vector<16x128xf32>
      %23 = arith.maximumf %21, %22 : vector<16x128xf32>
      %24 = arith.truncf %23 : vector<16x128xf32> to vector<16x128xbf16>
      %c0_18 = arith.constant 0 : index
      %c0_19 = arith.constant 0 : index
      %25 = vector.load %arg8[%c0_18, %c0_19] : memref<16x128xbf16, #tpu.memory_space<vmem>>, vector<16x128xbf16>
      tpu.vector_store %arg8[%c0_18, %c0_19], %24 {strides = array<i32>} : memref<16x128xbf16, #tpu.memory_space<vmem>>, vector<16x128xbf16>,
    } else {
    }
    return
  }
  func.func @transform_0(%arg0: i32, %arg1: i32, %arg2: i32) -> (i32, i32) {
    %c0_i32 = arith.constant 0 : i32
    return %arg0, %arg2 : i32, i32
  }
  func.func @transform_1(%arg0: i32, %arg1: i32, %arg2: i32) -> (i32, i32) {
    %c0_i32 = arith.constant 0 : i32
    return %arg2, %arg1 : i32, i32
  }
  func.func @transform_2(%arg0: i32, %arg1: i32, %arg2: i32) -> (i32, i32) {
    %c0_i32 = arith.constant 0 : i32
    %c0_i32_0 = arith.constant 0 : i32
    return %c0_i32, %arg1 : i32, i32
  }
  func.func @transform_3(%arg0: i32, %arg1: i32, %arg2: i32) -> (i32, i32) {
    %c0_i32 = arith.constant 0 : i32
    %c0_i32_0 = arith.constant 0 : i32
    return %c0_i32, %arg1 : i32, i32
  }
  func.func @transform_4(%arg0: i32, %arg1: i32, %arg2: i32) -> (i32, i32) {
    %c0_i32 = arith.constant 0 : i32
    return %arg0, %arg1 : i32, i32
  }
  func.func @transform_5(%arg0: i32, %arg1: i32, %arg2: i32) -> (i32, i32) {
    %c0_i32 = arith.constant 0 : i32
    return %arg0, %arg1 : i32, i32
  }
}

module attributes {stable_mosaic.version = 11 : i64} {
  func.func @_matmul_bn_kernel(%arg0: i32, %arg1: i32, %arg2: i32, %arg3: memref<16x256xbf16, #tpu.memory_space<vmem>>, %arg4: memref<256x128xbf16, #tpu.memory_space<vmem>>, %arg5: memref<1x128xf32, #tpu.memory_space<vmem>>, %arg6: memref<1x128xf32, #tpu.memory_space<vmem>>, %arg7: memref<16x128xbf16, #tpu.memory_space<vmem>>, %arg8: memref<16x128xf32, #tpu.memory_space<vmem>>) attributes {dimension_semantics = [#tpu.dimension_semantics<parallel>, #tpu.dimension_semantics<parallel>, #tpu.dimension_semantics<arbitrary>], iteration_bounds = array<i64: 1, 2, 9>, scalar_prefetch = 0 : i64, scratch_operands = 1 : i64, tpu.core_type = #tpu.core_type<tc>, window_params = [{transform_indices = @transform_0, window_bounds = array<i64: 16, 256>}, {transform_indices = @transform_1, window_bounds = array<i64: 256, 128>}, {transform_indices = @transform_2, window_bounds = array<i64: 1, 128>}, {transform_indices = @transform_3, window_bounds = array<i64: 1, 128>}, {transform_indices = @transform_4, window_bounds = array<i64: 16, 128>}]} {
    %c0_i32 = arith.constant 0 : i32
    %0 = arith.cmpi eq, %arg2, %c0_i32 : i32
    %1 = arith.extui %0 : i1 to i32
    %c0_i32_0 = arith.constant 0 : i32
    %2 = arith.cmpi ne, %1, %c0_i32_0 : i32
    scf.if %2 {
      %cst_9 = arith.constant 0.000000e+00 : f32
      %12 = vector.broadcast %cst_9 : f32 to vector<16x128xf32>
      %c0_10 = arith.constant 0 : index
      %c0_11 = arith.constant 0 : index
      %13 = vector.load %arg8[%c0_10, %c0_11] : memref<16x128xf32, #tpu.memory_space<vmem>>, vector<16x128xf32>
      tpu.vector_store %arg8[%c0_10, %c0_11], %12 {strides = array<i32>} : memref<16x128xf32, #tpu.memory_space<vmem>>, vector<16x128xf32>,
    } else {
    }
    %c0 = arith.constant 0 : index
    %c0_1 = arith.constant 0 : index
    %3 = vector.load %arg8[%c0, %c0_1] : memref<16x128xf32, #tpu.memory_space<vmem>>, vector<16x128xf32>
    %c0_2 = arith.constant 0 : index
    %c0_3 = arith.constant 0 : index
    %4 = vector.load %arg3[%c0_2, %c0_3] : memref<16x256xbf16, #tpu.memory_space<vmem>>, vector<16x256xbf16>
    %c0_4 = arith.constant 0 : index
    %c0_5 = arith.constant 0 : index
    %5 = vector.load %arg4[%c0_4, %c0_5] : memref<256x128xbf16, #tpu.memory_space<vmem>>, vector<256x128xbf16>
    %cst = arith.constant dense<0.000000e+00> : vector<16x128xf32>
    %6 = tpu.matmul %4, %5, %cst {dimension_numbers = #tpu.dot_dimension_numbers<[1], [0], [0], [1], [0, 0, 1, 1], [], []>} : vector<16x256xbf16>, vector<256x128xbf16>, vector<16x128xf32> -> vector<16x128xf32>
    %7 = arith.addf %3, %6 : vector<16x128xf32>
    %c0_6 = arith.constant 0 : index
    %c0_7 = arith.constant 0 : index
    %8 = vector.load %arg8[%c0_6, %c0_7] : memref<16x128xf32, #tpu.memory_space<vmem>>, vector<16x128xf32>
    tpu.vector_store %arg8[%c0_6, %c0_7], %7 {strides = array<i32>} : memref<16x128xf32, #tpu.memory_space<vmem>>, vector<16x128xf32>,
    %c8_i32 = arith.constant 8 : i32
    %9 = arith.cmpi eq, %arg2, %c8_i32 : i32
    %10 = arith.extui %9 : i1 to i32
    %c0_i32_8 = arith.constant 0 : i32
    %11 = arith.cmpi ne, %10, %c0_i32_8 : i32
    scf.if %11 {
      %c0_9 = arith.constant 0 : index
      %c0_10 = arith.constant 0 : index
      %12 = vector.load %arg8[%c0_9, %c0_10] : memref<16x128xf32, #tpu.memory_space<vmem>>, vector<16x128xf32>
      %c0_11 = arith.constant 0 : index
      %c0_12 = arith.constant 0 : index
      %13 = vector.load %arg5[%c0_11, %c0_12] : memref<1x128xf32, #tpu.memory_space<vmem>>, vector<1x128xf32>
      %14 = vector.broadcast %13 : vector<1x128xf32> to vector<16x128xf32>
      %15 = arith.mulf %12, %14 : vector<16x128xf32>
      %c0_13 = arith.constant 0 : index
      %c0_14 = arith.constant 0 : index
      %16 = vector.load %arg6[%c0_13, %c0_14] : memref<1x128xf32, #tpu.memory_space<vmem>>, vector<1x128xf32>
      %17 = vector.broadcast %16 : vector<1x128xf32> to vector<16x128xf32>
      %18 = arith.addf %15, %17 : vector<16x128xf32>
      %cst_15 = arith.constant 0.000000e+00 : f32
      %19 = vector.broadcast %cst_15 : f32 to vector<16x128xf32>
      %20 = arith.maximumf %18, %19 : vector<16x128xf32>
      %21 = arith.truncf %20 : vector<16x128xf32> to vector<16x128xbf16>
      %c0_16 = arith.constant 0 : index
      %c0_17 = arith.constant 0 : index
      %22 = vector.load %arg7[%c0_16, %c0_17] : memref<16x128xbf16, #tpu.memory_space<vmem>>, vector<16x128xbf16>
      tpu.vector_store %arg7[%c0_16, %c0_17], %21 {strides = array<i32>} : memref<16x128xbf16, #tpu.memory_space<vmem>>, vector<16x128xbf16>,
    } else {
    }
    return
  }
  func.func @transform_0(%arg0: i32, %arg1: i32, %arg2: i32) -> (i32, i32) {
    %c0_i32 = arith.constant 0 : i32
    return %arg0, %arg2 : i32, i32
  }
  func.func @transform_1(%arg0: i32, %arg1: i32, %arg2: i32) -> (i32, i32) {
    %c0_i32 = arith.constant 0 : i32
    return %arg2, %arg1 : i32, i32
  }
  func.func @transform_2(%arg0: i32, %arg1: i32, %arg2: i32) -> (i32, i32) {
    %c0_i32 = arith.constant 0 : i32
    %c0_i32_0 = arith.constant 0 : i32
    return %c0_i32, %arg1 : i32, i32
  }
  func.func @transform_3(%arg0: i32, %arg1: i32, %arg2: i32) -> (i32, i32) {
    %c0_i32 = arith.constant 0 : i32
    %c0_i32_0 = arith.constant 0 : i32
    return %c0_i32, %arg1 : i32, i32
  }
  func.func @transform_4(%arg0: i32, %arg1: i32, %arg2: i32) -> (i32, i32) {
    %c0_i32 = arith.constant 0 : i32
    return %arg0, %arg1 : i32, i32
  }
}

module attributes {stable_mosaic.version = 11 : i64} {
  func.func @_matmul_bn_kernel(%arg0: i32, %arg1: i32, %arg2: i32, %arg3: memref<16x256xbf16, #tpu.memory_space<vmem>>, %arg4: memref<256x256xbf16, #tpu.memory_space<vmem>>, %arg5: memref<1x256xf32, #tpu.memory_space<vmem>>, %arg6: memref<1x256xf32, #tpu.memory_space<vmem>>, %arg7: memref<16x256xbf16, #tpu.memory_space<vmem>>, %arg8: memref<16x256xf32, #tpu.memory_space<vmem>>) attributes {dimension_semantics = [#tpu.dimension_semantics<parallel>, #tpu.dimension_semantics<parallel>, #tpu.dimension_semantics<arbitrary>], iteration_bounds = array<i64: 1, 2, 9>, scalar_prefetch = 0 : i64, scratch_operands = 1 : i64, tpu.core_type = #tpu.core_type<tc>, window_params = [{transform_indices = @transform_0, window_bounds = array<i64: 16, 256>}, {transform_indices = @transform_1, window_bounds = array<i64: 256, 256>}, {transform_indices = @transform_2, window_bounds = array<i64: 1, 256>}, {transform_indices = @transform_3, window_bounds = array<i64: 1, 256>}, {transform_indices = @transform_4, window_bounds = array<i64: 16, 256>}]} {
    %c0_i32 = arith.constant 0 : i32
    %0 = arith.cmpi eq, %arg2, %c0_i32 : i32
    %1 = arith.extui %0 : i1 to i32
    %c0_i32_0 = arith.constant 0 : i32
    %2 = arith.cmpi ne, %1, %c0_i32_0 : i32
    scf.if %2 {
      %cst_9 = arith.constant 0.000000e+00 : f32
      %12 = vector.broadcast %cst_9 : f32 to vector<16x256xf32>
      %c0_10 = arith.constant 0 : index
      %c0_11 = arith.constant 0 : index
      %13 = vector.load %arg8[%c0_10, %c0_11] : memref<16x256xf32, #tpu.memory_space<vmem>>, vector<16x256xf32>
      tpu.vector_store %arg8[%c0_10, %c0_11], %12 {strides = array<i32>} : memref<16x256xf32, #tpu.memory_space<vmem>>, vector<16x256xf32>,
    } else {
    }
    %c0 = arith.constant 0 : index
    %c0_1 = arith.constant 0 : index
    %3 = vector.load %arg8[%c0, %c0_1] : memref<16x256xf32, #tpu.memory_space<vmem>>, vector<16x256xf32>
    %c0_2 = arith.constant 0 : index
    %c0_3 = arith.constant 0 : index
    %4 = vector.load %arg3[%c0_2, %c0_3] : memref<16x256xbf16, #tpu.memory_space<vmem>>, vector<16x256xbf16>
    %c0_4 = arith.constant 0 : index
    %c0_5 = arith.constant 0 : index
    %5 = vector.load %arg4[%c0_4, %c0_5] : memref<256x256xbf16, #tpu.memory_space<vmem>>, vector<256x256xbf16>
    %cst = arith.constant dense<0.000000e+00> : vector<16x256xf32>
    %6 = tpu.matmul %4, %5, %cst {dimension_numbers = #tpu.dot_dimension_numbers<[1], [0], [0], [1], [0, 0, 1, 1], [], []>} : vector<16x256xbf16>, vector<256x256xbf16>, vector<16x256xf32> -> vector<16x256xf32>
    %7 = arith.addf %3, %6 : vector<16x256xf32>
    %c0_6 = arith.constant 0 : index
    %c0_7 = arith.constant 0 : index
    %8 = vector.load %arg8[%c0_6, %c0_7] : memref<16x256xf32, #tpu.memory_space<vmem>>, vector<16x256xf32>
    tpu.vector_store %arg8[%c0_6, %c0_7], %7 {strides = array<i32>} : memref<16x256xf32, #tpu.memory_space<vmem>>, vector<16x256xf32>,
    %c8_i32 = arith.constant 8 : i32
    %9 = arith.cmpi eq, %arg2, %c8_i32 : i32
    %10 = arith.extui %9 : i1 to i32
    %c0_i32_8 = arith.constant 0 : i32
    %11 = arith.cmpi ne, %10, %c0_i32_8 : i32
    scf.if %11 {
      %c0_9 = arith.constant 0 : index
      %c0_10 = arith.constant 0 : index
      %12 = vector.load %arg8[%c0_9, %c0_10] : memref<16x256xf32, #tpu.memory_space<vmem>>, vector<16x256xf32>
      %c0_11 = arith.constant 0 : index
      %c0_12 = arith.constant 0 : index
      %13 = vector.load %arg5[%c0_11, %c0_12] : memref<1x256xf32, #tpu.memory_space<vmem>>, vector<1x256xf32>
      %14 = vector.broadcast %13 : vector<1x256xf32> to vector<16x256xf32>
      %15 = arith.mulf %12, %14 : vector<16x256xf32>
      %c0_13 = arith.constant 0 : index
      %c0_14 = arith.constant 0 : index
      %16 = vector.load %arg6[%c0_13, %c0_14] : memref<1x256xf32, #tpu.memory_space<vmem>>, vector<1x256xf32>
      %17 = vector.broadcast %16 : vector<1x256xf32> to vector<16x256xf32>
      %18 = arith.addf %15, %17 : vector<16x256xf32>
      %cst_15 = arith.constant 0.000000e+00 : f32
      %19 = vector.broadcast %cst_15 : f32 to vector<16x256xf32>
      %20 = arith.maximumf %18, %19 : vector<16x256xf32>
      %21 = arith.truncf %20 : vector<16x256xf32> to vector<16x256xbf16>
      %c0_16 = arith.constant 0 : index
      %c0_17 = arith.constant 0 : index
      %22 = vector.load %arg7[%c0_16, %c0_17] : memref<16x256xbf16, #tpu.memory_space<vmem>>, vector<16x256xbf16>
      tpu.vector_store %arg7[%c0_16, %c0_17], %21 {strides = array<i32>} : memref<16x256xbf16, #tpu.memory_space<vmem>>, vector<16x256xbf16>,
    } else {
    }
    return
  }
  func.func @transform_0(%arg0: i32, %arg1: i32, %arg2: i32) -> (i32, i32) {
    %c0_i32 = arith.constant 0 : i32
    return %arg0, %arg2 : i32, i32
  }
  func.func @transform_1(%arg0: i32, %arg1: i32, %arg2: i32) -> (i32, i32) {
    %c0_i32 = arith.constant 0 : i32
    return %arg2, %arg1 : i32, i32
  }
  func.func @transform_2(%arg0: i32, %arg1: i32, %arg2: i32) -> (i32, i32) {
    %c0_i32 = arith.constant 0 : i32
    %c0_i32_0 = arith.constant 0 : i32
    return %c0_i32, %arg1 : i32, i32
  }
  func.func @transform_3(%arg0: i32, %arg1: i32, %arg2: i32) -> (i32, i32) {
    %c0_i32 = arith.constant 0 : i32
    %c0_i32_0 = arith.constant 0 : i32
    return %c0_i32, %arg1 : i32, i32
  }
  func.func @transform_4(%arg0: i32, %arg1: i32, %arg2: i32) -> (i32, i32) {
    %c0_i32 = arith.constant 0 : i32
    return %arg0, %arg1 : i32, i32
  }
}

module attributes {stable_mosaic.version = 11 : i64} {
  func.func @_matmul_bn_kernel(%arg0: i32, %arg1: i32, %arg2: i32, %arg3: memref<16x256xbf16, #tpu.memory_space<vmem>>, %arg4: memref<256x256xbf16, #tpu.memory_space<vmem>>, %arg5: memref<1x256xf32, #tpu.memory_space<vmem>>, %arg6: memref<1x256xf32, #tpu.memory_space<vmem>>, %arg7: memref<16x256xbf16, #tpu.memory_space<vmem>>, %arg8: memref<16x256xf32, #tpu.memory_space<vmem>>) attributes {dimension_semantics = [#tpu.dimension_semantics<parallel>, #tpu.dimension_semantics<parallel>, #tpu.dimension_semantics<arbitrary>], iteration_bounds = array<i64: 1, 2, 1>, scalar_prefetch = 0 : i64, scratch_operands = 1 : i64, tpu.core_type = #tpu.core_type<tc>, window_params = [{transform_indices = @transform_0, window_bounds = array<i64: 16, 256>}, {transform_indices = @transform_1, window_bounds = array<i64: 256, 256>}, {transform_indices = @transform_2, window_bounds = array<i64: 1, 256>}, {transform_indices = @transform_3, window_bounds = array<i64: 1, 256>}, {transform_indices = @transform_4, window_bounds = array<i64: 16, 256>}]} {
    %c0_i32 = arith.constant 0 : i32
    %0 = arith.cmpi eq, %arg2, %c0_i32 : i32
    %1 = arith.extui %0 : i1 to i32
    %c0_i32_0 = arith.constant 0 : i32
    %2 = arith.cmpi ne, %1, %c0_i32_0 : i32
    scf.if %2 {
      %cst_10 = arith.constant 0.000000e+00 : f32
      %12 = vector.broadcast %cst_10 : f32 to vector<16x256xf32>
      %c0_11 = arith.constant 0 : index
      %c0_12 = arith.constant 0 : index
      %13 = vector.load %arg8[%c0_11, %c0_12] : memref<16x256xf32, #tpu.memory_space<vmem>>, vector<16x256xf32>
      tpu.vector_store %arg8[%c0_11, %c0_12], %12 {strides = array<i32>} : memref<16x256xf32, #tpu.memory_space<vmem>>, vector<16x256xf32>,
    } else {
    }
    %c0 = arith.constant 0 : index
    %c0_1 = arith.constant 0 : index
    %3 = vector.load %arg8[%c0, %c0_1] : memref<16x256xf32, #tpu.memory_space<vmem>>, vector<16x256xf32>
    %c0_2 = arith.constant 0 : index
    %c0_3 = arith.constant 0 : index
    %4 = vector.load %arg3[%c0_2, %c0_3] : memref<16x256xbf16, #tpu.memory_space<vmem>>, vector<16x256xbf16>
    %c0_4 = arith.constant 0 : index
    %c0_5 = arith.constant 0 : index
    %5 = vector.load %arg4[%c0_4, %c0_5] : memref<256x256xbf16, #tpu.memory_space<vmem>>, vector<256x256xbf16>
    %cst = arith.constant dense<0.000000e+00> : vector<16x256xf32>
    %6 = tpu.matmul %4, %5, %cst {dimension_numbers = #tpu.dot_dimension_numbers<[1], [0], [0], [1], [0, 0, 1, 1], [], []>} : vector<16x256xbf16>, vector<256x256xbf16>, vector<16x256xf32> -> vector<16x256xf32>
    %7 = arith.addf %3, %6 : vector<16x256xf32>
    %c0_6 = arith.constant 0 : index
    %c0_7 = arith.constant 0 : index
    %8 = vector.load %arg8[%c0_6, %c0_7] : memref<16x256xf32, #tpu.memory_space<vmem>>, vector<16x256xf32>
    tpu.vector_store %arg8[%c0_6, %c0_7], %7 {strides = array<i32>} : memref<16x256xf32, #tpu.memory_space<vmem>>, vector<16x256xf32>,
    %c0_i32_8 = arith.constant 0 : i32
    %9 = arith.cmpi eq, %arg2, %c0_i32_8 : i32
    %10 = arith.extui %9 : i1 to i32
    %c0_i32_9 = arith.constant 0 : i32
    %11 = arith.cmpi ne, %10, %c0_i32_9 : i32
    scf.if %11 {
      %c0_10 = arith.constant 0 : index
      %c0_11 = arith.constant 0 : index
      %12 = vector.load %arg8[%c0_10, %c0_11] : memref<16x256xf32, #tpu.memory_space<vmem>>, vector<16x256xf32>
      %c0_12 = arith.constant 0 : index
      %c0_13 = arith.constant 0 : index
      %13 = vector.load %arg5[%c0_12, %c0_13] : memref<1x256xf32, #tpu.memory_space<vmem>>, vector<1x256xf32>
      %14 = vector.broadcast %13 : vector<1x256xf32> to vector<16x256xf32>
      %15 = arith.mulf %12, %14 : vector<16x256xf32>
      %c0_14 = arith.constant 0 : index
      %c0_15 = arith.constant 0 : index
      %16 = vector.load %arg6[%c0_14, %c0_15] : memref<1x256xf32, #tpu.memory_space<vmem>>, vector<1x256xf32>
      %17 = vector.broadcast %16 : vector<1x256xf32> to vector<16x256xf32>
      %18 = arith.addf %15, %17 : vector<16x256xf32>
      %19 = arith.truncf %18 : vector<16x256xf32> to vector<16x256xbf16>
      %c0_16 = arith.constant 0 : index
      %c0_17 = arith.constant 0 : index
      %20 = vector.load %arg7[%c0_16, %c0_17] : memref<16x256xbf16, #tpu.memory_space<vmem>>, vector<16x256xbf16>
      tpu.vector_store %arg7[%c0_16, %c0_17], %19 {strides = array<i32>} : memref<16x256xbf16, #tpu.memory_space<vmem>>, vector<16x256xbf16>,
    } else {
    }
    return
  }
  func.func @transform_0(%arg0: i32, %arg1: i32, %arg2: i32) -> (i32, i32) {
    %c0_i32 = arith.constant 0 : i32
    return %arg0, %arg2 : i32, i32
  }
  func.func @transform_1(%arg0: i32, %arg1: i32, %arg2: i32) -> (i32, i32) {
    %c0_i32 = arith.constant 0 : i32
    return %arg2, %arg1 : i32, i32
  }
  func.func @transform_2(%arg0: i32, %arg1: i32, %arg2: i32) -> (i32, i32) {
    %c0_i32 = arith.constant 0 : i32
    %c0_i32_0 = arith.constant 0 : i32
    return %c0_i32, %arg1 : i32, i32
  }
  func.func @transform_3(%arg0: i32, %arg1: i32, %arg2: i32) -> (i32, i32) {
    %c0_i32 = arith.constant 0 : i32
    %c0_i32_0 = arith.constant 0 : i32
    return %c0_i32, %arg1 : i32, i32
  }
  func.func @transform_4(%arg0: i32, %arg1: i32, %arg2: i32) -> (i32, i32) {
    %c0_i32 = arith.constant 0 : i32
    return %arg0, %arg1 : i32, i32
  }
}

module attributes {stable_mosaic.version = 11 : i64} {
  func.func @_matmul_bn_kernel(%arg0: i32, %arg1: i32, %arg2: i32, %arg3: memref<16x512xbf16, #tpu.memory_space<vmem>>, %arg4: memref<512x256xbf16, #tpu.memory_space<vmem>>, %arg5: memref<1x256xf32, #tpu.memory_space<vmem>>, %arg6: memref<1x256xf32, #tpu.memory_space<vmem>>, %arg7: memref<16x256xbf16, #tpu.memory_space<vmem>>, %arg8: memref<16x256xbf16, #tpu.memory_space<vmem>>, %arg9: memref<16x256xf32, #tpu.memory_space<vmem>>) attributes {dimension_semantics = [#tpu.dimension_semantics<parallel>, #tpu.dimension_semantics<parallel>, #tpu.dimension_semantics<arbitrary>], iteration_bounds = array<i64: 1, 2, 9>, scalar_prefetch = 0 : i64, scratch_operands = 1 : i64, tpu.core_type = #tpu.core_type<tc>, window_params = [{transform_indices = @transform_0, window_bounds = array<i64: 16, 512>}, {transform_indices = @transform_1, window_bounds = array<i64: 512, 256>}, {transform_indices = @transform_2, window_bounds = array<i64: 1, 256>}, {transform_indices = @transform_3, window_bounds = array<i64: 1, 256>}, {transform_indices = @transform_4, window_bounds = array<i64: 16, 256>}, {transform_indices = @transform_5, window_bounds = array<i64: 16, 256>}]} {
    %c0_i32 = arith.constant 0 : i32
    %0 = arith.cmpi eq, %arg2, %c0_i32 : i32
    %1 = arith.extui %0 : i1 to i32
    %c0_i32_0 = arith.constant 0 : i32
    %2 = arith.cmpi ne, %1, %c0_i32_0 : i32
    scf.if %2 {
      %cst_9 = arith.constant 0.000000e+00 : f32
      %12 = vector.broadcast %cst_9 : f32 to vector<16x256xf32>
      %c0_10 = arith.constant 0 : index
      %c0_11 = arith.constant 0 : index
      %13 = vector.load %arg9[%c0_10, %c0_11] : memref<16x256xf32, #tpu.memory_space<vmem>>, vector<16x256xf32>
      tpu.vector_store %arg9[%c0_10, %c0_11], %12 {strides = array<i32>} : memref<16x256xf32, #tpu.memory_space<vmem>>, vector<16x256xf32>,
    } else {
    }
    %c0 = arith.constant 0 : index
    %c0_1 = arith.constant 0 : index
    %3 = vector.load %arg9[%c0, %c0_1] : memref<16x256xf32, #tpu.memory_space<vmem>>, vector<16x256xf32>
    %c0_2 = arith.constant 0 : index
    %c0_3 = arith.constant 0 : index
    %4 = vector.load %arg3[%c0_2, %c0_3] : memref<16x512xbf16, #tpu.memory_space<vmem>>, vector<16x512xbf16>
    %c0_4 = arith.constant 0 : index
    %c0_5 = arith.constant 0 : index
    %5 = vector.load %arg4[%c0_4, %c0_5] : memref<512x256xbf16, #tpu.memory_space<vmem>>, vector<512x256xbf16>
    %cst = arith.constant dense<0.000000e+00> : vector<16x256xf32>
    %6 = tpu.matmul %4, %5, %cst {dimension_numbers = #tpu.dot_dimension_numbers<[1], [0], [0], [1], [0, 0, 1, 1], [], []>} : vector<16x512xbf16>, vector<512x256xbf16>, vector<16x256xf32> -> vector<16x256xf32>
    %7 = arith.addf %3, %6 : vector<16x256xf32>
    %c0_6 = arith.constant 0 : index
    %c0_7 = arith.constant 0 : index
    %8 = vector.load %arg9[%c0_6, %c0_7] : memref<16x256xf32, #tpu.memory_space<vmem>>, vector<16x256xf32>
    tpu.vector_store %arg9[%c0_6, %c0_7], %7 {strides = array<i32>} : memref<16x256xf32, #tpu.memory_space<vmem>>, vector<16x256xf32>,
    %c8_i32 = arith.constant 8 : i32
    %9 = arith.cmpi eq, %arg2, %c8_i32 : i32
    %10 = arith.extui %9 : i1 to i32
    %c0_i32_8 = arith.constant 0 : i32
    %11 = arith.cmpi ne, %10, %c0_i32_8 : i32
    scf.if %11 {
      %c0_9 = arith.constant 0 : index
      %c0_10 = arith.constant 0 : index
      %12 = vector.load %arg9[%c0_9, %c0_10] : memref<16x256xf32, #tpu.memory_space<vmem>>, vector<16x256xf32>
      %c0_11 = arith.constant 0 : index
      %c0_12 = arith.constant 0 : index
      %13 = vector.load %arg5[%c0_11, %c0_12] : memref<1x256xf32, #tpu.memory_space<vmem>>, vector<1x256xf32>
      %14 = vector.broadcast %13 : vector<1x256xf32> to vector<16x256xf32>
      %15 = arith.mulf %12, %14 : vector<16x256xf32>
      %c0_13 = arith.constant 0 : index
      %c0_14 = arith.constant 0 : index
      %16 = vector.load %arg6[%c0_13, %c0_14] : memref<1x256xf32, #tpu.memory_space<vmem>>, vector<1x256xf32>
      %17 = vector.broadcast %16 : vector<1x256xf32> to vector<16x256xf32>
      %18 = arith.addf %15, %17 : vector<16x256xf32>
      %c0_15 = arith.constant 0 : index
      %c0_16 = arith.constant 0 : index
      %19 = vector.load %arg7[%c0_15, %c0_16] : memref<16x256xbf16, #tpu.memory_space<vmem>>, vector<16x256xbf16>
      %20 = arith.extf %19 : vector<16x256xbf16> to vector<16x256xf32>
      %21 = arith.addf %18, %20 : vector<16x256xf32>
      %cst_17 = arith.constant 0.000000e+00 : f32
      %22 = vector.broadcast %cst_17 : f32 to vector<16x256xf32>
      %23 = arith.maximumf %21, %22 : vector<16x256xf32>
      %24 = arith.truncf %23 : vector<16x256xf32> to vector<16x256xbf16>
      %c0_18 = arith.constant 0 : index
      %c0_19 = arith.constant 0 : index
      %25 = vector.load %arg8[%c0_18, %c0_19] : memref<16x256xbf16, #tpu.memory_space<vmem>>, vector<16x256xbf16>
      tpu.vector_store %arg8[%c0_18, %c0_19], %24 {strides = array<i32>} : memref<16x256xbf16, #tpu.memory_space<vmem>>, vector<16x256xbf16>,
    } else {
    }
    return
  }
  func.func @transform_0(%arg0: i32, %arg1: i32, %arg2: i32) -> (i32, i32) {
    %c0_i32 = arith.constant 0 : i32
    return %arg0, %arg2 : i32, i32
  }
  func.func @transform_1(%arg0: i32, %arg1: i32, %arg2: i32) -> (i32, i32) {
    %c0_i32 = arith.constant 0 : i32
    return %arg2, %arg1 : i32, i32
  }
  func.func @transform_2(%arg0: i32, %arg1: i32, %arg2: i32) -> (i32, i32) {
    %c0_i32 = arith.constant 0 : i32
    %c0_i32_0 = arith.constant 0 : i32
    return %c0_i32, %arg1 : i32, i32
  }
  func.func @transform_3(%arg0: i32, %arg1: i32, %arg2: i32) -> (i32, i32) {
    %c0_i32 = arith.constant 0 : i32
    %c0_i32_0 = arith.constant 0 : i32
    return %c0_i32, %arg1 : i32, i32
  }
  func.func @transform_4(%arg0: i32, %arg1: i32, %arg2: i32) -> (i32, i32) {
    %c0_i32 = arith.constant 0 : i32
    return %arg0, %arg1 : i32, i32
  }
  func.func @transform_5(%arg0: i32, %arg1: i32, %arg2: i32) -> (i32, i32) {
    %c0_i32 = arith.constant 0 : i32
    return %arg0, %arg1 : i32, i32
  }
}

module attributes {stable_mosaic.version = 11 : i64} {
  func.func @_matmul_bn_kernel(%arg0: i32, %arg1: i32, %arg2: i32, %arg3: memref<16x512xbf16, #tpu.memory_space<vmem>>, %arg4: memref<512x256xbf16, #tpu.memory_space<vmem>>, %arg5: memref<1x256xf32, #tpu.memory_space<vmem>>, %arg6: memref<1x256xf32, #tpu.memory_space<vmem>>, %arg7: memref<16x256xbf16, #tpu.memory_space<vmem>>, %arg8: memref<16x256xf32, #tpu.memory_space<vmem>>) attributes {dimension_semantics = [#tpu.dimension_semantics<parallel>, #tpu.dimension_semantics<parallel>, #tpu.dimension_semantics<arbitrary>], iteration_bounds = array<i64: 1, 2, 9>, scalar_prefetch = 0 : i64, scratch_operands = 1 : i64, tpu.core_type = #tpu.core_type<tc>, window_params = [{transform_indices = @transform_0, window_bounds = array<i64: 16, 512>}, {transform_indices = @transform_1, window_bounds = array<i64: 512, 256>}, {transform_indices = @transform_2, window_bounds = array<i64: 1, 256>}, {transform_indices = @transform_3, window_bounds = array<i64: 1, 256>}, {transform_indices = @transform_4, window_bounds = array<i64: 16, 256>}]} {
    %c0_i32 = arith.constant 0 : i32
    %0 = arith.cmpi eq, %arg2, %c0_i32 : i32
    %1 = arith.extui %0 : i1 to i32
    %c0_i32_0 = arith.constant 0 : i32
    %2 = arith.cmpi ne, %1, %c0_i32_0 : i32
    scf.if %2 {
      %cst_9 = arith.constant 0.000000e+00 : f32
      %12 = vector.broadcast %cst_9 : f32 to vector<16x256xf32>
      %c0_10 = arith.constant 0 : index
      %c0_11 = arith.constant 0 : index
      %13 = vector.load %arg8[%c0_10, %c0_11] : memref<16x256xf32, #tpu.memory_space<vmem>>, vector<16x256xf32>
      tpu.vector_store %arg8[%c0_10, %c0_11], %12 {strides = array<i32>} : memref<16x256xf32, #tpu.memory_space<vmem>>, vector<16x256xf32>,
    } else {
    }
    %c0 = arith.constant 0 : index
    %c0_1 = arith.constant 0 : index
    %3 = vector.load %arg8[%c0, %c0_1] : memref<16x256xf32, #tpu.memory_space<vmem>>, vector<16x256xf32>
    %c0_2 = arith.constant 0 : index
    %c0_3 = arith.constant 0 : index
    %4 = vector.load %arg3[%c0_2, %c0_3] : memref<16x512xbf16, #tpu.memory_space<vmem>>, vector<16x512xbf16>
    %c0_4 = arith.constant 0 : index
    %c0_5 = arith.constant 0 : index
    %5 = vector.load %arg4[%c0_4, %c0_5] : memref<512x256xbf16, #tpu.memory_space<vmem>>, vector<512x256xbf16>
    %cst = arith.constant dense<0.000000e+00> : vector<16x256xf32>
    %6 = tpu.matmul %4, %5, %cst {dimension_numbers = #tpu.dot_dimension_numbers<[1], [0], [0], [1], [0, 0, 1, 1], [], []>} : vector<16x512xbf16>, vector<512x256xbf16>, vector<16x256xf32> -> vector<16x256xf32>
    %7 = arith.addf %3, %6 : vector<16x256xf32>
    %c0_6 = arith.constant 0 : index
    %c0_7 = arith.constant 0 : index
    %8 = vector.load %arg8[%c0_6, %c0_7] : memref<16x256xf32, #tpu.memory_space<vmem>>, vector<16x256xf32>
    tpu.vector_store %arg8[%c0_6, %c0_7], %7 {strides = array<i32>} : memref<16x256xf32, #tpu.memory_space<vmem>>, vector<16x256xf32>,
    %c8_i32 = arith.constant 8 : i32
    %9 = arith.cmpi eq, %arg2, %c8_i32 : i32
    %10 = arith.extui %9 : i1 to i32
    %c0_i32_8 = arith.constant 0 : i32
    %11 = arith.cmpi ne, %10, %c0_i32_8 : i32
    scf.if %11 {
      %c0_9 = arith.constant 0 : index
      %c0_10 = arith.constant 0 : index
      %12 = vector.load %arg8[%c0_9, %c0_10] : memref<16x256xf32, #tpu.memory_space<vmem>>, vector<16x256xf32>
      %c0_11 = arith.constant 0 : index
      %c0_12 = arith.constant 0 : index
      %13 = vector.load %arg5[%c0_11, %c0_12] : memref<1x256xf32, #tpu.memory_space<vmem>>, vector<1x256xf32>
      %14 = vector.broadcast %13 : vector<1x256xf32> to vector<16x256xf32>
      %15 = arith.mulf %12, %14 : vector<16x256xf32>
      %c0_13 = arith.constant 0 : index
      %c0_14 = arith.constant 0 : index
      %16 = vector.load %arg6[%c0_13, %c0_14] : memref<1x256xf32, #tpu.memory_space<vmem>>, vector<1x256xf32>
      %17 = vector.broadcast %16 : vector<1x256xf32> to vector<16x256xf32>
      %18 = arith.addf %15, %17 : vector<16x256xf32>
      %cst_15 = arith.constant 0.000000e+00 : f32
      %19 = vector.broadcast %cst_15 : f32 to vector<16x256xf32>
      %20 = arith.maximumf %18, %19 : vector<16x256xf32>
      %21 = arith.truncf %20 : vector<16x256xf32> to vector<16x256xbf16>
      %c0_16 = arith.constant 0 : index
      %c0_17 = arith.constant 0 : index
      %22 = vector.load %arg7[%c0_16, %c0_17] : memref<16x256xbf16, #tpu.memory_space<vmem>>, vector<16x256xbf16>
      tpu.vector_store %arg7[%c0_16, %c0_17], %21 {strides = array<i32>} : memref<16x256xbf16, #tpu.memory_space<vmem>>, vector<16x256xbf16>,
    } else {
    }
    return
  }
  func.func @transform_0(%arg0: i32, %arg1: i32, %arg2: i32) -> (i32, i32) {
    %c0_i32 = arith.constant 0 : i32
    return %arg0, %arg2 : i32, i32
  }
  func.func @transform_1(%arg0: i32, %arg1: i32, %arg2: i32) -> (i32, i32) {
    %c0_i32 = arith.constant 0 : i32
    return %arg2, %arg1 : i32, i32
  }
  func.func @transform_2(%arg0: i32, %arg1: i32, %arg2: i32) -> (i32, i32) {
    %c0_i32 = arith.constant 0 : i32
    %c0_i32_0 = arith.constant 0 : i32
    return %c0_i32, %arg1 : i32, i32
  }
  func.func @transform_3(%arg0: i32, %arg1: i32, %arg2: i32) -> (i32, i32) {
    %c0_i32 = arith.constant 0 : i32
    %c0_i32_0 = arith.constant 0 : i32
    return %c0_i32, %arg1 : i32, i32
  }
  func.func @transform_4(%arg0: i32, %arg1: i32, %arg2: i32) -> (i32, i32) {
    %c0_i32 = arith.constant 0 : i32
    return %arg0, %arg1 : i32, i32
  }
}

module attributes {stable_mosaic.version = 11 : i64} {
  func.func @_gap_fc_kernel(%arg0: i32, %arg1: memref<2x1x512xbf16, #tpu.memory_space<vmem>>, %arg2: memref<512x128xbf16, #tpu.memory_space<vmem>>, %arg3: memref<1x128xf32, #tpu.memory_space<vmem>>, %arg4: memref<2x128xf32, #tpu.memory_space<vmem>>) attributes {dimension_semantics = [#tpu.dimension_semantics<arbitrary>], iteration_bounds = array<i64: 1>, scalar_prefetch = 0 : i64, scratch_operands = 0 : i64, tpu.core_type = #tpu.core_type<tc>, window_params = [{pipeline_mode = #tpu.pipeline_mode<synchronous>, transform_indices = @transform_0, window_bounds = array<i64: 2, 1, 512>}, {pipeline_mode = #tpu.pipeline_mode<synchronous>, transform_indices = @transform_1, window_bounds = array<i64: 512, 128>}, {pipeline_mode = #tpu.pipeline_mode<synchronous>, transform_indices = @transform_2, window_bounds = array<i64: 1, 128>}, {pipeline_mode = #tpu.pipeline_mode<synchronous>, transform_indices = @transform_3, window_bounds = array<i64: 2, 128>}]} {
    %c0 = arith.constant 0 : index
    %c0_0 = arith.constant 0 : index
    %c0_1 = arith.constant 0 : index
    %0 = vector.load %arg1[%c0, %c0_0, %c0_1] : memref<2x1x512xbf16, #tpu.memory_space<vmem>>, vector<2x1x512xbf16>
    %1 = arith.extf %0 : vector<2x1x512xbf16> to vector<2x1x512xf32>
    %cst = arith.constant dense<0.000000e+00> : vector<2x512xf32>
    %2 = vector.multi_reduction <add>, %1, %cst [1] : vector<2x1x512xf32> to vector<2x512xf32>
    %cst_2 = arith.constant 1.000000e+00 : f32
    %3 = vector.broadcast %cst_2 : f32 to vector<2x512xf32>
    %4 = arith.mulf %2, %3 : vector<2x512xf32>
    %5 = arith.truncf %4 : vector<2x512xf32> to vector<2x512xbf16>
    %c0_3 = arith.constant 0 : index
    %c0_4 = arith.constant 0 : index
    %6 = vector.load %arg2[%c0_3, %c0_4] : memref<512x128xbf16, #tpu.memory_space<vmem>>, vector<512x128xbf16>
    %cst_5 = arith.constant dense<0.000000e+00> : vector<2x128xf32>
    %7 = tpu.matmul %5, %6, %cst_5 {dimension_numbers = #tpu.dot_dimension_numbers<[1], [0], [0], [1], [0, 0, 1, 1], [], []>} : vector<2x512xbf16>, vector<512x128xbf16>, vector<2x128xf32> -> vector<2x128xf32>
    %c0_6 = arith.constant 0 : index
    %c0_7 = arith.constant 0 : index
    %8 = vector.load %arg3[%c0_6, %c0_7] : memref<1x128xf32, #tpu.memory_space<vmem>>, vector<1x128xf32>
    %9 = vector.broadcast %8 : vector<1x128xf32> to vector<2x128xf32>
    %10 = arith.addf %7, %9 : vector<2x128xf32>
    %c0_8 = arith.constant 0 : index
    %c0_9 = arith.constant 0 : index
    %11 = vector.load %arg4[%c0_8, %c0_9] : memref<2x128xf32, #tpu.memory_space<vmem>>, vector<2x128xf32>
    tpu.vector_store %arg4[%c0_8, %c0_9], %10 {strides = array<i32>} : memref<2x128xf32, #tpu.memory_space<vmem>>, vector<2x128xf32>,
    return
  }
  func.func @transform_0(%arg0: i32) -> (i32, i32, i32) {
    %c0_i32 = arith.constant 0 : i32
    %c0_i32_0 = arith.constant 0 : i32
    %c0_i32_1 = arith.constant 0 : i32
    %c0_i32_2 = arith.constant 0 : i32
    return %c0_i32, %c0_i32_0, %c0_i32_1 : i32, i32, i32
  }
  func.func @transform_1(%arg0: i32) -> (i32, i32) {
    %c0_i32 = arith.constant 0 : i32
    %c0_i32_0 = arith.constant 0 : i32
    %c0_i32_1 = arith.constant 0 : i32
    return %c0_i32, %c0_i32_0 : i32, i32
  }
  func.func @transform_2(%arg0: i32) -> (i32, i32) {
    %c0_i32 = arith.constant 0 : i32
    %c0_i32_0 = arith.constant 0 : i32
    %c0_i32_1 = arith.constant 0 : i32
    return %c0_i32, %c0_i32_0 : i32, i32
  }
  func.func @transform_3(%arg0: i32) -> (i32, i32) {
    %c0_i32 = arith.constant 0 : i32
    %c0_i32_0 = arith.constant 0 : i32
    %c0_i32_1 = arith.constant 0 : i32
    return %c0_i32, %c0_i32_0 : i32, i32
  }
}

</mosaic_0001>

<bundles_post_ra>
// kernel: electronics_classifier_forward.23
= control target key start
LH: loop header
LB: loop body
LE: loop exit
PB: predicated region body
PF: predicated region fallthrough
CT: control target
= control target key end

     0   :  { %s913_s15 = smov 0   ;;  %s1114_s0 = inlined_call_operand.vmem [shape: bf16[2,9,9,64], index: 0, kind: input, shape index: {}]   ;;  %s1115_s1 = inlined_call_operand.vmem [shape: bf16[2,9,9,64], index: 1, kind: input, shape index: {}]   ;;  %s1116_s2 = inlined_call_operand.vmem [shape: bf16[2,9,9,64], index: 2, kind: input, shape index: {}]   ;;  %s1117_s3 = inlined_call_operand.vmem [shape: bf16[2,9,9,64], index: 3, kind: input, shape index: {}]   ;;  %s1118_s4 = inlined_call_operand.vmem [shape: bf16[2,8,8,64], index: 4, kind: output, shape index: {}]  }
   0x1 LB: > { %s833_s16 = sadd.s32 4294967295, %s886_s15   ;;  %p837_p0 = scmp.ge.s32.totalorder %s886_s15, 1  ;;  %s886_s15 = sphi %s913_s15, %s14_s15  }
   0x2   : > { %p192_p1 = scmp.lt.s32.totalorder %s886_s15, 3 }
   0x4   : > { %p193_p2 = pnand %p837_p0, %p192_p1 }
   0x5   : > { %p233_p3 = scmp.lt.s32.totalorder (!%p193_p2), %s833_s16, 1 }
   0x6   : > { %196 = sbr.rel (%p193_p2) target bundleno = 83 (0x53), region = 36 }
   0xb   : > { %s1120_s16 = smov (!%p233_p3, %s833_s16), 1  ;;  %vm306_vm0 = vcmask 1046528   ;;  %vm733_vm1 = vcmask 519168  }
   0xc   : > { %s871_s17 = smul.u32 72, %s1120_s16  ;;  %s870_s30 = sshll.u32 %s1120_s16, 5 }
   0xd   : > { %s1033_s7 = scalar_lea.vmem %s1118_s4, %s870_s30 }
   0xe   : > { %s927_s20 = scalar_lea.vmem %s1114_s0, %s871_s17  ;;  %s932_s23 = scalar_lea.vmem %s1115_s1, %s871_s17 }
   0xf   : > { %s937_s26 = scalar_lea.vmem %s1116_s2, %s871_s17  ;;  %s942_s29 = scalar_lea.vmem %s1117_s3, %s871_s17  ;;  %v258_v0 = vld [vmem:[%s927_s20] sm:$0xf]  ;;  %v266_v1 = vld [vmem:[%s927_s20 + $0x4] sm:$0x1]  ;;  %v844_v2 = vld [vmem:[%s927_s20 + $0x8] sm:$0xf] }
  0x10   : > { %v274_v3 = vunpack.c.l.bf16 %v258_v0  ;;  %v282_v4 = vunpack.c.l.bf16 %v266_v1  ;;  %v372_v5 = vunpack.c.l.bf16 %v844_v2  ;;  %v852_v6 = vld [vmem:[%s927_s20 + $0xc] sm:$0x1]  ;;  %v484_v7 = vld [vmem:[%s932_s23] sm:$0xf]  ;;  %v950_v8 = vld [vmem:[%s932_s23 + $0x8] sm:$0xf] }
  0x11   : > { %v412_v9 = vunpack.c.l.bf16 %v852_v6  ;;  %v500_v10 = vunpack.c.l.bf16 %v484_v7  ;;  %v953_v11 = vld [vmem:[%s937_s26] sm:$0xf]  ;;  %v605_v12 = vld [vmem:[%s937_s26 + $0x4] sm:$0x1]  ;;  %v259_v18 = vld [vmem:[%s927_s20 + $0x8] sm:$0xf]  ;;  %v541_v20 = vunpack.c.l.bf16 %v950_v8 }
  0x12   : > { %v957_v13 = vld [vmem:[%s942_s29] sm:$0xf]  ;;  %v307_v14 = vrot.slane %v274_v3, 1  ;;  %v308_v15 = vrot.slane %v282_v4, 1  ;;  %v436_v16 = vrot.slane %v372_v5, 1  ;;  %v581_v17 = vunpack.c.l.bf16 %v953_v11 }
  0x13   : > { %v437_v19 = vrot.slane %v412_v9, 1  ;;  %v621_v21 = vunpack.c.l.bf16 %v605_v12  ;;  %v267_v22 = vld [vmem:[%s927_s20 + $0xc] sm:$0x1]  ;;  %v275_v23 = vunpack.c.l.bf16 %v259_v18  ;;  %v845_v24 = vld [vmem:[%s927_s20 + $0x10] sm:$0xf]  ;;  %v709_v33 = vunpack.c.l.bf16 %v957_v13 }
  0x14   : > { %v309_v25 = vsel %vm306_vm0, %v307_v14, %v308_v15  ;;  %v645_v26 = vrot.slane %v581_v17, 1  ;;  %v283_v27 = vunpack.c.l.bf16 %v267_v22  ;;  %v373_v28 = vunpack.c.l.bf16 %v845_v24  ;;  %v853_v29 = vld [vmem:[%s927_s20 + $0x14] sm:$0x1]  ;;  %v485_v30 = vld [vmem:[%s932_s23 + $0x8] sm:$0xf] }
  0x15   : > { %v339_v31 = vmax.f32 %v274_v3, %v309_v25  ;;  %v646_v32 = vrot.slane %v621_v21, 1  ;;  %v310_v34 = vrot.slane %v275_v23, 1  ;;  %v971_v35 = vld [vmem:[%s932_s23 + $0x10] sm:$0xf]  ;;  %v974_v36 = vld [vmem:[%s937_s26 + $0x8] sm:$0xf]  ;;  %v438_v37 = vsel %vm306_vm0, %v436_v16, %v437_v19 }
  0x16   : > { %v311_v38 = vrot.slane %v283_v27, 1  ;;  %v413_v39 = vunpack.c.l.bf16 %v853_v29  ;;  %v439_v40 = vrot.slane %v373_v28, 1  ;;  %v606_v41 = vld [vmem:[%s937_s26 + $0xc] sm:$0x1]  ;;  %v501_v44 = vunpack.c.l.bf16 %v485_v30  ;;  %v260_v46 = vld [vmem:[%s927_s20 + $0x10] sm:$0xf] }
  0x17   : > { %v380_v42 = vmax.f32 %v339_v31, %v372_v5  ;;  %v979_v43 = vsel %vm306_vm0, %v645_v26, %v646_v32  ;;  %v582_v45 = vunpack.c.l.bf16 %v974_v36  ;;  %v268_v47 = vld [vmem:[%s927_s20 + $0x14] sm:$0x1]  ;;  %v846_v48 = vld [vmem:[%s927_s20 + $0x18] sm:$0xf]  ;;  %v542_v51 = vunpack.c.l.bf16 %v971_v35  ;;  %v854_v53 = vld [vmem:[%s927_s20 + $0x1c] sm:$0x1] }
  0x18   : > { %v312_v49 = vsel %vm306_vm0, %v310_v34, %v311_v38  ;;  %v440_v50 = vrot.slane %v413_v39, 1  ;;  %v622_v52 = vunpack.c.l.bf16 %v606_v41  ;;  %v991_v57 = vld [vmem:[%s942_s29 + $0x8] sm:$0xf]  ;;  %v276_v58 = vunpack.c.l.bf16 %v260_v46  ;;  %v486_v63 = vld [vmem:[%s932_s23 + $0x10] sm:$0xf] }
  0x19   : > { %v468_v54 = vmax.f32 %v380_v42, %v438_v37  ;;  %v340_v55 = vmax.f32 %v275_v23, %v312_v49  ;;  %v648_v56 = vrot.slane %v582_v45, 1  ;;  %v284_v61 = vunpack.c.l.bf16 %v268_v47  ;;  %v996_v0 = vld [vmem:[%s932_s23 + $0x18] sm:$0xf]  ;;  %v999_v5 = vld [vmem:[%s937_s26 + $0x10] sm:$0xf] }
  0x1a   : > { %v441_v59 = vsel %vm306_vm0, %v439_v40, %v440_v50  ;;  %v649_v60 = vrot.slane %v622_v52, 1  ;;  %v374_v62 = vunpack.c.l.bf16 %v846_v48  ;;  %v313_v3 = vrot.slane %v276_v58, 1  ;;  %v607_v6 = vld [vmem:[%s937_s26 + $0x14] sm:$0x1]  ;;  %v261_v18 = vld [vmem:[%s927_s20 + $0x18] sm:$0xf] }
  0x1b   : > { %v508_v1 = vmax.f32 %v468_v54, %v500_v10  ;;  %v381_v2 = vmax.f32 %v340_v55, %v373_v28  ;;  %v414_v4 = vunpack.c.l.bf16 %v854_v53  ;;  %v710_v8 = vunpack.c.l.bf16 %v991_v57  ;;  %v269_v19 = vld [vmem:[%s927_s20 + $0x1c] sm:$0x1]  ;;  %v847_v25 = vld [vmem:[%s927_s20 + $0x20] sm:$0xf]  ;;  %v1014_v29 = vld [vmem:[%s942_s29 + $0x10] sm:$0xf] }
  0x1c   : > { %v650_v7 = vsel %vm306_vm0, %v648_v56, %v649_v60  ;;  %v314_v9 = vrot.slane %v284_v61, 1  ;;  %v442_v12 = vrot.slane %v374_v62, 1  ;;  %v502_v16 = vunpack.c.l.bf16 %v486_v63  ;;  %v855_v30 = vld [vmem:[%s927_s20 + $0x24] sm:$0x1]  ;;  %v487_v39 = vld [vmem:[%s932_s23 + $0x18] sm:$0xf] }
  0x1d   : > { %v549_v14 = vmax.f32 %v508_v1, %v541_v20  ;;  %v469_v15 = vmax.f32 %v381_v2, %v441_v59  ;;  %v443_v10 = vrot.slane %v414_v4, 1  ;;  %v543_v22 = vunpack.c.l.bf16 %v996_v0  ;;  %v863_v46 = vld [vmem:[%s932_s23 + $0x20] sm:$0xf]  ;;  %v1027_v50 = vld [vmem:[%s937_s26 + $0x18] sm:$0xf] }
  0x1e   : > { %v315_v21 = vsel %vm306_vm0, %v313_v3, %v314_v9  ;;  %v583_v23 = vunpack.c.l.bf16 %v999_v5  ;;  %v623_v24 = vunpack.c.l.bf16 %v607_v6  ;;  %v277_v34 = vunpack.c.l.bf16 %v261_v18  ;;  %v262_v53 = vld [vmem:[%s927_s20 + $0x20] sm:$0xf]  ;;  %v270_v57 = vld [vmem:[%s927_s20 + $0x24] sm:$0x1]  ;;  %v856_v3 = vld [vmem:[%s927_s20 + $0x2c] sm:$0x1] }
  0x1f   : > { %v589_v26 = vmax.f32 %v549_v14, %v581_v17  ;;  %v509_v20 = vmax.f32 %v469_v15, %v501_v44  ;;  %v341_v27 = vmax.f32 %v276_v58, %v315_v21  ;;  %v444_v28 = vsel %vm306_vm0, %v442_v12, %v443_v10  ;;  %v848_v58 = vld [vmem:[%s927_s20 + $0x28] sm:$0xf]  ;;  %v696_v6 = vld [vmem:[%s942_s29 + $0x18] sm:$0xf] }
  0x20   : > { %v651_v31 = vrot.slane %v583_v23, 1  ;;  %v652_v32 = vrot.slane %v623_v24, 1  ;;  %v285_v35 = vunpack.c.l.bf16 %v269_v19  ;;  %v375_v17 = vunpack.c.l.bf16 %v847_v25 }
  0x21   : > { %v677_v37 = vmax.f32 %v589_v26, %v979_v43  ;;  %v550_v11 = vmax.f32 %v509_v20, %v542_v51  ;;  %v382_v38 = vmax.f32 %v341_v27, %v374_v62  ;;  %v711_v40 = vunpack.c.l.bf16 %v1014_v29  ;;  %v608_v51 = vld [vmem:[%s937_s26 + $0x1c] sm:$0x1]  ;;  %v263_v20 = vld [vmem:[%s927_s20 + $0x28] sm:$0xf] }
  0x22   : > { %v316_v41 = vrot.slane %v277_v34, 1  ;;  %v317_v42 = vrot.slane %v285_v35, 1  ;;  %v415_v44 = vunpack.c.l.bf16 %v855_v30  ;;  %v445_v49 = vrot.slane %v375_v17, 1 }
  0x23   : > { %v717_v47 = vmax.f32 %v677_v37, %v709_v33  ;;  %v590_v48 = vmax.f32 %v550_v11, %v582_v45  ;;  %v470_v43 = vmax.f32 %v382_v38, %v444_v28  ;;  %v653_v52 = vsel %vm306_vm0, %v651_v31, %v652_v32  ;;  %v271_v31 = vld [vmem:[%s927_s20 + $0x2c] sm:$0x1]  ;;  %v849_v11 = vld [vmem:[%s927_s20 + $0x30] sm:$0xf]  ;;  %v857_v38 = vld [vmem:[%s927_s20 + $0x34] sm:$0x1] }
  0x24   : > { %v318_v13 = vsel %vm306_vm0, %v316_v41, %v317_v42  ;;  %v446_v33 = vrot.slane %v415_v44, 1  ;;  %v503_v36 = vunpack.c.l.bf16 %v487_v39  ;;  %v544_v60 = vunpack.c.l.bf16 %v863_v46  ;;  %v864_v39 = vld [vmem:[%s932_s23 + $0x28] sm:$0xf] }
  0x25   : > { %v725_v45 = vpack.c.bf16 %v717_v47, %v717_v47  ;;  %v678_v54 = vmax.f32 %v590_v48, %v650_v7  ;;  %v510_v55 = vmax.f32 %v470_v43, %v502_v16  ;;  %v342_v56 = vmax.f32 %v277_v34, %v318_v13  ;;  %v1047_v16 = vld [vmem:[%s937_s26 + $0x20] sm:$0xf] }
  0x26   : > { %v447_v59 = vsel %vm306_vm0, %v445_v49, %v446_v33  ;;  %v584_v61 = vunpack.c.l.bf16 %v1027_v50  ;;  %v624_v62 = vunpack.c.l.bf16 %v608_v51  ;;  %v278_v2 = vunpack.c.l.bf16 %v262_v53 }
  0x27   : > { %734 = vst.msk [vmem:[%s1033_s7] sm:$0xf] %vm733_vm1, %v725_v45  ;;  %v718_v63 = vmax.f32 %v678_v54, %v710_v8  ;;  %v551_v0 = vmax.f32 %v510_v55, %v543_v22  ;;  %v383_v1 = vmax.f32 %v342_v56, %v375_v17  ;;  %v286_v7 = vunpack.c.l.bf16 %v270_v57  ;;  %v609_v8 = vld [vmem:[%s937_s26 + $0x24] sm:$0x1]  ;;  %v488_v22 = vld [vmem:[%s932_s23 + $0x20] sm:$0xf] }
  0x28   : > { %v654_v4 = vrot.slane %v584_v61, 1  ;;  %v655_v5 = vrot.slane %v624_v62, 1  ;;  %v376_v9 = vunpack.c.l.bf16 %v848_v58  ;;  %v319_v10 = vrot.slane %v278_v2, 1  ;;  %v489_v45 = vld [vmem:[%s932_s23 + $0x28] sm:$0xf] }
  0x29   : > { %v726_v12 = vpack.c.bf16 %v718_v63, %v718_v63  ;;  %v591_v14 = vmax.f32 %v551_v0, %v583_v23  ;;  %v471_v15 = vmax.f32 %v383_v1, %v447_v59  ;;  %v320_v18 = vrot.slane %v286_v7, 1  ;;  %v264_v58 = vld [vmem:[%s927_s20 + $0x30] sm:$0xf]  ;;  %v272_v63 = vld [vmem:[%s927_s20 + $0x34] sm:$0x1] }
  0x2a   : > { %v416_v19 = vunpack.c.l.bf16 %v856_v3  ;;  %v448_v21 = vrot.slane %v376_v9, 1  ;;  %v656_v26 = vsel %vm306_vm0, %v654_v4, %v655_v5  ;;  %v712_v23 = vunpack.c.l.bf16 %v696_v6  ;;  %v850_v0 = vld [vmem:[%s927_s20 + $0x38] sm:$0xf]  ;;  %v858_v1 = vld [vmem:[%s927_s20 + $0x3c] sm:$0x1] }
  0x2b   : > { %735 = vst.msk [vmem:[%s1033_s7 + $0x4] sm:$0xf] %vm733_vm1, %v726_v12  ;;  %v679_v24 = vmax.f32 %v591_v14, %v653_v52  ;;  %v511_v25 = vmax.f32 %v471_v15, %v503_v36  ;;  %v321_v27 = vsel %vm306_vm0, %v319_v10, %v320_v18  ;;  %v585_v29 = vunpack.c.l.bf16 %v1047_v16  ;;  %v610_v52 = vld [vmem:[%s937_s26 + $0x2c] sm:$0x1]  ;;  %v865_v6 = vld [vmem:[%s932_s23 + $0x30] sm:$0xf] }
  0x2c   : > { %v449_v28 = vrot.slane %v416_v19, 1  ;;  %v625_v30 = vunpack.c.l.bf16 %v609_v8  ;;  %v343_v35 = vmax.f32 %v278_v2, %v321_v27  ;;  %v504_v37 = vunpack.c.l.bf16 %v488_v22  ;;  %v697_v2 = vld [vmem:[%s942_s29 + $0x20] sm:$0xf]  ;;  %v698_v16 = vld [vmem:[%s942_s29 + $0x28] sm:$0xf] }
  0x2d   : > { %v719_v32 = vmax.f32 %v679_v24, %v711_v40  ;;  %v552_v34 = vmax.f32 %v511_v25, %v544_v60  ;;  %v657_v41 = vrot.slane %v585_v29, 1  ;;  %v279_v44 = vunpack.c.l.bf16 %v263_v20  ;;  %v1063_v40 = vld [vmem:[%s937_s26 + $0x28] sm:$0xf] }
  0x2e   : > { %v450_v17 = vsel %vm306_vm0, %v448_v21, %v449_v28  ;;  %v658_v42 = vrot.slane %v625_v30, 1  ;;  %v384_v48 = vmax.f32 %v343_v35, %v376_v9  ;;  %v287_v43 = vunpack.c.l.bf16 %v271_v31  ;;  %v611_v30 = vld [vmem:[%s937_s26 + $0x34] sm:$0x1]  ;;  %v273_v35 = vld [vmem:[%s927_s20 + $0x3c] sm:$0x1] }
  0x2f   : > { %v727_v46 = vpack.c.bf16 %v719_v32, %v719_v32  ;;  %v592_v47 = vmax.f32 %v552_v34, %v584_v61  ;;  %v322_v49 = vrot.slane %v279_v44, 1  ;;  %v377_v50 = vunpack.c.l.bf16 %v849_v11  ;;  %v265_v34 = vld [vmem:[%s927_s20 + $0x38] sm:$0xf] }
  0x30   : > { %v417_v51 = vunpack.c.l.bf16 %v857_v38  ;;  %v472_v33 = vmax.f32 %v384_v48, %v450_v17  ;;  %v545_v36 = vunpack.c.l.bf16 %v864_v39  ;;  %v323_v53 = vrot.slane %v287_v43, 1  ;;  %v490_v17 = vld [vmem:[%s932_s23 + $0x30] sm:$0xf]  ;;  %v866_v43 = vld [vmem:[%s932_s23 + $0x38] sm:$0xf] }
  0x31   : > { %736 = vst.msk [vmem:[%s1033_s7 + $0x8] sm:$0xf] %vm733_vm1, %v727_v46  ;;  %v680_v13 = vmax.f32 %v592_v47, %v656_v26  ;;  %v659_v54 = vsel %vm306_vm0, %v657_v41, %v658_v42  ;;  %v451_v55 = vrot.slane %v377_v50, 1  ;;  %v586_v57 = vunpack.c.l.bf16 %v1063_v40  ;;  %v571_v26 = vld [vmem:[%s937_s26 + $0x30] sm:$0xf] }
  0x32   : > { %v452_v56 = vrot.slane %v417_v51, 1  ;;  %v512_v60 = vmax.f32 %v472_v33, %v504_v37  ;;  %v324_v61 = vsel %vm306_vm0, %v322_v49, %v323_v53  ;;  %v626_v62 = vunpack.c.l.bf16 %v610_v52  ;;  %v851_v37 = vld [vmem:[%s927_s20 + $0x40] sm:$0xf]  ;;  %v859_v41 = vld [vmem:[%s927_s20 + $0x44] sm:$0x1] }
  0x33   : > { %v720_v59 = vmax.f32 %v680_v13, %v712_v23  ;;  %v344_v3 = vmax.f32 %v279_v44, %v324_v61  ;;  %v505_v5 = vunpack.c.l.bf16 %v489_v45  ;;  %v660_v7 = vrot.slane %v586_v57, 1 }
  0x34   : > { %v453_v4 = vsel %vm306_vm0, %v451_v55, %v452_v56  ;;  %v553_v12 = vmax.f32 %v512_v60, %v545_v36  ;;  %v661_v14 = vrot.slane %v626_v62, 1  ;;  %v280_v15 = vunpack.c.l.bf16 %v264_v58  ;;  %v572_v55 = vld [vmem:[%s937_s26 + $0x38] sm:$0xf]  ;;  %v612_v60 = vld [vmem:[%s937_s26 + $0x3c] sm:$0x1] }
  0x35   : > { %v728_v9 = vpack.c.bf16 %v720_v59, %v720_v59  ;;  %v385_v10 = vmax.f32 %v344_v3, %v377_v50  ;;  %v288_v8 = vunpack.c.l.bf16 %v272_v63  ;;  %v378_v18 = vunpack.c.l.bf16 %v850_v0 }
  0x36   : > { %v418_v19 = vunpack.c.l.bf16 %v858_v1  ;;  %v593_v21 = vmax.f32 %v553_v12, %v585_v29  ;;  %v713_v22 = vunpack.c.l.bf16 %v697_v2  ;;  %v546_v24 = vunpack.c.l.bf16 %v865_v6  ;;  %v491_v1 = vld [vmem:[%s932_s23 + $0x38] sm:$0xf]  ;;  %v867_v6 = vld [vmem:[%s932_s23 + $0x40] sm:$0xf] }
  0x37   : > { %737 = vst.msk [vmem:[%s1033_s7 + $0xc] sm:$0xf] %vm733_vm1, %v728_v9  ;;  %v325_v25 = vrot.slane %v280_v15, 1  ;;  %v473_v23 = vmax.f32 %v385_v10, %v453_v4  ;;  %v326_v20 = vrot.slane %v288_v8, 1  ;;  %v454_v27 = vrot.slane %v378_v18, 1 }
  0x38   : > { %v455_v28 = vrot.slane %v418_v19, 1  ;;  %v681_v31 = vmax.f32 %v593_v21, %v659_v54  ;;  %v714_v32 = vunpack.c.l.bf16 %v698_v16  ;;  %v662_v29 = vsel %vm306_vm0, %v660_v7, %v661_v14  ;;  %v699_v4 = vld [vmem:[%s942_s29 + $0x30] sm:$0xf] }
  0x39   : > { %v513_v11 = vmax.f32 %v473_v23, %v505_v5  ;;  %v327_v38 = vsel %vm306_vm0, %v325_v25, %v326_v20  ;;  %v587_v39 = vunpack.c.l.bf16 %v571_v26  ;;  %v627_v47 = vunpack.c.l.bf16 %v611_v30  ;;  %v700_v23 = vld [vmem:[%s942_s29 + $0x38] sm:$0xf] }
  0x3a   : > { %v721_v42 = vmax.f32 %v681_v31, %v713_v22  ;;  %v345_v44 = vmax.f32 %v280_v15, %v327_v38  ;;  %v456_v46 = vsel %vm306_vm0, %v454_v27, %v455_v28  ;;  %v281_v40 = vunpack.c.l.bf16 %v265_v34 }
  0x3b   : > { %v554_v48 = vmax.f32 %v513_v11, %v546_v24  ;;  %v289_v49 = vunpack.c.l.bf16 %v273_v35  ;;  %v379_v50 = vunpack.c.l.bf16 %v851_v37  ;;  %v506_v13 = vunpack.c.l.bf16 %v490_v17 }
  0x3c   : > { %v729_v51 = vpack.c.bf16 %v721_v42, %v721_v42  ;;  %v386_v52 = vmax.f32 %v345_v44, %v378_v18  ;;  %v419_v33 = vunpack.c.l.bf16 %v859_v41  ;;  %v328_v53 = vrot.slane %v281_v40, 1 }
  0x3d   : > { %v594_v36 = vmax.f32 %v554_v48, %v586_v57  ;;  %v329_v45 = vrot.slane %v289_v49, 1  ;;  %v457_v54 = vrot.slane %v379_v50, 1  ;;  %v547_v58 = vunpack.c.l.bf16 %v866_v43 }
  0x3e   : > { %738 = vst.msk [vmem:[%s1033_s7 + $0x10] sm:$0xf] %vm733_vm1, %v729_v51  ;;  %v474_v56 = vmax.f32 %v386_v52, %v456_v46  ;;  %v458_v59 = vrot.slane %v419_v33, 1  ;;  %v663_v62 = vrot.slane %v587_v39, 1  ;;  %v664_v63 = vrot.slane %v627_v47, 1 }
  0x3f   : > { %v682_v61 = vmax.f32 %v594_v36, %v662_v29  ;;  %v330_v0 = vsel %vm306_vm0, %v328_v53, %v329_v45  ;;  %v588_v7 = vunpack.c.l.bf16 %v572_v55  ;;  %v628_v9 = vunpack.c.l.bf16 %v612_v60 }
  0x40   : > { %v514_v2 = vmax.f32 %v474_v56, %v506_v13  ;;  %v346_v57 = vmax.f32 %v281_v40, %v330_v0  ;;  %v459_v5 = vsel %vm306_vm0, %v457_v54, %v458_v59  ;;  %v507_v15 = vunpack.c.l.bf16 %v491_v1 }
  0x41   : > { %v722_v3 = vmax.f32 %v682_v61, %v714_v32  ;;  %v665_v16 = vsel %vm306_vm0, %v663_v62, %v664_v63  ;;  %v715_v18 = vunpack.c.l.bf16 %v699_v4  ;;  %v548_v21 = vunpack.c.l.bf16 %v867_v6 }
  0x42   : > { %v555_v12 = vmax.f32 %v514_v2, %v547_v58  ;;  %v387_v14 = vmax.f32 %v346_v57, %v379_v50  ;;  %v666_v22 = vrot.slane %v588_v7, 1  ;;  %v667_v24 = vrot.slane %v628_v9, 1 }
  0x43   : > { %v730_v10 = vpack.c.bf16 %v722_v3, %v722_v3  ;;  %v716_v32 = vunpack.c.l.bf16 %v700_v23 }
  0x44   : > { %v595_v8 = vmax.f32 %v555_v12, %v587_v39  ;;  %v475_v19 = vmax.f32 %v387_v14, %v459_v5  ;;  %v668_v28 = vsel %vm306_vm0, %v666_v22, %v667_v24 }
  0x45   : > { %739 = vst.msk [vmem:[%s1033_s7 + $0x14] sm:$0xf] %vm733_vm1, %v730_v10 }
  0x46   : > { %v683_v25 = vmax.f32 %v595_v8, %v665_v16  ;;  %v515_v26 = vmax.f32 %v475_v19, %v507_v15 }
  0x48   : > { %v723_v20 = vmax.f32 %v683_v25, %v715_v18  ;;  %v556_v27 = vmax.f32 %v515_v26, %v548_v21 }
  0x4a   : > { %v731_v30 = vpack.c.bf16 %v723_v20, %v723_v20  ;;  %v596_v31 = vmax.f32 %v556_v27, %v588_v7 }
  0x4c   : > { %740 = vst.msk [vmem:[%s1033_s7 + $0x18] sm:$0xf] %vm733_vm1, %v731_v30  ;;  %v684_v34 = vmax.f32 %v596_v31, %v668_v28 }
  0x4e   : > { %v724_v35 = vmax.f32 %v684_v34, %v716_v32 }
  0x50   : > { %v732_v37 = vpack.c.bf16 %v724_v35, %v724_v35 }
  0x52   : > { %741 = vst.msk [vmem:[%s1033_s7 + $0x1c] sm:$0xf] %vm733_vm1, %v732_v37 }
  0x53 PF: > { %s14_s15 = sadd.s32 1, %s886_s15  }
  0x54   : > { %p11_p4 = scmp.ge.s32.totalorder %s14_s15, 4  }
  0x56   :  { %13 = sbr.rel (!%p11_p4) target bundleno = 1 (0x1), region = 77 }

// kernel: electronics_classifier_forward.22
= control target key start
LH: loop header
LB: loop body
LE: loop exit
PB: predicated region body
PF: predicated region fallthrough
CT: control target
= control target key end

     0   :  { %s1709_s15 = smov 0   ;;  %s1711_s16 = smov 0   ;;  %s1955_s0 = inlined_call_operand.vmem [shape: bf16[512,256], index: 0, kind: input, shape index: {}]   ;;  %s1956_s1 = inlined_call_operand.vmem [shape: bf16[256,128], index: 1, kind: input, shape index: {}]   ;;  %s1957_s2 = inlined_call_operand.vmem [shape: f32[1,128], index: 2, kind: input, shape index: {}]   ;;  %s1958_s3 = inlined_call_operand.vmem [shape: f32[1,128], index: 3, kind: input, shape index: {}]   ;;  %s1959_s4 = inlined_call_operand.vmem [shape: bf16[512,128], index: 4, kind: output, shape index: {}]  }
   0x1   :  { %s1713_s17 = smov 0  }
   0x2 LB: > { %s33_s18 = sadd.s32 1, %s1678_s16  ;;  %p1274_p0 = scmp.ge.s32.totalorder %s1682_s17, 1  ;;  %s1682_s17 = sphi %s1713_s17, %s14_s17   ;;  %s1678_s16 = sphi %s1711_s16, %s1961_s16   ;;  %s1674_s15 = sphi %s1709_s15, %s1960_s15  }
   0x3   : > { %p35_p1 = scmp.ge.s32.totalorder %s33_s18, 2  ;;  %p224_p2 = scmp.lt.s32.totalorder %s1682_s17, 3 }
   0x5   : > { %s1963_s18 = smov (%p35_p1, %s33_s18), 0  ;;  %p225_p3 = pnand %p1274_p0, %p224_p2 }
   0x6   : > { %s1275_s5 = sshll.u32 (!%p225_p3), %s1674_s15, 5 }
   0x7   : > { %228 = sbr.rel (%p225_p3) target bundleno = 308 (0x134), region = 36  ;;  %p274_p4 = scmp.lt.s32.totalorder (!%p225_p3), %s1275_s5, 63 }
   0xc   : > { %v1514_v0 = vld [vmem:[%s1956_s1 + $0x38] sm:$0xff]  ;;  %v1513_v2 = vld [vmem:[%s1956_s1 + $0x30] sm:$0xff]  ;;  %v1512_v4 = vld [vmem:[%s1956_s1 + $0x28] sm:$0xff]  ;;  %s1965_s5 = smov (!%p274_p4, %s1275_s5), 63 }
   0xd   : > { %v1522_v1 = vld [vmem:[%s1956_s1 + $0x78] sm:$0xff]  ;;  %696 = vmatpush.bf16.msra.mxu0 %v1514_v0  ;;  %1618 = vmatpush.bf16.msra.mxu2 %v1514_v0  ;;  %v1521_v3 = vld [vmem:[%s1956_s1 + $0x70] sm:$0xff]  ;;  %v1520_v5 = vld [vmem:[%s1956_s1 + $0x68] sm:$0xff]  ;;  %s1474_s21 = sshll.u32 %s1965_s5, 3  ;;  %s1279_s12 = sshll.u32 %s1965_s5, 2 }
   0xe   : > { %785 = vmatpush.bf16.msra.mxu1 %v1522_v1  ;;  %1626 = vmatpush.bf16.msra.mxu3 %v1522_v1  ;;  %v1511_v6 = vld [vmem:[%s1956_s1 + $0x20] sm:$0xff]  ;;  %v1510_v8 = vld [vmem:[%s1956_s1 + $0x18] sm:$0xff]  ;;  %v1509_v10 = vld [vmem:[%s1956_s1 + $0x10] sm:$0xff]  ;;  %s1775_s26 = scalar_lea.vmem %s1955_s0, %s1474_s21  ;;  %s1869_s15 = scalar_lea.vmem %s1959_s4, %s1279_s12 }
   0xf   : > { %v1519_v7 = vld [vmem:[%s1956_s1 + $0x60] sm:$0xff]  ;;  %v1518_v9 = vld [vmem:[%s1956_s1 + $0x58] sm:$0xff]  ;;  %v1517_v11 = vld [vmem:[%s1956_s1 + $0x50] sm:$0xff] }
  0x10   : > { %v1508_v12 = vld [vmem:[%s1956_s1 + $0x8] sm:$0xff]  ;;  %v1507_v14 = vld [vmem:[%s1956_s1] sm:$0xff]  ;;  %v1290_v28 = vld [vmem:[%s1775_s26 + $0x10] sm:$0xf] }
  0x11   : > { %697 = vmatpush.bf16.msra.mxu0 %v1513_v2  ;;  %1619 = vmatpush.bf16.msra.mxu2 %v1513_v2  ;;  %v1516_v13 = vld [vmem:[%s1956_s1 + $0x48] sm:$0xff]  ;;  %v1515_v15 = vld [vmem:[%s1956_s1 + $0x40] sm:$0xff]  ;;  %v1478_v29 = vld [vmem:[%s1775_s26 + $0x14] sm:$0xf0] }
  0x12   : > { %786 = vmatpush.bf16.msra.mxu1 %v1521_v3  ;;  %1627 = vmatpush.bf16.msra.mxu3 %v1521_v3  ;;  %v1282_v16 = vld [vmem:[%s1775_s26] sm:$0xf]  ;;  %v1476_v17 = vld [vmem:[%s1775_s26 + $0x4] sm:$0xf0]  ;;  %v1475_v20 = vld [vmem:[%s1775_s26 + $0x4] sm:$0xf]  ;;  %v1291_v36 = vor.u32 %v1478_v29, %v1290_v28 }
  0x13   : > { %v1346_v18 = vld [vmem:[%s1775_s26 + $0x80] sm:$0xf]  ;;  %v1492_v19 = vld [vmem:[%s1775_s26 + $0x84] sm:$0xf0]  ;;  %v1284_v21 = vld [vmem:[%s1775_s26 + $0x8] sm:$0xf0]  ;;  %v1283_v24 = vor.u32 %v1476_v17, %v1282_v16 }
  0x14   : > { %v1491_v22 = vld [vmem:[%s1775_s26 + $0x84] sm:$0xf]  ;;  %v1348_v23 = vld [vmem:[%s1775_s26 + $0x88] sm:$0xf0]  ;;  %v1347_v25 = vor.u32 %v1492_v19, %v1346_v18  ;;  %v1287_v26 = vor.u32 %v1475_v20, %v1284_v21  ;;  %v1354_v30 = vld [vmem:[%s1775_s26 + $0x90] sm:$0xf] }
  0x15   : > { %698 = vmatpush.bf16.msra.mxu0 %v1512_v4  ;;  %1620 = vmatpush.bf16.msra.mxu2 %v1512_v4  ;;  %v1351_v27 = vor.u32 %v1491_v22, %v1348_v23  ;;  %v1494_v31 = vld [vmem:[%s1775_s26 + $0x94] sm:$0xf0]  ;;  %v1477_v32 = vld [vmem:[%s1775_s26 + $0x14] sm:$0xf]  ;;  %v1292_v33 = vld [vmem:[%s1775_s26 + $0x18] sm:$0xf0] }
  0x16   : > { %787 = vmatpush.bf16.msra.mxu1 %v1520_v5  ;;  %1628 = vmatpush.bf16.msra.mxu3 %v1520_v5  ;;  %v1493_v34 = vld [vmem:[%s1775_s26 + $0x94] sm:$0xf]  ;;  %v1356_v35 = vld [vmem:[%s1775_s26 + $0x98] sm:$0xf0]  ;;  %v1355_v37 = vor.u32 %v1494_v31, %v1354_v30  ;;  %v1295_v38 = vor.u32 %v1477_v32, %v1292_v33  ;;  %v1298_v40 = vld [vmem:[%s1775_s26 + $0x20] sm:$0xf] }
  0x17   : > { %v1359_v39 = vor.u32 %v1493_v34, %v1356_v35  ;;  %v1480_v41 = vld [vmem:[%s1775_s26 + $0x24] sm:$0xf0]  ;;  %v1362_v42 = vld [vmem:[%s1775_s26 + $0xa0] sm:$0xf]  ;;  %v1479_v44 = vld [vmem:[%s1775_s26 + $0x24] sm:$0xf] }
  0x18   : > { %v1496_v43 = vld [vmem:[%s1775_s26 + $0xa4] sm:$0xf0]  ;;  %v1300_v45 = vld [vmem:[%s1775_s26 + $0x28] sm:$0xf0]  ;;  %v1495_v46 = vld [vmem:[%s1775_s26 + $0xa4] sm:$0xf]  ;;  %v1299_v48 = vor.u32 %v1480_v41, %v1298_v40 }
  0x19   : > { %699 = vmatpush.bf16.msra.mxu0 %v1511_v6  ;;  %1621 = vmatpush.bf16.msra.mxu2 %v1511_v6  ;;  %v1364_v47 = vld [vmem:[%s1775_s26 + $0xa8] sm:$0xf0]  ;;  %v1363_v49 = vor.u32 %v1496_v43, %v1362_v42  ;;  %v1303_v50 = vor.u32 %v1479_v44, %v1300_v45  ;;  %v1306_v52 = vld [vmem:[%s1775_s26 + $0x30] sm:$0xf]  ;;  %v1482_v53 = vld [vmem:[%s1775_s26 + $0x34] sm:$0xf0] }
  0x1a   : > { %788 = vmatpush.bf16.msra.mxu1 %v1519_v7  ;;  %1629 = vmatpush.bf16.msra.mxu3 %v1519_v7  ;;  %v1367_v51 = vor.u32 %v1495_v46, %v1364_v47  ;;  %v1370_v54 = vld [vmem:[%s1775_s26 + $0xb0] sm:$0xf]  ;;  %v1498_v55 = vld [vmem:[%s1775_s26 + $0xb4] sm:$0xf0]  ;;  %v1481_v56 = vld [vmem:[%s1775_s26 + $0x34] sm:$0xf]  ;;  %v1307_v60 = vor.u32 %v1482_v53, %v1306_v52 }
  0x1b   : > { %v1308_v57 = vld [vmem:[%s1775_s26 + $0x38] sm:$0xf0]  ;;  %v1497_v58 = vld [vmem:[%s1775_s26 + $0xb4] sm:$0xf]  ;;  %v1371_v61 = vor.u32 %v1498_v55, %v1370_v54  ;;  %v1314_v0 = vld [vmem:[%s1775_s26 + $0x40] sm:$0xf] }
  0x1c   : > { %v1372_v59 = vld [vmem:[%s1775_s26 + $0xb8] sm:$0xf0]  ;;  %v1311_v62 = vor.u32 %v1481_v56, %v1308_v57  ;;  %v1484_v1 = vld [vmem:[%s1775_s26 + $0x44] sm:$0xf0]  ;;  %v1378_v2 = vld [vmem:[%s1775_s26 + $0xc0] sm:$0xf] }
  0x1d   : > { %700 = vmatpush.bf16.msra.mxu0 %v1510_v8  ;;  %1622 = vmatpush.bf16.msra.mxu2 %v1510_v8  ;;  %v1375_v63 = vor.u32 %v1497_v58, %v1372_v59  ;;  %v1500_v3 = vld [vmem:[%s1775_s26 + $0xc4] sm:$0xf0]  ;;  %v1483_v4 = vld [vmem:[%s1775_s26 + $0x44] sm:$0xf]  ;;  %v1316_v5 = vld [vmem:[%s1775_s26 + $0x48] sm:$0xf0]  ;;  %v1315_v8 = vor.u32 %v1484_v1, %v1314_v0 }
  0x1e   : > { %789 = vmatpush.bf16.msra.mxu1 %v1518_v9  ;;  %1630 = vmatpush.bf16.msra.mxu3 %v1518_v9  ;;  %v1499_v6 = vld [vmem:[%s1775_s26 + $0xc4] sm:$0xf]  ;;  %v1380_v7 = vld [vmem:[%s1775_s26 + $0xc8] sm:$0xf0]  ;;  %v1379_v9 = vor.u32 %v1500_v3, %v1378_v2  ;;  %v1485_v16 = vld [vmem:[%s1775_s26 + $0x54] sm:$0xf] }
  0x1f   : > { %v1324_v17 = vld [vmem:[%s1775_s26 + $0x58] sm:$0xf0]  ;;  %v1501_v18 = vld [vmem:[%s1775_s26 + $0xd4] sm:$0xf]  ;;  %v1487_v28 = vld [vmem:[%s1775_s26 + $0x64] sm:$0xf] }
  0x20   : > { %v1388_v19 = vld [vmem:[%s1775_s26 + $0xd8] sm:$0xf0]  ;;  %v1327_v22 = vor.u32 %v1485_v16, %v1324_v17  ;;  %v1332_v29 = vld [vmem:[%s1775_s26 + $0x68] sm:$0xf0]  ;;  %v1503_v30 = vld [vmem:[%s1775_s26 + $0xe4] sm:$0xf] }
  0x21   : > { %701 = vmatpush.bf16.msra.mxu0 %v1509_v10  ;;  %1623 = vmatpush.bf16.msra.mxu2 %v1509_v10  ;;  %v1319_v10 = vor.u32 %v1483_v4, %v1316_v5  ;;  %v1391_v23 = vor.u32 %v1501_v18, %v1388_v19  ;;  %v1396_v31 = vld [vmem:[%s1775_s26 + $0xe8] sm:$0xf0]  ;;  %v1335_v34 = vor.u32 %v1487_v28, %v1332_v29  ;;  %v1489_v40 = vld [vmem:[%s1775_s26 + $0x74] sm:$0xf]  ;;  %v1340_v41 = vld [vmem:[%s1775_s26 + $0x78] sm:$0xf0] }
  0x22   : > { %790 = vmatpush.bf16.msra.mxu1 %v1517_v11  ;;  %1631 = vmatpush.bf16.msra.mxu3 %v1517_v11  ;;  %v1383_v11 = vor.u32 %v1499_v6, %v1380_v7  ;;  %v1399_v35 = vor.u32 %v1503_v30, %v1396_v31  ;;  %v1505_v42 = vld [vmem:[%s1775_s26 + $0xf4] sm:$0xf]  ;;  %v1404_v43 = vld [vmem:[%s1775_s26 + $0xf8] sm:$0xf0]  ;;  %v1343_v46 = vor.u32 %v1489_v40, %v1340_v41  ;;  %v1859_v55 = vld [vmem:[%s1958_s3] ss:$0 sm:$0xff] }
  0x23   : > { %v1407_v47 = vor.u32 %v1505_v42, %v1404_v43 }
  0x25   : > { %702 = vmatpush.bf16.msra.mxu0 %v1508_v12  ;;  %1624 = vmatpush.bf16.msra.mxu2 %v1508_v12  ;;  %v1322_v12 = vld [vmem:[%s1775_s26 + $0x50] sm:$0xf] }
  0x26   : > { %791 = vmatpush.bf16.msra.mxu1 %v1516_v13  ;;  %1632 = vmatpush.bf16.msra.mxu3 %v1516_v13  ;;  %v1486_v13 = vld [vmem:[%s1775_s26 + $0x54] sm:$0xf0] }
  0x27   : > { %v1323_v20 = vor.u32 %v1486_v13, %v1322_v12 }
  0x29   : > { %703 = vmatpush.bf16.msra.mxu0 %v1507_v14  ;;  %1625 = vmatpush.bf16.msra.mxu2 %v1507_v14  ;;  %v1386_v14 = vld [vmem:[%s1775_s26 + $0xd0] sm:$0xf] }
  0x2a   : > { %792 = vmatpush.bf16.msra.mxu1 %v1515_v15  ;;  %1633 = vmatpush.bf16.msra.mxu3 %v1515_v15  ;;  %v1502_v15 = vld [vmem:[%s1775_s26 + $0xd4] sm:$0xf0] }
  0x2b   : > { %v1387_v21 = vor.u32 %v1502_v15, %v1386_v14 }
  0x2c   : > { %704 = vmatmul.bf16.vlgmr.msra.gmra.mxu0 %v1283_v24  ;;  %744 = vmatmul.bf16.vlgmr.msra.gmra.mxu2 %v1347_v25  ;;  %v1330_v24 = vld [vmem:[%s1775_s26 + $0x60] sm:$0xf]  ;;  %v1488_v25 = vld [vmem:[%s1775_s26 + $0x64] sm:$0xf0] }
  0x2d   : > { %793 = vmatmul.bf16.vlgmr.msra.gmra.mxu1 %v1287_v26  ;;  %833 = vmatmul.bf16.vlgmr.msra.gmra.mxu3 %v1351_v27  ;;  %v1394_v26 = vld [vmem:[%s1775_s26 + $0xe0] sm:$0xf]  ;;  %v1504_v27 = vld [vmem:[%s1775_s26 + $0xe4] sm:$0xf0]  ;;  %v1331_v32 = vor.u32 %v1488_v25, %v1330_v24 }
  0x2e   : > { %v1395_v33 = vor.u32 %v1504_v27, %v1394_v26 }
  0x3c   : > { %709 = vmatmul.bf16.gmra.mxu0 %v1291_v36  ;;  %749 = vmatmul.bf16.gmra.mxu2 %v1355_v37  ;;  %v1338_v36 = vld [vmem:[%s1775_s26 + $0x70] sm:$0xf]  ;;  %v1490_v37 = vld [vmem:[%s1775_s26 + $0x74] sm:$0xf0] }
  0x3d   : > { %798 = vmatmul.bf16.gmra.mxu1 %v1295_v38  ;;  %838 = vmatmul.bf16.gmra.mxu3 %v1359_v39  ;;  %v1402_v38 = vld [vmem:[%s1775_s26 + $0xf0] sm:$0xf]  ;;  %v1506_v39 = vld [vmem:[%s1775_s26 + $0xf4] sm:$0xf0]  ;;  %v1339_v44 = vor.u32 %v1490_v37, %v1338_v36 }
  0x3e   : > { %v1403_v45 = vor.u32 %v1506_v39, %v1402_v38 }
  0x4c   : > { %714 = vmatmul.bf16.gmra.mxu0 %v1299_v48  ;;  %754 = vmatmul.bf16.gmra.mxu2 %v1363_v49 }
  0x4d   : > { %803 = vmatmul.bf16.gmra.mxu1 %v1303_v50  ;;  %843 = vmatmul.bf16.gmra.mxu3 %v1367_v51  ;;  %v1853_v51 = vld [vmem:[%s1957_s2] ss:$0 sm:$0xff] }
  0x5c   : > { %719 = vmatmul.bf16.gmra.mxu0 %v1307_v60  ;;  %759 = vmatmul.bf16.gmra.mxu2 %v1371_v61 }
  0x5d   : > { %808 = vmatmul.bf16.gmra.mxu1 %v1311_v62  ;;  %848 = vmatmul.bf16.gmra.mxu3 %v1375_v63 }
  0x6c   : > { %724 = vmatmul.bf16.gmra.mxu0 %v1315_v8  ;;  %764 = vmatmul.bf16.gmra.mxu2 %v1379_v9 }
  0x6d   : > { %813 = vmatmul.bf16.gmra.mxu1 %v1319_v10  ;;  %853 = vmatmul.bf16.gmra.mxu3 %v1383_v11 }
  0x7c   : > { %729 = vmatmul.bf16.gmra.mxu0 %v1323_v20  ;;  %769 = vmatmul.bf16.gmra.mxu2 %v1387_v21 }
  0x7d   : > { %818 = vmatmul.bf16.gmra.mxu1 %v1327_v22  ;;  %858 = vmatmul.bf16.gmra.mxu3 %v1391_v23 }
  0x8c   : > { %734 = vmatmul.bf16.gmra.mxu0 %v1331_v32  ;;  %774 = vmatmul.bf16.gmra.mxu2 %v1395_v33 }
  0x8d   : > { %823 = vmatmul.bf16.gmra.mxu1 %v1335_v34  ;;  %863 = vmatmul.bf16.gmra.mxu3 %v1399_v35 }
  0x9c   : > { %739 = vmatmul.bf16.gmra.mxu0 %v1339_v44  ;;  %779 = vmatmul.bf16.gmra.mxu2 %v1403_v45 }
  0x9d   : > { %828 = vmatmul.bf16.gmra.mxu1 %v1343_v46  ;;  %868 = vmatmul.bf16.gmra.mxu3 %v1407_v47 }
  0xa9   : > { %v705_v48 = vpop.f32.mrf.mxu0 }
  0xaa   : > { %v794_v49 = vpop.f32.mrf.mxu1 }
  0xab   : > { %v795_v50 = vadd.f32 %v794_v49, %v705_v48 }
  0xad   : > { %v977_v54 = vmul.f32 %v1853_v51, %v795_v50 }
  0xaf   : > { %v745_v52 = vpop.f32.mrf.mxu2  ;;  %v1013_v60 = vadd.f32 %v1859_v55, %v977_v54 }
  0xb0   : > { %v834_v53 = vpop.f32.mrf.mxu3 }
  0xb1   : > { %v707_v56 = vpop.f32.mrf.mxu0  ;;  %v835_v58 = vadd.f32 %v834_v53, %v745_v52  ;;  %v1045_v2 = vmax.f32 %v1013_v60, 0.0 }
  0xb2   : > { %v796_v57 = vpop.f32.mrf.mxu1 }
  0xb3   : > { %v797_v59 = vadd.f32 %v796_v57, %v707_v56  ;;  %v993_v62 = vmul.f32 %v1853_v51, %v835_v58 }
  0xb5   : > { %v978_v61 = vmul.f32 %v1853_v51, %v797_v59  ;;  %v1029_v7 = vadd.f32 %v1859_v55, %v993_v62 }
  0xb7   : > { %v1014_v63 = vadd.f32 %v1859_v55, %v978_v61  ;;  %v747_v0 = vpop.f32.mrf.mxu2  ;;  %v1061_v12 = vmax.f32 %v1029_v7, 0.0 }
  0xb8   : > { %v836_v1 = vpop.f32.mrf.mxu3 }
  0xb9   : > { %v1046_v3 = vmax.f32 %v1014_v63, 0.0  ;;  %v837_v4 = vadd.f32 %v836_v1, %v747_v0  ;;  %v710_v5 = vpop.f32.mrf.mxu0 }
  0xba   : > { %v799_v6 = vpop.f32.mrf.mxu1 }
  0xbb   : > { %v1526_v8 = vpack.c.bf16 %v1046_v3, %v1045_v2  ;;  %v994_v9 = vmul.f32 %v1853_v51, %v837_v4  ;;  %v800_v11 = vadd.f32 %v799_v6, %v710_v5 }
  0xbd   : > { %1527 = vst [vmem:[%s1869_s15] sm:$0xff] %v1526_v8   ;;  %v1030_v10 = vadd.f32 %v1859_v55, %v994_v9  ;;  %v979_v17 = vmul.f32 %v1853_v51, %v800_v11 }
  0xbf   : > { %v1062_v13 = vmax.f32 %v1030_v10, 0.0  ;;  %v750_v14 = vpop.f32.mrf.mxu2  ;;  %v1015_v22 = vadd.f32 %v1859_v55, %v979_v17 }
  0xc0   : > { %v839_v15 = vpop.f32.mrf.mxu3 }
  0xc1   : > { %v1566_v16 = vpack.c.bf16 %v1062_v13, %v1061_v12  ;;  %v712_v18 = vpop.f32.mrf.mxu0  ;;  %v840_v20 = vadd.f32 %v839_v15, %v750_v14  ;;  %v1047_v28 = vmax.f32 %v1015_v22, 0.0 }
  0xc2   : > { %v801_v19 = vpop.f32.mrf.mxu1 }
  0xc3   : > { %1610 = vst [vmem:[%s1869_s15 + $0x40] sm:$0xff] %v1566_v16   ;;  %v802_v21 = vadd.f32 %v801_v19, %v712_v18  ;;  %v995_v24 = vmul.f32 %v1853_v51, %v840_v20 }
  0xc5   : > { %v980_v23 = vmul.f32 %v1853_v51, %v802_v21  ;;  %v1031_v33 = vadd.f32 %v1859_v55, %v995_v24 }
  0xc7   : > { %v1016_v25 = vadd.f32 %v1859_v55, %v980_v23  ;;  %v752_v26 = vpop.f32.mrf.mxu2  ;;  %v1063_v38 = vmax.f32 %v1031_v33, 0.0 }
  0xc8   : > { %v841_v27 = vpop.f32.mrf.mxu3 }
  0xc9   : > { %v1048_v29 = vmax.f32 %v1016_v25, 0.0  ;;  %v842_v30 = vadd.f32 %v841_v27, %v752_v26  ;;  %v715_v31 = vpop.f32.mrf.mxu0 }
  0xca   : > { %v804_v32 = vpop.f32.mrf.mxu1 }
  0xcb   : > { %v1531_v34 = vpack.c.bf16 %v1048_v29, %v1047_v28  ;;  %v996_v35 = vmul.f32 %v1853_v51, %v842_v30  ;;  %v805_v37 = vadd.f32 %v804_v32, %v715_v31 }
  0xcd   : > { %1603 = vst [vmem:[%s1869_s15 + $0x8] sm:$0xff] %v1531_v34   ;;  %v1032_v36 = vadd.f32 %v1859_v55, %v996_v35  ;;  %v981_v43 = vmul.f32 %v1853_v51, %v805_v37 }
  0xcf   : > { %v1064_v39 = vmax.f32 %v1032_v36, 0.0  ;;  %v755_v40 = vpop.f32.mrf.mxu2  ;;  %v1017_v48 = vadd.f32 %v1859_v55, %v981_v43 }
  0xd0   : > { %v844_v41 = vpop.f32.mrf.mxu3 }
  0xd1   : > { %v1571_v42 = vpack.c.bf16 %v1064_v39, %v1063_v38  ;;  %v717_v44 = vpop.f32.mrf.mxu0  ;;  %v845_v46 = vadd.f32 %v844_v41, %v755_v40  ;;  %v1049_v56 = vmax.f32 %v1017_v48, 0.0 }
  0xd2   : > { %v806_v45 = vpop.f32.mrf.mxu1 }
  0xd3   : > { %1611 = vst [vmem:[%s1869_s15 + $0x48] sm:$0xff] %v1571_v42   ;;  %v807_v47 = vadd.f32 %v806_v45, %v717_v44  ;;  %v997_v50 = vmul.f32 %v1853_v51, %v845_v46 }
  0xd5   : > { %v982_v49 = vmul.f32 %v1853_v51, %v807_v47  ;;  %v1033_v61 = vadd.f32 %v1859_v55, %v997_v50 }
  0xd7   : > { %v1018_v52 = vadd.f32 %v1859_v55, %v982_v49  ;;  %v757_v53 = vpop.f32.mrf.mxu2  ;;  %v1065_v2 = vmax.f32 %v1033_v61, 0.0 }
  0xd8   : > { %v846_v54 = vpop.f32.mrf.mxu3 }
  0xd9   : > { %v1050_v57 = vmax.f32 %v1018_v52, 0.0  ;;  %v847_v58 = vadd.f32 %v846_v54, %v757_v53  ;;  %v720_v59 = vpop.f32.mrf.mxu0 }
  0xda   : > { %v809_v60 = vpop.f32.mrf.mxu1 }
  0xdb   : > { %v1536_v62 = vpack.c.bf16 %v1050_v57, %v1049_v56  ;;  %v998_v63 = vmul.f32 %v1853_v51, %v847_v58  ;;  %v810_v1 = vadd.f32 %v809_v60, %v720_v59 }
  0xdd   : > { %1604 = vst [vmem:[%s1869_s15 + $0x10] sm:$0xff] %v1536_v62   ;;  %v1034_v0 = vadd.f32 %v1859_v55, %v998_v63  ;;  %v983_v7 = vmul.f32 %v1853_v51, %v810_v1 }
  0xdf   : > { %v1066_v3 = vmax.f32 %v1034_v0, 0.0  ;;  %v760_v4 = vpop.f32.mrf.mxu2  ;;  %v1019_v12 = vadd.f32 %v1859_v55, %v983_v7 }
  0xe0   : > { %v849_v5 = vpop.f32.mrf.mxu3 }
  0xe1   : > { %v1576_v6 = vpack.c.bf16 %v1066_v3, %v1065_v2  ;;  %v722_v8 = vpop.f32.mrf.mxu0  ;;  %v850_v10 = vadd.f32 %v849_v5, %v760_v4  ;;  %v1051_v18 = vmax.f32 %v1019_v12, 0.0 }
  0xe2   : > { %v811_v9 = vpop.f32.mrf.mxu1 }
  0xe3   : > { %1612 = vst [vmem:[%s1869_s15 + $0x50] sm:$0xff] %v1576_v6   ;;  %v812_v11 = vadd.f32 %v811_v9, %v722_v8  ;;  %v999_v14 = vmul.f32 %v1853_v51, %v850_v10 }
  0xe5   : > { %v984_v13 = vmul.f32 %v1853_v51, %v812_v11  ;;  %v1035_v23 = vadd.f32 %v1859_v55, %v999_v14 }
  0xe7   : > { %v1020_v15 = vadd.f32 %v1859_v55, %v984_v13  ;;  %v762_v16 = vpop.f32.mrf.mxu2  ;;  %v1067_v28 = vmax.f32 %v1035_v23, 0.0 }
  0xe8   : > { %v851_v17 = vpop.f32.mrf.mxu3 }
  0xe9   : > { %v1052_v19 = vmax.f32 %v1020_v15, 0.0  ;;  %v852_v20 = vadd.f32 %v851_v17, %v762_v16  ;;  %v725_v21 = vpop.f32.mrf.mxu0 }
  0xea   : > { %v814_v22 = vpop.f32.mrf.mxu1 }
  0xeb   : > { %v1541_v24 = vpack.c.bf16 %v1052_v19, %v1051_v18  ;;  %v1000_v25 = vmul.f32 %v1853_v51, %v852_v20  ;;  %v815_v27 = vadd.f32 %v814_v22, %v725_v21 }
  0xed   : > { %1605 = vst [vmem:[%s1869_s15 + $0x18] sm:$0xff] %v1541_v24   ;;  %v1036_v26 = vadd.f32 %v1859_v55, %v1000_v25  ;;  %v985_v33 = vmul.f32 %v1853_v51, %v815_v27 }
  0xef   : > { %v1068_v29 = vmax.f32 %v1036_v26, 0.0  ;;  %v765_v30 = vpop.f32.mrf.mxu2  ;;  %v1021_v38 = vadd.f32 %v1859_v55, %v985_v33 }
  0xf0   : > { %v854_v31 = vpop.f32.mrf.mxu3 }
  0xf1   : > { %v1581_v32 = vpack.c.bf16 %v1068_v29, %v1067_v28  ;;  %v727_v34 = vpop.f32.mrf.mxu0  ;;  %v855_v36 = vadd.f32 %v854_v31, %v765_v30  ;;  %v1053_v44 = vmax.f32 %v1021_v38, 0.0 }
  0xf2   : > { %v816_v35 = vpop.f32.mrf.mxu1 }
  0xf3   : > { %1613 = vst [vmem:[%s1869_s15 + $0x58] sm:$0xff] %v1581_v32   ;;  %v817_v37 = vadd.f32 %v816_v35, %v727_v34  ;;  %v1001_v40 = vmul.f32 %v1853_v51, %v855_v36 }
  0xf5   : > { %v986_v39 = vmul.f32 %v1853_v51, %v817_v37  ;;  %v1037_v49 = vadd.f32 %v1859_v55, %v1001_v40 }
  0xf7   : > { %v1022_v41 = vadd.f32 %v1859_v55, %v986_v39  ;;  %v767_v42 = vpop.f32.mrf.mxu2  ;;  %v1069_v56 = vmax.f32 %v1037_v49, 0.0 }
  0xf8   : > { %v856_v43 = vpop.f32.mrf.mxu3 }
  0xf9   : > { %v1054_v45 = vmax.f32 %v1022_v41, 0.0  ;;  %v857_v46 = vadd.f32 %v856_v43, %v767_v42  ;;  %v730_v47 = vpop.f32.mrf.mxu0 }
  0xfa   : > { %v819_v48 = vpop.f32.mrf.mxu1 }
  0xfb   : > { %v1546_v50 = vpack.c.bf16 %v1054_v45, %v1053_v44  ;;  %v1002_v52 = vmul.f32 %v1853_v51, %v857_v46  ;;  %v820_v54 = vadd.f32 %v819_v48, %v730_v47 }
  0xfd   : > { %1606 = vst [vmem:[%s1869_s15 + $0x20] sm:$0xff] %v1546_v50   ;;  %v1038_v53 = vadd.f32 %v1859_v55, %v1002_v52  ;;  %v987_v61 = vmul.f32 %v1853_v51, %v820_v54 }
  0xff   : > { %v1070_v57 = vmax.f32 %v1038_v53, 0.0  ;;  %v770_v58 = vpop.f32.mrf.mxu2  ;;  %v1023_v2 = vadd.f32 %v1859_v55, %v987_v61 }
 0x100   : > { %v859_v59 = vpop.f32.mrf.mxu3 }
 0x101   : > { %v1586_v60 = vpack.c.bf16 %v1070_v57, %v1069_v56  ;;  %v732_v62 = vpop.f32.mrf.mxu0  ;;  %v860_v0 = vadd.f32 %v859_v59, %v770_v58  ;;  %v1055_v8 = vmax.f32 %v1023_v2, 0.0 }
 0x102   : > { %v821_v63 = vpop.f32.mrf.mxu1 }
 0x103   : > { %1614 = vst [vmem:[%s1869_s15 + $0x60] sm:$0xff] %v1586_v60   ;;  %v822_v1 = vadd.f32 %v821_v63, %v732_v62  ;;  %v1003_v4 = vmul.f32 %v1853_v51, %v860_v0 }
 0x105   : > { %v988_v3 = vmul.f32 %v1853_v51, %v822_v1  ;;  %v1039_v13 = vadd.f32 %v1859_v55, %v1003_v4 }
 0x107   : > { %v1024_v5 = vadd.f32 %v1859_v55, %v988_v3  ;;  %v772_v6 = vpop.f32.mrf.mxu2  ;;  %v1071_v18 = vmax.f32 %v1039_v13, 0.0 }
 0x108   : > { %v861_v7 = vpop.f32.mrf.mxu3 }
 0x109   : > { %v1056_v9 = vmax.f32 %v1024_v5, 0.0  ;;  %v862_v10 = vadd.f32 %v861_v7, %v772_v6  ;;  %v735_v11 = vpop.f32.mrf.mxu0 }
 0x10a   : > { %v824_v12 = vpop.f32.mrf.mxu1 }
 0x10b   : > { %v1551_v14 = vpack.c.bf16 %v1056_v9, %v1055_v8  ;;  %v1004_v15 = vmul.f32 %v1853_v51, %v862_v10  ;;  %v825_v17 = vadd.f32 %v824_v12, %v735_v11 }
 0x10d   : > { %1607 = vst [vmem:[%s1869_s15 + $0x28] sm:$0xff] %v1551_v14   ;;  %v1040_v16 = vadd.f32 %v1859_v55, %v1004_v15  ;;  %v989_v23 = vmul.f32 %v1853_v51, %v825_v17 }
 0x10f   : > { %v1072_v19 = vmax.f32 %v1040_v16, 0.0  ;;  %v775_v20 = vpop.f32.mrf.mxu2  ;;  %v1025_v28 = vadd.f32 %v1859_v55, %v989_v23 }
 0x110   : > { %v864_v21 = vpop.f32.mrf.mxu3 }
 0x111   : > { %v1591_v22 = vpack.c.bf16 %v1072_v19, %v1071_v18  ;;  %v737_v24 = vpop.f32.mrf.mxu0  ;;  %v865_v26 = vadd.f32 %v864_v21, %v775_v20  ;;  %v1057_v34 = vmax.f32 %v1025_v28, 0.0 }
 0x112   : > { %v826_v25 = vpop.f32.mrf.mxu1 }
 0x113   : > { %1615 = vst [vmem:[%s1869_s15 + $0x68] sm:$0xff] %v1591_v22   ;;  %v827_v27 = vadd.f32 %v826_v25, %v737_v24  ;;  %v1005_v30 = vmul.f32 %v1853_v51, %v865_v26 }
 0x115   : > { %v990_v29 = vmul.f32 %v1853_v51, %v827_v27  ;;  %v1041_v39 = vadd.f32 %v1859_v55, %v1005_v30 }
 0x117   : > { %v1026_v31 = vadd.f32 %v1859_v55, %v990_v29  ;;  %v777_v32 = vpop.f32.mrf.mxu2  ;;  %v1073_v44 = vmax.f32 %v1041_v39, 0.0 }
 0x118   : > { %v866_v33 = vpop.f32.mrf.mxu3 }
 0x119   : > { %v1058_v35 = vmax.f32 %v1026_v31, 0.0  ;;  %v867_v36 = vadd.f32 %v866_v33, %v777_v32  ;;  %v740_v37 = vpop.f32.mrf.mxu0 }
 0x11a   : > { %v829_v38 = vpop.f32.mrf.mxu1 }
 0x11b   : > { %v1556_v40 = vpack.c.bf16 %v1058_v35, %v1057_v34  ;;  %v1006_v41 = vmul.f32 %v1853_v51, %v867_v36  ;;  %v830_v43 = vadd.f32 %v829_v38, %v740_v37 }
 0x11d   : > { %1608 = vst [vmem:[%s1869_s15 + $0x30] sm:$0xff] %v1556_v40   ;;  %v1042_v42 = vadd.f32 %v1859_v55, %v1006_v41  ;;  %v991_v49 = vmul.f32 %v1853_v51, %v830_v43 }
 0x11f   : > { %v1074_v45 = vmax.f32 %v1042_v42, 0.0  ;;  %v780_v46 = vpop.f32.mrf.mxu2  ;;  %v1027_v56 = vadd.f32 %v1859_v55, %v991_v49 }
 0x120   : > { %v869_v47 = vpop.f32.mrf.mxu3 }
 0x121   : > { %v1596_v48 = vpack.c.bf16 %v1074_v45, %v1073_v44  ;;  %v742_v50 = vpop.f32.mrf.mxu0  ;;  %v870_v53 = vadd.f32 %v869_v47, %v780_v46  ;;  %v1059_v62 = vmax.f32 %v1027_v56, 0.0 }
 0x122   : > { %v831_v52 = vpop.f32.mrf.mxu1 }
 0x123   : > { %1616 = vst [vmem:[%s1869_s15 + $0x70] sm:$0xff] %v1596_v48   ;;  %v832_v54 = vadd.f32 %v831_v52, %v742_v50  ;;  %v1007_v58 = vmul.f32 %v1853_v51, %v870_v53 }
 0x125   : > { %v992_v57 = vmul.f32 %v1853_v51, %v832_v54  ;;  %v1043_v1 = vadd.f32 %v1859_v55, %v1007_v58 }
 0x127   : > { %v1028_v59 = vadd.f32 %v1859_v55, %v992_v57  ;;  %v782_v60 = vpop.f32.mrf.mxu2  ;;  %v1075_v5 = vmax.f32 %v1043_v1, 0.0 }
 0x128   : > { %v871_v61 = vpop.f32.mrf.mxu3 }
 0x129   : > { %v1060_v63 = vmax.f32 %v1028_v59, 0.0  ;;  %v872_v0 = vadd.f32 %v871_v61, %v782_v60 }
 0x12b   : > { %v1561_v2 = vpack.c.bf16 %v1060_v63, %v1059_v62  ;;  %v1008_v3 = vmul.f32 %v1853_v51, %v872_v0 }
 0x12d   : > { %1609 = vst [vmem:[%s1869_s15 + $0x38] sm:$0xff] %v1561_v2   ;;  %v1044_v4 = vadd.f32 %v1859_v55, %v1008_v3 }
 0x12f   : > { %v1076_v6 = vmax.f32 %v1044_v4, 0.0 }
 0x131   : > { %v1601_v7 = vpack.c.bf16 %v1076_v6, %v1075_v5 }
 0x133   : > { %1617 = vst [vmem:[%s1869_s15 + $0x78] sm:$0xff] %v1601_v7  }
 0x134 PF: > { %s14_s17 = sadd.s32 1, %s1682_s17   ;;  %s1960_s15 = smov %s1678_s16 }
 0x135   : > { %p11_p5 = scmp.ge.s32.totalorder %s14_s17, 4   ;;  %s1961_s16 = smov %s1963_s18 }
 0x137   :  { %13 = sbr.rel (!%p11_p5) target bundleno = 2 (0x2), region = 83 }

// kernel: electronics_classifier_forward.24
= control target key start
LH: loop header
LB: loop body
LE: loop exit
PB: predicated region body
PF: predicated region fallthrough
CT: control target
= control target key end

     0   :  { %s1551_s15 = smov 0   ;;  %s1553_s16 = smov 0   ;;  %s1794_s0 = inlined_call_operand.vmem [shape: bf16[128,640], index: 0, kind: input, shape index: {}]   ;;  %s1795_s1 = inlined_call_operand.vmem [shape: bf16[640,128], index: 1, kind: input, shape index: {}]   ;;  %s1796_s2 = inlined_call_operand.vmem [shape: f32[1,128], index: 2, kind: input, shape index: {}]   ;;  %s1797_s3 = inlined_call_operand.vmem [shape: f32[1,128], index: 3, kind: input, shape index: {}]   ;;  %s1798_s4 = inlined_call_operand.vmem [shape: bf16[128,128], index: 4, kind: output, shape index: {}]  }
   0x1   :  { %s1555_s17 = smov 0  }
   0x2 LB: > { %s33_s18 = sadd.s32 1, %s1520_s16  ;;  %p1129_p0 = scmp.ge.s32.totalorder %s1524_s17, 1  ;;  %s1524_s17 = sphi %s1555_s17, %s14_s17   ;;  %s1520_s16 = sphi %s1553_s16, %s1800_s16   ;;  %s1516_s15 = sphi %s1551_s15, %s1799_s15  }
   0x3   : > { %p35_p1 = scmp.ge.s32.totalorder %s33_s18, 2  ;;  %p224_p2 = scmp.lt.s32.totalorder %s1524_s17, 3 }
   0x5   : > { %s1802_s18 = smov (%p35_p1, %s33_s18), 0  ;;  %p225_p3 = pnand %p1129_p0, %p224_p2 }
   0x6   : > { %s1130_s9 = sshll.u32 (!%p225_p3), %s1516_s15, 3 }
   0x7   : > { %228 = sbr.rel (%p225_p3) target bundleno = 275 (0x113), region = 36  ;;  %p274_p4 = scmp.lt.s32.totalorder (!%p225_p3), %s1130_s9, 15 }
   0xc   : > { %v1403_v0 = vld [vmem:[%s1795_s1 + $0x38] sm:$0xff]  ;;  %v1402_v2 = vld [vmem:[%s1795_s1 + $0x30] sm:$0xff]  ;;  %v1401_v6 = vld [vmem:[%s1795_s1 + $0x28] sm:$0xff]  ;;  %s1804_s9 = smov (!%p274_p4, %s1130_s9), 15 }
   0xd   : > { %v1419_v1 = vld [vmem:[%s1795_s1 + $0xb8] sm:$0xff]  ;;  %1459 = vmatpush.bf16.msra.mxu1 %v1403_v0  ;;  %776 = vmatpush.bf16.msra.mxu0 %v1403_v0  ;;  %v1418_v3 = vld [vmem:[%s1795_s1 + $0xb0] sm:$0xff]  ;;  %v1417_v7 = vld [vmem:[%s1795_s1 + $0xa8] sm:$0xff]  ;;  %s1475_s29 = smul.u32 20, %s1804_s9  ;;  %s1133_s15 = sshll.u32 %s1804_s9, 2 }
   0xe   : > { %834 = vmatpush.bf16.msra.mxu2 %v1419_v1  ;;  %v1427_v4 = vld [vmem:[%s1795_s1 + $0xf8] sm:$0xff]  ;;  %v1426_v5 = vld [vmem:[%s1795_s1 + $0xf0] sm:$0xff]  ;;  %v1425_v8 = vld [vmem:[%s1795_s1 + $0xe8] sm:$0xff]  ;;  %s1764_s23 = scalar_lea.vmem %s1798_s4, %s1133_s15 }
   0xf   : > { %863 = vmatpush.bf16.msra.mxu3 %v1427_v4  ;;  %v1400_v9 = vld [vmem:[%s1795_s1 + $0x20] sm:$0xff]  ;;  %v1399_v12 = vld [vmem:[%s1795_s1 + $0x18] sm:$0xff]  ;;  %v1398_v15 = vld [vmem:[%s1795_s1 + $0x10] sm:$0xff]  ;;  %s1635_s13 = scalar_lea.vmem %s1794_s0, %s1475_s29 }
  0x10   : > { %v1416_v10 = vld [vmem:[%s1795_s1 + $0xa0] sm:$0xff]  ;;  %v1415_v13 = vld [vmem:[%s1795_s1 + $0x98] sm:$0xff]  ;;  %v1414_v16 = vld [vmem:[%s1795_s1 + $0x90] sm:$0xff] }
  0x11   : > { %1460 = vmatpush.bf16.msra.mxu1 %v1402_v2  ;;  %777 = vmatpush.bf16.msra.mxu0 %v1402_v2  ;;  %v1424_v11 = vld [vmem:[%s1795_s1 + $0xe0] sm:$0xff]  ;;  %v1423_v14 = vld [vmem:[%s1795_s1 + $0xd8] sm:$0xff]  ;;  %v1422_v17 = vld [vmem:[%s1795_s1 + $0xd0] sm:$0xff] }
  0x12   : > { %835 = vmatpush.bf16.msra.mxu2 %v1418_v3  ;;  %v1397_v18 = vld [vmem:[%s1795_s1 + $0x8] sm:$0xff]  ;;  %v1396_v20 = vld [vmem:[%s1795_s1] sm:$0xff]  ;;  %v1176_v21 = vld [vmem:[%s1635_s13 + $0x50] sm:$0xf] }
  0x13   : > { %864 = vmatpush.bf16.msra.mxu3 %v1426_v5  ;;  %v1413_v19 = vld [vmem:[%s1795_s1 + $0x88] sm:$0xff]  ;;  %v1411_v22 = vld [vmem:[%s1795_s1 + $0x78] sm:$0xff]  ;;  %v1388_v24 = vld [vmem:[%s1635_s13 + $0x60] sm:$0xf0] }
  0x14   : > { %v1421_v23 = vld [vmem:[%s1795_s1 + $0xc8] sm:$0xff]  ;;  %v1136_v25 = vld [vmem:[%s1635_s13] sm:$0xf]  ;;  %v1378_v26 = vld [vmem:[%s1635_s13 + $0x10] sm:$0xf0]  ;;  %v1177_v31 = vor.u32 %v1388_v24, %v1176_v21 }
  0x15   : > { %1461 = vmatpush.bf16.msra.mxu1 %v1401_v6  ;;  %778 = vmatpush.bf16.msra.mxu0 %v1401_v6  ;;  %v1412_v27 = vld [vmem:[%s1795_s1 + $0x80] sm:$0xff]  ;;  %v1144_v28 = vld [vmem:[%s1635_s13 + $0x8] sm:$0xf]  ;;  %v1379_v29 = vld [vmem:[%s1635_s13 + $0x18] sm:$0xf0]  ;;  %v1137_v32 = vor.u32 %v1378_v26, %v1136_v25 }
  0x16   : > { %836 = vmatpush.bf16.msra.mxu2 %v1417_v7  ;;  %v1435_v30 = vld [vmem:[%s1795_s1 + $0x138] sm:$0xff]  ;;  %v1145_v33 = vor.u32 %v1379_v29, %v1144_v28  ;;  %v1420_v34 = vld [vmem:[%s1795_s1 + $0xc0] sm:$0xff]  ;;  %v1377_v35 = vld [vmem:[%s1635_s13 + $0xc] sm:$0xf] }
  0x17   : > { %865 = vmatpush.bf16.msra.mxu3 %v1425_v8  ;;  %v1146_v36 = vld [vmem:[%s1635_s13 + $0x1c] sm:$0xf0]  ;;  %v1410_v37 = vld [vmem:[%s1795_s1 + $0x70] sm:$0xff]  ;;  %v1409_v40 = vld [vmem:[%s1795_s1 + $0x68] sm:$0xff] }
  0x18   : > { %v1434_v38 = vld [vmem:[%s1795_s1 + $0x130] sm:$0xff]  ;;  %v1149_v39 = vor.u32 %v1377_v35, %v1146_v36  ;;  %v1433_v41 = vld [vmem:[%s1795_s1 + $0x128] sm:$0xff]  ;;  %v1408_v42 = vld [vmem:[%s1795_s1 + $0x60] sm:$0xff] }
  0x19   : > { %1462 = vmatpush.bf16.msra.mxu1 %v1400_v9  ;;  %779 = vmatpush.bf16.msra.mxu0 %v1400_v9  ;;  %v1432_v43 = vld [vmem:[%s1795_s1 + $0x120] sm:$0xff]  ;;  %v1196_v44 = vld [vmem:[%s1635_s13 + $0x78] sm:$0xf]  ;;  %v1393_v45 = vld [vmem:[%s1635_s13 + $0x88] sm:$0xf0] }
  0x1a   : > { %837 = vmatpush.bf16.msra.mxu2 %v1416_v10  ;;  %v1156_v46 = vld [vmem:[%s1635_s13 + $0x28] sm:$0xf]  ;;  %v1383_v47 = vld [vmem:[%s1635_s13 + $0x38] sm:$0xf0]  ;;  %v1164_v49 = vld [vmem:[%s1635_s13 + $0x30] sm:$0xf]  ;;  %v1197_v52 = vor.u32 %v1393_v45, %v1196_v44 }
  0x1b   : > { %866 = vmatpush.bf16.msra.mxu3 %v1424_v11  ;;  %v1407_v48 = vld [vmem:[%s1795_s1 + $0x58] sm:$0xff]  ;;  %v1384_v50 = vld [vmem:[%s1635_s13 + $0x40] sm:$0xf0]  ;;  %v1157_v53 = vor.u32 %v1383_v47, %v1156_v46  ;;  %v1382_v55 = vld [vmem:[%s1635_s13 + $0x34] sm:$0xf] }
  0x1c   : > { %v1431_v51 = vld [vmem:[%s1795_s1 + $0x118] sm:$0xff]  ;;  %v1165_v54 = vor.u32 %v1384_v50, %v1164_v49  ;;  %v1166_v56 = vld [vmem:[%s1635_s13 + $0x44] sm:$0xf0]  ;;  %v1406_v57 = vld [vmem:[%s1795_s1 + $0x50] sm:$0xff] }
  0x1d   : > { %1463 = vmatpush.bf16.msra.mxu1 %v1399_v12  ;;  %780 = vmatpush.bf16.msra.mxu0 %v1399_v12  ;;  %v1430_v58 = vld [vmem:[%s1795_s1 + $0x110] sm:$0xff]  ;;  %v1169_v59 = vor.u32 %v1382_v55, %v1166_v56  ;;  %v1405_v60 = vld [vmem:[%s1795_s1 + $0x48] sm:$0xff]  ;;  %v1404_v62 = vld [vmem:[%s1795_s1 + $0x40] sm:$0xff] }
  0x1e   : > { %838 = vmatpush.bf16.msra.mxu2 %v1415_v13  ;;  %v1429_v61 = vld [vmem:[%s1795_s1 + $0x108] sm:$0xff]  ;;  %v1428_v63 = vld [vmem:[%s1795_s1 + $0x100] sm:$0xff]  ;;  %v1138_v1 = vld [vmem:[%s1635_s13 + $0x14] sm:$0xf0] }
  0x1f   : > { %867 = vmatpush.bf16.msra.mxu3 %v1423_v14  ;;  %v1376_v0 = vld [vmem:[%s1635_s13 + $0x4] sm:$0xf]  ;;  %v1152_v2 = vld [vmem:[%s1635_s13 + $0x10] sm:$0xf]  ;;  %v1184_v4 = vld [vmem:[%s1635_s13 + $0x58] sm:$0xf] }
  0x20   : > { %v1380_v3 = vld [vmem:[%s1635_s13 + $0x20] sm:$0xf0]  ;;  %v1389_v5 = vld [vmem:[%s1635_s13 + $0x68] sm:$0xf0]  ;;  %v1141_v6 = vor.u32 %v1376_v0, %v1138_v1  ;;  %v1387_v9 = vld [vmem:[%s1635_s13 + $0x5c] sm:$0xf] }
  0x21   : > { %1464 = vmatpush.bf16.msra.mxu1 %v1398_v15  ;;  %781 = vmatpush.bf16.msra.mxu0 %v1398_v15  ;;  %v1153_v7 = vor.u32 %v1380_v3, %v1152_v2  ;;  %v1185_v8 = vor.u32 %v1389_v5, %v1184_v4  ;;  %v1186_v10 = vld [vmem:[%s1635_s13 + $0x6c] sm:$0xf0]  ;;  %v1381_v12 = vld [vmem:[%s1635_s13 + $0x2c] sm:$0xf]  ;;  %v1158_v13 = vld [vmem:[%s1635_s13 + $0x3c] sm:$0xf0] }
  0x22   : > { %839 = vmatpush.bf16.msra.mxu2 %v1414_v16  ;;  %v1189_v11 = vor.u32 %v1387_v9, %v1186_v10  ;;  %v1172_v14 = vld [vmem:[%s1635_s13 + $0x38] sm:$0xf]  ;;  %v1385_v15 = vld [vmem:[%s1635_s13 + $0x48] sm:$0xf0]  ;;  %v1204_v16 = vld [vmem:[%s1635_s13 + $0x80] sm:$0xf] }
  0x23   : > { %868 = vmatpush.bf16.msra.mxu3 %v1422_v17  ;;  %v1394_v17 = vld [vmem:[%s1635_s13 + $0x90] sm:$0xf0]  ;;  %v1392_v21 = vld [vmem:[%s1635_s13 + $0x84] sm:$0xf]  ;;  %v1178_v25 = vld [vmem:[%s1635_s13 + $0x64] sm:$0xf0] }
  0x24   : > { %v1386_v24 = vld [vmem:[%s1635_s13 + $0x54] sm:$0xf]  ;;  %v1192_v26 = vld [vmem:[%s1635_s13 + $0x60] sm:$0xf]  ;;  %v1212_v28 = vld [vmem:[%s1635_s13 + $0x88] sm:$0xf] }
  0x25   : > { %1465 = vmatpush.bf16.msra.mxu1 %v1397_v18  ;;  %782 = vmatpush.bf16.msra.mxu0 %v1397_v18  ;;  %v1161_v18 = vor.u32 %v1381_v12, %v1158_v13  ;;  %v1395_v29 = vld [vmem:[%s1635_s13 + $0x98] sm:$0xf0]  ;;  %v1755_v0 = vld [vmem:[%s1797_s3] ss:$0 sm:$0xff] }
  0x26   : > { %840 = vmatpush.bf16.msra.mxu2 %v1413_v19  ;;  %v1173_v19 = vor.u32 %v1385_v15, %v1172_v14 }
  0x27   : > { %869 = vmatpush.bf16.msra.mxu3 %v1421_v23 }
  0x29   : > { %1466 = vmatpush.bf16.msra.mxu1 %v1396_v20  ;;  %783 = vmatpush.bf16.msra.mxu0 %v1396_v20  ;;  %v1205_v20 = vor.u32 %v1394_v17, %v1204_v16 }
  0x2a   : > { %841 = vmatpush.bf16.msra.mxu2 %v1412_v27  ;;  %v1390_v27 = vld [vmem:[%s1635_s13 + $0x70] sm:$0xf0] }
  0x2b   : > { %870 = vmatpush.bf16.msra.mxu3 %v1420_v34  ;;  %v1198_v34 = vld [vmem:[%s1635_s13 + $0x8c] sm:$0xf0] }
  0x2c   : > { %794 = vmatmul.bf16.vlgmr.msra.gmra.mxu1 %v1177_v31  ;;  %784 = vmatmul.bf16.vlgmr.msra.gmra.mxu0 %v1137_v32  ;;  %v1193_v31 = vor.u32 %v1390_v27, %v1192_v26  ;;  %v1213_v32 = vor.u32 %v1395_v29, %v1212_v28 }
  0x2d   : > { %805 = vmatpush.bf16.msrb.mxu1 %v1411_v22  ;;  %892 = vmatpush.bf16.msrb.mxu0 %v1435_v30  ;;  %v1206_v22 = vld [vmem:[%s1635_s13 + $0x94] sm:$0xf0] }
  0x2e   : > { %1467 = vmatpush.bf16.msrb.mxu2 %v1435_v30  ;;  %871 = vmatmul.bf16.vlgmr.msra.gmra.mxu3 %v1149_v39  ;;  %v1209_v23 = vor.u32 %v1392_v21, %v1206_v22  ;;  %v1181_v30 = vor.u32 %v1386_v24, %v1178_v25 }
  0x2f   : > { %842 = vmatmul.bf16.vlgmr.msra.gmra.mxu2 %v1145_v33  ;;  %v1391_v33 = vld [vmem:[%s1635_s13 + $0x7c] sm:$0xf] }
  0x30   : > { %v1201_v35 = vor.u32 %v1391_v33, %v1198_v34 }
  0x31   : > { %806 = vmatpush.bf16.msrb.mxu1 %v1410_v37  ;;  %893 = vmatpush.bf16.msrb.mxu0 %v1434_v38 }
  0x32   : > { %1468 = vmatpush.bf16.msrb.mxu2 %v1434_v38 }
  0x35   : > { %807 = vmatpush.bf16.msrb.mxu1 %v1409_v40  ;;  %894 = vmatpush.bf16.msrb.mxu0 %v1433_v41 }
  0x36   : > { %1469 = vmatpush.bf16.msrb.mxu2 %v1433_v41 }
  0x39   : > { %808 = vmatpush.bf16.msrb.mxu1 %v1408_v42  ;;  %895 = vmatpush.bf16.msrb.mxu0 %v1432_v43 }
  0x3a   : > { %1470 = vmatpush.bf16.msrb.mxu2 %v1432_v43 }
  0x3c   : > { %799 = vmatmul.bf16.gmra.mxu1 %v1197_v52  ;;  %789 = vmatmul.bf16.gmra.mxu0 %v1157_v53 }
  0x3d   : > { %809 = vmatpush.bf16.msrb.mxu1 %v1407_v48  ;;  %896 = vmatpush.bf16.msrb.mxu0 %v1431_v51 }
  0x3e   : > { %1471 = vmatpush.bf16.msrb.mxu2 %v1431_v51  ;;  %876 = vmatmul.bf16.gmra.mxu3 %v1169_v59 }
  0x3f   : > { %847 = vmatmul.bf16.gmra.mxu2 %v1165_v54 }
  0x41   : > { %810 = vmatpush.bf16.msrb.mxu1 %v1406_v57  ;;  %897 = vmatpush.bf16.msrb.mxu0 %v1430_v58 }
  0x42   : > { %1472 = vmatpush.bf16.msrb.mxu2 %v1430_v58  ;;  %v1749_v58 = vld [vmem:[%s1796_s2] ss:$0 sm:$0xff] }
  0x45   : > { %811 = vmatpush.bf16.msrb.mxu1 %v1405_v60  ;;  %898 = vmatpush.bf16.msrb.mxu0 %v1429_v61 }
  0x46   : > { %1473 = vmatpush.bf16.msrb.mxu2 %v1429_v61 }
  0x49   : > { %812 = vmatpush.bf16.msrb.mxu1 %v1404_v62  ;;  %899 = vmatpush.bf16.msrb.mxu0 %v1428_v63 }
  0x4a   : > { %1474 = vmatpush.bf16.msrb.mxu2 %v1428_v63 }
  0x4c   : > { %813 = vmatmul.bf16.vlgmr.msrb.gmra.mxu1 %v1141_v6  ;;  %900 = vmatmul.bf16.vlgmr.msrb.gmra.mxu0 %v1153_v7 }
  0x4e   : > { %881 = vmatmul.bf16.gmra.mxu3 %v1189_v11 }
  0x4f   : > { %852 = vmatmul.bf16.gmra.mxu2 %v1185_v8 }
  0x5c   : > { %818 = vmatmul.bf16.gmra.mxu1 %v1161_v18  ;;  %905 = vmatmul.bf16.gmra.mxu0 %v1173_v19 }
  0x5e   : > { %886 = vmatmul.bf16.gmra.mxu3 %v1209_v23 }
  0x5f   : > { %857 = vmatmul.bf16.gmra.mxu2 %v1205_v20 }
  0x6c   : > { %823 = vmatmul.bf16.gmra.mxu1 %v1181_v30  ;;  %910 = vmatmul.bf16.gmra.mxu0 %v1193_v31 }
  0x6f   : > { %915 = vmatmul.bf16.vlgmr.msrb.gmra.mxu2 %v1213_v32 }
  0x7c   : > { %828 = vmatmul.bf16.gmra.mxu1 %v1201_v35 }
  0xa9   : > { %v795_v36 = vpop.f32.mrf.mxu1  ;;  %v785_v37 = vpop.f32.mrf.mxu0 }
  0xb1   : > { %v1740_v39 = vpop.f32.mrf.mxu1  ;;  %v787_v40 = vpop.f32.mrf.mxu0 }
  0xb2   : > { %v843_v38 = vpop.f32.mrf.mxu2  ;;  %v872_v44 = vpop.f32.mrf.mxu3 }
  0xb9   : > { %v1742_v42 = vpop.f32.mrf.mxu1  ;;  %v790_v43 = vpop.f32.mrf.mxu0 }
  0xba   : > { %v845_v41 = vpop.f32.mrf.mxu2  ;;  %v874_v48 = vpop.f32.mrf.mxu3 }
  0xc1   : > { %v1744_v46 = vpop.f32.mrf.mxu1  ;;  %v792_v47 = vpop.f32.mrf.mxu0 }
  0xc2   : > { %v848_v45 = vpop.f32.mrf.mxu2  ;;  %v877_v60 = vpop.f32.mrf.mxu3 }
  0xc9   : > { %v814_v49 = vpop.f32.mrf.mxu1  ;;  %v901_v50 = vpop.f32.mrf.mxu0 }
  0xca   : > { %v815_v51 = vadd.f32 %v814_v49, %v785_v37  ;;  %v850_v52 = vpop.f32.mrf.mxu2  ;;  %v879_v10 = vpop.f32.mrf.mxu3 }
  0xcc   : > { %v844_v53 = vadd.f32 %v843_v38, %v815_v51 }
  0xce   : > { %v873_v54 = vadd.f32 %v872_v44, %v844_v53 }
  0xd0   : > { %v902_v57 = vadd.f32 %v901_v50, %v873_v54 }
  0xd1   : > { %v816_v55 = vpop.f32.mrf.mxu1  ;;  %v903_v56 = vpop.f32.mrf.mxu0 }
  0xd2   : > { %v817_v59 = vadd.f32 %v816_v55, %v787_v40  ;;  %v853_v62 = vpop.f32.mrf.mxu2  ;;  %v952_v63 = vmul.f32 %v1749_v58, %v902_v57  ;;  %v882_v23 = vpop.f32.mrf.mxu3 }
  0xd4   : > { %v846_v61 = vadd.f32 %v845_v41, %v817_v59  ;;  %v964_v5 = vadd.f32 %v1755_v0, %v952_v63 }
  0xd6   : > { %v875_v1 = vadd.f32 %v874_v48, %v846_v61  ;;  %v972_v11 = vmax.f32 %v964_v5, 0.0 }
  0xd8   : > { %v904_v2 = vadd.f32 %v903_v56, %v875_v1 }
  0xd9   : > { %v819_v3 = vpop.f32.mrf.mxu1  ;;  %v906_v4 = vpop.f32.mrf.mxu0 }
  0xda   : > { %v953_v6 = vmul.f32 %v1749_v58, %v904_v2  ;;  %v820_v7 = vadd.f32 %v819_v3, %v790_v43  ;;  %v855_v14 = vpop.f32.mrf.mxu2  ;;  %v884_v38 = vpop.f32.mrf.mxu3 }
  0xdc   : > { %v965_v8 = vadd.f32 %v1755_v0, %v953_v6  ;;  %v849_v9 = vadd.f32 %v848_v45, %v820_v7 }
  0xde   : > { %v973_v12 = vmax.f32 %v965_v8, 0.0  ;;  %v878_v13 = vadd.f32 %v877_v60, %v849_v9 }
  0xe0   : > { %v1439_v15 = vpack.c.bf16 %v973_v12, %v972_v11  ;;  %v907_v18 = vadd.f32 %v906_v4, %v878_v13 }
  0xe1   : > { %v821_v16 = vpop.f32.mrf.mxu1  ;;  %v908_v17 = vpop.f32.mrf.mxu0 }
  0xe2   : > { %1440 = vst [vmem:[%s1764_s23] sm:$0xff] %v1439_v15   ;;  %v822_v19 = vadd.f32 %v821_v16, %v792_v47  ;;  %v954_v21 = vmul.f32 %v1749_v58, %v907_v18  ;;  %v858_v25 = vpop.f32.mrf.mxu2  ;;  %v887_v54 = vpop.f32.mrf.mxu3 }
  0xe4   : > { %v851_v20 = vadd.f32 %v850_v52, %v822_v19  ;;  %v966_v27 = vadd.f32 %v1755_v0, %v954_v21 }
  0xe6   : > { %v880_v22 = vadd.f32 %v879_v10, %v851_v20  ;;  %v974_v33 = vmax.f32 %v966_v27, 0.0 }
  0xe8   : > { %v909_v24 = vadd.f32 %v908_v17, %v880_v22 }
  0xe9   : > { %v824_v26 = vpop.f32.mrf.mxu1  ;;  %v911_v30 = vpop.f32.mrf.mxu0 }
  0xea   : > { %v955_v28 = vmul.f32 %v1749_v58, %v909_v24  ;;  %v825_v29 = vadd.f32 %v824_v26, %v795_v36  ;;  %v860_v44 = vpop.f32.mrf.mxu2  ;;  %v889_v3 = vpop.f32.mrf.mxu3 }
  0xec   : > { %v967_v31 = vadd.f32 %v1755_v0, %v955_v28  ;;  %v854_v32 = vadd.f32 %v853_v62, %v825_v29 }
  0xee   : > { %v975_v34 = vmax.f32 %v967_v31, 0.0  ;;  %v883_v35 = vadd.f32 %v882_v23, %v854_v32 }
  0xf0   : > { %v1444_v37 = vpack.c.bf16 %v975_v34, %v974_v33  ;;  %v912_v41 = vadd.f32 %v911_v30, %v883_v35 }
  0xf1   : > { %v826_v40 = vpop.f32.mrf.mxu1  ;;  %v913_v47 = vpop.f32.mrf.mxu0 }
  0xf2   : > { %1456 = vst [vmem:[%s1764_s23 + $0x8] sm:$0xff] %v1444_v37   ;;  %v827_v43 = vadd.f32 %v826_v40, %v1740_v39  ;;  %v956_v48 = vmul.f32 %v1749_v58, %v912_v41  ;;  %v916_v39 = vpop.f32.mrf.mxu2 }
  0xf4   : > { %v856_v45 = vadd.f32 %v855_v14, %v827_v43  ;;  %v968_v51 = vadd.f32 %v1755_v0, %v956_v48 }
  0xf6   : > { %v885_v36 = vadd.f32 %v884_v38, %v856_v45  ;;  %v976_v57 = vmax.f32 %v968_v51, 0.0 }
  0xf8   : > { %v914_v49 = vadd.f32 %v913_v47, %v885_v36 }
  0xf9   : > { %v829_v50 = vpop.f32.mrf.mxu1 }
  0xfa   : > { %v957_v52 = vmul.f32 %v1749_v58, %v914_v49  ;;  %v830_v53 = vadd.f32 %v829_v50, %v1742_v42  ;;  %v918_v5 = vpop.f32.mrf.mxu2 }
  0xfc   : > { %v969_v55 = vadd.f32 %v1755_v0, %v957_v52  ;;  %v859_v56 = vadd.f32 %v858_v25, %v830_v53 }
  0xfe   : > { %v977_v59 = vmax.f32 %v969_v55, 0.0  ;;  %v888_v60 = vadd.f32 %v887_v54, %v859_v56 }
 0x100   : > { %v1449_v61 = vpack.c.bf16 %v977_v59, %v976_v57  ;;  %v917_v63 = vadd.f32 %v916_v39, %v888_v60 }
 0x101   : > { %v831_v62 = vpop.f32.mrf.mxu1 }
 0x102   : > { %1457 = vst [vmem:[%s1764_s23 + $0x10] sm:$0xff] %v1449_v61   ;;  %v832_v1 = vadd.f32 %v831_v62, %v1744_v46  ;;  %v958_v4 = vmul.f32 %v1749_v58, %v917_v63 }
 0x104   : > { %v861_v2 = vadd.f32 %v860_v44, %v832_v1  ;;  %v970_v7 = vadd.f32 %v1755_v0, %v958_v4 }
 0x106   : > { %v890_v42 = vadd.f32 %v889_v3, %v861_v2  ;;  %v978_v10 = vmax.f32 %v970_v7, 0.0 }
 0x108   : > { %v919_v6 = vadd.f32 %v918_v5, %v890_v42 }
 0x10a   : > { %v959_v8 = vmul.f32 %v1749_v58, %v919_v6 }
 0x10c   : > { %v971_v9 = vadd.f32 %v1755_v0, %v959_v8 }
 0x10e   : > { %v979_v11 = vmax.f32 %v971_v9, 0.0 }
 0x110   : > { %v1454_v12 = vpack.c.bf16 %v979_v11, %v978_v10 }
 0x112   : > { %1458 = vst [vmem:[%s1764_s23 + $0x18] sm:$0xff] %v1454_v12  }
 0x113 PF: > { %s14_s17 = sadd.s32 1, %s1524_s17   ;;  %s1799_s15 = smov %s1520_s16 }
 0x114   : > { %p11_p5 = scmp.ge.s32.totalorder %s14_s17, 4   ;;  %s1800_s16 = smov %s1802_s18 }
 0x116   :  { %13 = sbr.rel (!%p11_p5) target bundleno = 2 (0x2), region = 83 }

// kernel: electronics_classifier_forward.25
= control target key start
LH: loop header
LB: loop body
LE: loop exit
PB: predicated region body
PF: predicated region fallthrough
CT: control target
= control target key end

     0   :  { %s1676_s18 = smov 0   ;;  %s1678_s19 = smov 0   ;;  %s1935_s0 = inlined_call_operand.vmem [shape: bf16[128,640], index: 0, kind: input, shape index: {}]   ;;  %s1936_s1 = inlined_call_operand.vmem [shape: bf16[640,128], index: 1, kind: input, shape index: {}]   ;;  %s1937_s2 = inlined_call_operand.vmem [shape: f32[1,128], index: 2, kind: input, shape index: {}]   ;;  %s1938_s3 = inlined_call_operand.vmem [shape: f32[1,128], index: 3, kind: input, shape index: {}]   ;;  %s1939_s4 = inlined_call_operand.vmem [shape: bf16[128,128], index: 4, kind: input, shape index: {}]   ;;  %s1940_s5 = inlined_call_operand.vmem [shape: bf16[128,128], index: 5, kind: output, shape index: {}]  }
   0x1   :  { %s1680_s20 = smov 0  }
   0x2 LB: > { %s34_s21 = sadd.s32 1, %s1640_s19  ;;  %p1228_p0 = scmp.ge.s32.totalorder %s1644_s20, 1  ;;  %s1644_s20 = sphi %s1680_s20, %s15_s20   ;;  %s1640_s19 = sphi %s1678_s19, %s1942_s19   ;;  %s1636_s18 = sphi %s1676_s18, %s1941_s18  }
   0x3   : > { %p36_p1 = scmp.ge.s32.totalorder %s34_s21, 2  ;;  %p265_p2 = scmp.lt.s32.totalorder %s1644_s20, 3 }
   0x5   : > { %s1944_s21 = smov (%p36_p1, %s34_s21), 0  ;;  %p266_p3 = pnand %p1228_p0, %p265_p2 }
   0x6   : > { %s1229_s13 = sshll.u32 (!%p266_p3), %s1636_s18, 3 }
   0x7   : > { %269 = sbr.rel (%p266_p3) target bundleno = 277 (0x115), region = 40  ;;  %p325_p4 = scmp.lt.s32.totalorder (!%p266_p3), %s1229_s13, 15 }
   0xc   : > { %v1504_v0 = vld [vmem:[%s1936_s1 + $0x38] sm:$0xff]  ;;  %v1503_v2 = vld [vmem:[%s1936_s1 + $0x30] sm:$0xff]  ;;  %v1502_v6 = vld [vmem:[%s1936_s1 + $0x28] sm:$0xff]  ;;  %s1946_s13 = smov (!%p325_p4, %s1229_s13), 15 }
   0xd   : > { %v1520_v1 = vld [vmem:[%s1936_s1 + $0xb8] sm:$0xff]  ;;  %1579 = vmatpush.bf16.msra.mxu1 %v1504_v0  ;;  %836 = vmatpush.bf16.msra.mxu0 %v1504_v0  ;;  %v1519_v3 = vld [vmem:[%s1936_s1 + $0xb0] sm:$0xff]  ;;  %v1518_v7 = vld [vmem:[%s1936_s1 + $0xa8] sm:$0xff]  ;;  %s1595_s8 = smul.u32 20, %s1946_s13 }
   0xe   : > { %894 = vmatpush.bf16.msra.mxu2 %v1520_v1  ;;  %v1528_v4 = vld [vmem:[%s1936_s1 + $0xf8] sm:$0xff]  ;;  %v1527_v5 = vld [vmem:[%s1936_s1 + $0xf0] sm:$0xff]  ;;  %v1526_v8 = vld [vmem:[%s1936_s1 + $0xe8] sm:$0xff] }
   0xf   : > { %923 = vmatpush.bf16.msra.mxu3 %v1528_v4  ;;  %v1501_v9 = vld [vmem:[%s1936_s1 + $0x20] sm:$0xff]  ;;  %v1500_v12 = vld [vmem:[%s1936_s1 + $0x18] sm:$0xff]  ;;  %v1499_v15 = vld [vmem:[%s1936_s1 + $0x10] sm:$0xff]  ;;  %s1760_s22 = scalar_lea.vmem %s1935_s0, %s1595_s8 }
  0x10   : > { %v1517_v10 = vld [vmem:[%s1936_s1 + $0xa0] sm:$0xff]  ;;  %v1516_v13 = vld [vmem:[%s1936_s1 + $0x98] sm:$0xff]  ;;  %v1515_v16 = vld [vmem:[%s1936_s1 + $0x90] sm:$0xff] }
  0x11   : > { %1580 = vmatpush.bf16.msra.mxu1 %v1503_v2  ;;  %837 = vmatpush.bf16.msra.mxu0 %v1503_v2  ;;  %v1525_v11 = vld [vmem:[%s1936_s1 + $0xe0] sm:$0xff]  ;;  %v1524_v14 = vld [vmem:[%s1936_s1 + $0xd8] sm:$0xff]  ;;  %v1523_v17 = vld [vmem:[%s1936_s1 + $0xd0] sm:$0xff] }
  0x12   : > { %895 = vmatpush.bf16.msra.mxu2 %v1519_v3  ;;  %v1498_v18 = vld [vmem:[%s1936_s1 + $0x8] sm:$0xff]  ;;  %v1497_v20 = vld [vmem:[%s1936_s1] sm:$0xff]  ;;  %v1277_v21 = vld [vmem:[%s1760_s22 + $0x50] sm:$0xf] }
  0x13   : > { %924 = vmatpush.bf16.msra.mxu3 %v1527_v5  ;;  %v1514_v19 = vld [vmem:[%s1936_s1 + $0x88] sm:$0xff]  ;;  %v1512_v22 = vld [vmem:[%s1936_s1 + $0x78] sm:$0xff]  ;;  %v1489_v24 = vld [vmem:[%s1760_s22 + $0x60] sm:$0xf0] }
  0x14   : > { %v1522_v23 = vld [vmem:[%s1936_s1 + $0xc8] sm:$0xff]  ;;  %v1237_v25 = vld [vmem:[%s1760_s22] sm:$0xf]  ;;  %v1479_v26 = vld [vmem:[%s1760_s22 + $0x10] sm:$0xf0]  ;;  %v1278_v31 = vor.u32 %v1489_v24, %v1277_v21 }
  0x15   : > { %1581 = vmatpush.bf16.msra.mxu1 %v1502_v6  ;;  %838 = vmatpush.bf16.msra.mxu0 %v1502_v6  ;;  %v1513_v27 = vld [vmem:[%s1936_s1 + $0x80] sm:$0xff]  ;;  %v1245_v28 = vld [vmem:[%s1760_s22 + $0x8] sm:$0xf]  ;;  %v1480_v29 = vld [vmem:[%s1760_s22 + $0x18] sm:$0xf0]  ;;  %v1238_v32 = vor.u32 %v1479_v26, %v1237_v25 }
  0x16   : > { %896 = vmatpush.bf16.msra.mxu2 %v1518_v7  ;;  %v1536_v30 = vld [vmem:[%s1936_s1 + $0x138] sm:$0xff]  ;;  %v1246_v33 = vor.u32 %v1480_v29, %v1245_v28  ;;  %v1521_v34 = vld [vmem:[%s1936_s1 + $0xc0] sm:$0xff]  ;;  %v1478_v35 = vld [vmem:[%s1760_s22 + $0xc] sm:$0xf] }
  0x17   : > { %925 = vmatpush.bf16.msra.mxu3 %v1526_v8  ;;  %v1247_v36 = vld [vmem:[%s1760_s22 + $0x1c] sm:$0xf0]  ;;  %v1511_v37 = vld [vmem:[%s1936_s1 + $0x70] sm:$0xff]  ;;  %v1510_v40 = vld [vmem:[%s1936_s1 + $0x68] sm:$0xff] }
  0x18   : > { %v1535_v38 = vld [vmem:[%s1936_s1 + $0x130] sm:$0xff]  ;;  %v1250_v39 = vor.u32 %v1478_v35, %v1247_v36  ;;  %v1534_v41 = vld [vmem:[%s1936_s1 + $0x128] sm:$0xff]  ;;  %v1509_v42 = vld [vmem:[%s1936_s1 + $0x60] sm:$0xff] }
  0x19   : > { %1582 = vmatpush.bf16.msra.mxu1 %v1501_v9  ;;  %839 = vmatpush.bf16.msra.mxu0 %v1501_v9  ;;  %v1533_v43 = vld [vmem:[%s1936_s1 + $0x120] sm:$0xff]  ;;  %v1297_v44 = vld [vmem:[%s1760_s22 + $0x78] sm:$0xf]  ;;  %v1494_v45 = vld [vmem:[%s1760_s22 + $0x88] sm:$0xf0] }
  0x1a   : > { %897 = vmatpush.bf16.msra.mxu2 %v1517_v10  ;;  %v1257_v46 = vld [vmem:[%s1760_s22 + $0x28] sm:$0xf]  ;;  %v1484_v47 = vld [vmem:[%s1760_s22 + $0x38] sm:$0xf0]  ;;  %v1265_v49 = vld [vmem:[%s1760_s22 + $0x30] sm:$0xf]  ;;  %v1298_v52 = vor.u32 %v1494_v45, %v1297_v44 }
  0x1b   : > { %926 = vmatpush.bf16.msra.mxu3 %v1525_v11  ;;  %v1508_v48 = vld [vmem:[%s1936_s1 + $0x58] sm:$0xff]  ;;  %v1485_v50 = vld [vmem:[%s1760_s22 + $0x40] sm:$0xf0]  ;;  %v1258_v53 = vor.u32 %v1484_v47, %v1257_v46  ;;  %v1483_v55 = vld [vmem:[%s1760_s22 + $0x34] sm:$0xf] }
  0x1c   : > { %v1532_v51 = vld [vmem:[%s1936_s1 + $0x118] sm:$0xff]  ;;  %v1266_v54 = vor.u32 %v1485_v50, %v1265_v49  ;;  %v1267_v56 = vld [vmem:[%s1760_s22 + $0x44] sm:$0xf0]  ;;  %v1507_v57 = vld [vmem:[%s1936_s1 + $0x50] sm:$0xff] }
  0x1d   : > { %1583 = vmatpush.bf16.msra.mxu1 %v1500_v12  ;;  %840 = vmatpush.bf16.msra.mxu0 %v1500_v12  ;;  %v1531_v58 = vld [vmem:[%s1936_s1 + $0x110] sm:$0xff]  ;;  %v1270_v59 = vor.u32 %v1483_v55, %v1267_v56  ;;  %v1506_v60 = vld [vmem:[%s1936_s1 + $0x48] sm:$0xff]  ;;  %v1505_v62 = vld [vmem:[%s1936_s1 + $0x40] sm:$0xff] }
  0x1e   : > { %898 = vmatpush.bf16.msra.mxu2 %v1516_v13  ;;  %v1530_v61 = vld [vmem:[%s1936_s1 + $0x108] sm:$0xff]  ;;  %v1529_v63 = vld [vmem:[%s1936_s1 + $0x100] sm:$0xff]  ;;  %v1239_v1 = vld [vmem:[%s1760_s22 + $0x14] sm:$0xf0] }
  0x1f   : > { %927 = vmatpush.bf16.msra.mxu3 %v1524_v14  ;;  %v1477_v0 = vld [vmem:[%s1760_s22 + $0x4] sm:$0xf]  ;;  %v1253_v2 = vld [vmem:[%s1760_s22 + $0x10] sm:$0xf]  ;;  %v1285_v4 = vld [vmem:[%s1760_s22 + $0x58] sm:$0xf] }
  0x20   : > { %v1481_v3 = vld [vmem:[%s1760_s22 + $0x20] sm:$0xf0]  ;;  %v1490_v5 = vld [vmem:[%s1760_s22 + $0x68] sm:$0xf0]  ;;  %v1242_v6 = vor.u32 %v1477_v0, %v1239_v1  ;;  %v1488_v9 = vld [vmem:[%s1760_s22 + $0x5c] sm:$0xf] }
  0x21   : > { %1584 = vmatpush.bf16.msra.mxu1 %v1499_v15  ;;  %841 = vmatpush.bf16.msra.mxu0 %v1499_v15  ;;  %v1254_v7 = vor.u32 %v1481_v3, %v1253_v2  ;;  %v1286_v8 = vor.u32 %v1490_v5, %v1285_v4  ;;  %v1287_v10 = vld [vmem:[%s1760_s22 + $0x6c] sm:$0xf0]  ;;  %v1482_v12 = vld [vmem:[%s1760_s22 + $0x2c] sm:$0xf]  ;;  %v1259_v13 = vld [vmem:[%s1760_s22 + $0x3c] sm:$0xf0] }
  0x22   : > { %899 = vmatpush.bf16.msra.mxu2 %v1515_v16  ;;  %v1290_v11 = vor.u32 %v1488_v9, %v1287_v10  ;;  %v1273_v14 = vld [vmem:[%s1760_s22 + $0x38] sm:$0xf]  ;;  %v1486_v15 = vld [vmem:[%s1760_s22 + $0x48] sm:$0xf0]  ;;  %v1305_v16 = vld [vmem:[%s1760_s22 + $0x80] sm:$0xf] }
  0x23   : > { %928 = vmatpush.bf16.msra.mxu3 %v1523_v17  ;;  %v1495_v17 = vld [vmem:[%s1760_s22 + $0x90] sm:$0xf0]  ;;  %v1493_v21 = vld [vmem:[%s1760_s22 + $0x84] sm:$0xf]  ;;  %v1279_v25 = vld [vmem:[%s1760_s22 + $0x64] sm:$0xf0] }
  0x24   : > { %v1487_v24 = vld [vmem:[%s1760_s22 + $0x54] sm:$0xf]  ;;  %v1293_v26 = vld [vmem:[%s1760_s22 + $0x60] sm:$0xf]  ;;  %v1313_v28 = vld [vmem:[%s1760_s22 + $0x88] sm:$0xf] }
  0x25   : > { %1585 = vmatpush.bf16.msra.mxu1 %v1498_v18  ;;  %842 = vmatpush.bf16.msra.mxu0 %v1498_v18  ;;  %v1262_v18 = vor.u32 %v1482_v12, %v1259_v13  ;;  %v1496_v29 = vld [vmem:[%s1760_s22 + $0x98] sm:$0xf0]  ;;  %v1877_v56 = vld [vmem:[%s1937_s2] ss:$0 sm:$0xff] }
  0x26   : > { %900 = vmatpush.bf16.msra.mxu2 %v1514_v19  ;;  %v1274_v19 = vor.u32 %v1486_v15, %v1273_v14 }
  0x27   : > { %929 = vmatpush.bf16.msra.mxu3 %v1522_v23 }
  0x29   : > { %1586 = vmatpush.bf16.msra.mxu1 %v1497_v20  ;;  %843 = vmatpush.bf16.msra.mxu0 %v1497_v20  ;;  %v1306_v20 = vor.u32 %v1495_v17, %v1305_v16 }
  0x2a   : > { %901 = vmatpush.bf16.msra.mxu2 %v1513_v27  ;;  %v1491_v27 = vld [vmem:[%s1760_s22 + $0x70] sm:$0xf0] }
  0x2b   : > { %930 = vmatpush.bf16.msra.mxu3 %v1521_v34  ;;  %v1299_v34 = vld [vmem:[%s1760_s22 + $0x8c] sm:$0xf0] }
  0x2c   : > { %854 = vmatmul.bf16.vlgmr.msra.gmra.mxu1 %v1278_v31  ;;  %844 = vmatmul.bf16.vlgmr.msra.gmra.mxu0 %v1238_v32  ;;  %v1294_v31 = vor.u32 %v1491_v27, %v1293_v26  ;;  %v1314_v32 = vor.u32 %v1496_v29, %v1313_v28 }
  0x2d   : > { %865 = vmatpush.bf16.msrb.mxu1 %v1512_v22  ;;  %952 = vmatpush.bf16.msrb.mxu0 %v1536_v30  ;;  %v1307_v22 = vld [vmem:[%s1760_s22 + $0x94] sm:$0xf0] }
  0x2e   : > { %1587 = vmatpush.bf16.msrb.mxu2 %v1536_v30  ;;  %931 = vmatmul.bf16.vlgmr.msra.gmra.mxu3 %v1250_v39  ;;  %v1310_v23 = vor.u32 %v1493_v21, %v1307_v22  ;;  %v1282_v30 = vor.u32 %v1487_v24, %v1279_v25 }
  0x2f   : > { %902 = vmatmul.bf16.vlgmr.msra.gmra.mxu2 %v1246_v33  ;;  %v1492_v33 = vld [vmem:[%s1760_s22 + $0x7c] sm:$0xf]  ;;  %s1232_s22 = sshll.u32 %s1946_s13, 2 }
  0x30   : > { %v1302_v35 = vor.u32 %v1492_v33, %v1299_v34  ;;  %s1884_s28 = scalar_lea.vmem %s1939_s4, %s1232_s22  ;;  %s1901_s8 = scalar_lea.vmem %s1940_s5, %s1232_s22 }
  0x31   : > { %866 = vmatpush.bf16.msrb.mxu1 %v1511_v37  ;;  %953 = vmatpush.bf16.msrb.mxu0 %v1535_v38  ;;  %v1538_v0 = vld [vmem:[%s1884_s28] sm:$0xff]   ;;  %v1573_v27 = vld [vmem:[%s1884_s28 + $0x8] sm:$0xff]  }
  0x32   : > { %1588 = vmatpush.bf16.msrb.mxu2 %v1535_v38  ;;  %v1539_v4 = vunpack.c.l.bf16 %v1538_v0  ;;  %v1540_v9 = vunpack.c.h.bf16 %v1538_v0 }
  0x35   : > { %867 = vmatpush.bf16.msrb.mxu1 %v1510_v40  ;;  %954 = vmatpush.bf16.msrb.mxu0 %v1534_v41 }
  0x36   : > { %1589 = vmatpush.bf16.msrb.mxu2 %v1534_v41 }
  0x39   : > { %868 = vmatpush.bf16.msrb.mxu1 %v1509_v42  ;;  %955 = vmatpush.bf16.msrb.mxu0 %v1533_v43 }
  0x3a   : > { %1590 = vmatpush.bf16.msrb.mxu2 %v1533_v43 }
  0x3c   : > { %859 = vmatmul.bf16.gmra.mxu1 %v1298_v52  ;;  %849 = vmatmul.bf16.gmra.mxu0 %v1258_v53 }
  0x3d   : > { %869 = vmatpush.bf16.msrb.mxu1 %v1508_v48  ;;  %956 = vmatpush.bf16.msrb.mxu0 %v1532_v51 }
  0x3e   : > { %1591 = vmatpush.bf16.msrb.mxu2 %v1532_v51  ;;  %936 = vmatmul.bf16.gmra.mxu3 %v1270_v59 }
  0x3f   : > { %907 = vmatmul.bf16.gmra.mxu2 %v1266_v54 }
  0x41   : > { %870 = vmatpush.bf16.msrb.mxu1 %v1507_v57  ;;  %957 = vmatpush.bf16.msrb.mxu0 %v1531_v58 }
  0x42   : > { %1592 = vmatpush.bf16.msrb.mxu2 %v1531_v58 }
  0x45   : > { %871 = vmatpush.bf16.msrb.mxu1 %v1506_v60  ;;  %958 = vmatpush.bf16.msrb.mxu0 %v1530_v61 }
  0x46   : > { %1593 = vmatpush.bf16.msrb.mxu2 %v1530_v61 }
  0x49   : > { %872 = vmatpush.bf16.msrb.mxu1 %v1505_v62  ;;  %959 = vmatpush.bf16.msrb.mxu0 %v1529_v63  ;;  %v1890_v62 = vld [vmem:[%s1938_s3] ss:$0 sm:$0xff] }
  0x4a   : > { %1594 = vmatpush.bf16.msrb.mxu2 %v1529_v63 }
  0x4c   : > { %873 = vmatmul.bf16.vlgmr.msrb.gmra.mxu1 %v1242_v6  ;;  %960 = vmatmul.bf16.vlgmr.msrb.gmra.mxu0 %v1254_v7 }
  0x4e   : > { %941 = vmatmul.bf16.gmra.mxu3 %v1290_v11 }
  0x4f   : > { %912 = vmatmul.bf16.gmra.mxu2 %v1286_v8 }
  0x5c   : > { %878 = vmatmul.bf16.gmra.mxu1 %v1262_v18  ;;  %965 = vmatmul.bf16.gmra.mxu0 %v1274_v19 }
  0x5e   : > { %946 = vmatmul.bf16.gmra.mxu3 %v1310_v23 }
  0x5f   : > { %917 = vmatmul.bf16.gmra.mxu2 %v1306_v20 }
  0x6c   : > { %883 = vmatmul.bf16.gmra.mxu1 %v1282_v30  ;;  %970 = vmatmul.bf16.gmra.mxu0 %v1294_v31  ;;  %v1543_v31 = vunpack.c.l.bf16 %v1573_v27 }
  0x6f   : > { %975 = vmatmul.bf16.vlgmr.msrb.gmra.mxu2 %v1314_v32 }
  0x7c   : > { %888 = vmatmul.bf16.gmra.mxu1 %v1302_v35 }
  0xa9   : > { %v1865_v36 = vpop.f32.mrf.mxu1  ;;  %v845_v37 = vpop.f32.mrf.mxu0 }
  0xb1   : > { %v1867_v39 = vpop.f32.mrf.mxu1  ;;  %v847_v40 = vpop.f32.mrf.mxu0 }
  0xb2   : > { %v903_v38 = vpop.f32.mrf.mxu2  ;;  %v932_v44 = vpop.f32.mrf.mxu3 }
  0xb9   : > { %v1869_v42 = vpop.f32.mrf.mxu1  ;;  %v850_v43 = vpop.f32.mrf.mxu0 }
  0xba   : > { %v905_v41 = vpop.f32.mrf.mxu2  ;;  %v934_v48 = vpop.f32.mrf.mxu3 }
  0xc1   : > { %v1871_v46 = vpop.f32.mrf.mxu1  ;;  %v852_v47 = vpop.f32.mrf.mxu0 }
  0xc2   : > { %v908_v45 = vpop.f32.mrf.mxu2  ;;  %v937_v60 = vpop.f32.mrf.mxu3 }
  0xc9   : > { %v874_v49 = vpop.f32.mrf.mxu1  ;;  %v961_v50 = vpop.f32.mrf.mxu0 }
  0xca   : > { %v875_v51 = vadd.f32 %v874_v49, %v845_v37  ;;  %v910_v52 = vpop.f32.mrf.mxu2  ;;  %v939_v14 = vpop.f32.mrf.mxu3  ;;  %v1544_v37 = vunpack.c.h.bf16 %v1573_v27 }
  0xcc   : > { %v904_v53 = vadd.f32 %v903_v38, %v875_v51 }
  0xce   : > { %v933_v54 = vadd.f32 %v932_v44, %v904_v53 }
  0xd0   : > { %v962_v55 = vadd.f32 %v961_v50, %v933_v54 }
  0xd1   : > { %v876_v57 = vpop.f32.mrf.mxu1  ;;  %v963_v58 = vpop.f32.mrf.mxu0 }
  0xd2   : > { %v877_v59 = vadd.f32 %v876_v57, %v847_v40  ;;  %v1012_v61 = vmul.f32 %v1877_v56, %v962_v55  ;;  %v913_v1 = vpop.f32.mrf.mxu2  ;;  %v942_v29 = vpop.f32.mrf.mxu3 }
  0xd4   : > { %v906_v63 = vadd.f32 %v905_v41, %v877_v59  ;;  %v1024_v3 = vadd.f32 %v1890_v62, %v1012_v61 }
  0xd6   : > { %v935_v2 = vadd.f32 %v934_v48, %v906_v63  ;;  %v1048_v11 = vadd.f32 %v1539_v4, %v1024_v3  ;;  %v1574_v48 = vld [vmem:[%s1884_s28 + $0x10] sm:$0xff]  }
  0xd7   : > { %v1547_v57 = vunpack.c.l.bf16 %v1574_v48  ;;  %v1548_v4 = vunpack.c.h.bf16 %v1574_v48 }
  0xd8   : > { %v964_v5 = vadd.f32 %v963_v58, %v935_v2  ;;  %v1056_v18 = vmax.f32 %v1048_v11, 0.0  ;;  %v1575_v11 = vld [vmem:[%s1884_s28 + $0x18] sm:$0xff]  }
  0xd9   : > { %v879_v6 = vpop.f32.mrf.mxu1  ;;  %v966_v7 = vpop.f32.mrf.mxu0  ;;  %v1552_v27 = vunpack.c.h.bf16 %v1575_v11 }
  0xda   : > { %v1013_v8 = vmul.f32 %v1877_v56, %v964_v5  ;;  %v880_v10 = vadd.f32 %v879_v6, %v850_v43  ;;  %v915_v17 = vpop.f32.mrf.mxu2 }
  0xdc   : > { %v1025_v12 = vadd.f32 %v1890_v62, %v1013_v8  ;;  %v909_v13 = vadd.f32 %v908_v45, %v880_v10 }
  0xde   : > { %v1049_v15 = vadd.f32 %v1540_v9, %v1025_v12  ;;  %v938_v16 = vadd.f32 %v937_v60, %v909_v13 }
  0xe0   : > { %v1057_v19 = vmax.f32 %v1049_v15, 0.0  ;;  %v967_v20 = vadd.f32 %v966_v7, %v938_v16 }
  0xe1   : > { %v881_v21 = vpop.f32.mrf.mxu1  ;;  %v968_v22 = vpop.f32.mrf.mxu0 }
  0xe2   : > { %v1556_v23 = vpack.c.bf16 %v1057_v19, %v1056_v18  ;;  %v882_v24 = vadd.f32 %v881_v21, %v852_v47  ;;  %v1014_v25 = vmul.f32 %v1877_v56, %v967_v20  ;;  %v918_v33 = vpop.f32.mrf.mxu2  ;;  %v1551_v18 = vunpack.c.l.bf16 %v1575_v11 }
  0xe4   : > { %1557 = vst [vmem:[%s1901_s8] sm:$0xff] %v1556_v23   ;;  %v911_v26 = vadd.f32 %v910_v52, %v882_v24  ;;  %v1026_v30 = vadd.f32 %v1890_v62, %v1014_v25  ;;  %v944_v52 = vpop.f32.mrf.mxu3 }
  0xe6   : > { %v940_v28 = vadd.f32 %v939_v14, %v911_v26  ;;  %v1050_v41 = vadd.f32 %v1543_v31, %v1026_v30 }
  0xe8   : > { %v969_v32 = vadd.f32 %v968_v22, %v940_v28  ;;  %v1058_v49 = vmax.f32 %v1050_v41, 0.0 }
  0xe9   : > { %v884_v34 = vpop.f32.mrf.mxu1  ;;  %v971_v40 = vpop.f32.mrf.mxu0 }
  0xea   : > { %v1015_v35 = vmul.f32 %v1877_v56, %v969_v32  ;;  %v885_v38 = vadd.f32 %v884_v34, %v1865_v36  ;;  %v920_v58 = vpop.f32.mrf.mxu2 }
  0xec   : > { %v1027_v43 = vadd.f32 %v1890_v62, %v1015_v35  ;;  %v914_v44 = vadd.f32 %v913_v1, %v885_v38  ;;  %v947_v6 = vpop.f32.mrf.mxu3 }
  0xee   : > { %v1051_v45 = vadd.f32 %v1544_v37, %v1027_v43  ;;  %v943_v47 = vadd.f32 %v942_v29, %v914_v44 }
  0xf0   : > { %v1059_v50 = vmax.f32 %v1051_v45, 0.0  ;;  %v972_v51 = vadd.f32 %v971_v40, %v943_v47 }
  0xf1   : > { %v886_v53 = vpop.f32.mrf.mxu1  ;;  %v973_v61 = vpop.f32.mrf.mxu0 }
  0xf2   : > { %v1561_v54 = vpack.c.bf16 %v1059_v50, %v1058_v49  ;;  %v1016_v55 = vmul.f32 %v1877_v56, %v972_v51  ;;  %v887_v36 = vadd.f32 %v886_v53, %v1867_v39  ;;  %v976_v8 = vpop.f32.mrf.mxu2 }
  0xf4   : > { %1576 = vst [vmem:[%s1901_s8 + $0x8] sm:$0xff] %v1561_v54   ;;  %v1028_v59 = vadd.f32 %v1890_v62, %v1016_v55  ;;  %v916_v60 = vadd.f32 %v915_v17, %v887_v36  ;;  %v949_v21 = vpop.f32.mrf.mxu3 }
  0xf6   : > { %v1052_v63 = vadd.f32 %v1547_v57, %v1028_v59  ;;  %v945_v0 = vadd.f32 %v944_v52, %v916_v60 }
  0xf8   : > { %v974_v1 = vadd.f32 %v973_v61, %v945_v0  ;;  %v1060_v12 = vmax.f32 %v1052_v63, 0.0 }
  0xf9   : > { %v889_v2 = vpop.f32.mrf.mxu1 }
  0xfa   : > { %v1017_v3 = vmul.f32 %v1877_v56, %v974_v1  ;;  %v890_v5 = vadd.f32 %v889_v2, %v1869_v42  ;;  %v978_v24 = vpop.f32.mrf.mxu2 }
  0xfc   : > { %v1029_v39 = vadd.f32 %v1890_v62, %v1017_v3  ;;  %v919_v7 = vadd.f32 %v918_v33, %v890_v5 }
  0xfe   : > { %v1053_v9 = vadd.f32 %v1548_v4, %v1029_v39  ;;  %v948_v10 = vadd.f32 %v947_v6, %v919_v7 }
 0x100   : > { %v1061_v13 = vmax.f32 %v1053_v9, 0.0  ;;  %v977_v14 = vadd.f32 %v976_v8, %v948_v10 }
 0x101   : > { %v891_v15 = vpop.f32.mrf.mxu1 }
 0x102   : > { %v1566_v16 = vpack.c.bf16 %v1061_v13, %v1060_v12  ;;  %v1018_v17 = vmul.f32 %v1877_v56, %v977_v14  ;;  %v892_v19 = vadd.f32 %v891_v15, %v1871_v46 }
 0x104   : > { %1577 = vst [vmem:[%s1901_s8 + $0x10] sm:$0xff] %v1566_v16   ;;  %v1030_v42 = vadd.f32 %v1890_v62, %v1018_v17  ;;  %v921_v20 = vadd.f32 %v920_v58, %v892_v19 }
 0x106   : > { %v1054_v22 = vadd.f32 %v1551_v18, %v1030_v42  ;;  %v950_v23 = vadd.f32 %v949_v21, %v921_v20 }
 0x108   : > { %v979_v25 = vadd.f32 %v978_v24, %v950_v23  ;;  %v1062_v30 = vmax.f32 %v1054_v22, 0.0 }
 0x10a   : > { %v1019_v26 = vmul.f32 %v1877_v56, %v979_v25 }
 0x10c   : > { %v1031_v28 = vadd.f32 %v1890_v62, %v1019_v26 }
 0x10e   : > { %v1055_v29 = vadd.f32 %v1552_v27, %v1031_v28 }
 0x110   : > { %v1063_v31 = vmax.f32 %v1055_v29, 0.0 }
 0x112   : > { %v1571_v32 = vpack.c.bf16 %v1063_v31, %v1062_v30 }
 0x114   : > { %1578 = vst [vmem:[%s1901_s8 + $0x18] sm:$0xff] %v1571_v32  }
 0x115 PF: > { %s15_s20 = sadd.s32 1, %s1644_s20   ;;  %s1941_s18 = smov %s1640_s19 }
 0x116   : > { %p12_p5 = scmp.ge.s32.totalorder %s15_s20, 4   ;;  %s1942_s19 = smov %s1944_s21 }
 0x118   :  { %14 = sbr.rel (!%p12_p5) target bundleno = 2 (0x2), region = 90 }

// kernel: electronics_classifier_forward.29
= control target key start
LH: loop header
LB: loop body
LE: loop exit
PB: predicated region body
PF: predicated region fallthrough
CT: control target
= control target key end

     0   :  { %s1211_s15 = smov 0   ;;  %s1213_s16 = smov 0   ;;  %s1389_s0 = inlined_call_operand.vmem [shape: bf16[32,640], index: 0, kind: input, shape index: {}]   ;;  %s1390_s1 = inlined_call_operand.vmem [shape: bf16[640,128], index: 1, kind: input, shape index: {}]   ;;  %s1391_s2 = inlined_call_operand.vmem [shape: f32[1,128], index: 2, kind: input, shape index: {}]   ;;  %s1392_s3 = inlined_call_operand.vmem [shape: f32[1,128], index: 3, kind: input, shape index: {}]   ;;  %s1393_s4 = inlined_call_operand.vmem [shape: bf16[32,128], index: 4, kind: output, shape index: {}]  }
   0x1   :  { %s1215_s17 = smov 0  }
   0x2 LB: > { %s33_s18 = sadd.s32 1, %s1180_s16  ;;  %p898_p0 = scmp.ge.s32.totalorder %s1184_s17, 1  ;;  %s1184_s17 = sphi %s1215_s17, %s14_s17   ;;  %s1180_s16 = sphi %s1213_s16, %s1395_s16   ;;  %s1176_s15 = sphi %s1211_s15, %s1394_s15  }
   0x3   : > { %p35_p1 = scmp.ge.s32.totalorder %s33_s18, 2  ;;  %p224_p2 = scmp.lt.s32.totalorder %s1184_s17, 3 }
   0x5   : > { %s1397_s18 = smov (%p35_p1, %s33_s18), 0  ;;  %p225_p3 = pnand %p898_p0, %p224_p2 }
   0x6   : > { %s899_s21 = sshll.u32 (!%p225_p3), %s1176_s15, 1 }
   0x7   : > { %228 = sbr.rel (%p225_p3) target bundleno = 221 (0xdd), region = 36  ;;  %p274_p4 = scmp.lt.s32.totalorder (!%p225_p3), %s899_s21, 3 }
   0xc   : > { %v1097_v0 = vld [vmem:[%s1390_s1 + $0x38] sm:$0xff]  ;;  %v1096_v4 = vld [vmem:[%s1390_s1 + $0x30] sm:$0xff]  ;;  %v1095_v8 = vld [vmem:[%s1390_s1 + $0x28] sm:$0xff]  ;;  %s1399_s21 = smov (!%p274_p4, %s899_s21), 3 }
   0xd   : > { %v1113_v1 = vld [vmem:[%s1390_s1 + $0xb8] sm:$0xff]  ;;  %668 = vmatpush.bf16.msra.mxu0 %v1097_v0  ;;  %v1112_v5 = vld [vmem:[%s1390_s1 + $0xb0] sm:$0xff]  ;;  %v1111_v9 = vld [vmem:[%s1390_s1 + $0xa8] sm:$0xff]  ;;  %s1135_s19 = smul.u32 20, %s1399_s21 }
   0xe   : > { %v1121_v2 = vld [vmem:[%s1390_s1 + $0xf8] sm:$0xff]  ;;  %696 = vmatpush.bf16.msra.mxu2 %v1113_v1  ;;  %v1120_v6 = vld [vmem:[%s1390_s1 + $0xf0] sm:$0xff]  ;;  %v1119_v10 = vld [vmem:[%s1390_s1 + $0xe8] sm:$0xff] }
   0xf   : > { %v1105_v3 = vld [vmem:[%s1390_s1 + $0x78] sm:$0xff]  ;;  %710 = vmatpush.bf16.msra.mxu3 %v1121_v2  ;;  %v1104_v7 = vld [vmem:[%s1390_s1 + $0x70] sm:$0xff]  ;;  %v1103_v11 = vld [vmem:[%s1390_s1 + $0x68] sm:$0xff]  ;;  %s1316_s30 = scalar_lea.vmem %s1389_s0, %s1135_s19  ;;  %s902_s19 = sshll.u32 %s1399_s21, 2 }
  0x10   : > { %682 = vmatpush.bf16.msra.mxu1 %v1105_v3  ;;  %v1094_v12 = vld [vmem:[%s1390_s1 + $0x20] sm:$0xff]  ;;  %v1093_v16 = vld [vmem:[%s1390_s1 + $0x18] sm:$0xff]  ;;  %v1092_v20 = vld [vmem:[%s1390_s1 + $0x10] sm:$0xff]  ;;  %s306_s23 = scalar_lea.vmem %s1393_s4, %s902_s19 }
  0x11   : > { %669 = vmatpush.bf16.msra.mxu0 %v1096_v4  ;;  %v1110_v13 = vld [vmem:[%s1390_s1 + $0xa0] sm:$0xff]  ;;  %v1109_v17 = vld [vmem:[%s1390_s1 + $0x98] sm:$0xff]  ;;  %v1108_v21 = vld [vmem:[%s1390_s1 + $0x90] sm:$0xff] }
  0x12   : > { %697 = vmatpush.bf16.msra.mxu2 %v1112_v5  ;;  %v1118_v14 = vld [vmem:[%s1390_s1 + $0xe0] sm:$0xff]  ;;  %v1117_v18 = vld [vmem:[%s1390_s1 + $0xd8] sm:$0xff]  ;;  %v1116_v22 = vld [vmem:[%s1390_s1 + $0xd0] sm:$0xff] }
  0x13   : > { %711 = vmatpush.bf16.msra.mxu3 %v1120_v6  ;;  %v1102_v15 = vld [vmem:[%s1390_s1 + $0x60] sm:$0xff]  ;;  %v1101_v19 = vld [vmem:[%s1390_s1 + $0x58] sm:$0xff]  ;;  %v1100_v23 = vld [vmem:[%s1390_s1 + $0x50] sm:$0xff] }
  0x14   : > { %683 = vmatpush.bf16.msra.mxu1 %v1104_v7  ;;  %v1091_v24 = vld [vmem:[%s1390_s1 + $0x8] sm:$0xff]  ;;  %v1090_v28 = vld [vmem:[%s1390_s1] sm:$0xff]  ;;  %v1129_v30 = vld [vmem:[%s1390_s1 + $0x138] sm:$0xff] }
  0x15   : > { %670 = vmatpush.bf16.msra.mxu0 %v1095_v8  ;;  %v1107_v25 = vld [vmem:[%s1390_s1 + $0x88] sm:$0xff]  ;;  %v1106_v29 = vld [vmem:[%s1390_s1 + $0x80] sm:$0xff]  ;;  %v1088_v32 = vld [vmem:[%s1316_s30 + $0x18] sm:$0xf0] }
  0x16   : > { %698 = vmatpush.bf16.msra.mxu2 %v1111_v9  ;;  %v1115_v26 = vld [vmem:[%s1390_s1 + $0xc8] sm:$0xff]  ;;  %v905_v33 = vld [vmem:[%s1316_s30] sm:$0xf]  ;;  %v1087_v34 = vld [vmem:[%s1316_s30 + $0x10] sm:$0xf0] }
  0x17   : > { %712 = vmatpush.bf16.msra.mxu3 %v1119_v10  ;;  %v1099_v27 = vld [vmem:[%s1390_s1 + $0x48] sm:$0xff]  ;;  %v1114_v35 = vld [vmem:[%s1390_s1 + $0xc0] sm:$0xff]  ;;  %v907_v40 = vld [vmem:[%s1316_s30 + $0x14] sm:$0xf0]  ;;  %v906_v42 = vor.u32 %v1087_v34, %v905_v33 }
  0x18   : > { %684 = vmatpush.bf16.msra.mxu1 %v1103_v11  ;;  %v913_v31 = vld [vmem:[%s1316_s30 + $0x8] sm:$0xf]  ;;  %v1086_v36 = vld [vmem:[%s1316_s30 + $0xc] sm:$0xf]  ;;  %v915_v37 = vld [vmem:[%s1316_s30 + $0x1c] sm:$0xf0] }
  0x19   : > { %671 = vmatpush.bf16.msra.mxu0 %v1094_v12  ;;  %v1098_v38 = vld [vmem:[%s1390_s1 + $0x40] sm:$0xff]  ;;  %v914_v41 = vor.u32 %v1088_v32, %v913_v31  ;;  %v918_v43 = vor.u32 %v1086_v36, %v915_v37  ;;  %v1128_v44 = vld [vmem:[%s1390_s1 + $0x130] sm:$0xff]  ;;  %v1127_v46 = vld [vmem:[%s1390_s1 + $0x128] sm:$0xff] }
  0x1a   : > { %699 = vmatpush.bf16.msra.mxu2 %v1110_v13  ;;  %v1085_v39 = vld [vmem:[%s1316_s30 + $0x4] sm:$0xf]  ;;  %v1125_v48 = vld [vmem:[%s1390_s1 + $0x118] sm:$0xff]  ;;  %v1124_v49 = vld [vmem:[%s1390_s1 + $0x110] sm:$0xff] }
  0x1b   : > { %713 = vmatpush.bf16.msra.mxu3 %v1118_v14  ;;  %v910_v45 = vor.u32 %v1085_v39, %v907_v40  ;;  %v1126_v47 = vld [vmem:[%s1390_s1 + $0x120] sm:$0xff]  ;;  %v1123_v50 = vld [vmem:[%s1390_s1 + $0x108] sm:$0xff]  ;;  %v921_v52 = vld [vmem:[%s1316_s30 + $0x10] sm:$0xf] }
  0x1c   : > { %685 = vmatpush.bf16.msra.mxu1 %v1102_v15  ;;  %v1122_v51 = vld [vmem:[%s1390_s1 + $0x100] sm:$0xff] }
  0x1d   : > { %672 = vmatpush.bf16.msra.mxu0 %v1093_v16  ;;  %v1089_v53 = vld [vmem:[%s1316_s30 + $0x20] sm:$0xf0]  ;;  %v1160_v5 = vld [vmem:[%s1391_s2] ss:$0 sm:$0xff] }
  0x1e   : > { %700 = vmatpush.bf16.msra.mxu2 %v1109_v17  ;;  %v922_v54 = vor.u32 %v1089_v53, %v921_v52  ;;  %v1161_v9 = vld [vmem:[%s1392_s3] ss:$0 sm:$0xff] }
  0x1f   : > { %714 = vmatpush.bf16.msra.mxu3 %v1117_v18 }
  0x20   : > { %686 = vmatpush.bf16.msra.mxu1 %v1101_v19 }
  0x21   : > { %673 = vmatpush.bf16.msra.mxu0 %v1092_v20 }
  0x22   : > { %701 = vmatpush.bf16.msra.mxu2 %v1108_v21 }
  0x23   : > { %715 = vmatpush.bf16.msra.mxu3 %v1116_v22 }
  0x24   : > { %687 = vmatpush.bf16.msra.mxu1 %v1100_v23 }
  0x25   : > { %674 = vmatpush.bf16.msra.mxu0 %v1091_v24 }
  0x26   : > { %702 = vmatpush.bf16.msra.mxu2 %v1107_v25 }
  0x27   : > { %716 = vmatpush.bf16.msra.mxu3 %v1115_v26 }
  0x28   : > { %688 = vmatpush.bf16.msra.mxu1 %v1099_v27 }
  0x29   : > { %675 = vmatpush.bf16.msra.mxu0 %v1090_v28 }
  0x2a   : > { %703 = vmatpush.bf16.msra.mxu2 %v1106_v29 }
  0x2b   : > { %717 = vmatpush.bf16.msra.mxu3 %v1114_v35 }
  0x2c   : > { %689 = vmatpush.bf16.msra.mxu1 %v1098_v38  ;;  %676 = vmatmul.bf16.vlgmr.msra.gmra.mxu0 %v906_v42 }
  0x2d   : > { %724 = vmatpush.bf16.msrb.mxu0 %v1129_v30  ;;  %704 = vmatmul.bf16.vlgmr.msra.gmra.mxu2 %v914_v41 }
  0x2e   : > { %718 = vmatmul.bf16.vlgmr.msra.gmra.mxu3 %v918_v43 }
  0x2f   : > { %690 = vmatmul.bf16.vlgmr.msra.gmra.mxu1 %v910_v45 }
  0x31   : > { %725 = vmatpush.bf16.msrb.mxu0 %v1128_v44 }
  0x35   : > { %726 = vmatpush.bf16.msrb.mxu0 %v1127_v46 }
  0x39   : > { %727 = vmatpush.bf16.msrb.mxu0 %v1126_v47 }
  0x3d   : > { %728 = vmatpush.bf16.msrb.mxu0 %v1125_v48 }
  0x41   : > { %729 = vmatpush.bf16.msrb.mxu0 %v1124_v49 }
  0x45   : > { %730 = vmatpush.bf16.msrb.mxu0 %v1123_v50 }
  0x49   : > { %731 = vmatpush.bf16.msrb.mxu0 %v1122_v51 }
  0x4c   : > { %732 = vmatmul.bf16.vlgmr.msrb.gmra.mxu0 %v922_v54 }
  0xa9   : > { %v677_v55 = vpop.f32.mrf.mxu0 }
  0xac   : > { %v691_v56 = vpop.f32.mrf.mxu1 }
  0xad   : > { %v692_v59 = vadd.f32 %v691_v56, %v677_v55 }
  0xb0   : > { %v705_v57 = vpop.f32.mrf.mxu2 }
  0xb1   : > { %v679_v58 = vpop.f32.mrf.mxu0  ;;  %v719_v60 = vpop.f32.mrf.mxu3  ;;  %v706_v62 = vadd.f32 %v705_v57, %v692_v59 }
  0xb3   : > { %v720_v2 = vadd.f32 %v719_v60, %v706_v62 }
  0xb4   : > { %v693_v61 = vpop.f32.mrf.mxu1 }
  0xb5   : > { %v694_v63 = vadd.f32 %v693_v61, %v679_v58 }
  0xb8   : > { %v707_v0 = vpop.f32.mrf.mxu2 }
  0xb9   : > { %v708_v3 = vadd.f32 %v707_v0, %v694_v63  ;;  %v721_v6 = vpop.f32.mrf.mxu3 }
  0xbb   : > { %v722_v7 = vadd.f32 %v721_v6, %v708_v3 }
  0xc9   : > { %v733_v1 = vpop.f32.mrf.mxu0 }
  0xca   : > { %v734_v4 = vadd.f32 %v733_v1, %v720_v2 }
  0xcc   : > { %v751_v8 = vmul.f32 %v1160_v5, %v734_v4 }
  0xce   : > { %v757_v12 = vadd.f32 %v1161_v9, %v751_v8 }
  0xd0   : > { %v759_v15 = vmax.f32 %v757_v12, 0.0 }
  0xd1   : > { %v735_v10 = vpop.f32.mrf.mxu0 }
  0xd2   : > { %v736_v11 = vadd.f32 %v735_v10, %v722_v7 }
  0xd4   : > { %v752_v13 = vmul.f32 %v1160_v5, %v736_v11 }
  0xd6   : > { %v758_v14 = vadd.f32 %v1161_v9, %v752_v13 }
  0xd8   : > { %v760_v16 = vmax.f32 %v758_v14, 0.0 }
  0xda   : > { %v1133_v17 = vpack.c.bf16 %v760_v16, %v759_v15 }
  0xdc   : > { %1134 = vst [vmem:[%s306_s23] sm:$0xff] %v1133_v17  }
  0xdd PF: > { %s14_s17 = sadd.s32 1, %s1184_s17   ;;  %s1394_s15 = smov %s1180_s16 }
  0xde   : > { %p11_p5 = scmp.ge.s32.totalorder %s14_s17, 4   ;;  %s1395_s16 = smov %s1397_s18 }
  0xe0   :  { %13 = sbr.rel (!%p11_p5) target bundleno = 2 (0x2), region = 83 }

// kernel: electronics_classifier_forward.28
= control target key start
LH: loop header
LB: loop body
LE: loop exit
PB: predicated region body
PF: predicated region fallthrough
CT: control target
= control target key end

     0   :  { %s681_s15 = smov 0   ;;  %s683_s16 = smov 0   ;;  %s744_s0 = inlined_call_operand.vmem [shape: bf16[32,128], index: 0, kind: input, shape index: {}]   ;;  %s745_s1 = inlined_call_operand.vmem [shape: bf16[128,128], index: 1, kind: input, shape index: {}]   ;;  %s746_s2 = inlined_call_operand.vmem [shape: f32[1,128], index: 2, kind: input, shape index: {}]   ;;  %s747_s3 = inlined_call_operand.vmem [shape: f32[1,128], index: 3, kind: input, shape index: {}]   ;;  %s748_s4 = inlined_call_operand.vmem [shape: bf16[32,128], index: 4, kind: output, shape index: {}]  }
   0x1   :  { %s685_s17 = smov 0  }
   0x2 LB: > { %s33_s18 = sadd.s32 1, %s650_s16  ;;  %p549_p0 = scmp.ge.s32.totalorder %s654_s17, 1  ;;  %s654_s17 = sphi %s685_s17, %s14_s17   ;;  %s650_s16 = sphi %s683_s16, %s750_s16   ;;  %s646_s15 = sphi %s681_s15, %s749_s15  }
   0x3   : > { %p35_p1 = scmp.ge.s32.totalorder %s33_s18, 2  ;;  %p221_p2 = scmp.lt.s32.totalorder %s654_s17, 3 }
   0x5   : > { %s752_s18 = smov (%p35_p1, %s33_s18), 0  ;;  %p222_p3 = pnand %p549_p0, %p221_p2 }
   0x6   : > { %s550_s27 = sshll.u32 (!%p222_p3), %s646_s15, 1 }
   0x7   : > { %225 = sbr.rel (%p222_p3) target bundleno = 185 (0xb9), region = 36  ;;  %p268_p4 = scmp.lt.s32.totalorder (!%p222_p3), %s550_s27, 3 }
   0xc   : > { %v600_v0 = vld [vmem:[%s745_s1 + $0x38] sm:$0xff]  ;;  %v599_v1 = vld [vmem:[%s745_s1 + $0x30] sm:$0xff]  ;;  %v598_v2 = vld [vmem:[%s745_s1 + $0x28] sm:$0xff]  ;;  %s754_s27 = smov (!%p268_p4, %s550_s27), 3 }
   0xd   : > { %380 = vmatpush.bf16.msra.mxu0 %v600_v0  ;;  %v597_v3 = vld [vmem:[%s745_s1 + $0x20] sm:$0xff]  ;;  %v596_v4 = vld [vmem:[%s745_s1 + $0x18] sm:$0xff]  ;;  %v595_v5 = vld [vmem:[%s745_s1 + $0x10] sm:$0xff]  ;;  %s551_s8 = sshll.u32 %s754_s27, 2 }
   0xe   : > { %v594_v6 = vld [vmem:[%s745_s1 + $0x8] sm:$0xff]  ;;  %v593_v7 = vld [vmem:[%s745_s1] sm:$0xff]  ;;  %s274_s13 = scalar_lea.vmem %s744_s0, %s551_s8  ;;  %s298_s23 = scalar_lea.vmem %s748_s4, %s551_s8 }
   0xf   : > { %v592_v8 = vld [vmem:[%s274_s13] sm:$0xff] }
  0x10   : > { %v630_v10 = vld [vmem:[%s746_s2] ss:$0 sm:$0xff] }
  0x11   : > { %381 = vmatpush.bf16.msra.mxu0 %v599_v1  ;;  %v631_v12 = vld [vmem:[%s747_s3] ss:$0 sm:$0xff] }
  0x15   : > { %382 = vmatpush.bf16.msra.mxu0 %v598_v2 }
  0x19   : > { %383 = vmatpush.bf16.msra.mxu0 %v597_v3 }
  0x1d   : > { %384 = vmatpush.bf16.msra.mxu0 %v596_v4 }
  0x21   : > { %385 = vmatpush.bf16.msra.mxu0 %v595_v5 }
  0x25   : > { %386 = vmatpush.bf16.msra.mxu0 %v594_v6 }
  0x29   : > { %387 = vmatpush.bf16.msra.mxu0 %v593_v7 }
  0x2c   : > { %388 = vmatmul.bf16.vlgmr.msra.gmra.mxu0 %v592_v8 }
  0xa9   : > { %v389_v9 = vpop.f32.mrf.mxu0 }
  0xaa   : > { %v407_v11 = vmul.f32 %v630_v10, %v389_v9 }
  0xac   : > { %v413_v15 = vadd.f32 %v631_v12, %v407_v11 }
  0xb1   : > { %v391_v13 = vpop.f32.mrf.mxu0 }
  0xb2   : > { %v408_v14 = vmul.f32 %v630_v10, %v391_v13 }
  0xb4   : > { %v414_v16 = vadd.f32 %v631_v12, %v408_v14 }
  0xb6   : > { %v604_v17 = vpack.c.bf16 %v414_v16, %v413_v15 }
  0xb8   : > { %605 = vst [vmem:[%s298_s23] sm:$0xff] %v604_v17  }
  0xb9 PF: > { %s14_s17 = sadd.s32 1, %s654_s17   ;;  %s749_s15 = smov %s650_s16 }
  0xba   : > { %p11_p5 = scmp.ge.s32.totalorder %s14_s17, 4   ;;  %s750_s16 = smov %s752_s18 }
  0xbc   :  { %13 = sbr.rel (!%p11_p5) target bundleno = 2 (0x2), region = 83 }

// kernel: electronics_classifier_forward.30
= control target key start
LH: loop header
LB: loop body
LE: loop exit
PB: predicated region body
PF: predicated region fallthrough
CT: control target
= control target key end

     0   :  { %s894_s18 = smov 0   ;;  %s896_s19 = smov 0   ;;  %s1006_s0 = inlined_call_operand.vmem [shape: bf16[32,1152], index: 0, kind: input, shape index: {}]   ;;  %s1007_s1 = inlined_call_operand.vmem [shape: bf16[1152,128], index: 1, kind: input, shape index: {}]   ;;  %s1008_s2 = inlined_call_operand.vmem [shape: f32[1,128], index: 2, kind: input, shape index: {}]   ;;  %s1009_s3 = inlined_call_operand.vmem [shape: f32[1,128], index: 3, kind: input, shape index: {}]   ;;  %s1010_s4 = inlined_call_operand.vmem [shape: bf16[32,128], index: 4, kind: input, shape index: {}]   ;;  %s1011_s5 = inlined_call_operand.vmem [shape: bf16[32,128], index: 5, kind: output, shape index: {}]  }
   0x1   :  { %s898_s20 = smov 0   ;;  %s900_s21 = smov 0  }
   0x2   :  { %s902_s22 = smov 0   ;;  %s904_s23 = smov 0  }
   0x3   :  { %s906_s24 = smov 0  }
   0x4 LB: > { %s27_s25 = sadd.s32 1, %s853_s22  ;;  %s34_s26 = sadd.s32 1, %s857_s23  ;;  %s861_s24 = sphi %s906_s24, %s15_s24   ;;  %s857_s23 = sphi %s904_s23, %s1017_s23   ;;  %s853_s22 = sphi %s902_s22, %s1016_s22   ;;  %s849_s21 = sphi %s900_s21, %s1015_s21   ;;  %s845_s20 = sphi %s898_s20, %s1014_s20   ;;  %s841_s19 = sphi %s896_s19, %s1013_s19   ;;  %s837_s18 = sphi %s894_s18, %s1012_s18  }
   0x5   : > { %p28_p0 = scmp.ge.s32.totalorder %s27_s25, 9  ;;  %p50_p1 = scmp.ne.s32.totalorder %s841_s19, %s837_s18 }
   0x6   : > { %p51_p2 = scmp.eq.s32.totalorder %s861_s24, 0  ;;  %s43_s30 = sadd.s32 1, %s841_s19 }
   0x7   : > { %s1019_s25 = smov (%p28_p0, %s27_s25), 0  ;;  %s1021_s26 = smov (!%p28_p0, %s34_s26), %s857_s23 }
   0x8   : > { %p52_p3 = por %p51_p2, %p50_p1  ;;  %p36_p4 = scmp.ge.s32.totalorder %s1021_s26, 2 }
   0x9   : > { %s39_s27 = ssub.s32 %s853_s22, %s1019_s25  ;;  %p676_p6 = scmp.ge.s32.totalorder %s861_s24, 18 }
   0xa   : > { %s1023_s26 = smov (%p36_p4, %s1021_s26), 0 }
   0xb   : > { %s38_s28 = ssub.s32 %s857_s23, %s1023_s26  ;;  %224 = sbr.rel (%p676_p6) target bundleno = 25 (0x19), region = 24 }
   0xc   : > { %s40_s29 = sor.u32 %s39_s27, %s38_s28 }
   0xd   : > { %p41_p5 = scmp.eq.s32.totalorder %s40_s29, 0 }
   0xf   : > { %s945_s6 = scalar_select %p41_p5, %s841_s19, %s43_s30  }
  0x10   : > { %227 = sbr.rel (!%p52_p3) target bundleno = 25 (0x19), region = 28  ;;  %s229_s7 = sand.u32 (%p52_p3), 1, %s841_s19  }
  0x11   : > { %s747_s8 = smul.u32 (%p52_p3), 18, %s857_s23  ;;  %s677_s9 = sshll.u32 (%p52_p3), %s229_s7, 3 }
  0x12   : > { %s231_s15 = scalar_lea.vmem (%p52_p3), [#allocation3], %s677_s9 }
  0x13   : > { %s234_s10 = sadd.s32 (%p52_p3), %s853_s22, %s747_s8 }
  0x14   : > { %s680_s11 = sshll.u32 (%p52_p3), %s234_s10, 2 }
  0x15   : > { %s236_s14 = scalar_lea.vmem %s1006_s0, %s680_s11 }
  0x16   : > { %v253_v0 = vld [vmem:[%s236_s14] sm:$0xf]  ;;  %v255_v1 = vld [vmem:[%s236_s14 + $0x24] sm:$0xf] }
  0x17   : > { %254 = vst [vmem:[%s231_s15] sm:$0xf] %v253_v0 }
  0x18   : > { %256 = vst [vmem:[%s231_s15 + $0x4] sm:$0xf] %v255_v1 }
  0x19 PF: > { %p681_p7 = scmp.ge.s32.totalorder %s861_s24, 1  ;;  %p307_p8 = scmp.lt.s32.totalorder %s861_s24, 19 }
  0x1b   : > { %p308_p9 = pnand %p681_p7, %p307_p8 }
  0x1c   : > { %s314_s16 = sand.u32 (!%p308_p9), 1, %s837_s18   ;;  %s683_s17 = sshll.u32 (!%p308_p9), %s845_s20, 4 }
  0x1d   : > { %311 = sbr.rel (%p308_p9) target bundleno = 232 (0xe8), region = 77  ;;  %s958_s27 = sshll.u32 (!%p308_p9), %s314_s16, 3 }
  0x1e   : > { %p368_p10 = scmp.lt.s32.totalorder (!%p308_p9), %s683_s17, 143  ;;  %s685_s28 = sshll.u32 (!%p308_p9), %s849_s21, 1 }
  0x1f   : > { %p383_p11 = scmp.lt.s32.totalorder (!%p308_p9), %s685_s28, 3  ;;  %s316_s21 = scalar_lea.vmem (!%p308_p9), [#allocation3], %s958_s27 }
  0x20   : > { %p689_p12 = scmp.ne.s32.totalorder (!%p308_p9), %s845_s20, 0 }
  0x22   : > { %s1025_s17 = smov (!%p368_p10, %s683_s17), 143  ;;  %s1027_s28 = smov (!%p383_p11, %s685_s28), 3 }
  0x23   : > { %s684_s29 = sshll.u32 %s1025_s17, 2  ;;  %s686_s9 = sshll.u32 %s1027_s28, 2 }
  0x24   : > { %s374_s8 = scalar_lea.vmem %s1007_s1, %s684_s29  ;;  %s967_s12 = scalar_lea.vmem %s1010_s4, %s686_s9 }
  0x25   : > { %s972_s14 = scalar_lea.vmem %s1011_s5, %s686_s9  ;;  %403 = sbr.rel (%p689_p12) target bundleno = 45 (0x2d), region = 85 }
  0x2a   : > { %v863_v2 = vmov 0.0  }
  0x2b   : > { %404 = vst [vmem:[#allocation2] sm:$0xff] %v863_v2 }
  0x2c   : > { %405 = vst [vmem:[#allocation2 + $0x8] sm:$0xff] %v863_v2 }
  0x2d PF: > { %v737_v3 = vld [vmem:[%s374_s8 + $0x38] sm:$0xff]  ;;  %v736_v4 = vld [vmem:[%s374_s8 + $0x30] sm:$0xff]  ;;  %v735_v5 = vld [vmem:[%s374_s8 + $0x28] sm:$0xff]  ;;  %p726_p13 = scmp.ne.s32.totalorder %s845_s20, 8 }
  0x2e   : > { %480 = vmatpush.bf16.msra.mxu0 %v737_v3  ;;  %v734_v6 = vld [vmem:[%s374_s8 + $0x20] sm:$0xff]  ;;  %v733_v7 = vld [vmem:[%s374_s8 + $0x18] sm:$0xff]  ;;  %v732_v8 = vld [vmem:[%s374_s8 + $0x10] sm:$0xff] }
  0x2f   : > { %v731_v9 = vld [vmem:[%s374_s8 + $0x8] sm:$0xff]  ;;  %v730_v10 = vld [vmem:[%s374_s8] sm:$0xff]  ;;  %v729_v11 = vld [vmem:[%s316_s21] sm:$0xff] }
  0x32   : > { %481 = vmatpush.bf16.msra.mxu0 %v736_v4  ;;  %v406_v12 = vld [vmem:[#allocation2] sm:$0xff] }
  0x33   : > { %v407_v15 = vld [vmem:[#allocation2 + $0x8] sm:$0xff] }
  0x36   : > { %482 = vmatpush.bf16.msra.mxu0 %v735_v5 }
  0x3a   : > { %483 = vmatpush.bf16.msra.mxu0 %v734_v6 }
  0x3e   : > { %484 = vmatpush.bf16.msra.mxu0 %v733_v7 }
  0x42   : > { %485 = vmatpush.bf16.msra.mxu0 %v732_v8 }
  0x46   : > { %486 = vmatpush.bf16.msra.mxu0 %v731_v9 }
  0x4a   : > { %487 = vmatpush.bf16.msra.mxu0 %v730_v10 }
  0x4d   : > { %488 = vmatmul.bf16.vlgmr.msra.gmra.mxu0 %v729_v11 }
  0xca   : > { %v489_v13 = vpop.f32.mrf.mxu0 }
  0xcb   : > { %v494_v14 = vadd.f32 %v489_v13, %v406_v12 }
  0xcd   : > { %496 = vst [vmem:[#allocation2] sm:$0xff] %v494_v14 }
  0xd1   : > { %501 = sbr.rel (%p726_p13) target bundleno = 232 (0xe8), region = 89 }
  0xd2   : > { %v491_v16 = vpop.f32.mrf.mxu0 }
  0xd3   : > { %v495_v17 = vadd.f32 %v491_v16, %v407_v15 }
  0xd5   : > { %497 = vst [vmem:[#allocation2 + $0x8] sm:$0xff] %v495_v17 }
  0xd6   : > { %v502_v18 = vld [vmem:[#allocation2] sm:$0xff] }
  0xd7   : > { %v805_v20 = vld [vmem:[%s1008_s2] ss:$0 sm:$0xff] }
  0xd8   : > { %v806_v21 = vld [vmem:[%s1009_s3] ss:$0 sm:$0xff]  ;;  %v508_v23 = vmul.f32 %v805_v20, %v502_v18 }
  0xd9   : > { %v739_v22 = vld [vmem:[%s967_s12] sm:$0xff]  }
  0xda   : > { %v740_v25 = vunpack.c.l.bf16 %v739_v22  ;;  %v741_v26 = vunpack.c.h.bf16 %v739_v22  ;;  %v514_v27 = vadd.f32 %v806_v21, %v508_v23 }
  0xdc   : > { %v503_v19 = vld [vmem:[#allocation2 + $0x8] sm:$0xff]  ;;  %v520_v29 = vadd.f32 %v740_v25, %v514_v27 }
  0xdd   : > { %v509_v24 = vmul.f32 %v805_v20, %v503_v19 }
  0xde   : > { %v522_v31 = vmax.f32 %v520_v29, 0.0 }
  0xdf   : > { %v515_v28 = vadd.f32 %v806_v21, %v509_v24 }
  0xe1   : > { %v521_v30 = vadd.f32 %v741_v26, %v515_v28 }
  0xe3   : > { %v523_v32 = vmax.f32 %v521_v30, 0.0 }
  0xe5   : > { %v745_v33 = vpack.c.bf16 %v523_v32, %v522_v31 }
  0xe7   : > { %746 = vst [vmem:[%s972_s14] sm:$0xff] %v745_v33  }
  0xe8 PF: > { %s15_s24 = sadd.s32 1, %s861_s24   ;;  %s1012_s18 = smov %s841_s19 }
  0xe9   : > { %p12_p0 = scmp.ge.s32.totalorder %s15_s24, 20   ;;  %s1013_s19 = smov %s945_s6 }
  0xea   : > { %s1014_s20 = smov %s853_s22  ;;  %s1015_s21 = smov %s857_s23 }
  0xeb   : > { %s1016_s22 = smov %s1019_s25  ;;  %s1017_s23 = smov %s1023_s26 }
  0xec   :  { %14 = sbr.rel (!%p12_p0) target bundleno = 4 (0x4), region = 136 }

// kernel: electronics_classifier_forward.31
= control target key start
LH: loop header
LB: loop body
LE: loop exit
PB: predicated region body
PF: predicated region fallthrough
CT: control target
= control target key end

     0   :  { %s802_s15 = smov 0   ;;  %s804_s16 = smov 0   ;;  %s908_s0 = inlined_call_operand.vmem [shape: bf16[32,1152], index: 0, kind: input, shape index: {}]   ;;  %s909_s1 = inlined_call_operand.vmem [shape: bf16[1152,128], index: 1, kind: input, shape index: {}]   ;;  %s910_s2 = inlined_call_operand.vmem [shape: f32[1,128], index: 2, kind: input, shape index: {}]   ;;  %s911_s3 = inlined_call_operand.vmem [shape: f32[1,128], index: 3, kind: input, shape index: {}]   ;;  %s912_s4 = inlined_call_operand.vmem [shape: bf16[32,128], index: 4, kind: output, shape index: {}]  }
   0x1   :  { %s806_s17 = smov 0   ;;  %s808_s18 = smov 0  }
   0x2   :  { %s810_s19 = smov 0   ;;  %s812_s20 = smov 0  }
   0x3   :  { %s814_s21 = smov 0  }
   0x4 LB: > { %s26_s22 = sadd.s32 1, %s766_s19  ;;  %s33_s23 = sadd.s32 1, %s770_s20  ;;  %s774_s21 = sphi %s814_s21, %s14_s21   ;;  %s770_s20 = sphi %s812_s20, %s918_s20   ;;  %s766_s19 = sphi %s810_s19, %s917_s19   ;;  %s762_s18 = sphi %s808_s18, %s916_s18   ;;  %s758_s17 = sphi %s806_s17, %s915_s17   ;;  %s754_s16 = sphi %s804_s16, %s914_s16   ;;  %s750_s15 = sphi %s802_s15, %s913_s15  }
   0x5   : > { %p27_p0 = scmp.ge.s32.totalorder %s26_s22, 9  ;;  %p49_p1 = scmp.ne.s32.totalorder %s754_s16, %s750_s15 }
   0x6   : > { %p50_p2 = scmp.eq.s32.totalorder %s774_s21, 0  ;;  %s42_s27 = sadd.s32 1, %s754_s16 }
   0x7   : > { %s920_s22 = smov (%p27_p0, %s26_s22), 0  ;;  %s922_s23 = smov (!%p27_p0, %s33_s23), %s770_s20 }
   0x8   : > { %p51_p3 = por %p50_p2, %p49_p1  ;;  %p35_p4 = scmp.ge.s32.totalorder %s922_s23, 2 }
   0x9   : > { %s38_s24 = ssub.s32 %s766_s19, %s920_s22  ;;  %p595_p6 = scmp.ge.s32.totalorder %s774_s21, 18 }
   0xa   : > { %s924_s23 = smov (%p35_p4, %s922_s23), 0 }
   0xb   : > { %s37_s25 = ssub.s32 %s770_s20, %s924_s23  ;;  %195 = sbr.rel (%p595_p6) target bundleno = 25 (0x19), region = 24 }
   0xc   : > { %s39_s26 = sor.u32 %s38_s24, %s37_s25 }
   0xd   : > { %p40_p5 = scmp.eq.s32.totalorder %s39_s26, 0 }
   0xf   : > { %s853_s28 = scalar_select %p40_p5, %s754_s16, %s42_s27  }
  0x10   : > { %198 = sbr.rel (!%p51_p3) target bundleno = 25 (0x19), region = 28  ;;  %s200_s29 = sand.u32 (%p51_p3), 1, %s754_s16  }
  0x11   : > { %s660_s30 = smul.u32 (%p51_p3), 18, %s770_s20  ;;  %s596_s5 = sshll.u32 (%p51_p3), %s200_s29, 3 }
  0x12   : > { %s202_s11 = scalar_lea.vmem (%p51_p3), [#allocation3], %s596_s5 }
  0x13   : > { %s205_s6 = sadd.s32 (%p51_p3), %s766_s19, %s660_s30 }
  0x14   : > { %s599_s7 = sshll.u32 (%p51_p3), %s205_s6, 2 }
  0x15   : > { %s207_s10 = scalar_lea.vmem %s908_s0, %s599_s7 }
  0x16   : > { %v224_v0 = vld [vmem:[%s207_s10] sm:$0xf]  ;;  %v226_v1 = vld [vmem:[%s207_s10 + $0x24] sm:$0xf] }
  0x17   : > { %225 = vst [vmem:[%s202_s11] sm:$0xf] %v224_v0 }
  0x18   : > { %227 = vst [vmem:[%s202_s11 + $0x4] sm:$0xf] %v226_v1 }
  0x19 PF: > { %p600_p7 = scmp.ge.s32.totalorder %s774_s21, 1  ;;  %p266_p8 = scmp.lt.s32.totalorder %s774_s21, 19 }
  0x1b   : > { %p267_p9 = pnand %p600_p7, %p266_p8 }
  0x1c   : > { %s273_s12 = sand.u32 (!%p267_p9), 1, %s750_s15   ;;  %s602_s13 = sshll.u32 (!%p267_p9), %s758_s17, 4 }
  0x1d   : > { %270 = sbr.rel (%p267_p9) target bundleno = 230 (0xe6), region = 73  ;;  %s866_s14 = sshll.u32 (!%p267_p9), %s273_s12, 3 }
  0x1e   : > { %p317_p10 = scmp.lt.s32.totalorder (!%p267_p9), %s602_s13, 143  ;;  %s604_s24 = sshll.u32 (!%p267_p9), %s762_s18, 1 }
  0x1f   : > { %p332_p11 = scmp.lt.s32.totalorder (!%p267_p9), %s604_s24, 3  ;;  %s275_s15 = scalar_lea.vmem (!%p267_p9), [#allocation3], %s866_s14 }
  0x20   : > { %p606_p12 = scmp.ne.s32.totalorder (!%p267_p9), %s758_s17, 0 }
  0x22   : > { %s926_s13 = smov (!%p317_p10, %s602_s13), 143  ;;  %s928_s24 = smov (!%p332_p11, %s604_s24), 3 }
  0x23   : > { %s603_s25 = sshll.u32 %s926_s13, 2  ;;  %s605_s30 = sshll.u32 %s928_s24, 2 }
  0x24   : > { %s323_s29 = scalar_lea.vmem %s909_s1, %s603_s25  ;;  %s875_s7 = scalar_lea.vmem %s912_s4, %s605_s30 }
  0x25   : > { %343 = sbr.rel (%p606_p12) target bundleno = 45 (0x2d), region = 81 }
  0x2a   : > { %v776_v2 = vmov 0.0  }
  0x2b   : > { %344 = vst [vmem:[#allocation2] sm:$0xff] %v776_v2 }
  0x2c   : > { %345 = vst [vmem:[#allocation2 + $0x8] sm:$0xff] %v776_v2 }
  0x2d PF: > { %v654_v3 = vld [vmem:[%s323_s29 + $0x38] sm:$0xff]  ;;  %v653_v4 = vld [vmem:[%s323_s29 + $0x30] sm:$0xff]  ;;  %v652_v5 = vld [vmem:[%s323_s29 + $0x28] sm:$0xff]  ;;  %p643_p13 = scmp.ne.s32.totalorder %s758_s17, 8 }
  0x2e   : > { %420 = vmatpush.bf16.msra.mxu0 %v654_v3  ;;  %v651_v6 = vld [vmem:[%s323_s29 + $0x20] sm:$0xff]  ;;  %v650_v7 = vld [vmem:[%s323_s29 + $0x18] sm:$0xff]  ;;  %v649_v8 = vld [vmem:[%s323_s29 + $0x10] sm:$0xff] }
  0x2f   : > { %v648_v9 = vld [vmem:[%s323_s29 + $0x8] sm:$0xff]  ;;  %v647_v10 = vld [vmem:[%s323_s29] sm:$0xff]  ;;  %v646_v11 = vld [vmem:[%s275_s15] sm:$0xff] }
  0x32   : > { %421 = vmatpush.bf16.msra.mxu0 %v653_v4  ;;  %v346_v12 = vld [vmem:[#allocation2] sm:$0xff] }
  0x33   : > { %v347_v15 = vld [vmem:[#allocation2 + $0x8] sm:$0xff] }
  0x36   : > { %422 = vmatpush.bf16.msra.mxu0 %v652_v5 }
  0x3a   : > { %423 = vmatpush.bf16.msra.mxu0 %v651_v6 }
  0x3e   : > { %424 = vmatpush.bf16.msra.mxu0 %v650_v7 }
  0x42   : > { %425 = vmatpush.bf16.msra.mxu0 %v649_v8 }
  0x46   : > { %426 = vmatpush.bf16.msra.mxu0 %v648_v9 }
  0x4a   : > { %427 = vmatpush.bf16.msra.mxu0 %v647_v10 }
  0x4d   : > { %428 = vmatmul.bf16.vlgmr.msra.gmra.mxu0 %v646_v11 }
  0xca   : > { %v429_v13 = vpop.f32.mrf.mxu0 }
  0xcb   : > { %v434_v14 = vadd.f32 %v429_v13, %v346_v12 }
  0xcd   : > { %436 = vst [vmem:[#allocation2] sm:$0xff] %v434_v14 }
  0xd1   : > { %441 = sbr.rel (%p643_p13) target bundleno = 230 (0xe6), region = 85 }
  0xd2   : > { %v431_v16 = vpop.f32.mrf.mxu0 }
  0xd3   : > { %v435_v17 = vadd.f32 %v431_v16, %v347_v15 }
  0xd5   : > { %437 = vst [vmem:[#allocation2 + $0x8] sm:$0xff] %v435_v17 }
  0xd6   : > { %v442_v18 = vld [vmem:[#allocation2] sm:$0xff] }
  0xd7   : > { %v718_v20 = vld [vmem:[%s910_s2] ss:$0 sm:$0xff] }
  0xd8   : > { %v719_v21 = vld [vmem:[%s911_s3] ss:$0 sm:$0xff]  ;;  %v448_v22 = vmul.f32 %v718_v20, %v442_v18 }
  0xda   : > { %v454_v24 = vadd.f32 %v719_v21, %v448_v22 }
  0xdc   : > { %v443_v19 = vld [vmem:[#allocation2 + $0x8] sm:$0xff]  ;;  %v456_v26 = vmax.f32 %v454_v24, 0.0 }
  0xdd   : > { %v449_v23 = vmul.f32 %v718_v20, %v443_v19 }
  0xdf   : > { %v455_v25 = vadd.f32 %v719_v21, %v449_v23 }
  0xe1   : > { %v457_v27 = vmax.f32 %v455_v25, 0.0 }
  0xe3   : > { %v658_v28 = vpack.c.bf16 %v457_v27, %v456_v26 }
  0xe5   : > { %659 = vst [vmem:[%s875_s7] sm:$0xff] %v658_v28  }
  0xe6 PF: > { %s14_s21 = sadd.s32 1, %s774_s21   ;;  %s913_s15 = smov %s754_s16 }
  0xe7   : > { %p11_p0 = scmp.ge.s32.totalorder %s14_s21, 20   ;;  %s914_s16 = smov %s853_s28 }
  0xe8   : > { %s915_s17 = smov %s766_s19  ;;  %s916_s18 = smov %s770_s20 }
  0xe9   : > { %s917_s19 = smov %s920_s22  ;;  %s918_s20 = smov %s924_s23 }
  0xea   :  { %13 = sbr.rel (!%p11_p0) target bundleno = 4 (0x4), region = 129 }

// kernel: electronics_classifier_forward.34
= control target key start
LH: loop header
LB: loop body
LE: loop exit
PB: predicated region body
PF: predicated region fallthrough
CT: control target
= control target key end

     0   :  { %s992_s15 = smov 0   ;;  %s994_s16 = smov 0   ;;  %s1200_s0 = inlined_call_operand.vmem [shape: bf16[16,1152], index: 0, kind: input, shape index: {}]   ;;  %s1201_s1 = inlined_call_operand.vmem [shape: bf16[1152,256], index: 1, kind: input, shape index: {}]   ;;  %s1202_s2 = inlined_call_operand.vmem [shape: f32[1,256], index: 2, kind: input, shape index: {}]   ;;  %s1203_s3 = inlined_call_operand.vmem [shape: f32[1,256], index: 3, kind: input, shape index: {}]   ;;  %s1204_s4 = inlined_call_operand.vmem [shape: bf16[16,256], index: 4, kind: output, shape index: {}]  }
   0x1   :  { %s996_s17 = smov 0   ;;  %s998_s18 = smov 0  }
   0x2   :  { %s1000_s19 = smov 0   ;;  %s1002_s20 = smov 0  }
   0x3   :  { %s1004_s21 = smov 0   ;;  %s1006_s22 = smov 0  }
   0x4   :  { %s1008_s23 = smov 0   ;;  %s1010_s24 = smov 0  }
   0x5   :  { %s1012_s25 = smov 0  }
   0x6 LB: > { %1208 = sst [smem:[#allocation6_spill]] %s944_s20  ;;  %s716_s26 = sadd.s32 4294967295, %s964_s25   ;;  %s964_s25 = sphi %s1012_s25, %s14_s25   ;;  %s960_s24 = sphi %s1010_s24, %s1226_s24   ;;  %s956_s23 = sphi %s1008_s23, %s1225_s23   ;;  %s952_s22 = sphi %s1006_s22, %s1224_s22   ;;  %s948_s21 = sphi %s1004_s21, %s1223_s21   ;;  %s944_s20 = sphi %s1002_s20, %s1216_s20   ;;  %s940_s19 = sphi %s1000_s19, %s1215_s19   ;;  %s936_s18 = sphi %s998_s18, %s1222_s18   ;;  %s932_s17 = sphi %s996_s17, %s1221_s17   ;;  %s928_s16 = sphi %s994_s16, %s1220_s16   ;;  %s924_s15 = sphi %s992_s15, %s1219_s15  }
   0x7   : > { %s26_s27 = sadd.s32 1, %s956_s23  ;;  %s29_s28 = sadd.s32 1, %s960_s24 }
   0x8   : > { %p27_p0 = scmp.ge.s32.totalorder %s26_s27, 9  ;;  %s42_s29 = sadd.s32 1, %s944_s20 }
   0x9   : > { %p49_p1 = scmp.ne.s32.totalorder %s944_s20, %s940_s19  ;;  %p50_p2 = scmp.eq.s32.totalorder %s964_s25, 0 }
   0xa   : > { %s1228_s27 = smov (%p27_p0, %s26_s27), 0  ;;  %s1230_s28 = smov (!%p27_p0, %s29_s28), %s960_s24 }
   0xb   : > { %1209 = sst [smem:[#allocation7_spill]] %s1228_s27  ;;  %s38_s30 = ssub.s32 %s956_s23, %s1228_s27 }
   0xc   : > { %p31_p3 = scmp.ge.s32.totalorder %s1230_s28, 2  ;;  %p40_p4 = scmp.eq.s32.totalorder %s38_s30, 0 }
   0xd   : > { %p1059_p5 = por %p50_p2, %p49_p1  ;;  %s70_s6 = sadd.s32 1, %s936_s18 }
   0xe   : > { %s1232_s28 = smov (%p31_p3, %s1230_s28), 0  ;;  %p77_p6 = scmp.ne.s32.totalorder %s936_s18, %s932_s17 }
   0xf   : > { %1211 = sst [smem:[#allocation8_spill]] %s1232_s28  ;;  %s66_s8 = ssub.s32 %s960_s24, %s1232_s28 }
  0x10   : > { %s1067_s7 = scalar_select %p40_p4, %s944_s20, %s42_s29  }
  0x11   : > { %s67_s9 = sor.u32 %s66_s8, %s38_s30  ;;  %p148_p7 = scmp.eq.s32.totalorder %s66_s8, 0 }
  0x12   : > { %1212 = sst [smem:[#allocation9_spill]] %s1067_s7  ;;  %p68_p8 = scmp.eq.s32.totalorder %s67_s9, 0 }
  0x13   : > { %p1073_p9 = por %p77_p6, %p50_p2  ;;  %s150_s11 = sadd.s32 1, %s928_s16 }
  0x14   : > { %p160_p10 = scmp.ne.s32.totalorder %s928_s16, %s924_s15  ;;  %p161_p11 = scmp.eq.s32.totalorder %s716_s26, 17 }
  0x15   : > { %s1081_s12 = scalar_select %p68_p8, %s936_s18, %s70_s6  }
  0x16   : > { %s1084_s13 = scalar_select %p148_p7, %s928_s16, %s150_s11  }
  0x17   : > { %p1086_p12 = por %p161_p11, %p160_p10  ;;  %p719_p13 = scmp.ge.s32.totalorder %s964_s25, 18 }
  0x19   : > { %183 = sbr.rel (%p719_p13) target bundleno = 58 (0x3a), region = 16 }
  0x1e   : > { %186 = sbr.rel (!%p1059_p5) target bundleno = 36 (0x24), region = 20  ;;  %s188_s29 = sand.u32 (%p1059_p5), 1, %s944_s20  }
  0x1f   : > { %s721_s30 = sshll.u32 (%p1059_p5), %s956_s23, 2  ;;  %s720_s8 = sshll.u32 (%p1059_p5), %s188_s29, 3 }
  0x20   : > { %s195_s11 = scalar_lea.vmem (%p1059_p5), %s1200_s0, %s721_s30  ;;  %s190_s26 = scalar_lea.vmem (%p1059_p5), [#allocation3], %s720_s8 }
  0x21   : > { %v212_v0 = vld [vmem:[%s195_s11] sm:$0xf] (%p1059_p5)  ;;  %v214_v1 = vld [vmem:[%s195_s11 + $0x24] sm:$0xf] (%p1059_p5) }
  0x22   : > { %213 = vst [vmem:[%s190_s26] sm:$0xf] (%p1059_p5), %v212_v0 }
  0x23   : > { %215 = vst [vmem:[%s190_s26 + $0x4] sm:$0xf] %v214_v1 }
  0x24 PF: > { %243 = sbr.rel (!%p1073_p9) target bundleno = 58 (0x3a), region = 61  ;;  %s245_s5 = sand.u32 (%p1073_p9), 1, %s936_s18  }
  0x25   : > { %s772_s28 = sshll.u32 (%p1073_p9), %s956_s23, 5  ;;  %s722_s27 = sshll.u32 (%p1073_p9), %s245_s5, 6 }
  0x26   : > { %s250_s29 = sadd.s32 (%p1073_p9), %s960_s24, %s772_s28  ;;  %s247_s28 = scalar_lea.vmem (%p1073_p9), [#allocation4], %s722_s27 }
  0x27   : > { %s725_s7 = sshll.u32 (%p1073_p9), %s250_s29, 2 }
  0x28   : > { %s1106_s30 = scalar_lea.vmem (%p1073_p9), %s1201_s1, %s725_s7 }
  0x29   : > { %v269_v2 = vld [vmem:[%s1106_s30] sm:$0xf]  ;;  %v271_v3 = vld [vmem:[%s1106_s30 + $0x8] sm:$0xf]  ;;  %v273_v4 = vld [vmem:[%s1106_s30 + $0x10] sm:$0xf] }
  0x2a   : > { %270 = vst [vmem:[%s247_s28] sm:$0xf] %v269_v2  ;;  %v275_v5 = vld [vmem:[%s1106_s30 + $0x18] sm:$0xf]  ;;  %v277_v6 = vld [vmem:[%s1106_s30 + $0x20] sm:$0xf] }
  0x2b   : > { %272 = vst [vmem:[%s247_s28 + $0x4] sm:$0xf] %v271_v3  ;;  %v279_v7 = vld [vmem:[%s1106_s30 + $0x28] sm:$0xf]  ;;  %v281_v8 = vld [vmem:[%s1106_s30 + $0x30] sm:$0xf] }
  0x2c   : > { %274 = vst [vmem:[%s247_s28 + $0x8] sm:$0xf] %v273_v4  ;;  %v283_v9 = vld [vmem:[%s1106_s30 + $0x38] sm:$0xf]  ;;  %v285_v10 = vld [vmem:[%s1106_s30 + $0x40] sm:$0xf] }
  0x2d   : > { %276 = vst [vmem:[%s247_s28 + $0xc] sm:$0xf] %v275_v5  ;;  %v287_v11 = vld [vmem:[%s1106_s30 + $0x48] sm:$0xf]  ;;  %v289_v12 = vld [vmem:[%s1106_s30 + $0x50] sm:$0xf] }
  0x2e   : > { %278 = vst [vmem:[%s247_s28 + $0x10] sm:$0xf] %v277_v6  ;;  %v291_v13 = vld [vmem:[%s1106_s30 + $0x58] sm:$0xf]  ;;  %v293_v14 = vld [vmem:[%s1106_s30 + $0x60] sm:$0xf] }
  0x2f   : > { %280 = vst [vmem:[%s247_s28 + $0x14] sm:$0xf] %v279_v7  ;;  %v295_v15 = vld [vmem:[%s1106_s30 + $0x68] sm:$0xf]  ;;  %v297_v16 = vld [vmem:[%s1106_s30 + $0x70] sm:$0xf] }
  0x30   : > { %282 = vst [vmem:[%s247_s28 + $0x18] sm:$0xf] %v281_v8  ;;  %v299_v17 = vld [vmem:[%s1106_s30 + $0x78] sm:$0xf] }
  0x31   : > { %284 = vst [vmem:[%s247_s28 + $0x1c] sm:$0xf] %v283_v9 }
  0x32   : > { %286 = vst [vmem:[%s247_s28 + $0x20] sm:$0xf] %v285_v10 }
  0x33   : > { %288 = vst [vmem:[%s247_s28 + $0x24] sm:$0xf] %v287_v11 }
  0x34   : > { %290 = vst [vmem:[%s247_s28 + $0x28] sm:$0xf] %v289_v12 }
  0x35   : > { %292 = vst [vmem:[%s247_s28 + $0x2c] sm:$0xf] %v291_v13 }
  0x36   : > { %294 = vst [vmem:[%s247_s28 + $0x30] sm:$0xf] %v293_v14 }
  0x37   : > { %296 = vst [vmem:[%s247_s28 + $0x34] sm:$0xf] %v295_v15 }
  0x38   : > { %298 = vst [vmem:[%s247_s28 + $0x38] sm:$0xf] %v297_v16 }
  0x39   : > { %300 = vst [vmem:[%s247_s28 + $0x3c] sm:$0xf] %v299_v17 }
  0x3a PF: > { %p726_p0 = scmp.ge.s32.totalorder %s964_s25, 1  ;;  %p367_p1 = scmp.lt.s32.totalorder %s964_s25, 19 }
  0x3c   : > { %p368_p2 = pnand %p726_p0, %p367_p1 }
  0x3d   : > { %s374_s20 = sand.u32 (!%p368_p2), 1, %s940_s19   ;;  %s381_s27 = sand.u32 (!%p368_p2), 1, %s932_s17  }
  0x3e   : > { %371 = sbr.rel (%p368_p2) target bundleno = 270 (0x10e), region = 110  ;;  %s1128_s7 = sshll.u32 (!%p368_p2), %s374_s20, 3 }
  0x3f   : > { %s728_s10 = sshll.u32 (!%p368_p2), %s381_s27, 6  ;;  %s412_s8 = sand.u32 (!%p368_p2), 1, %s924_s15  }
  0x40   : > { %p417_p3 = scmp.lt.s32.totalorder (!%p368_p2), %s952_s22, 1  ;;  %s729_s9 = sshll.u32 (!%p368_p2), %s412_s8, 3 }
  0x41   : > { %s376_s17 = scalar_lea.vmem (!%p368_p2), [#allocation3], %s1128_s7  ;;  %s383_s28 = scalar_lea.vmem (!%p368_p2), [#allocation4], %s728_s10 }
  0x42   : > { %s1144_s20 = scalar_lea.vmem (!%p368_p2), [#allocation5], %s729_s9  ;;  %p730_p4 = scmp.ne.s32.totalorder (!%p368_p2), %s948_s21, 0 }
  0x43   : > { %s1133_s11 = scalar_select %p417_p3, %s952_s22, 1 }
  0x44   : > { %427 = sbr.rel (%p730_p4) target bundleno = 76 (0x4c), region = 122 }
  0x45   : > { %s419_s29 = scalar_lea.vmem %s1202_s2, %s1133_s11  ;;  %s422_s19 = scalar_lea.vmem %s1203_s3, %s1133_s11 }
  0x49   : > { %v966_v18 = vmov 0.0  }
  0x4a   : > { %428 = vst [vmem:[#allocation2] sm:$0xff] %v966_v18 }
  0x4b   : > { %429 = vst [vmem:[#allocation2 + $0x8] sm:$0xff] %v966_v18 }
  0x4c PF: > { %v781_v19 = vld [vmem:[%s383_s28 + $0x38] sm:$0xff]  ;;  %v780_v20 = vld [vmem:[%s383_s28 + $0x30] sm:$0xff]  ;;  %v779_v21 = vld [vmem:[%s383_s28 + $0x28] sm:$0xff]  ;;  %p767_p5 = scmp.ne.s32.totalorder %s948_s21, 8 }
  0x4d   : > { %504 = vmatpush.bf16.msra.mxu0 %v781_v19  ;;  %v778_v22 = vld [vmem:[%s383_s28 + $0x20] sm:$0xff]  ;;  %v777_v23 = vld [vmem:[%s383_s28 + $0x18] sm:$0xff]  ;;  %v776_v24 = vld [vmem:[%s383_s28 + $0x10] sm:$0xff] }
  0x4e   : > { %v775_v25 = vld [vmem:[%s383_s28 + $0x8] sm:$0xff]  ;;  %v774_v26 = vld [vmem:[%s383_s28] sm:$0xff]  ;;  %v773_v27 = vld [vmem:[%s376_s17] sm:$0xff] }
  0x51   : > { %505 = vmatpush.bf16.msra.mxu0 %v780_v20  ;;  %v430_v28 = vld [vmem:[#allocation2] sm:$0xff] }
  0x52   : > { %v431_v31 = vld [vmem:[#allocation2 + $0x8] sm:$0xff] }
  0x55   : > { %506 = vmatpush.bf16.msra.mxu0 %v779_v21 }
  0x59   : > { %507 = vmatpush.bf16.msra.mxu0 %v778_v22 }
  0x5d   : > { %508 = vmatpush.bf16.msra.mxu0 %v777_v23 }
  0x61   : > { %509 = vmatpush.bf16.msra.mxu0 %v776_v24 }
  0x65   : > { %510 = vmatpush.bf16.msra.mxu0 %v775_v25 }
  0x69   : > { %511 = vmatpush.bf16.msra.mxu0 %v774_v26 }
  0x6c   : > { %512 = vmatmul.bf16.vlgmr.msra.gmra.mxu0 %v773_v27 }
  0xe9   : > { %v513_v29 = vpop.f32.mrf.mxu0 }
  0xea   : > { %v518_v30 = vadd.f32 %v513_v29, %v430_v28 }
  0xec   : > { %520 = vst [vmem:[#allocation2] sm:$0xff] %v518_v30 }
  0xf0   : > { %525 = sbr.rel (%p767_p5) target bundleno = 261 (0x105), region = 126 }
  0xf1   : > { %v515_v32 = vpop.f32.mrf.mxu0 }
  0xf2   : > { %v519_v33 = vadd.f32 %v515_v32, %v431_v31 }
  0xf4   : > { %521 = vst [vmem:[#allocation2 + $0x8] sm:$0xff] %v519_v33 }
  0xf5   : > { %v526_v34 = vld [vmem:[#allocation2] sm:$0xff] }
  0xf6   : > { %v876_v36 = vld [vmem:[%s419_s29] ss:$0 sm:$0xff] }
  0xf7   : > { %v877_v37 = vld [vmem:[%s422_s19] ss:$0 sm:$0xff]  ;;  %v532_v38 = vmul.f32 %v876_v36, %v526_v34 }
  0xf9   : > { %v538_v40 = vadd.f32 %v877_v37, %v532_v38 }
  0xfb   : > { %v527_v35 = vld [vmem:[#allocation2 + $0x8] sm:$0xff]  ;;  %v540_v42 = vmax.f32 %v538_v40, 0.0 }
  0xfc   : > { %v533_v39 = vmul.f32 %v876_v36, %v527_v35 }
  0xfe   : > { %v539_v41 = vadd.f32 %v877_v37, %v533_v39 }
 0x100   : > { %v541_v43 = vmax.f32 %v539_v41, 0.0 }
 0x102   : > { %v785_v44 = vpack.c.bf16 %v541_v43, %v540_v42 }
 0x104   : > { %786 = vst [vmem:[%s1144_s20] sm:$0xff] %v785_v44  }
 0x105 PF: > { %552 = sbr.rel (!%p1086_p12) target bundleno = 270 (0x10e), region = 130  ;;  %s769_s21 = sshll.u32 (%p1086_p12), %s952_s22, 2 }
 0x106   : > { %s557_s11 = scalar_lea.vmem (%p1086_p12), %s1204_s4, %s769_s21 }
 0x10b   : > { %v574_v45 = vld [vmem:[%s1144_s20] sm:$0xf]  ;;  %v576_v46 = vld [vmem:[%s1144_s20 + $0x4] sm:$0xf] }
 0x10c   : > { %575 = vst [vmem:[%s557_s11] sm:$0xf] %v574_v45 }
 0x10d   : > { %577 = vst [vmem:[%s557_s11 + $0x8] sm:$0xf] %v576_v46 }
 0x10e PF: > { %s14_s25 = sadd.s32 1, %s964_s25   ;;  %s1215_s19 = sld [smem:[#allocation6_spill]] }
 0x10f   : > { %p11_p6 = scmp.ge.s32.totalorder %s14_s25, 20   ;;  %s1216_s20 = sld [smem:[#allocation9_spill]] }
 0x110   : > { %s1217_s14 = sld [smem:[#allocation7_spill]]  ;;  %s1219_s15 = smov %s928_s16 }
 0x111   : > { %s1218_s26 = sld [smem:[#allocation8_spill]]  ;;  %s1220_s16 = smov %s1084_s13 }
 0x112   : > { %s1221_s17 = smov %s936_s18  ;;  %s1222_s18 = smov %s1081_s12 }
 0x113   : > { %s1223_s21 = smov %s956_s23  ;;  %s1224_s22 = smov %s960_s24 }
 0x114   :  { %13 = sbr.rel (!%p11_p6) target bundleno = 6 (0x6), region = 216 }
 0x116   : > { %s1225_s23 = smov %s1217_s14 }
 0x117   : > { %s1226_s24 = smov %s1218_s26 }

// kernel: electronics_classifier_forward.33
= control target key start
LH: loop header
LB: loop body
LE: loop exit
PB: predicated region body
PF: predicated region fallthrough
CT: control target
= control target key end

     0   :  { %s839_s15 = smov 0   ;;  %s841_s16 = smov 0   ;;  %s940_s0 = inlined_call_operand.vmem [shape: bf16[16,128], index: 0, kind: input, shape index: {}]   ;;  %s941_s1 = inlined_call_operand.vmem [shape: bf16[128,256], index: 1, kind: input, shape index: {}]   ;;  %s942_s2 = inlined_call_operand.vmem [shape: f32[1,256], index: 2, kind: input, shape index: {}]   ;;  %s943_s3 = inlined_call_operand.vmem [shape: f32[1,256], index: 3, kind: input, shape index: {}]   ;;  %s944_s4 = inlined_call_operand.vmem [shape: bf16[16,256], index: 4, kind: output, shape index: {}]  }
   0x1   :  { %s843_s17 = smov 0   ;;  %s845_s18 = smov 0  }
   0x2   :  { %s847_s19 = smov 0  }
   0x3 LB: > { %s29_s20 = sadd.s32 1, %s808_s18  ;;  %s668_s21 = sadd.s32 4294967295, %s812_s19   ;;  %s812_s19 = sphi %s847_s19, %s14_s19   ;;  %s808_s18 = sphi %s845_s18, %s949_s18   ;;  %s804_s17 = sphi %s843_s17, %s948_s17   ;;  %s800_s16 = sphi %s841_s16, %s947_s16   ;;  %s796_s15 = sphi %s839_s15, %s946_s15  }
   0x4   : > { %p31_p0 = scmp.ge.s32.totalorder %s29_s20, 2  ;;  %p77_p1 = scmp.ne.s32.totalorder %s800_s16, %s796_s15 }
   0x5   : > { %p78_p2 = scmp.eq.s32.totalorder %s812_s19, 0  ;;  %p161_p4 = scmp.eq.s32.totalorder %s668_s21, 1 }
   0x6   : > { %s951_s20 = smov (%p31_p0, %s29_s20), 0  ;;  %s70_s23 = sadd.s32 1, %s800_s16 }
   0x7   : > { %p79_p3 = por %p78_p2, %p77_p1  ;;  %s66_s22 = ssub.s32 %s808_s18, %s951_s20 }
   0x8   : > { %p68_p5 = scmp.eq.s32.totalorder %s66_s22, 0  ;;  %p874_p6 = por %p161_p4, %p77_p1 }
   0x9   : > { %p672_p7 = scmp.ge.s32.totalorder %s812_s19, 2 }
   0xa   : > { %s879_s25 = scalar_select %p68_p5, %s800_s16, %s70_s23  }
   0xb   : > { %195 = sbr.rel (%p672_p7) target bundleno = 36 (0x24), region = 20 }
  0x10   : > { %198 = sbr.rel (!%p79_p3) target bundleno = 36 (0x24), region = 24  ;;  %s200_s26 = sand.u32 (%p79_p3), 1, %s800_s16  }
  0x11   : > { %s674_s27 = sshll.u32 (%p79_p3), %s808_s18, 2  ;;  %s673_s28 = sshll.u32 (%p79_p3), %s200_s26, 6 }
  0x12   : > { %s887_s5 = scalar_lea.vmem (%p79_p3), %s941_s1, %s674_s27  ;;  %s202_s6 = scalar_lea.vmem (%p79_p3), [#allocation3], %s673_s28 }
  0x13   : > { %v224_v0 = vld [vmem:[%s887_s5] sm:$0xf] (%p79_p3)  ;;  %v226_v1 = vld [vmem:[%s887_s5 + $0x8] sm:$0xf] (%p79_p3)  ;;  %v228_v2 = vld [vmem:[%s887_s5 + $0x10] sm:$0xf] (%p79_p3) }
  0x14   : > { %225 = vst [vmem:[%s202_s6] sm:$0xf] (%p79_p3), %v224_v0  ;;  %v230_v3 = vld [vmem:[%s887_s5 + $0x18] sm:$0xf] (%p79_p3)  ;;  %v232_v4 = vld [vmem:[%s887_s5 + $0x20] sm:$0xf] (%p79_p3) }
  0x15   : > { %227 = vst [vmem:[%s202_s6 + $0x4] sm:$0xf] %v226_v1  ;;  %v234_v5 = vld [vmem:[%s887_s5 + $0x28] sm:$0xf]  ;;  %v236_v6 = vld [vmem:[%s887_s5 + $0x30] sm:$0xf] }
  0x16   : > { %229 = vst [vmem:[%s202_s6 + $0x8] sm:$0xf] %v228_v2  ;;  %v238_v7 = vld [vmem:[%s887_s5 + $0x38] sm:$0xf]  ;;  %v240_v8 = vld [vmem:[%s887_s5 + $0x40] sm:$0xf] }
  0x17   : > { %231 = vst [vmem:[%s202_s6 + $0xc] sm:$0xf] %v230_v3  ;;  %v242_v9 = vld [vmem:[%s887_s5 + $0x48] sm:$0xf]  ;;  %v244_v10 = vld [vmem:[%s887_s5 + $0x50] sm:$0xf] }
  0x18   : > { %233 = vst [vmem:[%s202_s6 + $0x10] sm:$0xf] %v232_v4  ;;  %v246_v11 = vld [vmem:[%s887_s5 + $0x58] sm:$0xf]  ;;  %v248_v12 = vld [vmem:[%s887_s5 + $0x60] sm:$0xf] }
  0x19   : > { %235 = vst [vmem:[%s202_s6 + $0x14] sm:$0xf] %v234_v5  ;;  %v250_v13 = vld [vmem:[%s887_s5 + $0x68] sm:$0xf]  ;;  %v252_v14 = vld [vmem:[%s887_s5 + $0x70] sm:$0xf] }
  0x1a   : > { %237 = vst [vmem:[%s202_s6 + $0x18] sm:$0xf] %v236_v6  ;;  %v254_v15 = vld [vmem:[%s887_s5 + $0x78] sm:$0xf] }
  0x1b   : > { %239 = vst [vmem:[%s202_s6 + $0x1c] sm:$0xf] %v238_v7 }
  0x1c   : > { %241 = vst [vmem:[%s202_s6 + $0x20] sm:$0xf] %v240_v8 }
  0x1d   : > { %243 = vst [vmem:[%s202_s6 + $0x24] sm:$0xf] %v242_v9 }
  0x1e   : > { %245 = vst [vmem:[%s202_s6 + $0x28] sm:$0xf] %v244_v10 }
  0x1f   : > { %247 = vst [vmem:[%s202_s6 + $0x2c] sm:$0xf] %v246_v11 }
  0x20   : > { %249 = vst [vmem:[%s202_s6 + $0x30] sm:$0xf] %v248_v12 }
  0x21   : > { %251 = vst [vmem:[%s202_s6 + $0x34] sm:$0xf] %v250_v13 }
  0x22   : > { %253 = vst [vmem:[%s202_s6 + $0x38] sm:$0xf] %v252_v14 }
  0x23   : > { %255 = vst [vmem:[%s202_s6 + $0x3c] sm:$0xf] %v254_v15 }
  0x24 PF: > { %p675_p8 = scmp.ge.s32.totalorder %s812_s19, 1  ;;  %p322_p9 = scmp.lt.s32.totalorder %s812_s19, 3 }
  0x26   : > { %p323_p10 = pnand %p675_p8, %p322_p9 }
  0x27   : > { %s329_s7 = sand.u32 (!%p323_p10), 1, %s796_s15   ;;  %p377_p11 = scmp.lt.s32.totalorder (!%p323_p10), %s804_s17, 1 }
  0x28   : > { %326 = sbr.rel (%p323_p10) target bundleno = 227 (0xe3), region = 73  ;;  %s676_s8 = sshll.u32 (!%p323_p10), %s329_s7, 6 }
  0x29   : > { %s331_s9 = scalar_lea.vmem (!%p323_p10), [#allocation3], %s676_s8  ;;  %s677_s26 = sshll.u32 (!%p323_p10), %s329_s7, 3 }
  0x2a   : > { %s366_s27 = scalar_lea.vmem (!%p323_p10), [#allocation4], %s677_s26 }
  0x2d   : > { %v726_v16 = vld [vmem:[%s331_s9 + $0x38] sm:$0xff]  ;;  %s378_s10 = scalar_select %p377_p11, %s804_s17, 1  ;;  %v725_v17 = vld [vmem:[%s331_s9 + $0x30] sm:$0xff]  ;;  %v724_v18 = vld [vmem:[%s331_s9 + $0x28] sm:$0xff] }
  0x2e   : > { %464 = vmatpush.bf16.msra.mxu0 %v726_v16  ;;  %v723_v19 = vld [vmem:[%s331_s9 + $0x20] sm:$0xff]  ;;  %v722_v20 = vld [vmem:[%s331_s9 + $0x18] sm:$0xff]  ;;  %v721_v21 = vld [vmem:[%s331_s9 + $0x10] sm:$0xff]  ;;  %s715_s28 = sshll.u32 (%p874_p6), %s804_s17, 2 }
  0x2f   : > { %s379_s13 = scalar_lea.vmem %s942_s2, %s378_s10  ;;  %s382_s22 = scalar_lea.vmem %s943_s3, %s378_s10  ;;  %v720_v22 = vld [vmem:[%s331_s9 + $0x8] sm:$0xff]  ;;  %v719_v23 = vld [vmem:[%s331_s9] sm:$0xff] }
  0x30   : > { %v718_v24 = vld [vmem:[%s940_s0] sm:$0xff]  ;;  %s514_s5 = scalar_lea.vmem (%p874_p6), %s944_s4, %s715_s28 }
  0x31   : > { %v772_v26 = vld [vmem:[%s379_s13] ss:$0 sm:$0xff] }
  0x32   : > { %465 = vmatpush.bf16.msra.mxu0 %v725_v17  ;;  %v773_v28 = vld [vmem:[%s382_s22] ss:$0 sm:$0xff] }
  0x36   : > { %466 = vmatpush.bf16.msra.mxu0 %v724_v18 }
  0x3a   : > { %467 = vmatpush.bf16.msra.mxu0 %v723_v19 }
  0x3e   : > { %468 = vmatpush.bf16.msra.mxu0 %v722_v20 }
  0x42   : > { %469 = vmatpush.bf16.msra.mxu0 %v721_v21 }
  0x46   : > { %470 = vmatpush.bf16.msra.mxu0 %v720_v22 }
  0x4a   : > { %471 = vmatpush.bf16.msra.mxu0 %v719_v23 }
  0x4d   : > { %472 = vmatmul.bf16.vlgmr.msra.gmra.mxu0 %v718_v24 }
  0xca   : > { %v473_v25 = vpop.f32.mrf.mxu0 }
  0xcb   : > { %v491_v27 = vmul.f32 %v772_v26, %v473_v25 }
  0xcd   : > { %v497_v31 = vadd.f32 %v773_v28, %v491_v27 }
  0xd2   : > { %v475_v29 = vpop.f32.mrf.mxu0 }
  0xd3   : > { %v492_v30 = vmul.f32 %v772_v26, %v475_v29 }
  0xd5   : > { %v498_v32 = vadd.f32 %v773_v28, %v492_v30  ;;  %509 = sbr.rel (!%p874_p6) target bundleno = 227 (0xe3), region = 89 }
  0xd7   : > { %v730_v33 = vpack.c.bf16 %v498_v32, %v497_v31 }
  0xd9   : > { %731 = vst [vmem:[%s366_s27] sm:$0xff] %v730_v33  }
  0xe0   : > { %v531_v34 = vld [vmem:[%s366_s27] sm:$0xf]  ;;  %v533_v35 = vld [vmem:[%s366_s27 + $0x4] sm:$0xf] }
  0xe1   : > { %532 = vst [vmem:[%s514_s5] sm:$0xf] %v531_v34 }
  0xe2   : > { %534 = vst [vmem:[%s514_s5 + $0x8] sm:$0xf] %v533_v35 }
  0xe3 PF: > { %s14_s19 = sadd.s32 1, %s812_s19   ;;  %s946_s15 = smov %s800_s16 }
  0xe4   : > { %p11_p12 = scmp.ge.s32.totalorder %s14_s19, 4   ;;  %s947_s16 = smov %s879_s25 }
  0xe5   : > { %s948_s17 = smov %s808_s18  ;;  %s949_s18 = smov %s951_s20 }
  0xe6   :  { %13 = sbr.rel (!%p11_p12) target bundleno = 3 (0x3), region = 170 }

// kernel: electronics_classifier_forward.35
= control target key start
LH: loop header
LB: loop body
LE: loop exit
PB: predicated region body
PF: predicated region fallthrough
CT: control target
= control target key end

     0   :  { %s1318_s18 = smov 0   ;;  %s1320_s19 = smov 0   ;;  %s1620_s0 = inlined_call_operand.vmem [shape: bf16[16,2304], index: 0, kind: input, shape index: {}]   ;;  %s1621_s1 = inlined_call_operand.vmem [shape: bf16[2304,256], index: 1, kind: input, shape index: {}]   ;;  %s1622_s2 = inlined_call_operand.vmem [shape: f32[1,256], index: 2, kind: input, shape index: {}]   ;;  %s1623_s3 = inlined_call_operand.vmem [shape: f32[1,256], index: 3, kind: input, shape index: {}]   ;;  %s1624_s4 = inlined_call_operand.vmem [shape: bf16[16,256], index: 4, kind: input, shape index: {}]   ;;  %s1625_s5 = inlined_call_operand.vmem [shape: bf16[16,256], index: 5, kind: output, shape index: {}]  }
   0x1   :  { %s1322_s20 = smov 0   ;;  %s1324_s21 = smov 0  }
   0x2   :  { %s1326_s22 = smov 0   ;;  %s1328_s23 = smov 0  }
   0x3   :  { %s1330_s24 = smov 0   ;;  %s1332_s25 = smov 0  }
   0x4   :  { %s1334_s26 = smov 0   ;;  %s1336_s27 = smov 0  }
   0x5   :  { %s1338_s28 = smov 0  }
   0x6 LB: > { %1629 = sst [smem:[#allocation7_spill]] %s1265_s23  ;;  %s983_s29 = sadd.s32 4294967295, %s1285_s28   ;;  %s1285_s28 = sphi %s1338_s28, %s15_s28   ;;  %s1281_s27 = sphi %s1336_s27, %s1653_s27   ;;  %s1277_s26 = sphi %s1334_s26, %s1652_s26   ;;  %s1273_s25 = sphi %s1332_s25, %s1651_s25   ;;  %s1269_s24 = sphi %s1330_s24, %s1650_s24   ;;  %s1265_s23 = sphi %s1328_s23, %s1649_s23   ;;  %s1261_s22 = sphi %s1326_s22, %s1641_s22   ;;  %s1257_s21 = sphi %s1324_s21, %s1648_s21   ;;  %s1253_s20 = sphi %s1322_s20, %s1647_s20   ;;  %s1249_s19 = sphi %s1320_s19, %s1646_s19   ;;  %s1245_s18 = sphi %s1318_s18, %s1645_s18  }
   0x7   : > { %s27_s30 = sadd.s32 1, %s1277_s26  ;;  %s30_s6 = sadd.s32 1, %s1281_s27 }
   0x8   : > { %p28_p0 = scmp.ge.s32.totalorder %s27_s30, 9  ;;  %s43_s7 = sadd.s32 1, %s1265_s23 }
   0x9   : > { %p50_p1 = scmp.ne.s32.totalorder %s1265_s23, %s1261_s22  ;;  %p51_p2 = scmp.eq.s32.totalorder %s1285_s28, 0 }
   0xa   : > { %s1655_s30 = smov (%p28_p0, %s27_s30), 0  ;;  %s1657_s6 = smov (!%p28_p0, %s30_s6), %s1281_s27 }
   0xb   : > { %1630 = sst [smem:[#allocation8_spill]] %s1655_s30  ;;  %s39_s8 = ssub.s32 %s1277_s26, %s1655_s30 }
   0xc   : > { %p32_p3 = scmp.ge.s32.totalorder %s1657_s6, 2  ;;  %p41_p4 = scmp.eq.s32.totalorder %s39_s8, 0 }
   0xd   : > { %p1387_p5 = por %p51_p2, %p50_p1  ;;  %s71_s10 = sadd.s32 1, %s1257_s21 }
   0xe   : > { %s1659_s6 = smov (%p32_p3, %s1657_s6), 0  ;;  %p78_p6 = scmp.ne.s32.totalorder %s1257_s21, %s1253_s20 }
   0xf   : > { %1632 = sst [smem:[#allocation9_spill]] %s1659_s6  ;;  %s67_s12 = ssub.s32 %s1281_s27, %s1659_s6 }
  0x10   : > { %s1395_s11 = scalar_select %p41_p4, %s1265_s23, %s43_s7  }
  0x11   : > { %s68_s13 = sor.u32 %s67_s12, %s39_s8  ;;  %p149_p7 = scmp.eq.s32.totalorder %s67_s12, 0 }
  0x12   : > { %1633 = sst [smem:[#allocation10_spill]] %s1395_s11  ;;  %p69_p8 = scmp.eq.s32.totalorder %s68_s13, 0 }
  0x13   : > { %p1403_p9 = por %p78_p6, %p51_p2  ;;  %s151_s15 = sadd.s32 1, %s1249_s19 }
  0x14   : > { %p158_p10 = scmp.ne.s32.totalorder %s1249_s19, %s1245_s18  ;;  %p190_p12 = scmp.eq.s32.totalorder %s983_s29, 17 }
  0x15   : > { %s1411_s16 = scalar_select %p69_p8, %s1257_s21, %s71_s10  }
  0x16   : > { %s1414_s17 = scalar_select %p149_p7, %s1249_s19, %s151_s15  }
  0x17   : > { %1635 = sst [smem:[#allocation11_spill]] %s1411_s16  ;;  %p1418_p11 = por %p158_p10, %p51_p2 }
  0x18   : > { %1636 = sst [smem:[#allocation12_spill]] %s1414_s17  ;;  %p1422_p13 = por %p190_p12, %p158_p10 }
  0x19   : > { %p986_p0 = scmp.ge.s32.totalorder %s1285_s28, 18 }
  0x1b   : > { %212 = sbr.rel (%p986_p0) target bundleno = 82 (0x52), region = 16 }
  0x20   : > { %215 = sbr.rel (!%p1387_p5) target bundleno = 38 (0x26), region = 20  ;;  %s217_s10 = sand.u32 (%p1387_p5), 1, %s1265_s23  }
  0x21   : > { %s1079_s12 = sshll.u32 (%p1387_p5), %s1277_s26, 3  ;;  %s987_s13 = sshll.u32 (%p1387_p5), %s217_s10, 4 }
  0x22   : > { %s225_s30 = scalar_lea.vmem (%p1387_p5), %s1620_s0, %s1079_s12  ;;  %s219_s29 = scalar_lea.vmem (%p1387_p5), [#allocation3], %s987_s13 }
  0x23   : > { %v256_v0 = vld [vmem:[%s225_s30] sm:$0xff] (%p1387_p5)  ;;  %v258_v1 = vld [vmem:[%s225_s30 + $0x48] sm:$0xff] (%p1387_p5) }
  0x24   : > { %257 = vst [vmem:[%s219_s29] sm:$0xff] (%p1387_p5), %v256_v0 }
  0x25   : > { %259 = vst [vmem:[%s219_s29 + $0x8] sm:$0xff] %v258_v1 }
  0x26 PF: > { %265 = sbr.rel (!%p1403_p9) target bundleno = 76 (0x4c), region = 58  ;;  %s267_s9 = sand.u32 (%p1403_p9), 1, %s1257_s21  }
  0x27   : > { %s1080_s11 = sshll.u32 (%p1403_p9), %s1277_s26, 6  ;;  %s990_s23 = sshll.u32 (%p1403_p9), %s267_s9, 7 }
  0x28   : > { %s272_s10 = sadd.s32 (%p1403_p9), %s1281_s27, %s1080_s11  ;;  %s1447_s30 = scalar_lea.vmem (%p1403_p9), [#allocation4], %s990_s23 }
  0x29   : > { %s993_s16 = sshll.u32 (%p1403_p9), %s272_s10, 2 }
  0x2a   : > { %s1442_s12 = scalar_lea.vmem (%p1403_p9), %s1621_s1, %s993_s16 }
  0x2b   : > { %v291_v2 = vld [vmem:[%s1442_s12] sm:$0xf]  ;;  %v293_v3 = vld [vmem:[%s1442_s12 + $0x8] sm:$0xf]  ;;  %v295_v4 = vld [vmem:[%s1442_s12 + $0x10] sm:$0xf] }
  0x2c   : > { %292 = vst [vmem:[%s1447_s30] sm:$0xf] %v291_v2  ;;  %v297_v5 = vld [vmem:[%s1442_s12 + $0x18] sm:$0xf]  ;;  %v299_v6 = vld [vmem:[%s1442_s12 + $0x20] sm:$0xf] }
  0x2d   : > { %294 = vst [vmem:[%s1447_s30 + $0x4] sm:$0xf] %v293_v3  ;;  %v301_v7 = vld [vmem:[%s1442_s12 + $0x28] sm:$0xf]  ;;  %v303_v8 = vld [vmem:[%s1442_s12 + $0x30] sm:$0xf] }
  0x2e   : > { %296 = vst [vmem:[%s1447_s30 + $0x8] sm:$0xf] %v295_v4  ;;  %v305_v9 = vld [vmem:[%s1442_s12 + $0x38] sm:$0xf]  ;;  %v307_v10 = vld [vmem:[%s1442_s12 + $0x40] sm:$0xf] }
  0x2f   : > { %298 = vst [vmem:[%s1447_s30 + $0xc] sm:$0xf] %v297_v5  ;;  %v309_v11 = vld [vmem:[%s1442_s12 + $0x48] sm:$0xf]  ;;  %v311_v12 = vld [vmem:[%s1442_s12 + $0x50] sm:$0xf] }
  0x30   : > { %300 = vst [vmem:[%s1447_s30 + $0x10] sm:$0xf] %v299_v6  ;;  %v313_v13 = vld [vmem:[%s1442_s12 + $0x58] sm:$0xf]  ;;  %v315_v14 = vld [vmem:[%s1442_s12 + $0x60] sm:$0xf] }
  0x31   : > { %302 = vst [vmem:[%s1447_s30 + $0x14] sm:$0xf] %v301_v7  ;;  %v317_v15 = vld [vmem:[%s1442_s12 + $0x68] sm:$0xf]  ;;  %v319_v16 = vld [vmem:[%s1442_s12 + $0x70] sm:$0xf] }
  0x32   : > { %304 = vst [vmem:[%s1447_s30 + $0x18] sm:$0xf] %v303_v8  ;;  %v321_v17 = vld [vmem:[%s1442_s12 + $0x78] sm:$0xf]  ;;  %v323_v18 = vld [vmem:[%s1442_s12 + $0x80] sm:$0xf] }
  0x33   : > { %306 = vst [vmem:[%s1447_s30 + $0x1c] sm:$0xf] %v305_v9  ;;  %v325_v19 = vld [vmem:[%s1442_s12 + $0x88] sm:$0xf]  ;;  %v327_v20 = vld [vmem:[%s1442_s12 + $0x90] sm:$0xf] }
  0x34   : > { %308 = vst [vmem:[%s1447_s30 + $0x20] sm:$0xf] %v307_v10  ;;  %v329_v21 = vld [vmem:[%s1442_s12 + $0x98] sm:$0xf]  ;;  %v331_v22 = vld [vmem:[%s1442_s12 + $0xa0] sm:$0xf] }
  0x35   : > { %310 = vst [vmem:[%s1447_s30 + $0x24] sm:$0xf] %v309_v11  ;;  %v333_v23 = vld [vmem:[%s1442_s12 + $0xa8] sm:$0xf]  ;;  %v335_v24 = vld [vmem:[%s1442_s12 + $0xb0] sm:$0xf] }
  0x36   : > { %312 = vst [vmem:[%s1447_s30 + $0x28] sm:$0xf] %v311_v12  ;;  %v337_v25 = vld [vmem:[%s1442_s12 + $0xb8] sm:$0xf]  ;;  %v339_v26 = vld [vmem:[%s1442_s12 + $0xc0] sm:$0xf] }
  0x37   : > { %314 = vst [vmem:[%s1447_s30 + $0x2c] sm:$0xf] %v313_v13  ;;  %v341_v27 = vld [vmem:[%s1442_s12 + $0xc8] sm:$0xf]  ;;  %v343_v28 = vld [vmem:[%s1442_s12 + $0xd0] sm:$0xf] }
  0x38   : > { %316 = vst [vmem:[%s1447_s30 + $0x30] sm:$0xf] %v315_v14  ;;  %v345_v29 = vld [vmem:[%s1442_s12 + $0xd8] sm:$0xf]  ;;  %v347_v30 = vld [vmem:[%s1442_s12 + $0xe0] sm:$0xf] }
  0x39   : > { %318 = vst [vmem:[%s1447_s30 + $0x34] sm:$0xf] %v317_v15  ;;  %v349_v31 = vld [vmem:[%s1442_s12 + $0xe8] sm:$0xf]  ;;  %v351_v32 = vld [vmem:[%s1442_s12 + $0xf0] sm:$0xf] }
  0x3a   : > { %320 = vst [vmem:[%s1447_s30 + $0x38] sm:$0xf] %v319_v16  ;;  %v353_v33 = vld [vmem:[%s1442_s12 + $0xf8] sm:$0xf] }
  0x3b   : > { %322 = vst [vmem:[%s1447_s30 + $0x3c] sm:$0xf] %v321_v17 }
  0x3c   : > { %324 = vst [vmem:[%s1447_s30 + $0x40] sm:$0xf] %v323_v18 }
  0x3d   : > { %326 = vst [vmem:[%s1447_s30 + $0x44] sm:$0xf] %v325_v19 }
  0x3e   : > { %328 = vst [vmem:[%s1447_s30 + $0x48] sm:$0xf] %v327_v20 }
  0x3f   : > { %330 = vst [vmem:[%s1447_s30 + $0x4c] sm:$0xf] %v329_v21 }
  0x40   : > { %332 = vst [vmem:[%s1447_s30 + $0x50] sm:$0xf] %v331_v22 }
  0x41   : > { %334 = vst [vmem:[%s1447_s30 + $0x54] sm:$0xf] %v333_v23 }
  0x42   : > { %336 = vst [vmem:[%s1447_s30 + $0x58] sm:$0xf] %v335_v24 }
  0x43   : > { %338 = vst [vmem:[%s1447_s30 + $0x5c] sm:$0xf] %v337_v25 }
  0x44   : > { %340 = vst [vmem:[%s1447_s30 + $0x60] sm:$0xf] %v339_v26 }
  0x45   : > { %342 = vst [vmem:[%s1447_s30 + $0x64] sm:$0xf] %v341_v27 }
  0x46   : > { %344 = vst [vmem:[%s1447_s30 + $0x68] sm:$0xf] %v343_v28 }
  0x47   : > { %346 = vst [vmem:[%s1447_s30 + $0x6c] sm:$0xf] %v345_v29 }
  0x48   : > { %348 = vst [vmem:[%s1447_s30 + $0x70] sm:$0xf] %v347_v30 }
  0x49   : > { %350 = vst [vmem:[%s1447_s30 + $0x74] sm:$0xf] %v349_v31 }
  0x4a   : > { %352 = vst [vmem:[%s1447_s30 + $0x78] sm:$0xf] %v351_v32 }
  0x4b   : > { %354 = vst [vmem:[%s1447_s30 + $0x7c] sm:$0xf] %v353_v33 }
  0x4c PF: > { %454 = sbr.rel (!%p1418_p11) target bundleno = 82 (0x52), region = 107  ;;  %s456_s23 = sand.u32 (%p1418_p11), 1, %s1249_s19  }
  0x4d   : > { %s995_s11 = sshll.u32 (%p1418_p11), %s1281_s27, 2  ;;  %s994_s14 = sshll.u32 (%p1418_p11), %s456_s23, 3 }
  0x4e   : > { %s463_s13 = scalar_lea.vmem (%p1418_p11), %s1624_s4, %s995_s11  ;;  %s458_s15 = scalar_lea.vmem (%p1418_p11), [#allocation5], %s994_s14 }
  0x4f   : > { %v480_v34 = vld [vmem:[%s463_s13] sm:$0xf] (%p1418_p11)  ;;  %v482_v35 = vld [vmem:[%s463_s13 + $0x8] sm:$0xf] (%p1418_p11) }
  0x50   : > { %481 = vst [vmem:[%s458_s15] sm:$0xf] (%p1418_p11), %v480_v34 }
  0x51   : > { %483 = vst [vmem:[%s458_s15 + $0x4] sm:$0xf] %v482_v35 }
  0x52 PF: > { %p996_p1 = scmp.ge.s32.totalorder %s1285_s28, 1  ;;  %p510_p2 = scmp.lt.s32.totalorder %s1285_s28, 19 }
  0x54   : > { %p511_p3 = pnand %p996_p1, %p510_p2 }
  0x55   : > { %s517_s7 = sand.u32 (!%p511_p3), 1, %s1261_s22   ;;  %s524_s29 = sand.u32 (!%p511_p3), 1, %s1253_s20  }
  0x56   : > { %514 = sbr.rel (%p511_p3) target bundleno = 301 (0x12d), region = 148  ;;  %s997_s9 = sshll.u32 (!%p511_p3), %s517_s7, 4 }
  0x57   : > { %s998_s10 = sshll.u32 (!%p511_p3), %s524_s29, 7  ;;  %s531_s6 = sand.u32 (!%p511_p3), 1, %s1245_s18  }
  0x58   : > { %p574_p4 = scmp.lt.s32.totalorder (!%p511_p3), %s1273_s25, 1  ;;  %s1523_s12 = sshll.u32 (!%p511_p3), %s531_s6, 3 }
  0x59   : > { %s1536_s22 = scalar_lea.vmem (!%p511_p3), [#allocation3], %s997_s9  ;;  %s1538_s18 = scalar_lea.vmem (!%p511_p3), [#allocation4], %s998_s10 }
  0x5a   : > { %s533_s13 = scalar_lea.vmem (!%p511_p3), [#allocation5], %s1523_s12  ;;  %s1542_s15 = scalar_lea.vmem (!%p511_p3), [#allocation6], %s1523_s12 }
  0x5b   : > { %s1526_s30 = scalar_select %p574_p4, %s1273_s25, 1 }
  0x5c   : > { %p1001_p5 = scmp.ne.s32.totalorder %s1269_s24, 0 }
  0x5d   : > { %s576_s14 = scalar_lea.vmem %s1622_s2, %s1526_s30  ;;  %s579_s20 = scalar_lea.vmem %s1623_s3, %s1526_s30 }
  0x5e   : > { %585 = sbr.rel (%p1001_p5) target bundleno = 102 (0x66), region = 164 }
  0x63   : > { %v1287_v36 = vmov 0.0  }
  0x64   : > { %586 = vst [vmem:[#allocation2] sm:$0xff] %v1287_v36 }
  0x65   : > { %587 = vst [vmem:[#allocation2 + $0x8] sm:$0xff] %v1287_v36 }
  0x66 PF: > { %v1090_v37 = vld [vmem:[%s1538_s18 + $0x38] sm:$0xff]  ;;  %v1089_v39 = vld [vmem:[%s1538_s18 + $0x30] sm:$0xff]  ;;  %v1088_v41 = vld [vmem:[%s1538_s18 + $0x28] sm:$0xff]  ;;  %p1074_p6 = scmp.ne.s32.totalorder %s1269_s24, 8 }
  0x67   : > { %v1098_v38 = vld [vmem:[%s1538_s18 + $0x78] sm:$0xff]  ;;  %730 = vmatpush.bf16.msra.mxu0 %v1090_v37  ;;  %v1097_v40 = vld [vmem:[%s1538_s18 + $0x70] sm:$0xff]  ;;  %v1096_v42 = vld [vmem:[%s1538_s18 + $0x68] sm:$0xff] }
  0x68   : > { %744 = vmatpush.bf16.msra.mxu1 %v1098_v38  ;;  %v1087_v43 = vld [vmem:[%s1538_s18 + $0x20] sm:$0xff]  ;;  %v1086_v45 = vld [vmem:[%s1538_s18 + $0x18] sm:$0xff]  ;;  %v1085_v47 = vld [vmem:[%s1538_s18 + $0x10] sm:$0xff] }
  0x69   : > { %v1095_v44 = vld [vmem:[%s1538_s18 + $0x60] sm:$0xff]  ;;  %v1094_v46 = vld [vmem:[%s1538_s18 + $0x58] sm:$0xff]  ;;  %v1093_v48 = vld [vmem:[%s1538_s18 + $0x50] sm:$0xff] }
  0x6a   : > { %v1084_v49 = vld [vmem:[%s1538_s18 + $0x8] sm:$0xff]  ;;  %v1083_v51 = vld [vmem:[%s1538_s18] sm:$0xff] }
  0x6b   : > { %731 = vmatpush.bf16.msra.mxu0 %v1089_v39  ;;  %v1092_v50 = vld [vmem:[%s1538_s18 + $0x48] sm:$0xff]  ;;  %v1091_v52 = vld [vmem:[%s1538_s18 + $0x40] sm:$0xff]  ;;  %v588_v60 = vld [vmem:[#allocation2] sm:$0xff] }
  0x6c   : > { %745 = vmatpush.bf16.msra.mxu1 %v1097_v40  ;;  %v1004_v53 = vld [vmem:[%s1536_s22] sm:$0xf]  ;;  %v1082_v54 = vld [vmem:[%s1536_s22 + $0x4] sm:$0xf0]  ;;  %v1081_v55 = vld [vmem:[%s1536_s22 + $0x4] sm:$0xf] }
  0x6d   : > { %v1006_v56 = vld [vmem:[%s1536_s22 + $0x8] sm:$0xf0]  ;;  %v1005_v57 = vor.u32 %v1082_v54, %v1004_v53 }
  0x6e   : > { %v1009_v58 = vor.u32 %v1081_v55, %v1006_v56  ;;  %v589_v1 = vld [vmem:[#allocation2 + $0x8] sm:$0xff] }
  0x6f   : > { %732 = vmatpush.bf16.msra.mxu0 %v1088_v41 }
  0x70   : > { %746 = vmatpush.bf16.msra.mxu1 %v1096_v42 }
  0x73   : > { %733 = vmatpush.bf16.msra.mxu0 %v1087_v43 }
  0x74   : > { %747 = vmatpush.bf16.msra.mxu1 %v1095_v44 }
  0x77   : > { %734 = vmatpush.bf16.msra.mxu0 %v1086_v45 }
  0x78   : > { %748 = vmatpush.bf16.msra.mxu1 %v1094_v46 }
  0x7b   : > { %735 = vmatpush.bf16.msra.mxu0 %v1085_v47 }
  0x7c   : > { %749 = vmatpush.bf16.msra.mxu1 %v1093_v48 }
  0x7f   : > { %736 = vmatpush.bf16.msra.mxu0 %v1084_v49 }
  0x80   : > { %750 = vmatpush.bf16.msra.mxu1 %v1092_v50 }
  0x83   : > { %737 = vmatpush.bf16.msra.mxu0 %v1083_v51 }
  0x84   : > { %751 = vmatpush.bf16.msra.mxu1 %v1091_v52 }
  0x86   : > { %738 = vmatmul.bf16.vlgmr.msra.gmra.mxu0 %v1005_v57 }
  0x87   : > { %752 = vmatmul.bf16.vlgmr.msra.gmra.mxu1 %v1009_v58 }
 0x103   : > { %v739_v59 = vpop.f32.mrf.mxu0 }
 0x104   : > { %v753_v61 = vpop.f32.mrf.mxu1 }
 0x105   : > { %v754_v62 = vadd.f32 %v753_v61, %v739_v59 }
 0x107   : > { %v758_v63 = vadd.f32 %v754_v62, %v588_v60 }
 0x109   : > { %760 = vst [vmem:[#allocation2] sm:$0xff] %v758_v63 }
 0x10b   : > { %v741_v0 = vpop.f32.mrf.mxu0 }
 0x10c   : > { %v755_v2 = vpop.f32.mrf.mxu1 }
 0x10d   : > { %v756_v3 = vadd.f32 %v755_v2, %v741_v0  ;;  %765 = sbr.rel (%p1074_p6) target bundleno = 292 (0x124), region = 168 }
 0x10f   : > { %v759_v4 = vadd.f32 %v756_v3, %v589_v1 }
 0x111   : > { %761 = vst [vmem:[#allocation2 + $0x8] sm:$0xff] %v759_v4 }
 0x112   : > { %v766_v5 = vld [vmem:[#allocation2] sm:$0xff]  ;;  %v1100_v9 = vld [vmem:[%s533_s13] sm:$0xff]  }
 0x113   : > { %v1197_v7 = vld [vmem:[%s576_s14] ss:$0 sm:$0xff]  ;;  %v1101_v12 = vunpack.c.l.bf16 %v1100_v9  ;;  %v1102_v13 = vunpack.c.h.bf16 %v1100_v9 }
 0x114   : > { %v1198_v8 = vld [vmem:[%s579_s20] ss:$0 sm:$0xff]  ;;  %v772_v10 = vmul.f32 %v1197_v7, %v766_v5 }
 0x116   : > { %v778_v14 = vadd.f32 %v1198_v8, %v772_v10 }
 0x118   : > { %v767_v6 = vld [vmem:[#allocation2 + $0x8] sm:$0xff]  ;;  %v784_v16 = vadd.f32 %v1101_v12, %v778_v14 }
 0x119   : > { %v773_v11 = vmul.f32 %v1197_v7, %v767_v6 }
 0x11a   : > { %v786_v18 = vmax.f32 %v784_v16, 0.0 }
 0x11b   : > { %v779_v15 = vadd.f32 %v1198_v8, %v773_v11 }
 0x11d   : > { %v785_v17 = vadd.f32 %v1102_v13, %v779_v15 }
 0x11f   : > { %v787_v19 = vmax.f32 %v785_v17, 0.0 }
 0x121   : > { %v1106_v20 = vpack.c.bf16 %v787_v19, %v786_v18 }
 0x123   : > { %1107 = vst [vmem:[%s1542_s15] sm:$0xff] %v1106_v20  }
 0x124 PF: > { %798 = sbr.rel (!%p1422_p13) target bundleno = 301 (0x12d), region = 172  ;;  %s1076_s24 = sshll.u32 (%p1422_p13), %s1273_s25, 2 }
 0x125   : > { %s803_s30 = scalar_lea.vmem (%p1422_p13), %s1625_s5, %s1076_s24 }
 0x12a   : > { %v820_v21 = vld [vmem:[%s1542_s15] sm:$0xf]  ;;  %v822_v22 = vld [vmem:[%s1542_s15 + $0x4] sm:$0xf] }
 0x12b   : > { %821 = vst [vmem:[%s803_s30] sm:$0xf] %v820_v21 }
 0x12c   : > { %823 = vst [vmem:[%s803_s30 + $0x8] sm:$0xf] %v822_v22 }
 0x12d PF: > { %s15_s28 = sadd.s32 1, %s1285_s28   ;;  %s1639_s8 = sld [smem:[#allocation12_spill]] }
 0x12e   : > { %p12_p7 = scmp.ge.s32.totalorder %s15_s28, 20   ;;  %s1640_s23 = sld [smem:[#allocation11_spill]] }
 0x12f   : > { %s1641_s22 = sld [smem:[#allocation7_spill]]  ;;  %s1645_s18 = smov %s1249_s19 }
 0x130   : > { %s1642_s11 = sld [smem:[#allocation10_spill]]  ;;  %s1647_s20 = smov %s1257_s21 }
 0x131   : > { %s1643_s14 = sld [smem:[#allocation8_spill]]  ;;  %s1650_s24 = smov %s1277_s26 }
 0x132   : > { %s1644_s16 = sld [smem:[#allocation9_spill]]  ;;  %s1651_s25 = smov %s1281_s27 }
 0x133   : > { %s1646_s19 = smov %s1639_s8 }
 0x134   : > { %s1648_s21 = smov %s1640_s23  ;;  %14 = sbr.rel (!%p12_p7) target bundleno = 6 (0x6), region = 266 }
 0x136   : > { %s1649_s23 = smov %s1642_s11 }
 0x137   : > { %s1652_s26 = smov %s1643_s14 }
 0x138   : > { %s1653_s27 = smov %s1644_s16 }

// kernel: electronics_classifier_forward.36
= control target key start
LH: loop header
LB: loop body
LE: loop exit
PB: predicated region body
PF: predicated region fallthrough
CT: control target
= control target key end

     0   :  { %s1459_s0 = inlined_call_operand.vmem [shape: bf16[16,2304], index: 0, kind: input, shape index: {}]   ;;  %s1460_s1 = inlined_call_operand.vmem [shape: bf16[2304,256], index: 1, kind: input, shape index: {}]   ;;  %s1461_s2 = inlined_call_operand.vmem [shape: f32[1,256], index: 2, kind: input, shape index: {}]   ;;  %s1462_s3 = inlined_call_operand.vmem [shape: f32[1,256], index: 3, kind: input, shape index: {}]   ;;  %s1463_s4 = inlined_call_operand.vmem [shape: bf16[16,256], index: 4, kind: output, shape index: {}]  }
   0x1   :  { %1467 = sst [smem:[#allocation10_spill]] %s1459_s0 }
   0x2   :  { %s1180_s15 = smov 0   ;;  %s1182_s16 = smov 0  }
   0x3   :  { %s1184_s17 = smov 0   ;;  %s1186_s18 = smov 0  }
   0x4   :  { %s1188_s19 = smov 0   ;;  %s1190_s20 = smov 0  }
   0x5   :  { %s1192_s21 = smov 0   ;;  %s1194_s22 = smov 0  }
   0x6   :  { %s1196_s23 = smov 0   ;;  %s1198_s24 = smov 0  }
   0x7   :  { %s1200_s25 = smov 0  }
   0x8 LB: > { %1468 = sst [smem:[#allocation6_spill]] %s1132_s20  ;;  %s857_s26 = sadd.s32 4294967295, %s1152_s25   ;;  %s1152_s25 = sphi %s1200_s25, %s14_s25   ;;  %s1148_s24 = sphi %s1198_s24, %s1487_s24   ;;  %s1144_s23 = sphi %s1196_s23, %s1486_s23   ;;  %s1140_s22 = sphi %s1194_s22, %s1485_s22   ;;  %s1136_s21 = sphi %s1192_s21, %s1484_s21   ;;  %s1132_s20 = sphi %s1190_s20, %s1477_s20   ;;  %s1128_s19 = sphi %s1188_s19, %s1476_s19   ;;  %s1124_s18 = sphi %s1186_s18, %s1483_s18   ;;  %s1120_s17 = sphi %s1184_s17, %s1482_s17   ;;  %s1116_s16 = sphi %s1182_s16, %s1481_s16   ;;  %s1112_s15 = sphi %s1180_s15, %s1480_s15  }
   0x9   : > { %s26_s27 = sadd.s32 1, %s1144_s23  ;;  %s29_s28 = sadd.s32 1, %s1148_s24 }
   0xa   : > { %p27_p0 = scmp.ge.s32.totalorder %s26_s27, 9  ;;  %s42_s29 = sadd.s32 1, %s1132_s20 }
   0xb   : > { %p49_p1 = scmp.ne.s32.totalorder %s1132_s20, %s1128_s19  ;;  %p50_p2 = scmp.eq.s32.totalorder %s1152_s25, 0 }
   0xc   : > { %s1489_s27 = smov (%p27_p0, %s26_s27), 0  ;;  %s1491_s28 = smov (!%p27_p0, %s29_s28), %s1148_s24 }
   0xd   : > { %1469 = sst [smem:[#allocation7_spill]] %s1489_s27  ;;  %s38_s30 = ssub.s32 %s1144_s23, %s1489_s27 }
   0xe   : > { %p31_p3 = scmp.ge.s32.totalorder %s1491_s28, 2  ;;  %p40_p4 = scmp.eq.s32.totalorder %s38_s30, 0 }
   0xf   : > { %p1247_p5 = por %p50_p2, %p49_p1  ;;  %s70_s6 = sadd.s32 1, %s1124_s18 }
  0x10   : > { %s1493_s28 = smov (%p31_p3, %s1491_s28), 0  ;;  %p77_p6 = scmp.ne.s32.totalorder %s1124_s18, %s1120_s17 }
  0x11   : > { %1471 = sst [smem:[#allocation8_spill]] %s1493_s28  ;;  %s66_s8 = ssub.s32 %s1148_s24, %s1493_s28 }
  0x12   : > { %s1255_s7 = scalar_select %p40_p4, %s1132_s20, %s42_s29  }
  0x13   : > { %s67_s9 = sor.u32 %s66_s8, %s38_s30  ;;  %p148_p7 = scmp.eq.s32.totalorder %s66_s8, 0 }
  0x14   : > { %1472 = sst [smem:[#allocation9_spill]] %s1255_s7  ;;  %p68_p8 = scmp.eq.s32.totalorder %s67_s9, 0 }
  0x15   : > { %p1261_p9 = por %p77_p6, %p50_p2  ;;  %s150_s11 = sadd.s32 1, %s1116_s16 }
  0x16   : > { %p160_p10 = scmp.ne.s32.totalorder %s1116_s16, %s1112_s15  ;;  %p161_p11 = scmp.eq.s32.totalorder %s857_s26, 17 }
  0x17   : > { %s1269_s12 = scalar_select %p68_p8, %s1124_s18, %s70_s6  }
  0x18   : > { %s1272_s13 = scalar_select %p148_p7, %s1116_s16, %s150_s11  }
  0x19   : > { %p1274_p12 = por %p161_p11, %p160_p10  ;;  %p860_p13 = scmp.ge.s32.totalorder %s1152_s25, 18 }
  0x1b   : > { %183 = sbr.rel (%p860_p13) target bundleno = 82 (0x52), region = 16 }
  0x20   : > { %186 = sbr.rel (!%p1247_p5) target bundleno = 44 (0x2c), region = 20  ;;  %s188_s29 = sand.u32 (%p1247_p5), 1, %s1132_s20  }
  0x21   : > { %s950_s30 = sshll.u32 (%p1247_p5), %s1144_s23, 3  ;;  %s861_s8 = sshll.u32 (%p1247_p5), %s188_s29, 4 }
  0x22   : > { %s1475_s0 = sld [smem:[#allocation10_spill]] (%p1247_p5)  ;;  %s190_s26 = scalar_lea.vmem (%p1247_p5), [#allocation3], %s861_s8 }
  0x28   : > { %s196_s11 = scalar_lea.vmem %s1475_s0, %s950_s30 }
  0x29   : > { %v227_v0 = vld [vmem:[%s196_s11] sm:$0xff]  ;;  %v229_v1 = vld [vmem:[%s196_s11 + $0x48] sm:$0xff] }
  0x2a   : > { %228 = vst [vmem:[%s190_s26] sm:$0xff] %v227_v0 }
  0x2b   : > { %230 = vst [vmem:[%s190_s26 + $0x8] sm:$0xff] %v229_v1 }
  0x2c PF: > { %236 = sbr.rel (!%p1261_p9) target bundleno = 82 (0x52), region = 58  ;;  %s238_s5 = sand.u32 (%p1261_p9), 1, %s1124_s18  }
  0x2d   : > { %s951_s28 = sshll.u32 (%p1261_p9), %s1144_s23, 6  ;;  %s864_s27 = sshll.u32 (%p1261_p9), %s238_s5, 7 }
  0x2e   : > { %s243_s29 = sadd.s32 (%p1261_p9), %s1148_s24, %s951_s28  ;;  %s1299_s28 = scalar_lea.vmem (%p1261_p9), [#allocation4], %s864_s27 }
  0x2f   : > { %s867_s7 = sshll.u32 (%p1261_p9), %s243_s29, 2 }
  0x30   : > { %s1294_s30 = scalar_lea.vmem (%p1261_p9), %s1460_s1, %s867_s7 }
  0x31   : > { %v262_v2 = vld [vmem:[%s1294_s30] sm:$0xf]  ;;  %v264_v3 = vld [vmem:[%s1294_s30 + $0x8] sm:$0xf]  ;;  %v266_v4 = vld [vmem:[%s1294_s30 + $0x10] sm:$0xf] }
  0x32   : > { %263 = vst [vmem:[%s1299_s28] sm:$0xf] %v262_v2  ;;  %v268_v5 = vld [vmem:[%s1294_s30 + $0x18] sm:$0xf]  ;;  %v270_v6 = vld [vmem:[%s1294_s30 + $0x20] sm:$0xf] }
  0x33   : > { %265 = vst [vmem:[%s1299_s28 + $0x4] sm:$0xf] %v264_v3  ;;  %v272_v7 = vld [vmem:[%s1294_s30 + $0x28] sm:$0xf]  ;;  %v274_v8 = vld [vmem:[%s1294_s30 + $0x30] sm:$0xf] }
  0x34   : > { %267 = vst [vmem:[%s1299_s28 + $0x8] sm:$0xf] %v266_v4  ;;  %v276_v9 = vld [vmem:[%s1294_s30 + $0x38] sm:$0xf]  ;;  %v278_v10 = vld [vmem:[%s1294_s30 + $0x40] sm:$0xf] }
  0x35   : > { %269 = vst [vmem:[%s1299_s28 + $0xc] sm:$0xf] %v268_v5  ;;  %v280_v11 = vld [vmem:[%s1294_s30 + $0x48] sm:$0xf]  ;;  %v282_v12 = vld [vmem:[%s1294_s30 + $0x50] sm:$0xf] }
  0x36   : > { %271 = vst [vmem:[%s1299_s28 + $0x10] sm:$0xf] %v270_v6  ;;  %v284_v13 = vld [vmem:[%s1294_s30 + $0x58] sm:$0xf]  ;;  %v286_v14 = vld [vmem:[%s1294_s30 + $0x60] sm:$0xf] }
  0x37   : > { %273 = vst [vmem:[%s1299_s28 + $0x14] sm:$0xf] %v272_v7  ;;  %v288_v15 = vld [vmem:[%s1294_s30 + $0x68] sm:$0xf]  ;;  %v290_v16 = vld [vmem:[%s1294_s30 + $0x70] sm:$0xf] }
  0x38   : > { %275 = vst [vmem:[%s1299_s28 + $0x18] sm:$0xf] %v274_v8  ;;  %v292_v17 = vld [vmem:[%s1294_s30 + $0x78] sm:$0xf]  ;;  %v294_v18 = vld [vmem:[%s1294_s30 + $0x80] sm:$0xf] }
  0x39   : > { %277 = vst [vmem:[%s1299_s28 + $0x1c] sm:$0xf] %v276_v9  ;;  %v296_v19 = vld [vmem:[%s1294_s30 + $0x88] sm:$0xf]  ;;  %v298_v20 = vld [vmem:[%s1294_s30 + $0x90] sm:$0xf] }
  0x3a   : > { %279 = vst [vmem:[%s1299_s28 + $0x20] sm:$0xf] %v278_v10  ;;  %v300_v21 = vld [vmem:[%s1294_s30 + $0x98] sm:$0xf]  ;;  %v302_v22 = vld [vmem:[%s1294_s30 + $0xa0] sm:$0xf] }
  0x3b   : > { %281 = vst [vmem:[%s1299_s28 + $0x24] sm:$0xf] %v280_v11  ;;  %v304_v23 = vld [vmem:[%s1294_s30 + $0xa8] sm:$0xf]  ;;  %v306_v24 = vld [vmem:[%s1294_s30 + $0xb0] sm:$0xf] }
  0x3c   : > { %283 = vst [vmem:[%s1299_s28 + $0x28] sm:$0xf] %v282_v12  ;;  %v308_v25 = vld [vmem:[%s1294_s30 + $0xb8] sm:$0xf]  ;;  %v310_v26 = vld [vmem:[%s1294_s30 + $0xc0] sm:$0xf] }
  0x3d   : > { %285 = vst [vmem:[%s1299_s28 + $0x2c] sm:$0xf] %v284_v13  ;;  %v312_v27 = vld [vmem:[%s1294_s30 + $0xc8] sm:$0xf]  ;;  %v314_v28 = vld [vmem:[%s1294_s30 + $0xd0] sm:$0xf] }
  0x3e   : > { %287 = vst [vmem:[%s1299_s28 + $0x30] sm:$0xf] %v286_v14  ;;  %v316_v29 = vld [vmem:[%s1294_s30 + $0xd8] sm:$0xf]  ;;  %v318_v30 = vld [vmem:[%s1294_s30 + $0xe0] sm:$0xf] }
  0x3f   : > { %289 = vst [vmem:[%s1299_s28 + $0x34] sm:$0xf] %v288_v15  ;;  %v320_v31 = vld [vmem:[%s1294_s30 + $0xe8] sm:$0xf]  ;;  %v322_v32 = vld [vmem:[%s1294_s30 + $0xf0] sm:$0xf] }
  0x40   : > { %291 = vst [vmem:[%s1299_s28 + $0x38] sm:$0xf] %v290_v16  ;;  %v324_v33 = vld [vmem:[%s1294_s30 + $0xf8] sm:$0xf] }
  0x41   : > { %293 = vst [vmem:[%s1299_s28 + $0x3c] sm:$0xf] %v292_v17 }
  0x42   : > { %295 = vst [vmem:[%s1299_s28 + $0x40] sm:$0xf] %v294_v18 }
  0x43   : > { %297 = vst [vmem:[%s1299_s28 + $0x44] sm:$0xf] %v296_v19 }
  0x44   : > { %299 = vst [vmem:[%s1299_s28 + $0x48] sm:$0xf] %v298_v20 }
  0x45   : > { %301 = vst [vmem:[%s1299_s28 + $0x4c] sm:$0xf] %v300_v21 }
  0x46   : > { %303 = vst [vmem:[%s1299_s28 + $0x50] sm:$0xf] %v302_v22 }
  0x47   : > { %305 = vst [vmem:[%s1299_s28 + $0x54] sm:$0xf] %v304_v23 }
  0x48   : > { %307 = vst [vmem:[%s1299_s28 + $0x58] sm:$0xf] %v306_v24 }
  0x49   : > { %309 = vst [vmem:[%s1299_s28 + $0x5c] sm:$0xf] %v308_v25 }
  0x4a   : > { %311 = vst [vmem:[%s1299_s28 + $0x60] sm:$0xf] %v310_v26 }
  0x4b   : > { %313 = vst [vmem:[%s1299_s28 + $0x64] sm:$0xf] %v312_v27 }
  0x4c   : > { %315 = vst [vmem:[%s1299_s28 + $0x68] sm:$0xf] %v314_v28 }
  0x4d   : > { %317 = vst [vmem:[%s1299_s28 + $0x6c] sm:$0xf] %v316_v29 }
  0x4e   : > { %319 = vst [vmem:[%s1299_s28 + $0x70] sm:$0xf] %v318_v30 }
  0x4f   : > { %321 = vst [vmem:[%s1299_s28 + $0x74] sm:$0xf] %v320_v31 }
  0x50   : > { %323 = vst [vmem:[%s1299_s28 + $0x78] sm:$0xf] %v322_v32 }
  0x51   : > { %325 = vst [vmem:[%s1299_s28 + $0x7c] sm:$0xf] %v324_v33 }
  0x52 PF: > { %p868_p0 = scmp.ge.s32.totalorder %s1152_s25, 1  ;;  %p424_p1 = scmp.lt.s32.totalorder %s1152_s25, 19 }
  0x54   : > { %p425_p2 = pnand %p868_p0, %p424_p1 }
  0x55   : > { %s431_s20 = sand.u32 (!%p425_p2), 1, %s1128_s19   ;;  %s438_s27 = sand.u32 (!%p425_p2), 1, %s1120_s17  }
  0x56   : > { %428 = sbr.rel (%p425_p2) target bundleno = 297 (0x129), region = 107  ;;  %s869_s7 = sshll.u32 (!%p425_p2), %s431_s20, 4 }
  0x57   : > { %s870_s10 = sshll.u32 (!%p425_p2), %s438_s27, 7  ;;  %s469_s8 = sand.u32 (!%p425_p2), 1, %s1112_s15  }
  0x58   : > { %p475_p3 = scmp.lt.s32.totalorder (!%p425_p2), %s1140_s22, 1  ;;  %s871_s9 = sshll.u32 (!%p425_p2), %s469_s8, 3 }
  0x59   : > { %s1379_s0 = scalar_lea.vmem (!%p425_p2), [#allocation3], %s869_s7  ;;  %s1381_s17 = scalar_lea.vmem (!%p425_p2), [#allocation4], %s870_s10 }
  0x5a   : > { %s1383_s19 = scalar_lea.vmem (!%p425_p2), [#allocation5], %s871_s9  ;;  %p872_p4 = scmp.ne.s32.totalorder (!%p425_p2), %s1136_s21, 0 }
  0x5b   : > { %s1369_s11 = scalar_select %p475_p3, %s1140_s22, 1 }
  0x5c   : > { %485 = sbr.rel (%p872_p4) target bundleno = 100 (0x64), region = 119 }
  0x5d   : > { %s477_s29 = scalar_lea.vmem %s1461_s2, %s1369_s11  ;;  %s480_s28 = scalar_lea.vmem %s1462_s3, %s1369_s11 }
  0x61   : > { %v1154_v34 = vmov 0.0  }
  0x62   : > { %486 = vst [vmem:[#allocation2] sm:$0xff] %v1154_v34 }
  0x63   : > { %487 = vst [vmem:[#allocation2 + $0x8] sm:$0xff] %v1154_v34 }
  0x64 PF: > { %v961_v35 = vld [vmem:[%s1381_s17 + $0x38] sm:$0xff]  ;;  %v960_v37 = vld [vmem:[%s1381_s17 + $0x30] sm:$0xff]  ;;  %v959_v39 = vld [vmem:[%s1381_s17 + $0x28] sm:$0xff]  ;;  %p945_p5 = scmp.ne.s32.totalorder %s1136_s21, 8 }
  0x65   : > { %v969_v36 = vld [vmem:[%s1381_s17 + $0x78] sm:$0xff]  ;;  %630 = vmatpush.bf16.msra.mxu0 %v961_v35  ;;  %v968_v38 = vld [vmem:[%s1381_s17 + $0x70] sm:$0xff]  ;;  %v967_v40 = vld [vmem:[%s1381_s17 + $0x68] sm:$0xff] }
  0x66   : > { %644 = vmatpush.bf16.msra.mxu1 %v969_v36  ;;  %v958_v41 = vld [vmem:[%s1381_s17 + $0x20] sm:$0xff]  ;;  %v957_v43 = vld [vmem:[%s1381_s17 + $0x18] sm:$0xff]  ;;  %v956_v45 = vld [vmem:[%s1381_s17 + $0x10] sm:$0xff] }
  0x67   : > { %v966_v42 = vld [vmem:[%s1381_s17 + $0x60] sm:$0xff]  ;;  %v965_v44 = vld [vmem:[%s1381_s17 + $0x58] sm:$0xff]  ;;  %v964_v46 = vld [vmem:[%s1381_s17 + $0x50] sm:$0xff] }
  0x68   : > { %v955_v47 = vld [vmem:[%s1381_s17 + $0x8] sm:$0xff]  ;;  %v954_v49 = vld [vmem:[%s1381_s17] sm:$0xff] }
  0x69   : > { %631 = vmatpush.bf16.msra.mxu0 %v960_v37  ;;  %v963_v48 = vld [vmem:[%s1381_s17 + $0x48] sm:$0xff]  ;;  %v962_v50 = vld [vmem:[%s1381_s17 + $0x40] sm:$0xff]  ;;  %v488_v58 = vld [vmem:[#allocation2] sm:$0xff] }
  0x6a   : > { %645 = vmatpush.bf16.msra.mxu1 %v968_v38  ;;  %v875_v51 = vld [vmem:[%s1379_s0] sm:$0xf]  ;;  %v953_v52 = vld [vmem:[%s1379_s0 + $0x4] sm:$0xf0]  ;;  %v952_v53 = vld [vmem:[%s1379_s0 + $0x4] sm:$0xf] }
  0x6b   : > { %v877_v54 = vld [vmem:[%s1379_s0 + $0x8] sm:$0xf0]  ;;  %v876_v55 = vor.u32 %v953_v52, %v875_v51 }
  0x6c   : > { %v880_v56 = vor.u32 %v952_v53, %v877_v54  ;;  %v489_v63 = vld [vmem:[#allocation2 + $0x8] sm:$0xff] }
  0x6d   : > { %632 = vmatpush.bf16.msra.mxu0 %v959_v39 }
  0x6e   : > { %646 = vmatpush.bf16.msra.mxu1 %v967_v40 }
  0x71   : > { %633 = vmatpush.bf16.msra.mxu0 %v958_v41 }
  0x72   : > { %647 = vmatpush.bf16.msra.mxu1 %v966_v42 }
  0x75   : > { %634 = vmatpush.bf16.msra.mxu0 %v957_v43 }
  0x76   : > { %648 = vmatpush.bf16.msra.mxu1 %v965_v44 }
  0x79   : > { %635 = vmatpush.bf16.msra.mxu0 %v956_v45 }
  0x7a   : > { %649 = vmatpush.bf16.msra.mxu1 %v964_v46 }
  0x7d   : > { %636 = vmatpush.bf16.msra.mxu0 %v955_v47 }
  0x7e   : > { %650 = vmatpush.bf16.msra.mxu1 %v963_v48 }
  0x81   : > { %637 = vmatpush.bf16.msra.mxu0 %v954_v49 }
  0x82   : > { %651 = vmatpush.bf16.msra.mxu1 %v962_v50 }
  0x84   : > { %638 = vmatmul.bf16.vlgmr.msra.gmra.mxu0 %v876_v55 }
  0x85   : > { %652 = vmatmul.bf16.vlgmr.msra.gmra.mxu1 %v880_v56 }
 0x101   : > { %v639_v57 = vpop.f32.mrf.mxu0 }
 0x102   : > { %v653_v59 = vpop.f32.mrf.mxu1 }
 0x103   : > { %v654_v60 = vadd.f32 %v653_v59, %v639_v57 }
 0x105   : > { %v658_v61 = vadd.f32 %v654_v60, %v488_v58 }
 0x107   : > { %660 = vst [vmem:[#allocation2] sm:$0xff] %v658_v61 }
 0x109   : > { %v641_v62 = vpop.f32.mrf.mxu0 }
 0x10a   : > { %v655_v0 = vpop.f32.mrf.mxu1 }
 0x10b   : > { %v656_v1 = vadd.f32 %v655_v0, %v641_v62  ;;  %665 = sbr.rel (%p945_p5) target bundleno = 288 (0x120), region = 123 }
 0x10d   : > { %v659_v2 = vadd.f32 %v656_v1, %v489_v63 }
 0x10f   : > { %661 = vst [vmem:[#allocation2 + $0x8] sm:$0xff] %v659_v2 }
 0x110   : > { %v666_v3 = vld [vmem:[#allocation2] sm:$0xff] }
 0x111   : > { %v1064_v5 = vld [vmem:[%s477_s29] ss:$0 sm:$0xff] }
 0x112   : > { %v1065_v6 = vld [vmem:[%s480_s28] ss:$0 sm:$0xff]  ;;  %v672_v7 = vmul.f32 %v1064_v5, %v666_v3 }
 0x114   : > { %v678_v9 = vadd.f32 %v1065_v6, %v672_v7 }
 0x116   : > { %v667_v4 = vld [vmem:[#allocation2 + $0x8] sm:$0xff]  ;;  %v680_v11 = vmax.f32 %v678_v9, 0.0 }
 0x117   : > { %v673_v8 = vmul.f32 %v1064_v5, %v667_v4 }
 0x119   : > { %v679_v10 = vadd.f32 %v1065_v6, %v673_v8 }
 0x11b   : > { %v681_v12 = vmax.f32 %v679_v10, 0.0 }
 0x11d   : > { %v973_v13 = vpack.c.bf16 %v681_v12, %v680_v11 }
 0x11f   : > { %974 = vst [vmem:[%s1383_s19] sm:$0xff] %v973_v13  }
 0x120 PF: > { %692 = sbr.rel (!%p1274_p12) target bundleno = 297 (0x129), region = 127  ;;  %s947_s21 = sshll.u32 (%p1274_p12), %s1140_s22, 2 }
 0x121   : > { %s697_s8 = scalar_lea.vmem (%p1274_p12), %s1463_s4, %s947_s21 }
 0x126   : > { %v714_v14 = vld [vmem:[%s1383_s19] sm:$0xf]  ;;  %v716_v15 = vld [vmem:[%s1383_s19 + $0x4] sm:$0xf] }
 0x127   : > { %715 = vst [vmem:[%s697_s8] sm:$0xf] %v714_v14 }
 0x128   : > { %717 = vst [vmem:[%s697_s8 + $0x8] sm:$0xf] %v716_v15 }
 0x129 PF: > { %s14_s25 = sadd.s32 1, %s1152_s25   ;;  %s1476_s19 = sld [smem:[#allocation6_spill]] }
 0x12a   : > { %p11_p6 = scmp.ge.s32.totalorder %s14_s25, 20   ;;  %s1477_s20 = sld [smem:[#allocation9_spill]] }
 0x12b   : > { %s1478_s14 = sld [smem:[#allocation7_spill]]  ;;  %s1480_s15 = smov %s1116_s16 }
 0x12c   : > { %s1479_s9 = sld [smem:[#allocation8_spill]]  ;;  %s1481_s16 = smov %s1272_s13 }
 0x12d   : > { %s1482_s17 = smov %s1124_s18  ;;  %s1483_s18 = smov %s1269_s12 }
 0x12e   : > { %s1484_s21 = smov %s1144_s23  ;;  %s1485_s22 = smov %s1148_s24 }
 0x12f   :  { %13 = sbr.rel (!%p11_p6) target bundleno = 8 (0x8), region = 213 }
 0x131   : > { %s1486_s23 = smov %s1478_s14 }
 0x132   : > { %s1487_s24 = smov %s1479_s9 }

// kernel: electronics_classifier_forward.39
= control target key start
LH: loop header
LB: loop body
LE: loop exit
PB: predicated region body
PF: predicated region fallthrough
CT: control target
= control target key end

     0   :  { %s1370_s15 = smov 0   ;;  %s1372_s16 = smov 0   ;;  %s1697_s0 = inlined_call_operand.vmem [shape: bf16[16,2304], index: 0, kind: input, shape index: {}]   ;;  %s1698_s1 = inlined_call_operand.vmem [shape: bf16[2304,512], index: 1, kind: input, shape index: {}]   ;;  %s1699_s2 = inlined_call_operand.vmem [shape: f32[1,512], index: 2, kind: input, shape index: {}]   ;;  %s1700_s3 = inlined_call_operand.vmem [shape: f32[1,512], index: 3, kind: input, shape index: {}]   ;;  %s1701_s4 = inlined_call_operand.vmem [shape: bf16[16,512], index: 4, kind: output, shape index: {}]  }
   0x1   :  { %s1374_s17 = smov 0   ;;  %s1376_s18 = smov 0  }
   0x2   :  { %s1378_s19 = smov 0   ;;  %s1380_s20 = smov 0  }
   0x3   :  { %s1382_s21 = smov 0   ;;  %s1384_s22 = smov 0  }
   0x4   :  { %s1386_s23 = smov 0   ;;  %s1388_s24 = smov 0  }
   0x5   :  { %s1390_s25 = smov 0  }
   0x6 LB: > { %1705 = sst [smem:[#allocation6_spill]] %s1322_s20  ;;  %s969_s26 = sadd.s32 4294967295, %s1342_s25   ;;  %s1342_s25 = sphi %s1390_s25, %s14_s25   ;;  %s1338_s24 = sphi %s1388_s24, %s1723_s24   ;;  %s1334_s23 = sphi %s1386_s23, %s1722_s23   ;;  %s1330_s22 = sphi %s1384_s22, %s1721_s22   ;;  %s1326_s21 = sphi %s1382_s21, %s1720_s21   ;;  %s1322_s20 = sphi %s1380_s20, %s1713_s20   ;;  %s1318_s19 = sphi %s1378_s19, %s1712_s19   ;;  %s1314_s18 = sphi %s1376_s18, %s1719_s18   ;;  %s1310_s17 = sphi %s1374_s17, %s1718_s17   ;;  %s1306_s16 = sphi %s1372_s16, %s1717_s16   ;;  %s1302_s15 = sphi %s1370_s15, %s1716_s15  }
   0x7   : > { %s26_s27 = sadd.s32 1, %s1334_s23  ;;  %s29_s28 = sadd.s32 1, %s1338_s24 }
   0x8   : > { %p27_p0 = scmp.ge.s32.totalorder %s26_s27, 9  ;;  %s42_s29 = sadd.s32 1, %s1322_s20 }
   0x9   : > { %p49_p1 = scmp.ne.s32.totalorder %s1322_s20, %s1318_s19  ;;  %p50_p2 = scmp.eq.s32.totalorder %s1342_s25, 0 }
   0xa   : > { %s1725_s27 = smov (%p27_p0, %s26_s27), 0  ;;  %s1727_s28 = smov (!%p27_p0, %s29_s28), %s1338_s24 }
   0xb   : > { %1706 = sst [smem:[#allocation7_spill]] %s1725_s27  ;;  %s38_s30 = ssub.s32 %s1334_s23, %s1725_s27 }
   0xc   : > { %p31_p3 = scmp.ge.s32.totalorder %s1727_s28, 2  ;;  %p40_p4 = scmp.eq.s32.totalorder %s38_s30, 0 }
   0xd   : > { %p1437_p5 = por %p50_p2, %p49_p1  ;;  %s70_s6 = sadd.s32 1, %s1314_s18 }
   0xe   : > { %s1729_s28 = smov (%p31_p3, %s1727_s28), 0  ;;  %p77_p6 = scmp.ne.s32.totalorder %s1314_s18, %s1310_s17 }
   0xf   : > { %1708 = sst [smem:[#allocation8_spill]] %s1729_s28  ;;  %s66_s8 = ssub.s32 %s1338_s24, %s1729_s28 }
  0x10   : > { %s1445_s7 = scalar_select %p40_p4, %s1322_s20, %s42_s29  }
  0x11   : > { %s67_s9 = sor.u32 %s66_s8, %s38_s30  ;;  %p148_p7 = scmp.eq.s32.totalorder %s66_s8, 0 }
  0x12   : > { %1709 = sst [smem:[#allocation9_spill]] %s1445_s7  ;;  %p68_p8 = scmp.eq.s32.totalorder %s67_s9, 0 }
  0x13   : > { %p1451_p9 = por %p77_p6, %p50_p2  ;;  %s150_s11 = sadd.s32 1, %s1306_s16 }
  0x14   : > { %p160_p10 = scmp.ne.s32.totalorder %s1306_s16, %s1302_s15  ;;  %p161_p11 = scmp.eq.s32.totalorder %s969_s26, 17 }
  0x15   : > { %s1459_s12 = scalar_select %p68_p8, %s1314_s18, %s70_s6  }
  0x16   : > { %s1462_s13 = scalar_select %p148_p7, %s1306_s16, %s150_s11  }
  0x17   : > { %p1464_p12 = por %p161_p11, %p160_p10  ;;  %p972_p13 = scmp.ge.s32.totalorder %s1342_s25, 18 }
  0x19   : > { %183 = sbr.rel (%p972_p13) target bundleno = 75 (0x4b), region = 16 }
  0x1e   : > { %186 = sbr.rel (!%p1437_p5) target bundleno = 36 (0x24), region = 20  ;;  %s188_s29 = sand.u32 (%p1437_p5), 1, %s1322_s20  }
  0x1f   : > { %s1130_s30 = sshll.u32 (%p1437_p5), %s1334_s23, 3  ;;  %s973_s8 = sshll.u32 (%p1437_p5), %s188_s29, 4 }
  0x20   : > { %s196_s11 = scalar_lea.vmem (%p1437_p5), %s1697_s0, %s1130_s30  ;;  %s190_s26 = scalar_lea.vmem (%p1437_p5), [#allocation3], %s973_s8 }
  0x21   : > { %v227_v0 = vld [vmem:[%s196_s11] sm:$0xff] (%p1437_p5)  ;;  %v229_v1 = vld [vmem:[%s196_s11 + $0x48] sm:$0xff] (%p1437_p5) }
  0x22   : > { %228 = vst [vmem:[%s190_s26] sm:$0xff] (%p1437_p5), %v227_v0 }
  0x23   : > { %230 = vst [vmem:[%s190_s26 + $0x8] sm:$0xff] %v229_v1 }
  0x24 PF: > { %236 = sbr.rel (!%p1451_p9) target bundleno = 75 (0x4b), region = 58  ;;  %s238_s5 = sand.u32 (%p1451_p9), 1, %s1314_s18  }
  0x25   : > { %s978_s28 = sshll.u32 (%p1451_p9), %s1338_s24, 1  ;;  %s976_s27 = sshll.u32 (%p1451_p9), %s238_s5, 8 }
  0x26   : > { %s1131_s29 = sshll.u32 (%p1451_p9), %s1334_s23, 7 }
  0x27   : > { %s244_s7 = sadd.s32 (%p1451_p9), %s1131_s29, %s978_s28  ;;  %s1489_s28 = scalar_lea.vmem (%p1451_p9), [#allocation4], %s976_s27 }
  0x28   : > { %s980_s20 = sshll.u32 (%p1451_p9), %s244_s7, 2 }
  0x29   : > { %s1484_s9 = scalar_lea.vmem %s1698_s1, %s980_s20 }
  0x2a   : > { %v337_v2 = vld [vmem:[%s1484_s9] sm:$0xff]  ;;  %v339_v3 = vld [vmem:[%s1484_s9 + $0x10] sm:$0xff] }
  0x2b   : > { %v341_v4 = vld [vmem:[%s1484_s9 + $0x20] sm:$0xff]  ;;  %338 = vst [vmem:[%s1489_s28] sm:$0xff] %v337_v2  ;;  %v343_v5 = vld [vmem:[%s1484_s9 + $0x30] sm:$0xff] }
  0x2c   : > { %340 = vst [vmem:[%s1489_s28 + $0x8] sm:$0xff] %v339_v3  ;;  %v345_v6 = vld [vmem:[%s1484_s9 + $0x40] sm:$0xff]  ;;  %v347_v7 = vld [vmem:[%s1484_s9 + $0x50] sm:$0xff] }
  0x2d   : > { %342 = vst [vmem:[%s1489_s28 + $0x10] sm:$0xff] %v341_v4  ;;  %v349_v8 = vld [vmem:[%s1484_s9 + $0x60] sm:$0xff]  ;;  %v351_v9 = vld [vmem:[%s1484_s9 + $0x70] sm:$0xff] }
  0x2e   : > { %344 = vst [vmem:[%s1489_s28 + $0x18] sm:$0xff] %v343_v5  ;;  %v353_v10 = vld [vmem:[%s1484_s9 + $0x80] sm:$0xff]  ;;  %v355_v11 = vld [vmem:[%s1484_s9 + $0x90] sm:$0xff] }
  0x2f   : > { %346 = vst [vmem:[%s1489_s28 + $0x20] sm:$0xff] %v345_v6  ;;  %v357_v12 = vld [vmem:[%s1484_s9 + $0xa0] sm:$0xff]  ;;  %v359_v13 = vld [vmem:[%s1484_s9 + $0xb0] sm:$0xff] }
  0x30   : > { %348 = vst [vmem:[%s1489_s28 + $0x28] sm:$0xff] %v347_v7  ;;  %v361_v14 = vld [vmem:[%s1484_s9 + $0xc0] sm:$0xff]  ;;  %v363_v15 = vld [vmem:[%s1484_s9 + $0xd0] sm:$0xff] }
  0x31   : > { %350 = vst [vmem:[%s1489_s28 + $0x30] sm:$0xff] %v349_v8  ;;  %v365_v16 = vld [vmem:[%s1484_s9 + $0xe0] sm:$0xff]  ;;  %v367_v17 = vld [vmem:[%s1484_s9 + $0xf0] sm:$0xff] }
  0x32   : > { %352 = vst [vmem:[%s1489_s28 + $0x38] sm:$0xff] %v351_v9  ;;  %v369_v18 = vld [vmem:[%s1484_s9 + $0x100] sm:$0xff]  ;;  %v371_v19 = vld [vmem:[%s1484_s9 + $0x110] sm:$0xff] }
  0x33   : > { %354 = vst [vmem:[%s1489_s28 + $0x40] sm:$0xff] %v353_v10  ;;  %v373_v20 = vld [vmem:[%s1484_s9 + $0x120] sm:$0xff]  ;;  %v375_v21 = vld [vmem:[%s1484_s9 + $0x130] sm:$0xff] }
  0x34   : > { %356 = vst [vmem:[%s1489_s28 + $0x48] sm:$0xff] %v355_v11  ;;  %v377_v22 = vld [vmem:[%s1484_s9 + $0x140] sm:$0xff]  ;;  %v379_v23 = vld [vmem:[%s1484_s9 + $0x150] sm:$0xff] }
  0x35   : > { %358 = vst [vmem:[%s1489_s28 + $0x50] sm:$0xff] %v357_v12  ;;  %v381_v24 = vld [vmem:[%s1484_s9 + $0x160] sm:$0xff]  ;;  %v383_v25 = vld [vmem:[%s1484_s9 + $0x170] sm:$0xff] }
  0x36   : > { %360 = vst [vmem:[%s1489_s28 + $0x58] sm:$0xff] %v359_v13  ;;  %v385_v26 = vld [vmem:[%s1484_s9 + $0x180] sm:$0xff]  ;;  %v387_v27 = vld [vmem:[%s1484_s9 + $0x190] sm:$0xff] }
  0x37   : > { %362 = vst [vmem:[%s1489_s28 + $0x60] sm:$0xff] %v361_v14  ;;  %v389_v28 = vld [vmem:[%s1484_s9 + $0x1a0] sm:$0xff]  ;;  %v391_v29 = vld [vmem:[%s1484_s9 + $0x1b0] sm:$0xff] }
  0x38   : > { %364 = vst [vmem:[%s1489_s28 + $0x68] sm:$0xff] %v363_v15  ;;  %v393_v30 = vld [vmem:[%s1484_s9 + $0x1c0] sm:$0xff]  ;;  %v395_v31 = vld [vmem:[%s1484_s9 + $0x1d0] sm:$0xff] }
  0x39   : > { %366 = vst [vmem:[%s1489_s28 + $0x70] sm:$0xff] %v365_v16  ;;  %v397_v32 = vld [vmem:[%s1484_s9 + $0x1e0] sm:$0xff]  ;;  %v399_v33 = vld [vmem:[%s1484_s9 + $0x1f0] sm:$0xff] }
  0x3a   : > { %368 = vst [vmem:[%s1489_s28 + $0x78] sm:$0xff] %v367_v17 }
  0x3b   : > { %370 = vst [vmem:[%s1489_s28 + $0x80] sm:$0xff] %v369_v18 }
  0x3c   : > { %372 = vst [vmem:[%s1489_s28 + $0x88] sm:$0xff] %v371_v19 }
  0x3d   : > { %374 = vst [vmem:[%s1489_s28 + $0x90] sm:$0xff] %v373_v20 }
  0x3e   : > { %376 = vst [vmem:[%s1489_s28 + $0x98] sm:$0xff] %v375_v21 }
  0x3f   : > { %378 = vst [vmem:[%s1489_s28 + $0xa0] sm:$0xff] %v377_v22 }
  0x40   : > { %380 = vst [vmem:[%s1489_s28 + $0xa8] sm:$0xff] %v379_v23 }
  0x41   : > { %382 = vst [vmem:[%s1489_s28 + $0xb0] sm:$0xff] %v381_v24 }
  0x42   : > { %384 = vst [vmem:[%s1489_s28 + $0xb8] sm:$0xff] %v383_v25 }
  0x43   : > { %386 = vst [vmem:[%s1489_s28 + $0xc0] sm:$0xff] %v385_v26 }
  0x44   : > { %388 = vst [vmem:[%s1489_s28 + $0xc8] sm:$0xff] %v387_v27 }
  0x45   : > { %390 = vst [vmem:[%s1489_s28 + $0xd0] sm:$0xff] %v389_v28 }
  0x46   : > { %392 = vst [vmem:[%s1489_s28 + $0xd8] sm:$0xff] %v391_v29 }
  0x47   : > { %394 = vst [vmem:[%s1489_s28 + $0xe0] sm:$0xff] %v393_v30 }
  0x48   : > { %396 = vst [vmem:[%s1489_s28 + $0xe8] sm:$0xff] %v395_v31 }
  0x49   : > { %398 = vst [vmem:[%s1489_s28 + $0xf0] sm:$0xff] %v397_v32 }
  0x4a   : > { %400 = vst [vmem:[%s1489_s28 + $0xf8] sm:$0xff] %v399_v33 }
  0x4b PF: > { %p981_p0 = scmp.ge.s32.totalorder %s1342_s25, 1  ;;  %p421_p1 = scmp.lt.s32.totalorder %s1342_s25, 19 }
  0x4d   : > { %p422_p2 = pnand %p981_p0, %p421_p1 }
  0x4e   : > { %s428_s20 = sand.u32 (!%p422_p2), 1, %s1318_s19   ;;  %s435_s27 = sand.u32 (!%p422_p2), 1, %s1310_s17  }
  0x4f   : > { %425 = sbr.rel (%p422_p2) target bundleno = 301 (0x12d), region = 104  ;;  %s982_s7 = sshll.u32 (!%p422_p2), %s428_s20, 4 }
  0x50   : > { %s983_s10 = sshll.u32 (!%p422_p2), %s435_s27, 8  ;;  %s468_s8 = sand.u32 (!%p422_p2), 1, %s1302_s15  }
  0x51   : > { %s985_s11 = sshll.u32 (!%p422_p2), %s1330_s22, 1  ;;  %s984_s26 = sshll.u32 (!%p422_p2), %s468_s8, 4 }
  0x52   : > { %p476_p3 = scmp.lt.s32.totalorder (!%p422_p2), %s985_s11, 3  ;;  %s1568_s19 = scalar_lea.vmem (!%p422_p2), [#allocation3], %s982_s7 }
  0x53   : > { %s1570_s17 = scalar_lea.vmem (!%p422_p2), [#allocation4], %s983_s10  ;;  %s1572_s15 = scalar_lea.vmem (!%p422_p2), [#allocation5], %s984_s26 }
  0x54   : > { %s1731_s11 = smov (!%p476_p3, %s985_s11), 3  ;;  %p987_p4 = scmp.ne.s32.totalorder %s1326_s21, 0 }
  0x55   : > { %s478_s6 = scalar_lea.vmem %s1699_s2, %s1731_s11  ;;  %s483_s28 = scalar_lea.vmem %s1700_s3, %s1731_s11 }
  0x56   : > { %490 = sbr.rel (%p987_p4) target bundleno = 96 (0x60), region = 116 }
  0x5b   : > { %v1344_v34 = vmov 0.0  }
  0x5c   : > { %491 = vst [vmem:[#allocation2 + $0x10] sm:$0xff] %v1344_v34 }
  0x5d   : > { %492 = vst [vmem:[#allocation2] sm:$0xff] %v1344_v34 }
  0x5e   : > { %493 = vst [vmem:[#allocation2 + $0x18] sm:$0xff] %v1344_v34 }
  0x5f   : > { %494 = vst [vmem:[#allocation2 + $0x8] sm:$0xff] %v1344_v34 }
  0x60 PF: > { %v1054_v35 = vld [vmem:[%s1570_s17 + $0x70] sm:$0xf]  ;;  %v1149_v36 = vld [vmem:[%s1570_s17 + $0x74] sm:$0xf0]  ;;  %v1148_v40 = vld [vmem:[%s1570_s17 + $0x74] sm:$0xf] }
  0x61   : > { %v1118_v37 = vld [vmem:[%s1570_s17 + $0xf0] sm:$0xf]  ;;  %v1055_v38 = vor.u32 %v1149_v36, %v1054_v35  ;;  %v1165_v39 = vld [vmem:[%s1570_s17 + $0xf4] sm:$0xf0]  ;;  %v1056_v41 = vld [vmem:[%s1570_s17 + $0x78] sm:$0xf0] }
  0x62   : > { %v1119_v42 = vor.u32 %v1165_v39, %v1118_v37  ;;  %v1059_v43 = vor.u32 %v1148_v40, %v1056_v41  ;;  %v1164_v44 = vld [vmem:[%s1570_s17 + $0xf4] sm:$0xf]  ;;  %v1120_v45 = vld [vmem:[%s1570_s17 + $0xf8] sm:$0xf0]  ;;  %v1046_v46 = vld [vmem:[%s1570_s17 + $0x60] sm:$0xf] }
  0x63   : > { %703 = vmatpush.bf16.msra.mxu0 %v1055_v38  ;;  %v1123_v47 = vor.u32 %v1164_v44, %v1120_v45  ;;  %v1147_v48 = vld [vmem:[%s1570_s17 + $0x64] sm:$0xf0]  ;;  %v1110_v49 = vld [vmem:[%s1570_s17 + $0xe0] sm:$0xf]  ;;  %v1146_v53 = vld [vmem:[%s1570_s17 + $0x64] sm:$0xf] }
  0x64   : > { %v1163_v50 = vld [vmem:[%s1570_s17 + $0xe4] sm:$0xf0]  ;;  %717 = vmatpush.bf16.msra.mxu1 %v1119_v42  ;;  %731 = vmatpush.bf16.msra.mxu2 %v1059_v43  ;;  %v1047_v51 = vor.u32 %v1147_v48, %v1046_v46  ;;  %v1048_v54 = vld [vmem:[%s1570_s17 + $0x68] sm:$0xf0]  ;;  %v1162_v55 = vld [vmem:[%s1570_s17 + $0xe4] sm:$0xf] }
  0x65   : > { %v1111_v52 = vor.u32 %v1163_v50, %v1110_v49  ;;  %745 = vmatpush.bf16.msra.mxu3 %v1123_v47  ;;  %v1051_v56 = vor.u32 %v1146_v53, %v1048_v54  ;;  %v1112_v57 = vld [vmem:[%s1570_s17 + $0xe8] sm:$0xf0]  ;;  %v1038_v58 = vld [vmem:[%s1570_s17 + $0x50] sm:$0xf]  ;;  %v1145_v59 = vld [vmem:[%s1570_s17 + $0x54] sm:$0xf0] }
  0x66   : > { %v1115_v60 = vor.u32 %v1162_v55, %v1112_v57  ;;  %v1102_v61 = vld [vmem:[%s1570_s17 + $0xd0] sm:$0xf]  ;;  %v1161_v62 = vld [vmem:[%s1570_s17 + $0xd4] sm:$0xf0]  ;;  %v1144_v63 = vld [vmem:[%s1570_s17 + $0x54] sm:$0xf]  ;;  %v1039_v0 = vor.u32 %v1145_v59, %v1038_v58 }
  0x67   : > { %704 = vmatpush.bf16.msra.mxu0 %v1047_v51  ;;  %v1040_v1 = vld [vmem:[%s1570_s17 + $0x58] sm:$0xf0]  ;;  %v1160_v2 = vld [vmem:[%s1570_s17 + $0xd4] sm:$0xf]  ;;  %v1103_v4 = vor.u32 %v1161_v62, %v1102_v61  ;;  %v1030_v6 = vld [vmem:[%s1570_s17 + $0x40] sm:$0xf] }
  0x68   : > { %v1104_v3 = vld [vmem:[%s1570_s17 + $0xd8] sm:$0xf0]  ;;  %718 = vmatpush.bf16.msra.mxu1 %v1111_v52  ;;  %732 = vmatpush.bf16.msra.mxu2 %v1051_v56  ;;  %v1043_v5 = vor.u32 %v1144_v63, %v1040_v1  ;;  %v1143_v7 = vld [vmem:[%s1570_s17 + $0x44] sm:$0xf0]  ;;  %v1094_v8 = vld [vmem:[%s1570_s17 + $0xc0] sm:$0xf] }
  0x69   : > { %746 = vmatpush.bf16.msra.mxu3 %v1115_v60  ;;  %v1107_v9 = vor.u32 %v1160_v2, %v1104_v3  ;;  %v1159_v10 = vld [vmem:[%s1570_s17 + $0xc4] sm:$0xf0]  ;;  %v1142_v11 = vld [vmem:[%s1570_s17 + $0x44] sm:$0xf]  ;;  %v1032_v12 = vld [vmem:[%s1570_s17 + $0x48] sm:$0xf0]  ;;  %v1031_v15 = vor.u32 %v1143_v7, %v1030_v6 }
  0x6a   : > { %v1158_v13 = vld [vmem:[%s1570_s17 + $0xc4] sm:$0xf]  ;;  %v1096_v14 = vld [vmem:[%s1570_s17 + $0xc8] sm:$0xf0]  ;;  %v1095_v16 = vor.u32 %v1159_v10, %v1094_v8  ;;  %v1035_v17 = vor.u32 %v1142_v11, %v1032_v12  ;;  %v1022_v18 = vld [vmem:[%s1570_s17 + $0x30] sm:$0xf] }
  0x6b   : > { %705 = vmatpush.bf16.msra.mxu0 %v1039_v0  ;;  %v1141_v19 = vld [vmem:[%s1570_s17 + $0x34] sm:$0xf0]  ;;  %v1086_v20 = vld [vmem:[%s1570_s17 + $0xb0] sm:$0xf]  ;;  %v1099_v21 = vor.u32 %v1158_v13, %v1096_v14  ;;  %v1140_v23 = vld [vmem:[%s1570_s17 + $0x34] sm:$0xf] }
  0x6c   : > { %719 = vmatpush.bf16.msra.mxu1 %v1103_v4  ;;  %733 = vmatpush.bf16.msra.mxu2 %v1043_v5  ;;  %v1157_v22 = vld [vmem:[%s1570_s17 + $0xb4] sm:$0xf0]  ;;  %v1024_v24 = vld [vmem:[%s1570_s17 + $0x38] sm:$0xf0]  ;;  %v1156_v25 = vld [vmem:[%s1570_s17 + $0xb4] sm:$0xf]  ;;  %v1023_v27 = vor.u32 %v1141_v19, %v1022_v18 }
  0x6d   : > { %747 = vmatpush.bf16.msra.mxu3 %v1107_v9  ;;  %v1088_v26 = vld [vmem:[%s1570_s17 + $0xb8] sm:$0xf0]  ;;  %v1087_v28 = vor.u32 %v1157_v22, %v1086_v20  ;;  %v1027_v29 = vor.u32 %v1140_v23, %v1024_v24  ;;  %v1014_v30 = vld [vmem:[%s1570_s17 + $0x20] sm:$0xf]  ;;  %v1139_v31 = vld [vmem:[%s1570_s17 + $0x24] sm:$0xf0] }
  0x6e   : > { %v1078_v32 = vld [vmem:[%s1570_s17 + $0xa0] sm:$0xf]  ;;  %v1091_v33 = vor.u32 %v1156_v25, %v1088_v26  ;;  %v1155_v34 = vld [vmem:[%s1570_s17 + $0xa4] sm:$0xf0]  ;;  %v1138_v35 = vld [vmem:[%s1570_s17 + $0x24] sm:$0xf]  ;;  %v1015_v39 = vor.u32 %v1139_v31, %v1014_v30 }
  0x6f   : > { %706 = vmatpush.bf16.msra.mxu0 %v1031_v15  ;;  %v1016_v36 = vld [vmem:[%s1570_s17 + $0x28] sm:$0xf0]  ;;  %v1154_v37 = vld [vmem:[%s1570_s17 + $0xa4] sm:$0xf]  ;;  %v1079_v40 = vor.u32 %v1155_v34, %v1078_v32  ;;  %v1006_v42 = vld [vmem:[%s1570_s17 + $0x10] sm:$0xf] }
  0x70   : > { %720 = vmatpush.bf16.msra.mxu1 %v1095_v16  ;;  %734 = vmatpush.bf16.msra.mxu2 %v1035_v17  ;;  %v1080_v38 = vld [vmem:[%s1570_s17 + $0xa8] sm:$0xf0]  ;;  %v1019_v41 = vor.u32 %v1138_v35, %v1016_v36  ;;  %v1137_v43 = vld [vmem:[%s1570_s17 + $0x14] sm:$0xf0]  ;;  %v1070_v44 = vld [vmem:[%s1570_s17 + $0x90] sm:$0xf] }
  0x71   : > { %748 = vmatpush.bf16.msra.mxu3 %v1099_v21  ;;  %v1083_v45 = vor.u32 %v1154_v37, %v1080_v38  ;;  %v1153_v46 = vld [vmem:[%s1570_s17 + $0x94] sm:$0xf0]  ;;  %v1136_v47 = vld [vmem:[%s1570_s17 + $0x14] sm:$0xf]  ;;  %v1008_v48 = vld [vmem:[%s1570_s17 + $0x18] sm:$0xf0]  ;;  %v1007_v51 = vor.u32 %v1137_v43, %v1006_v42 }
  0x72   : > { %v1152_v49 = vld [vmem:[%s1570_s17 + $0x94] sm:$0xf]  ;;  %v1072_v50 = vld [vmem:[%s1570_s17 + $0x98] sm:$0xf0]  ;;  %v1071_v52 = vor.u32 %v1153_v46, %v1070_v44  ;;  %v1011_v53 = vor.u32 %v1136_v47, %v1008_v48  ;;  %v998_v54 = vld [vmem:[%s1570_s17] sm:$0xf] }
  0x73   : > { %707 = vmatpush.bf16.msra.mxu0 %v1023_v27  ;;  %v1135_v55 = vld [vmem:[%s1570_s17 + $0x4] sm:$0xf0]  ;;  %v1062_v56 = vld [vmem:[%s1570_s17 + $0x80] sm:$0xf]  ;;  %v1075_v57 = vor.u32 %v1152_v49, %v1072_v50  ;;  %v1134_v59 = vld [vmem:[%s1570_s17 + $0x4] sm:$0xf] }
  0x74   : > { %721 = vmatpush.bf16.msra.mxu1 %v1087_v28  ;;  %735 = vmatpush.bf16.msra.mxu2 %v1027_v29  ;;  %v1151_v58 = vld [vmem:[%s1570_s17 + $0x84] sm:$0xf0]  ;;  %v1000_v60 = vld [vmem:[%s1570_s17 + $0x8] sm:$0xf0]  ;;  %v1150_v61 = vld [vmem:[%s1570_s17 + $0x84] sm:$0xf]  ;;  %v999_v63 = vor.u32 %v1135_v55, %v998_v54 }
  0x75   : > { %749 = vmatpush.bf16.msra.mxu3 %v1091_v33  ;;  %v1064_v62 = vld [vmem:[%s1570_s17 + $0x88] sm:$0xf0]  ;;  %v990_v0 = vld [vmem:[%s1568_s19] sm:$0xf]  ;;  %v1133_v1 = vld [vmem:[%s1568_s19 + $0x4] sm:$0xf0]  ;;  %v1063_v2 = vor.u32 %v1151_v58, %v1062_v56  ;;  %v1003_v3 = vor.u32 %v1134_v59, %v1000_v60 }
  0x76   : > { %v1132_v4 = vld [vmem:[%s1568_s19 + $0x4] sm:$0xf]  ;;  %v992_v5 = vld [vmem:[%s1568_s19 + $0x8] sm:$0xf0]  ;;  %v1067_v6 = vor.u32 %v1150_v61, %v1064_v62  ;;  %v991_v7 = vor.u32 %v1133_v1, %v990_v0  ;;  %p1124_p5 = scmp.ne.s32.totalorder %s1326_s21, 8 }
  0x77   : > { %708 = vmatpush.bf16.msra.mxu0 %v1015_v39  ;;  %v995_v8 = vor.u32 %v1132_v4, %v992_v5  ;;  %v495_v10 = vld [vmem:[#allocation2 + $0x10] sm:$0xff]  ;;  %v496_v15 = vld [vmem:[#allocation2] sm:$0xff]  ;;  %v497_v19 = vld [vmem:[#allocation2 + $0x18] sm:$0xff] }
  0x78   : > { %722 = vmatpush.bf16.msra.mxu1 %v1079_v40  ;;  %736 = vmatpush.bf16.msra.mxu2 %v1019_v41  ;;  %v498_v25 = vld [vmem:[#allocation2 + $0x8] sm:$0xff] }
  0x79   : > { %750 = vmatpush.bf16.msra.mxu3 %v1083_v45 }
  0x7b   : > { %709 = vmatpush.bf16.msra.mxu0 %v1007_v51 }
  0x7c   : > { %723 = vmatpush.bf16.msra.mxu1 %v1071_v52  ;;  %737 = vmatpush.bf16.msra.mxu2 %v1011_v53 }
  0x7d   : > { %751 = vmatpush.bf16.msra.mxu3 %v1075_v57 }
  0x7f   : > { %710 = vmatpush.bf16.msra.mxu0 %v999_v63 }
  0x80   : > { %724 = vmatpush.bf16.msra.mxu1 %v1063_v2  ;;  %738 = vmatpush.bf16.msra.mxu2 %v1003_v3 }
  0x81   : > { %752 = vmatpush.bf16.msra.mxu3 %v1067_v6 }
  0x82   : > { %711 = vmatmul.bf16.vlgmr.msra.gmra.mxu0 %v991_v7 }
  0x83   : > { %725 = vmatmul.bf16.vlgmr.msra.gmra.mxu1 %v995_v8  ;;  %739 = vmatmul.bf16.vlgmr.msra.gmra.mxu2 %v991_v7 }
  0x84   : > { %753 = vmatmul.bf16.vlgmr.msra.gmra.mxu3 %v995_v8 }
  0xff   : > { %v712_v9 = vpop.f32.mrf.mxu0 }
 0x100   : > { %v726_v11 = vpop.f32.mrf.mxu1 }
 0x101   : > { %v727_v12 = vadd.f32 %v726_v11, %v712_v9 }
 0x103   : > { %v759_v13 = vadd.f32 %v727_v12, %v495_v10 }
 0x105   : > { %763 = vst [vmem:[#allocation2 + $0x10] sm:$0xff] %v759_v13 }
 0x106   : > { %v740_v14 = vpop.f32.mrf.mxu2 }
 0x107   : > { %v754_v16 = vpop.f32.mrf.mxu3  ;;  %v714_v17 = vpop.f32.mrf.mxu0 }
 0x108   : > { %v755_v18 = vadd.f32 %v754_v16, %v740_v14  ;;  %v728_v20 = vpop.f32.mrf.mxu1 }
 0x109   : > { %v729_v21 = vadd.f32 %v728_v20, %v714_v17 }
 0x10a   : > { %v760_v22 = vadd.f32 %v755_v18, %v496_v15 }
 0x10b   : > { %v761_v23 = vadd.f32 %v729_v21, %v497_v19 }
 0x10c   : > { %764 = vst [vmem:[#allocation2] sm:$0xff] %v760_v22 }
 0x10d   : > { %765 = vst [vmem:[#allocation2 + $0x18] sm:$0xff] %v761_v23 }
 0x10e   : > { %v742_v24 = vpop.f32.mrf.mxu2 }
 0x10f   : > { %v756_v26 = vpop.f32.mrf.mxu3 }
 0x110   : > { %v757_v27 = vadd.f32 %v756_v26, %v742_v24  ;;  %770 = sbr.rel (%p1124_p5) target bundleno = 293 (0x125), region = 120 }
 0x112   : > { %v762_v28 = vadd.f32 %v757_v27, %v498_v25 }
 0x114   : > { %766 = vst [vmem:[#allocation2 + $0x8] sm:$0xff] %v762_v28 }
 0x115   : > { %v771_v29 = vld [vmem:[#allocation2 + $0x10] sm:$0xff]  ;;  %v772_v30 = vld [vmem:[#allocation2] sm:$0xff]  ;;  %v773_v35 = vld [vmem:[#allocation2 + $0x18] sm:$0xff] }
 0x116   : > { %v775_v31 = vld [vmem:[%s478_s6] sm:$0x3] }
 0x117   : > { %v777_v32 = vperm.slane %v775_v31, 0  ;;  %v778_v33 = vperm.slane %v775_v31, 1  ;;  %v785_v34 = vld [vmem:[%s483_s28] sm:$0x3] }
 0x118   : > { %v787_v37 = vperm.slane %v785_v34, 0  ;;  %v788_v38 = vperm.slane %v785_v34, 1 }
 0x119   : > { %v781_v39 = vmul.f32 %v777_v32, %v771_v29  ;;  %v782_v40 = vmul.f32 %v778_v33, %v772_v30  ;;  %v783_v41 = vmul.f32 %v777_v32, %v773_v35 }
 0x11b   : > { %v774_v36 = vld [vmem:[#allocation2 + $0x8] sm:$0xff]  ;;  %v791_v43 = vadd.f32 %v787_v37, %v781_v39  ;;  %v792_v44 = vadd.f32 %v788_v38, %v782_v40  ;;  %v793_v45 = vadd.f32 %v787_v37, %v783_v41 }
 0x11c   : > { %v784_v42 = vmul.f32 %v778_v33, %v774_v36 }
 0x11d   : > { %v795_v47 = vmax.f32 %v791_v43, 0.0  ;;  %v796_v48 = vmax.f32 %v792_v44, 0.0  ;;  %v797_v49 = vmax.f32 %v793_v45, 0.0 }
 0x11e   : > { %v794_v46 = vadd.f32 %v788_v38, %v784_v42 }
 0x11f   : > { %v799_v51 = vpack.c.bf16 %v796_v48, %v795_v47 }
 0x120   : > { %v798_v50 = vmax.f32 %v794_v46, 0.0 }
 0x121   : > { %801 = vst [vmem:[%s1572_s15] sm:$0xff] %v799_v51 }
 0x122   : > { %v800_v52 = vpack.c.bf16 %v798_v50, %v797_v49 }
 0x124   : > { %802 = vst [vmem:[%s1572_s15 + $0x8] sm:$0xff] %v800_v52 }
 0x125 PF: > { %809 = sbr.rel (!%p1464_p12) target bundleno = 301 (0x12d), region = 124  ;;  %s1166_s21 = sshll.u32 (%p1464_p12), %s1330_s22, 3 }
 0x126   : > { %s815_s26 = scalar_lea.vmem (%p1464_p12), %s1701_s4, %s1166_s21 }
 0x128   : > { %v846_v53 = vld [vmem:[%s1572_s15] sm:$0xff] (%p1464_p12) }
 0x129   : > { %847 = vst [vmem:[%s815_s26] sm:$0xff] (%p1464_p12), %v846_v53 }
 0x12b   : > { %v848_v54 = vld [vmem:[%s1572_s15 + $0x8] sm:$0xff] }
 0x12c   : > { %849 = vst [vmem:[%s815_s26 + $0x10] sm:$0xff] %v848_v54 }
 0x12d PF: > { %s14_s25 = sadd.s32 1, %s1342_s25   ;;  %s1712_s19 = sld [smem:[#allocation6_spill]] }
 0x12e   : > { %p11_p6 = scmp.ge.s32.totalorder %s14_s25, 20   ;;  %s1713_s20 = sld [smem:[#allocation9_spill]] }
 0x12f   : > { %s1714_s14 = sld [smem:[#allocation7_spill]]  ;;  %s1716_s15 = smov %s1306_s16 }
 0x130   : > { %s1715_s5 = sld [smem:[#allocation8_spill]]  ;;  %s1717_s16 = smov %s1462_s13 }
 0x131   : > { %s1718_s17 = smov %s1314_s18  ;;  %s1719_s18 = smov %s1459_s12 }
 0x132   : > { %s1720_s21 = smov %s1334_s23  ;;  %s1721_s22 = smov %s1338_s24 }
 0x133   :  { %13 = sbr.rel (!%p11_p6) target bundleno = 6 (0x6), region = 207 }
 0x135   : > { %s1722_s23 = smov %s1714_s14 }
 0x136   : > { %s1723_s24 = smov %s1715_s5 }

// kernel: electronics_classifier_forward.38
= control target key start
LH: loop header
LB: loop body
LE: loop exit
PB: predicated region body
PF: predicated region fallthrough
CT: control target
= control target key end

     0   :  { %s1230_s15 = smov 0   ;;  %s1232_s16 = smov 0   ;;  %s1459_s0 = inlined_call_operand.vmem [shape: bf16[16,256], index: 0, kind: input, shape index: {}]   ;;  %s1460_s1 = inlined_call_operand.vmem [shape: bf16[256,512], index: 1, kind: input, shape index: {}]   ;;  %s1461_s2 = inlined_call_operand.vmem [shape: f32[1,512], index: 2, kind: input, shape index: {}]   ;;  %s1462_s3 = inlined_call_operand.vmem [shape: f32[1,512], index: 3, kind: input, shape index: {}]   ;;  %s1463_s4 = inlined_call_operand.vmem [shape: bf16[16,512], index: 4, kind: output, shape index: {}]  }
   0x1   :  { %s1234_s17 = smov 0   ;;  %s1236_s18 = smov 0  }
   0x2   :  { %s1238_s19 = smov 0  }
   0x3 LB: > { %s29_s20 = sadd.s32 1, %s1199_s18  ;;  %s935_s21 = sadd.s32 4294967295, %s1203_s19   ;;  %s1203_s19 = sphi %s1238_s19, %s14_s19   ;;  %s1199_s18 = sphi %s1236_s18, %s1468_s18   ;;  %s1195_s17 = sphi %s1234_s17, %s1467_s17   ;;  %s1191_s16 = sphi %s1232_s16, %s1466_s16   ;;  %s1187_s15 = sphi %s1230_s15, %s1465_s15  }
   0x4   : > { %p31_p0 = scmp.ge.s32.totalorder %s29_s20, 2  ;;  %p77_p1 = scmp.ne.s32.totalorder %s1191_s16, %s1187_s15 }
   0x5   : > { %p78_p2 = scmp.eq.s32.totalorder %s1203_s19, 0  ;;  %p161_p4 = scmp.eq.s32.totalorder %s935_s21, 1 }
   0x6   : > { %s1470_s20 = smov (%p31_p0, %s29_s20), 0  ;;  %s70_s23 = sadd.s32 1, %s1191_s16 }
   0x7   : > { %p79_p3 = por %p78_p2, %p77_p1  ;;  %s66_s22 = ssub.s32 %s1199_s18, %s1470_s20 }
   0x8   : > { %p68_p5 = scmp.eq.s32.totalorder %s66_s22, 0  ;;  %p1265_p6 = por %p161_p4, %p77_p1 }
   0x9   : > { %p939_p7 = scmp.ge.s32.totalorder %s1203_s19, 2 }
   0xa   : > { %s1270_s25 = scalar_select %p68_p5, %s1191_s16, %s70_s23  }
   0xb   : > { %198 = sbr.rel (%p939_p7) target bundleno = 52 (0x34), region = 20 }
  0x10   : > { %201 = sbr.rel (!%p79_p3) target bundleno = 52 (0x34), region = 24  ;;  %s203_s26 = sand.u32 (%p79_p3), 1, %s1191_s16  }
  0x11   : > { %s1089_s27 = sshll.u32 (%p79_p3), %s1199_s18, 3  ;;  %s940_s28 = sshll.u32 (%p79_p3), %s203_s26, 8 }
  0x12   : > { %s1278_s5 = scalar_lea.vmem (%p79_p3), %s1460_s1, %s1089_s27  ;;  %s1283_s6 = scalar_lea.vmem (%p79_p3), [#allocation3], %s940_s28 }
  0x13   : > { %v302_v0 = vld [vmem:[%s1278_s5] sm:$0xff] (%p79_p3)  ;;  %v304_v1 = vld [vmem:[%s1278_s5 + $0x10] sm:$0xff] (%p79_p3) }
  0x14   : > { %v306_v2 = vld [vmem:[%s1278_s5 + $0x20] sm:$0xff] (%p79_p3)  ;;  %303 = vst [vmem:[%s1283_s6] sm:$0xff] (%p79_p3), %v302_v0  ;;  %v308_v3 = vld [vmem:[%s1278_s5 + $0x30] sm:$0xff] (%p79_p3) }
  0x15   : > { %305 = vst [vmem:[%s1283_s6 + $0x8] sm:$0xff] %v304_v1  ;;  %v310_v4 = vld [vmem:[%s1278_s5 + $0x40] sm:$0xff]  ;;  %v312_v5 = vld [vmem:[%s1278_s5 + $0x50] sm:$0xff] }
  0x16   : > { %307 = vst [vmem:[%s1283_s6 + $0x10] sm:$0xff] %v306_v2  ;;  %v314_v6 = vld [vmem:[%s1278_s5 + $0x60] sm:$0xff]  ;;  %v316_v7 = vld [vmem:[%s1278_s5 + $0x70] sm:$0xff] }
  0x17   : > { %309 = vst [vmem:[%s1283_s6 + $0x18] sm:$0xff] %v308_v3  ;;  %v318_v8 = vld [vmem:[%s1278_s5 + $0x80] sm:$0xff]  ;;  %v320_v9 = vld [vmem:[%s1278_s5 + $0x90] sm:$0xff] }
  0x18   : > { %311 = vst [vmem:[%s1283_s6 + $0x20] sm:$0xff] %v310_v4  ;;  %v322_v10 = vld [vmem:[%s1278_s5 + $0xa0] sm:$0xff]  ;;  %v324_v11 = vld [vmem:[%s1278_s5 + $0xb0] sm:$0xff] }
  0x19   : > { %313 = vst [vmem:[%s1283_s6 + $0x28] sm:$0xff] %v312_v5  ;;  %v326_v12 = vld [vmem:[%s1278_s5 + $0xc0] sm:$0xff]  ;;  %v328_v13 = vld [vmem:[%s1278_s5 + $0xd0] sm:$0xff] }
  0x1a   : > { %315 = vst [vmem:[%s1283_s6 + $0x30] sm:$0xff] %v314_v6  ;;  %v330_v14 = vld [vmem:[%s1278_s5 + $0xe0] sm:$0xff]  ;;  %v332_v15 = vld [vmem:[%s1278_s5 + $0xf0] sm:$0xff] }
  0x1b   : > { %317 = vst [vmem:[%s1283_s6 + $0x38] sm:$0xff] %v316_v7  ;;  %v334_v16 = vld [vmem:[%s1278_s5 + $0x100] sm:$0xff]  ;;  %v336_v17 = vld [vmem:[%s1278_s5 + $0x110] sm:$0xff] }
  0x1c   : > { %319 = vst [vmem:[%s1283_s6 + $0x40] sm:$0xff] %v318_v8  ;;  %v338_v18 = vld [vmem:[%s1278_s5 + $0x120] sm:$0xff]  ;;  %v340_v19 = vld [vmem:[%s1278_s5 + $0x130] sm:$0xff] }
  0x1d   : > { %321 = vst [vmem:[%s1283_s6 + $0x48] sm:$0xff] %v320_v9  ;;  %v342_v20 = vld [vmem:[%s1278_s5 + $0x140] sm:$0xff]  ;;  %v344_v21 = vld [vmem:[%s1278_s5 + $0x150] sm:$0xff] }
  0x1e   : > { %323 = vst [vmem:[%s1283_s6 + $0x50] sm:$0xff] %v322_v10  ;;  %v346_v22 = vld [vmem:[%s1278_s5 + $0x160] sm:$0xff]  ;;  %v348_v23 = vld [vmem:[%s1278_s5 + $0x170] sm:$0xff] }
  0x1f   : > { %325 = vst [vmem:[%s1283_s6 + $0x58] sm:$0xff] %v324_v11  ;;  %v350_v24 = vld [vmem:[%s1278_s5 + $0x180] sm:$0xff]  ;;  %v352_v25 = vld [vmem:[%s1278_s5 + $0x190] sm:$0xff] }
  0x20   : > { %327 = vst [vmem:[%s1283_s6 + $0x60] sm:$0xff] %v326_v12  ;;  %v354_v26 = vld [vmem:[%s1278_s5 + $0x1a0] sm:$0xff]  ;;  %v356_v27 = vld [vmem:[%s1278_s5 + $0x1b0] sm:$0xff] }
  0x21   : > { %329 = vst [vmem:[%s1283_s6 + $0x68] sm:$0xff] %v328_v13  ;;  %v358_v28 = vld [vmem:[%s1278_s5 + $0x1c0] sm:$0xff]  ;;  %v360_v29 = vld [vmem:[%s1278_s5 + $0x1d0] sm:$0xff] }
  0x22   : > { %331 = vst [vmem:[%s1283_s6 + $0x70] sm:$0xff] %v330_v14  ;;  %v362_v30 = vld [vmem:[%s1278_s5 + $0x1e0] sm:$0xff]  ;;  %v364_v31 = vld [vmem:[%s1278_s5 + $0x1f0] sm:$0xff] }
  0x23   : > { %333 = vst [vmem:[%s1283_s6 + $0x78] sm:$0xff] %v332_v15 }
  0x24   : > { %335 = vst [vmem:[%s1283_s6 + $0x80] sm:$0xff] %v334_v16 }
  0x25   : > { %337 = vst [vmem:[%s1283_s6 + $0x88] sm:$0xff] %v336_v17 }
  0x26   : > { %339 = vst [vmem:[%s1283_s6 + $0x90] sm:$0xff] %v338_v18 }
  0x27   : > { %341 = vst [vmem:[%s1283_s6 + $0x98] sm:$0xff] %v340_v19 }
  0x28   : > { %343 = vst [vmem:[%s1283_s6 + $0xa0] sm:$0xff] %v342_v20 }
  0x29   : > { %345 = vst [vmem:[%s1283_s6 + $0xa8] sm:$0xff] %v344_v21 }
  0x2a   : > { %347 = vst [vmem:[%s1283_s6 + $0xb0] sm:$0xff] %v346_v22 }
  0x2b   : > { %349 = vst [vmem:[%s1283_s6 + $0xb8] sm:$0xff] %v348_v23 }
  0x2c   : > { %351 = vst [vmem:[%s1283_s6 + $0xc0] sm:$0xff] %v350_v24 }
  0x2d   : > { %353 = vst [vmem:[%s1283_s6 + $0xc8] sm:$0xff] %v352_v25 }
  0x2e   : > { %355 = vst [vmem:[%s1283_s6 + $0xd0] sm:$0xff] %v354_v26 }
  0x2f   : > { %357 = vst [vmem:[%s1283_s6 + $0xd8] sm:$0xff] %v356_v27 }
  0x30   : > { %359 = vst [vmem:[%s1283_s6 + $0xe0] sm:$0xff] %v358_v28 }
  0x31   : > { %361 = vst [vmem:[%s1283_s6 + $0xe8] sm:$0xff] %v360_v29 }
  0x32   : > { %363 = vst [vmem:[%s1283_s6 + $0xf0] sm:$0xff] %v362_v30 }
  0x33   : > { %365 = vst [vmem:[%s1283_s6 + $0xf8] sm:$0xff] %v364_v31 }
  0x34 PF: > { %p943_p8 = scmp.ge.s32.totalorder %s1203_s19, 1  ;;  %p386_p9 = scmp.lt.s32.totalorder %s1203_s19, 3 }
  0x36   : > { %p387_p10 = pnand %p943_p8, %p386_p9 }
  0x37   : > { %s393_s7 = sand.u32 (!%p387_p10), 1, %s1187_s15   ;;  %s946_s26 = sshll.u32 (!%p387_p10), %s1195_s17, 1 }
  0x38   : > { %390 = sbr.rel (%p387_p10) target bundleno = 254 (0xfe), region = 70  ;;  %s944_s8 = sshll.u32 (!%p387_p10), %s393_s7, 8 }
  0x39   : > { %s1351_s9 = scalar_lea.vmem (!%p387_p10), [#allocation3], %s944_s8  ;;  %p450_p11 = scmp.lt.s32.totalorder (!%p387_p10), %s946_s26, 3 }
  0x3a   : > { %s945_s8 = sshll.u32 (!%p387_p10), %s393_s7, 4 }
  0x3d   : > { %v1014_v32 = vld [vmem:[%s1351_s9 + $0x70] sm:$0xf]  ;;  %v1107_v33 = vld [vmem:[%s1351_s9 + $0x74] sm:$0xf0]  ;;  %v1106_v37 = vld [vmem:[%s1351_s9 + $0x74] sm:$0xf] }
  0x3e   : > { %v1078_v34 = vld [vmem:[%s1351_s9 + $0xf0] sm:$0xf]  ;;  %v1015_v35 = vor.u32 %v1107_v33, %v1014_v32  ;;  %v1123_v36 = vld [vmem:[%s1351_s9 + $0xf4] sm:$0xf0]  ;;  %v1016_v38 = vld [vmem:[%s1351_s9 + $0x78] sm:$0xf0] }
  0x3f   : > { %v1079_v39 = vor.u32 %v1123_v36, %v1078_v34  ;;  %v1019_v40 = vor.u32 %v1106_v37, %v1016_v38  ;;  %v1122_v41 = vld [vmem:[%s1351_s9 + $0xf4] sm:$0xf]  ;;  %v1080_v42 = vld [vmem:[%s1351_s9 + $0xf8] sm:$0xf0]  ;;  %v1006_v43 = vld [vmem:[%s1351_s9 + $0x60] sm:$0xf] }
  0x40   : > { %677 = vmatpush.bf16.msra.mxu0 %v1015_v35  ;;  %v1083_v44 = vor.u32 %v1122_v41, %v1080_v42  ;;  %v1105_v45 = vld [vmem:[%s1351_s9 + $0x64] sm:$0xf0]  ;;  %v1070_v46 = vld [vmem:[%s1351_s9 + $0xe0] sm:$0xf]  ;;  %v1104_v50 = vld [vmem:[%s1351_s9 + $0x64] sm:$0xf] }
  0x41   : > { %v1121_v47 = vld [vmem:[%s1351_s9 + $0xe4] sm:$0xf0]  ;;  %691 = vmatpush.bf16.msra.mxu1 %v1079_v39  ;;  %705 = vmatpush.bf16.msra.mxu2 %v1019_v40  ;;  %v1007_v48 = vor.u32 %v1105_v45, %v1006_v43  ;;  %v1008_v51 = vld [vmem:[%s1351_s9 + $0x68] sm:$0xf0]  ;;  %v1120_v52 = vld [vmem:[%s1351_s9 + $0xe4] sm:$0xf] }
  0x42   : > { %v1071_v49 = vor.u32 %v1121_v47, %v1070_v46  ;;  %719 = vmatpush.bf16.msra.mxu3 %v1083_v44  ;;  %v1011_v53 = vor.u32 %v1104_v50, %v1008_v51  ;;  %v1072_v54 = vld [vmem:[%s1351_s9 + $0xe8] sm:$0xf0]  ;;  %v998_v55 = vld [vmem:[%s1351_s9 + $0x50] sm:$0xf]  ;;  %v1103_v56 = vld [vmem:[%s1351_s9 + $0x54] sm:$0xf0] }
  0x43   : > { %v1075_v57 = vor.u32 %v1120_v52, %v1072_v54  ;;  %v1062_v58 = vld [vmem:[%s1351_s9 + $0xd0] sm:$0xf]  ;;  %v1119_v59 = vld [vmem:[%s1351_s9 + $0xd4] sm:$0xf0]  ;;  %v1102_v60 = vld [vmem:[%s1351_s9 + $0x54] sm:$0xf]  ;;  %v999_v61 = vor.u32 %v1103_v56, %v998_v55 }
  0x44   : > { %678 = vmatpush.bf16.msra.mxu0 %v1007_v48  ;;  %v1000_v62 = vld [vmem:[%s1351_s9 + $0x58] sm:$0xf0]  ;;  %v1118_v63 = vld [vmem:[%s1351_s9 + $0xd4] sm:$0xf]  ;;  %v1063_v1 = vor.u32 %v1119_v59, %v1062_v58  ;;  %v990_v3 = vld [vmem:[%s1351_s9 + $0x40] sm:$0xf] }
  0x45   : > { %v1064_v0 = vld [vmem:[%s1351_s9 + $0xd8] sm:$0xf0]  ;;  %692 = vmatpush.bf16.msra.mxu1 %v1071_v49  ;;  %706 = vmatpush.bf16.msra.mxu2 %v1011_v53  ;;  %v1003_v2 = vor.u32 %v1102_v60, %v1000_v62  ;;  %v1101_v4 = vld [vmem:[%s1351_s9 + $0x44] sm:$0xf0]  ;;  %v1054_v5 = vld [vmem:[%s1351_s9 + $0xc0] sm:$0xf] }
  0x46   : > { %720 = vmatpush.bf16.msra.mxu3 %v1075_v57  ;;  %v1067_v6 = vor.u32 %v1118_v63, %v1064_v0  ;;  %v1117_v7 = vld [vmem:[%s1351_s9 + $0xc4] sm:$0xf0]  ;;  %v1100_v8 = vld [vmem:[%s1351_s9 + $0x44] sm:$0xf]  ;;  %v992_v9 = vld [vmem:[%s1351_s9 + $0x48] sm:$0xf0]  ;;  %v991_v12 = vor.u32 %v1101_v4, %v990_v3 }
  0x47   : > { %v1116_v10 = vld [vmem:[%s1351_s9 + $0xc4] sm:$0xf]  ;;  %v1056_v11 = vld [vmem:[%s1351_s9 + $0xc8] sm:$0xf0]  ;;  %v1055_v13 = vor.u32 %v1117_v7, %v1054_v5  ;;  %v995_v14 = vor.u32 %v1100_v8, %v992_v9  ;;  %v982_v15 = vld [vmem:[%s1351_s9 + $0x30] sm:$0xf] }
  0x48   : > { %679 = vmatpush.bf16.msra.mxu0 %v999_v61  ;;  %v1099_v16 = vld [vmem:[%s1351_s9 + $0x34] sm:$0xf0]  ;;  %v1046_v17 = vld [vmem:[%s1351_s9 + $0xb0] sm:$0xf]  ;;  %v1059_v18 = vor.u32 %v1116_v10, %v1056_v11  ;;  %v1098_v20 = vld [vmem:[%s1351_s9 + $0x34] sm:$0xf] }
  0x49   : > { %693 = vmatpush.bf16.msra.mxu1 %v1063_v1  ;;  %707 = vmatpush.bf16.msra.mxu2 %v1003_v2  ;;  %v1115_v19 = vld [vmem:[%s1351_s9 + $0xb4] sm:$0xf0]  ;;  %v984_v21 = vld [vmem:[%s1351_s9 + $0x38] sm:$0xf0]  ;;  %v1114_v22 = vld [vmem:[%s1351_s9 + $0xb4] sm:$0xf]  ;;  %v983_v24 = vor.u32 %v1099_v16, %v982_v15 }
  0x4a   : > { %721 = vmatpush.bf16.msra.mxu3 %v1067_v6  ;;  %v1048_v23 = vld [vmem:[%s1351_s9 + $0xb8] sm:$0xf0]  ;;  %v1047_v25 = vor.u32 %v1115_v19, %v1046_v17  ;;  %v987_v26 = vor.u32 %v1098_v20, %v984_v21  ;;  %v974_v27 = vld [vmem:[%s1351_s9 + $0x20] sm:$0xf]  ;;  %v1097_v28 = vld [vmem:[%s1351_s9 + $0x24] sm:$0xf0] }
  0x4b   : > { %v1038_v29 = vld [vmem:[%s1351_s9 + $0xa0] sm:$0xf]  ;;  %v1051_v30 = vor.u32 %v1114_v22, %v1048_v23  ;;  %v1113_v31 = vld [vmem:[%s1351_s9 + $0xa4] sm:$0xf0]  ;;  %v1096_v32 = vld [vmem:[%s1351_s9 + $0x24] sm:$0xf]  ;;  %v975_v36 = vor.u32 %v1097_v28, %v974_v27 }
  0x4c   : > { %680 = vmatpush.bf16.msra.mxu0 %v991_v12  ;;  %v976_v33 = vld [vmem:[%s1351_s9 + $0x28] sm:$0xf0]  ;;  %v1112_v34 = vld [vmem:[%s1351_s9 + $0xa4] sm:$0xf]  ;;  %v1039_v37 = vor.u32 %v1113_v31, %v1038_v29  ;;  %v966_v39 = vld [vmem:[%s1351_s9 + $0x10] sm:$0xf] }
  0x4d   : > { %694 = vmatpush.bf16.msra.mxu1 %v1055_v13  ;;  %708 = vmatpush.bf16.msra.mxu2 %v995_v14  ;;  %v1040_v35 = vld [vmem:[%s1351_s9 + $0xa8] sm:$0xf0]  ;;  %v979_v38 = vor.u32 %v1096_v32, %v976_v33  ;;  %v1095_v40 = vld [vmem:[%s1351_s9 + $0x14] sm:$0xf0]  ;;  %v1030_v41 = vld [vmem:[%s1351_s9 + $0x90] sm:$0xf] }
  0x4e   : > { %722 = vmatpush.bf16.msra.mxu3 %v1059_v18  ;;  %v1043_v42 = vor.u32 %v1112_v34, %v1040_v35  ;;  %v1111_v43 = vld [vmem:[%s1351_s9 + $0x94] sm:$0xf0]  ;;  %v1094_v44 = vld [vmem:[%s1351_s9 + $0x14] sm:$0xf]  ;;  %v968_v45 = vld [vmem:[%s1351_s9 + $0x18] sm:$0xf0]  ;;  %v967_v48 = vor.u32 %v1095_v40, %v966_v39 }
  0x4f   : > { %v1110_v46 = vld [vmem:[%s1351_s9 + $0x94] sm:$0xf]  ;;  %v1032_v47 = vld [vmem:[%s1351_s9 + $0x98] sm:$0xf0]  ;;  %v1031_v49 = vor.u32 %v1111_v43, %v1030_v41  ;;  %v971_v50 = vor.u32 %v1094_v44, %v968_v45  ;;  %v958_v51 = vld [vmem:[%s1351_s9] sm:$0xf] }
  0x50   : > { %681 = vmatpush.bf16.msra.mxu0 %v983_v24  ;;  %v1093_v52 = vld [vmem:[%s1351_s9 + $0x4] sm:$0xf0]  ;;  %v1022_v53 = vld [vmem:[%s1351_s9 + $0x80] sm:$0xf]  ;;  %v1035_v54 = vor.u32 %v1110_v46, %v1032_v47  ;;  %v1092_v56 = vld [vmem:[%s1351_s9 + $0x4] sm:$0xf] }
  0x51   : > { %695 = vmatpush.bf16.msra.mxu1 %v1047_v25  ;;  %709 = vmatpush.bf16.msra.mxu2 %v987_v26  ;;  %v1109_v55 = vld [vmem:[%s1351_s9 + $0x84] sm:$0xf0]  ;;  %v960_v57 = vld [vmem:[%s1351_s9 + $0x8] sm:$0xf0]  ;;  %v1108_v58 = vld [vmem:[%s1351_s9 + $0x84] sm:$0xf]  ;;  %v959_v60 = vor.u32 %v1093_v52, %v958_v51 }
  0x52   : > { %723 = vmatpush.bf16.msra.mxu3 %v1051_v30  ;;  %v1024_v59 = vld [vmem:[%s1351_s9 + $0x88] sm:$0xf0]  ;;  %v950_v61 = vld [vmem:[%s1459_s0] sm:$0xf]  ;;  %v1091_v62 = vld [vmem:[%s1459_s0 + $0x4] sm:$0xf0]  ;;  %v1023_v63 = vor.u32 %v1109_v55, %v1022_v53  ;;  %v963_v0 = vor.u32 %v1092_v56, %v960_v57 }
  0x53   : > { %v1090_v1 = vld [vmem:[%s1459_s0 + $0x4] sm:$0xf]  ;;  %v952_v2 = vld [vmem:[%s1459_s0 + $0x8] sm:$0xf0]  ;;  %v1027_v3 = vor.u32 %v1108_v58, %v1024_v59  ;;  %v951_v4 = vor.u32 %v1091_v62, %v950_v61  ;;  %s1472_s26 = smov (!%p450_p11, %s946_s26), 3  ;;  %s434_s9 = scalar_lea.vmem [#allocation4], %s945_s8 }
  0x54   : > { %682 = vmatpush.bf16.msra.mxu0 %v975_v36  ;;  %v955_v5 = vor.u32 %v1090_v1, %v952_v2  ;;  %s452_s29 = scalar_lea.vmem %s1461_s2, %s1472_s26  ;;  %s457_s6 = scalar_lea.vmem %s1462_s3, %s1472_s26 }
  0x55   : > { %696 = vmatpush.bf16.msra.mxu1 %v1039_v37  ;;  %710 = vmatpush.bf16.msra.mxu2 %v979_v38  ;;  %v748_v7 = vld [vmem:[%s452_s29] sm:$0x3]  ;;  %s1124_s15 = sshll.u32 (%p1265_p6), %s1195_s17, 3 }
  0x56   : > { %724 = vmatpush.bf16.msra.mxu3 %v1043_v42  ;;  %v750_v10 = vperm.slane %v748_v7, 0  ;;  %v758_v11 = vld [vmem:[%s457_s6] sm:$0x3]  ;;  %v751_v15 = vperm.slane %v748_v7, 1  ;;  %s784_s11 = scalar_lea.vmem (%p1265_p6), %s1463_s4, %s1124_s15 }
  0x57   : > { %v760_v13 = vperm.slane %v758_v11, 0  ;;  %v761_v18 = vperm.slane %v758_v11, 1 }
  0x58   : > { %683 = vmatpush.bf16.msra.mxu0 %v967_v48 }
  0x59   : > { %697 = vmatpush.bf16.msra.mxu1 %v1031_v49  ;;  %711 = vmatpush.bf16.msra.mxu2 %v971_v50 }
  0x5a   : > { %725 = vmatpush.bf16.msra.mxu3 %v1035_v54 }
  0x5c   : > { %684 = vmatpush.bf16.msra.mxu0 %v959_v60 }
  0x5d   : > { %698 = vmatpush.bf16.msra.mxu1 %v1023_v63  ;;  %712 = vmatpush.bf16.msra.mxu2 %v963_v0 }
  0x5e   : > { %726 = vmatpush.bf16.msra.mxu3 %v1027_v3 }
  0x5f   : > { %685 = vmatmul.bf16.vlgmr.msra.gmra.mxu0 %v951_v4 }
  0x60   : > { %699 = vmatmul.bf16.vlgmr.msra.gmra.mxu1 %v955_v5  ;;  %713 = vmatmul.bf16.vlgmr.msra.gmra.mxu2 %v951_v4 }
  0x61   : > { %727 = vmatmul.bf16.vlgmr.msra.gmra.mxu3 %v955_v5 }
  0xdc   : > { %v686_v6 = vpop.f32.mrf.mxu0 }
  0xdd   : > { %v700_v8 = vpop.f32.mrf.mxu1 }
  0xde   : > { %v701_v9 = vadd.f32 %v700_v8, %v686_v6 }
  0xe0   : > { %v754_v12 = vmul.f32 %v750_v10, %v701_v9 }
  0xe2   : > { %v764_v21 = vadd.f32 %v760_v13, %v754_v12 }
  0xe3   : > { %v714_v14 = vpop.f32.mrf.mxu2 }
  0xe4   : > { %v728_v16 = vpop.f32.mrf.mxu3  ;;  %v688_v19 = vpop.f32.mrf.mxu0 }
  0xe5   : > { %v729_v17 = vadd.f32 %v728_v16, %v714_v14  ;;  %v702_v20 = vpop.f32.mrf.mxu1 }
  0xe6   : > { %v703_v24 = vadd.f32 %v702_v20, %v688_v19 }
  0xe7   : > { %v755_v22 = vmul.f32 %v751_v15, %v729_v17 }
  0xe8   : > { %v756_v28 = vmul.f32 %v750_v10, %v703_v24 }
  0xe9   : > { %v765_v23 = vadd.f32 %v761_v18, %v755_v22 }
  0xea   : > { %v766_v31 = vadd.f32 %v760_v13, %v756_v28 }
  0xeb   : > { %v768_v25 = vpack.c.bf16 %v765_v23, %v764_v21  ;;  %v716_v26 = vpop.f32.mrf.mxu2 }
  0xec   : > { %v730_v27 = vpop.f32.mrf.mxu3 }
  0xed   : > { %770 = vst [vmem:[%s434_s9] sm:$0xff] %v768_v25  ;;  %v731_v29 = vadd.f32 %v730_v27, %v716_v26 }
  0xef   : > { %v757_v30 = vmul.f32 %v751_v15, %v731_v29 }
  0xf1   : > { %v767_v32 = vadd.f32 %v761_v18, %v757_v30  ;;  %778 = sbr.rel (!%p1265_p6) target bundleno = 254 (0xfe), region = 86 }
  0xf3   : > { %v769_v33 = vpack.c.bf16 %v767_v32, %v766_v31 }
  0xf4   : > { %v815_v34 = vld [vmem:[%s434_s9] sm:$0xff] (%p1265_p6) }
  0xf5   : > { %771 = vst [vmem:[%s434_s9 + $0x8] sm:$0xff] %v769_v33 }
  0xf6   : > { %816 = vst [vmem:[%s784_s11] sm:$0xff] %v815_v34 }
  0xfc   : > { %v817_v35 = vld [vmem:[%s434_s9 + $0x8] sm:$0xff] }
  0xfd   : > { %818 = vst [vmem:[%s784_s11 + $0x10] sm:$0xff] %v817_v35 }
  0xfe PF: > { %s14_s19 = sadd.s32 1, %s1203_s19   ;;  %s1465_s15 = smov %s1191_s16 }
  0xff   : > { %p11_p12 = scmp.ge.s32.totalorder %s14_s19, 4   ;;  %s1466_s16 = smov %s1270_s25 }
 0x100   : > { %s1467_s17 = smov %s1199_s18  ;;  %s1468_s18 = smov %s1470_s20 }
 0x101   :  { %13 = sbr.rel (!%p11_p12) target bundleno = 3 (0x3), region = 164 }

// kernel: electronics_classifier_forward.40
= control target key start
LH: loop header
LB: loop body
LE: loop exit
PB: predicated region body
PF: predicated region fallthrough
CT: control target
= control target key end

     0   :  { %s2549_s0 = inlined_call_operand.vmem [shape: bf16[16,4608], index: 0, kind: input, shape index: {}]   ;;  %s2550_s1 = inlined_call_operand.vmem [shape: bf16[4608,512], index: 1, kind: input, shape index: {}]   ;;  %s2551_s2 = inlined_call_operand.vmem [shape: f32[1,512], index: 2, kind: input, shape index: {}]   ;;  %s2552_s3 = inlined_call_operand.vmem [shape: f32[1,512], index: 3, kind: input, shape index: {}]   ;;  %s2553_s4 = inlined_call_operand.vmem [shape: bf16[16,512], index: 4, kind: input, shape index: {}]   ;;  %s2554_s5 = inlined_call_operand.vmem [shape: bf16[16,512], index: 5, kind: output, shape index: {}]  }
   0x1   :  { %2557 = sst [smem:[#allocation10_spill]] %s2549_s0 }
   0x2   :  { %s2049_s18 = smov 0   ;;  %s2051_s19 = smov 0  }
   0x3   :  { %s2053_s20 = smov 0   ;;  %s2055_s21 = smov 0  }
   0x4   :  { %s2057_s22 = smov 0   ;;  %s2059_s23 = smov 0  }
   0x5   :  { %s2061_s24 = smov 0   ;;  %s2063_s25 = smov 0  }
   0x6   :  { %s2065_s26 = smov 0   ;;  %s2067_s27 = smov 0  }
   0x7   :  { %s2069_s28 = smov 0  }
   0x8 LB: > { %s1468_s29 = sadd.s32 4294967295, %s2016_s28   ;;  %s27_s30 = sadd.s32 1, %s2008_s26  ;;  %s2016_s28 = sphi %s2069_s28, %s15_s28   ;;  %s2012_s27 = sphi %s2067_s27, %s2578_s27   ;;  %s2008_s26 = sphi %s2065_s26, %s2577_s26   ;;  %s2004_s25 = sphi %s2063_s25, %s2576_s25   ;;  %s2000_s24 = sphi %s2061_s24, %s2575_s24   ;;  %s1996_s23 = sphi %s2059_s23, %s2574_s23   ;;  %s1992_s22 = sphi %s2057_s22, %s2573_s22   ;;  %s1988_s21 = sphi %s2055_s21, %s2572_s21   ;;  %s1984_s20 = sphi %s2053_s20, %s2571_s20   ;;  %s1980_s19 = sphi %s2051_s19, %s2570_s19   ;;  %s1976_s18 = sphi %s2049_s18, %s2569_s18  }
   0x9   : > { %p28_p0 = scmp.ge.s32.totalorder %s27_s30, 9  ;;  %s30_s6 = sadd.s32 1, %s2012_s27 }
   0xa   : > { %s43_s7 = sadd.s32 1, %s1996_s23  ;;  %p50_p1 = scmp.ne.s32.totalorder %s1996_s23, %s1992_s22 }
   0xb   : > { %s2580_s30 = smov (%p28_p0, %s27_s30), 0  ;;  %s2582_s6 = smov (!%p28_p0, %s30_s6), %s2012_s27 }
   0xc   : > { %2558 = sst [smem:[#allocation7_spill]] %s2580_s30  ;;  %s39_s8 = ssub.s32 %s2008_s26, %s2580_s30 }
   0xd   : > { %p51_p2 = scmp.eq.s32.totalorder %s2016_s28, 0  ;;  %p32_p3 = scmp.ge.s32.totalorder %s2582_s6, 2 }
   0xe   : > { %p41_p4 = scmp.eq.s32.totalorder %s39_s8, 0  ;;  %s71_s10 = sadd.s32 1, %s1988_s21 }
   0xf   : > { %p2118_p5 = por %p51_p2, %p50_p1  ;;  %s2584_s6 = smov (%p32_p3, %s2582_s6), 0 }
  0x10   : > { %2560 = sst [smem:[#allocation8_spill]] %s2584_s6  ;;  %s67_s12 = ssub.s32 %s2012_s27, %s2584_s6 }
  0x11   : > { %s2126_s11 = scalar_select %p41_p4, %s1996_s23, %s43_s7  }
  0x12   : > { %p78_p6 = scmp.ne.s32.totalorder %s1988_s21, %s1984_s20  ;;  %s68_s13 = sor.u32 %s67_s12, %s39_s8 }
  0x13   : > { %2561 = sst [smem:[#allocation9_spill]] %s2126_s11  ;;  %p149_p7 = scmp.eq.s32.totalorder %s67_s12, 0 }
  0x14   : > { %p69_p8 = scmp.eq.s32.totalorder %s68_s13, 0  ;;  %p2134_p9 = por %p78_p6, %p51_p2 }
  0x15   : > { %s151_s15 = sadd.s32 1, %s1980_s19  ;;  %p158_p10 = scmp.ne.s32.totalorder %s1980_s19, %s1976_s18 }
  0x16   : > { %s2142_s16 = scalar_select %p69_p8, %s1988_s21, %s71_s10  }
  0x17   : > { %s2145_s17 = scalar_select %p149_p7, %s1980_s19, %s151_s15  }
  0x18   : > { %p2149_p11 = por %p158_p10, %p51_p2  ;;  %p190_p12 = scmp.eq.s32.totalorder %s1468_s29, 17 }
  0x19   : > { %p1471_p0 = scmp.ge.s32.totalorder %s2016_s28, 18 }
  0x1a   : > { %p2153_p13 = por %p190_p12, %p158_p10 }
  0x1b   : > { %212 = sbr.rel (%p1471_p0) target bundleno = 123 (0x7b), region = 16 }
  0x20   : > { %215 = sbr.rel (!%p2118_p5) target bundleno = 46 (0x2e), region = 20  ;;  %s217_s10 = sand.u32 (%p2118_p5), 1, %s1996_s23  }
  0x21   : > { %s1769_s12 = sshll.u32 (%p2118_p5), %s2008_s26, 4  ;;  %s1472_s13 = sshll.u32 (%p2118_p5), %s217_s10, 5 }
  0x22   : > { %s2565_s0 = sld [smem:[#allocation10_spill]] (%p2118_p5)  ;;  %s219_s29 = scalar_lea.vmem (%p2118_p5), [#allocation3], %s1472_s13 }
  0x28   : > { %s225_s30 = scalar_lea.vmem %s2565_s0, %s1769_s12 }
  0x29   : > { %v238_v0 = vld [vmem:[%s225_s30] sm:$0xff]  ;;  %v240_v1 = vld [vmem:[%s225_s30 + $0x8] sm:$0xff]  ;;  %v242_v2 = vld [vmem:[%s225_s30 + $0x90] sm:$0xff] }
  0x2a   : > { %239 = vst [vmem:[%s219_s29] sm:$0xff] %v238_v0  ;;  %v244_v3 = vld [vmem:[%s225_s30 + $0x98] sm:$0xff] }
  0x2b   : > { %241 = vst [vmem:[%s219_s29 + $0x8] sm:$0xff] %v240_v1 }
  0x2c   : > { %243 = vst [vmem:[%s219_s29 + $0x10] sm:$0xff] %v242_v2 }
  0x2d   : > { %245 = vst [vmem:[%s219_s29 + $0x18] sm:$0xff] %v244_v3 }
  0x2e PF: > { %251 = sbr.rel (!%p2134_p9) target bundleno = 117 (0x75), region = 43  ;;  %s253_s9 = sand.u32 (%p2134_p9), 1, %s1988_s21  }
  0x2f   : > { %s1477_s10 = sshll.u32 (%p2134_p9), %s2012_s27, 1  ;;  %s1475_s6 = sshll.u32 (%p2134_p9), %s253_s9, 9 }
  0x30   : > { %s1770_s12 = sshll.u32 (%p2134_p9), %s2008_s26, 8  ;;  %s2178_s14 = scalar_lea.vmem (%p2134_p9), [#allocation4], %s1475_s6 }
  0x31   : > { %s259_s15 = sadd.s32 (%p2134_p9), %s1770_s12, %s1477_s10 }
  0x32   : > { %s1479_s0 = sshll.u32 (%p2134_p9), %s259_s15, 2 }
  0x33   : > { %s2173_s30 = scalar_lea.vmem %s2550_s1, %s1479_s0 }
  0x34   : > { %v416_v4 = vld [vmem:[%s2173_s30] sm:$0xff]  ;;  %v418_v5 = vld [vmem:[%s2173_s30 + $0x10] sm:$0xff] }
  0x35   : > { %v420_v6 = vld [vmem:[%s2173_s30 + $0x20] sm:$0xff]  ;;  %417 = vst [vmem:[%s2178_s14] sm:$0xff] %v416_v4  ;;  %v422_v7 = vld [vmem:[%s2173_s30 + $0x30] sm:$0xff] }
  0x36   : > { %419 = vst [vmem:[%s2178_s14 + $0x8] sm:$0xff] %v418_v5  ;;  %v424_v8 = vld [vmem:[%s2173_s30 + $0x40] sm:$0xff]  ;;  %v426_v9 = vld [vmem:[%s2173_s30 + $0x50] sm:$0xff] }
  0x37   : > { %421 = vst [vmem:[%s2178_s14 + $0x10] sm:$0xff] %v420_v6  ;;  %v428_v10 = vld [vmem:[%s2173_s30 + $0x60] sm:$0xff]  ;;  %v430_v11 = vld [vmem:[%s2173_s30 + $0x70] sm:$0xff] }
  0x38   : > { %423 = vst [vmem:[%s2178_s14 + $0x18] sm:$0xff] %v422_v7  ;;  %v432_v12 = vld [vmem:[%s2173_s30 + $0x80] sm:$0xff]  ;;  %v434_v13 = vld [vmem:[%s2173_s30 + $0x90] sm:$0xff] }
  0x39   : > { %425 = vst [vmem:[%s2178_s14 + $0x20] sm:$0xff] %v424_v8  ;;  %v436_v14 = vld [vmem:[%s2173_s30 + $0xa0] sm:$0xff]  ;;  %v438_v15 = vld [vmem:[%s2173_s30 + $0xb0] sm:$0xff] }
  0x3a   : > { %427 = vst [vmem:[%s2178_s14 + $0x28] sm:$0xff] %v426_v9  ;;  %v440_v16 = vld [vmem:[%s2173_s30 + $0xc0] sm:$0xff]  ;;  %v442_v17 = vld [vmem:[%s2173_s30 + $0xd0] sm:$0xff] }
  0x3b   : > { %429 = vst [vmem:[%s2178_s14 + $0x30] sm:$0xff] %v428_v10  ;;  %v444_v18 = vld [vmem:[%s2173_s30 + $0xe0] sm:$0xff]  ;;  %v446_v19 = vld [vmem:[%s2173_s30 + $0xf0] sm:$0xff] }
  0x3c   : > { %431 = vst [vmem:[%s2178_s14 + $0x38] sm:$0xff] %v430_v11  ;;  %v448_v20 = vld [vmem:[%s2173_s30 + $0x100] sm:$0xff]  ;;  %v450_v21 = vld [vmem:[%s2173_s30 + $0x110] sm:$0xff] }
  0x3d   : > { %433 = vst [vmem:[%s2178_s14 + $0x40] sm:$0xff] %v432_v12  ;;  %v452_v22 = vld [vmem:[%s2173_s30 + $0x120] sm:$0xff]  ;;  %v454_v23 = vld [vmem:[%s2173_s30 + $0x130] sm:$0xff] }
  0x3e   : > { %435 = vst [vmem:[%s2178_s14 + $0x48] sm:$0xff] %v434_v13  ;;  %v456_v24 = vld [vmem:[%s2173_s30 + $0x140] sm:$0xff]  ;;  %v458_v25 = vld [vmem:[%s2173_s30 + $0x150] sm:$0xff] }
  0x3f   : > { %437 = vst [vmem:[%s2178_s14 + $0x50] sm:$0xff] %v436_v14  ;;  %v460_v26 = vld [vmem:[%s2173_s30 + $0x160] sm:$0xff]  ;;  %v462_v27 = vld [vmem:[%s2173_s30 + $0x170] sm:$0xff] }
  0x40   : > { %439 = vst [vmem:[%s2178_s14 + $0x58] sm:$0xff] %v438_v15  ;;  %v464_v28 = vld [vmem:[%s2173_s30 + $0x180] sm:$0xff]  ;;  %v466_v29 = vld [vmem:[%s2173_s30 + $0x190] sm:$0xff] }
  0x41   : > { %441 = vst [vmem:[%s2178_s14 + $0x60] sm:$0xff] %v440_v16  ;;  %v468_v30 = vld [vmem:[%s2173_s30 + $0x1a0] sm:$0xff]  ;;  %v470_v31 = vld [vmem:[%s2173_s30 + $0x1b0] sm:$0xff] }
  0x42   : > { %443 = vst [vmem:[%s2178_s14 + $0x68] sm:$0xff] %v442_v17  ;;  %v472_v32 = vld [vmem:[%s2173_s30 + $0x1c0] sm:$0xff]  ;;  %v474_v33 = vld [vmem:[%s2173_s30 + $0x1d0] sm:$0xff] }
  0x43   : > { %445 = vst [vmem:[%s2178_s14 + $0x70] sm:$0xff] %v444_v18  ;;  %v476_v34 = vld [vmem:[%s2173_s30 + $0x1e0] sm:$0xff]  ;;  %v478_v35 = vld [vmem:[%s2173_s30 + $0x1f0] sm:$0xff] }
  0x44   : > { %447 = vst [vmem:[%s2178_s14 + $0x78] sm:$0xff] %v446_v19  ;;  %v480_v36 = vld [vmem:[%s2173_s30 + $0x200] sm:$0xff]  ;;  %v482_v37 = vld [vmem:[%s2173_s30 + $0x210] sm:$0xff] }
  0x45   : > { %449 = vst [vmem:[%s2178_s14 + $0x80] sm:$0xff] %v448_v20  ;;  %v484_v38 = vld [vmem:[%s2173_s30 + $0x220] sm:$0xff]  ;;  %v486_v39 = vld [vmem:[%s2173_s30 + $0x230] sm:$0xff] }
  0x46   : > { %451 = vst [vmem:[%s2178_s14 + $0x88] sm:$0xff] %v450_v21  ;;  %v488_v40 = vld [vmem:[%s2173_s30 + $0x240] sm:$0xff]  ;;  %v490_v41 = vld [vmem:[%s2173_s30 + $0x250] sm:$0xff] }
  0x47   : > { %453 = vst [vmem:[%s2178_s14 + $0x90] sm:$0xff] %v452_v22  ;;  %v492_v42 = vld [vmem:[%s2173_s30 + $0x260] sm:$0xff]  ;;  %v494_v43 = vld [vmem:[%s2173_s30 + $0x270] sm:$0xff] }
  0x48   : > { %455 = vst [vmem:[%s2178_s14 + $0x98] sm:$0xff] %v454_v23  ;;  %v496_v44 = vld [vmem:[%s2173_s30 + $0x280] sm:$0xff]  ;;  %v498_v45 = vld [vmem:[%s2173_s30 + $0x290] sm:$0xff] }
  0x49   : > { %457 = vst [vmem:[%s2178_s14 + $0xa0] sm:$0xff] %v456_v24  ;;  %v500_v46 = vld [vmem:[%s2173_s30 + $0x2a0] sm:$0xff]  ;;  %v502_v47 = vld [vmem:[%s2173_s30 + $0x2b0] sm:$0xff] }
  0x4a   : > { %459 = vst [vmem:[%s2178_s14 + $0xa8] sm:$0xff] %v458_v25  ;;  %v504_v48 = vld [vmem:[%s2173_s30 + $0x2c0] sm:$0xff]  ;;  %v506_v49 = vld [vmem:[%s2173_s30 + $0x2d0] sm:$0xff] }
  0x4b   : > { %461 = vst [vmem:[%s2178_s14 + $0xb0] sm:$0xff] %v460_v26  ;;  %v508_v50 = vld [vmem:[%s2173_s30 + $0x2e0] sm:$0xff]  ;;  %v510_v51 = vld [vmem:[%s2173_s30 + $0x2f0] sm:$0xff] }
  0x4c   : > { %463 = vst [vmem:[%s2178_s14 + $0xb8] sm:$0xff] %v462_v27  ;;  %v512_v52 = vld [vmem:[%s2173_s30 + $0x300] sm:$0xff]  ;;  %v514_v53 = vld [vmem:[%s2173_s30 + $0x310] sm:$0xff] }
  0x4d   : > { %465 = vst [vmem:[%s2178_s14 + $0xc0] sm:$0xff] %v464_v28  ;;  %v516_v54 = vld [vmem:[%s2173_s30 + $0x320] sm:$0xff]  ;;  %v518_v55 = vld [vmem:[%s2173_s30 + $0x330] sm:$0xff] }
  0x4e   : > { %467 = vst [vmem:[%s2178_s14 + $0xc8] sm:$0xff] %v466_v29  ;;  %v520_v56 = vld [vmem:[%s2173_s30 + $0x340] sm:$0xff]  ;;  %v522_v57 = vld [vmem:[%s2173_s30 + $0x350] sm:$0xff] }
  0x4f   : > { %469 = vst [vmem:[%s2178_s14 + $0xd0] sm:$0xff] %v468_v30  ;;  %v524_v58 = vld [vmem:[%s2173_s30 + $0x360] sm:$0xff]  ;;  %v526_v59 = vld [vmem:[%s2173_s30 + $0x370] sm:$0xff] }
  0x50   : > { %471 = vst [vmem:[%s2178_s14 + $0xd8] sm:$0xff] %v470_v31  ;;  %v528_v60 = vld [vmem:[%s2173_s30 + $0x380] sm:$0xff]  ;;  %v530_v61 = vld [vmem:[%s2173_s30 + $0x390] sm:$0xff] }
  0x51   : > { %473 = vst [vmem:[%s2178_s14 + $0xe0] sm:$0xff] %v472_v32  ;;  %v532_v62 = vld [vmem:[%s2173_s30 + $0x3a0] sm:$0xff]  ;;  %v534_v63 = vld [vmem:[%s2173_s30 + $0x3b0] sm:$0xff] }
  0x52   : > { %475 = vst [vmem:[%s2178_s14 + $0xe8] sm:$0xff] %v474_v33  ;;  %v536_v0 = vld [vmem:[%s2173_s30 + $0x3c0] sm:$0xff]  ;;  %v538_v1 = vld [vmem:[%s2173_s30 + $0x3d0] sm:$0xff] }
  0x53   : > { %477 = vst [vmem:[%s2178_s14 + $0xf0] sm:$0xff] %v476_v34  ;;  %v540_v2 = vld [vmem:[%s2173_s30 + $0x3e0] sm:$0xff]  ;;  %v542_v3 = vld [vmem:[%s2173_s30 + $0x3f0] sm:$0xff] }
  0x54   : > { %479 = vst [vmem:[%s2178_s14 + $0xf8] sm:$0xff] %v478_v35 }
  0x55   : > { %481 = vst [vmem:[%s2178_s14 + $0x100] sm:$0xff] %v480_v36 }
  0x56   : > { %483 = vst [vmem:[%s2178_s14 + $0x108] sm:$0xff] %v482_v37 }
  0x57   : > { %485 = vst [vmem:[%s2178_s14 + $0x110] sm:$0xff] %v484_v38 }
  0x58   : > { %487 = vst [vmem:[%s2178_s14 + $0x118] sm:$0xff] %v486_v39 }
  0x59   : > { %489 = vst [vmem:[%s2178_s14 + $0x120] sm:$0xff] %v488_v40 }
  0x5a   : > { %491 = vst [vmem:[%s2178_s14 + $0x128] sm:$0xff] %v490_v41 }
  0x5b   : > { %493 = vst [vmem:[%s2178_s14 + $0x130] sm:$0xff] %v492_v42 }
  0x5c   : > { %495 = vst [vmem:[%s2178_s14 + $0x138] sm:$0xff] %v494_v43 }
  0x5d   : > { %497 = vst [vmem:[%s2178_s14 + $0x140] sm:$0xff] %v496_v44 }
  0x5e   : > { %499 = vst [vmem:[%s2178_s14 + $0x148] sm:$0xff] %v498_v45 }
  0x5f   : > { %501 = vst [vmem:[%s2178_s14 + $0x150] sm:$0xff] %v500_v46 }
  0x60   : > { %503 = vst [vmem:[%s2178_s14 + $0x158] sm:$0xff] %v502_v47 }
  0x61   : > { %505 = vst [vmem:[%s2178_s14 + $0x160] sm:$0xff] %v504_v48 }
  0x62   : > { %507 = vst [vmem:[%s2178_s14 + $0x168] sm:$0xff] %v506_v49 }
  0x63   : > { %509 = vst [vmem:[%s2178_s14 + $0x170] sm:$0xff] %v508_v50 }
  0x64   : > { %511 = vst [vmem:[%s2178_s14 + $0x178] sm:$0xff] %v510_v51 }
  0x65   : > { %513 = vst [vmem:[%s2178_s14 + $0x180] sm:$0xff] %v512_v52 }
  0x66   : > { %515 = vst [vmem:[%s2178_s14 + $0x188] sm:$0xff] %v514_v53 }
  0x67   : > { %517 = vst [vmem:[%s2178_s14 + $0x190] sm:$0xff] %v516_v54 }
  0x68   : > { %519 = vst [vmem:[%s2178_s14 + $0x198] sm:$0xff] %v518_v55 }
  0x69   : > { %521 = vst [vmem:[%s2178_s14 + $0x1a0] sm:$0xff] %v520_v56 }
  0x6a   : > { %523 = vst [vmem:[%s2178_s14 + $0x1a8] sm:$0xff] %v522_v57 }
  0x6b   : > { %525 = vst [vmem:[%s2178_s14 + $0x1b0] sm:$0xff] %v524_v58 }
  0x6c   : > { %527 = vst [vmem:[%s2178_s14 + $0x1b8] sm:$0xff] %v526_v59 }
  0x6d   : > { %529 = vst [vmem:[%s2178_s14 + $0x1c0] sm:$0xff] %v528_v60 }
  0x6e   : > { %531 = vst [vmem:[%s2178_s14 + $0x1c8] sm:$0xff] %v530_v61 }
  0x6f   : > { %533 = vst [vmem:[%s2178_s14 + $0x1d0] sm:$0xff] %v532_v62 }
  0x70   : > { %535 = vst [vmem:[%s2178_s14 + $0x1d8] sm:$0xff] %v534_v63 }
  0x71   : > { %537 = vst [vmem:[%s2178_s14 + $0x1e0] sm:$0xff] %v536_v0 }
  0x72   : > { %539 = vst [vmem:[%s2178_s14 + $0x1e8] sm:$0xff] %v538_v1 }
  0x73   : > { %541 = vst [vmem:[%s2178_s14 + $0x1f0] sm:$0xff] %v540_v2 }
  0x74   : > { %543 = vst [vmem:[%s2178_s14 + $0x1f8] sm:$0xff] %v542_v3 }
  0x75 PF: > { %565 = sbr.rel (!%p2149_p11) target bundleno = 123 (0x7b), region = 89  ;;  %s567_s0 = sand.u32 (%p2149_p11), 1, %s1980_s19  }
  0x76   : > { %s1771_s11 = sshll.u32 (%p2149_p11), %s2012_s27, 3  ;;  %s1480_s29 = sshll.u32 (%p2149_p11), %s567_s0, 4 }
  0x77   : > { %s575_s6 = scalar_lea.vmem (%p2149_p11), %s2553_s4, %s1771_s11  ;;  %s569_s12 = scalar_lea.vmem (%p2149_p11), [#allocation5], %s1480_s29 }
  0x78   : > { %v606_v4 = vld [vmem:[%s575_s6] sm:$0xff] (%p2149_p11)  ;;  %v608_v5 = vld [vmem:[%s575_s6 + $0x10] sm:$0xff] (%p2149_p11) }
  0x79   : > { %607 = vst [vmem:[%s569_s12] sm:$0xff] (%p2149_p11), %v606_v4 }
  0x7a   : > { %609 = vst [vmem:[%s569_s12 + $0x8] sm:$0xff] %v608_v5 }
  0x7b PF: > { %p1483_p1 = scmp.ge.s32.totalorder %s2016_s28, 1  ;;  %p614_p2 = scmp.lt.s32.totalorder %s2016_s28, 19 }
  0x7d   : > { %p615_p3 = pnand %p1483_p1, %p614_p2 }
  0x7e   : > { %s621_s7 = sand.u32 (!%p615_p3), 1, %s1992_s22   ;;  %s628_s15 = sand.u32 (!%p615_p3), 1, %s1984_s20  }
  0x7f   : > { %618 = sbr.rel (%p615_p3) target bundleno = 387 (0x183), region = 127  ;;  %s1484_s13 = sshll.u32 (!%p615_p3), %s621_s7, 5 }
  0x80   : > { %s1485_s30 = sshll.u32 (!%p615_p3), %s628_s15, 9  ;;  %s635_s14 = sand.u32 (!%p615_p3), 1, %s1976_s18  }
  0x81   : > { %s1488_s0 = sshll.u32 (!%p615_p3), %s2004_s25, 1  ;;  %s2318_s11 = sshll.u32 (!%p615_p3), %s635_s14, 4 }
  0x82   : > { %p682_p4 = scmp.lt.s32.totalorder (!%p615_p3), %s1488_s0, 3  ;;  %s2330_s12 = scalar_lea.vmem (!%p615_p3), [#allocation3], %s1484_s13 }
  0x83   : > { %s2332_s18 = scalar_lea.vmem (!%p615_p3), [#allocation4], %s1485_s30  ;;  %s637_s7 = scalar_lea.vmem (!%p615_p3), [#allocation5], %s2318_s11 }
  0x84   : > { %s2586_s0 = smov (!%p682_p4, %s1488_s0), 3  ;;  %s2336_s15 = scalar_lea.vmem [#allocation6], %s2318_s11 }
  0x85   : > { %s684_s10 = scalar_lea.vmem %s2551_s2, %s2586_s0  ;;  %s689_s20 = scalar_lea.vmem %s2552_s3, %s2586_s0 }
  0x86   : > { %p1490_p5 = scmp.ne.s32.totalorder %s2000_s24, 0 }
  0x88   : > { %698 = sbr.rel (%p1490_p5) target bundleno = 146 (0x92), region = 143 }
  0x8d   : > { %v2018_v6 = vmov 0.0  }
  0x8e   : > { %699 = vst [vmem:[#allocation2 + $0x10] sm:$0xff] %v2018_v6 }
  0x8f   : > { %700 = vst [vmem:[#allocation2] sm:$0xff] %v2018_v6 }
  0x90   : > { %701 = vst [vmem:[#allocation2 + $0x18] sm:$0xff] %v2018_v6 }
  0x91   : > { %702 = vst [vmem:[#allocation2 + $0x8] sm:$0xff] %v2018_v6 }
  0x92 PF: > { %v1565_v7 = vld [vmem:[%s2332_s18 + $0x70] sm:$0xf]  ;;  %v1791_v8 = vld [vmem:[%s2332_s18 + $0x74] sm:$0xf0]  ;;  %v1557_v18 = vld [vmem:[%s2332_s18 + $0x60] sm:$0xf] }
  0x93   : > { %v1629_v9 = vld [vmem:[%s2332_s18 + $0xf0] sm:$0xf]  ;;  %v1566_v10 = vor.u32 %v1791_v8, %v1565_v7  ;;  %v1807_v11 = vld [vmem:[%s2332_s18 + $0xf4] sm:$0xf0]  ;;  %v1789_v20 = vld [vmem:[%s2332_s18 + $0x64] sm:$0xf0] }
  0x94   : > { %v1693_v12 = vld [vmem:[%s2332_s18 + $0x170] sm:$0xf]  ;;  %v1823_v13 = vld [vmem:[%s2332_s18 + $0x174] sm:$0xf0]  ;;  %v1630_v14 = vor.u32 %v1807_v11, %v1629_v9  ;;  %v1621_v21 = vld [vmem:[%s2332_s18 + $0xe0] sm:$0xf]  ;;  %v1558_v23 = vor.u32 %v1789_v20, %v1557_v18 }
  0x95   : > { %v1694_v15 = vor.u32 %v1823_v13, %v1693_v12  ;;  %v1757_v16 = vld [vmem:[%s2332_s18 + $0x1f0] sm:$0xf]  ;;  %v1839_v17 = vld [vmem:[%s2332_s18 + $0x1f4] sm:$0xf0]  ;;  %1115 = vmatpush.bf16.msra.mxu0 %v1566_v10  ;;  %v1805_v22 = vld [vmem:[%s2332_s18 + $0xe4] sm:$0xf0] }
  0x96   : > { %v1758_v19 = vor.u32 %v1839_v17, %v1757_v16  ;;  %1129 = vmatpush.bf16.msra.mxu1 %v1630_v14  ;;  %v1622_v24 = vor.u32 %v1805_v22, %v1621_v21  ;;  %v1685_v25 = vld [vmem:[%s2332_s18 + $0x160] sm:$0xf]  ;;  %v1821_v26 = vld [vmem:[%s2332_s18 + $0x164] sm:$0xf0]  ;;  %v1549_v30 = vld [vmem:[%s2332_s18 + $0x50] sm:$0xf] }
  0x97   : > { %1143 = vmatpush.bf16.msra.mxu2 %v1694_v15  ;;  %v1749_v27 = vld [vmem:[%s2332_s18 + $0x1e0] sm:$0xf]  ;;  %v1686_v28 = vor.u32 %v1821_v26, %v1685_v25  ;;  %v1837_v29 = vld [vmem:[%s2332_s18 + $0x1e4] sm:$0xf0]  ;;  %v1787_v31 = vld [vmem:[%s2332_s18 + $0x54] sm:$0xf0] }
  0x98   : > { %1157 = vmatpush.bf16.msra.mxu3 %v1758_v19  ;;  %v1750_v32 = vor.u32 %v1837_v29, %v1749_v27  ;;  %v1613_v33 = vld [vmem:[%s2332_s18 + $0xd0] sm:$0xf]  ;;  %v1803_v34 = vld [vmem:[%s2332_s18 + $0xd4] sm:$0xf0]  ;;  %v1550_v36 = vor.u32 %v1787_v31, %v1549_v30  ;;  %v1541_v42 = vld [vmem:[%s2332_s18 + $0x40] sm:$0xf] }
  0x99   : > { %v1677_v35 = vld [vmem:[%s2332_s18 + $0x150] sm:$0xf]  ;;  %1116 = vmatpush.bf16.msra.mxu0 %v1558_v23  ;;  %v1819_v37 = vld [vmem:[%s2332_s18 + $0x154] sm:$0xf0]  ;;  %v1614_v40 = vor.u32 %v1803_v34, %v1613_v33  ;;  %v1785_v43 = vld [vmem:[%s2332_s18 + $0x44] sm:$0xf0] }
  0x9a   : > { %v1741_v38 = vld [vmem:[%s2332_s18 + $0x1d0] sm:$0xf]  ;;  %v1835_v39 = vld [vmem:[%s2332_s18 + $0x1d4] sm:$0xf0]  ;;  %1130 = vmatpush.bf16.msra.mxu1 %v1622_v24  ;;  %v1678_v41 = vor.u32 %v1819_v37, %v1677_v35  ;;  %v1605_v44 = vld [vmem:[%s2332_s18 + $0xc0] sm:$0xf]  ;;  %v1542_v51 = vor.u32 %v1785_v43, %v1541_v42 }
  0x9b   : > { %1144 = vmatpush.bf16.msra.mxu2 %v1686_v28  ;;  %v1742_v45 = vor.u32 %v1835_v39, %v1741_v38  ;;  %v1801_v46 = vld [vmem:[%s2332_s18 + $0xc4] sm:$0xf0]  ;;  %v1669_v47 = vld [vmem:[%s2332_s18 + $0x140] sm:$0xf]  ;;  %v1533_v54 = vld [vmem:[%s2332_s18 + $0x30] sm:$0xf] }
  0x9c   : > { %1158 = vmatpush.bf16.msra.mxu3 %v1750_v32  ;;  %v1817_v48 = vld [vmem:[%s2332_s18 + $0x144] sm:$0xf0]  ;;  %v1733_v49 = vld [vmem:[%s2332_s18 + $0x1c0] sm:$0xf]  ;;  %v1606_v52 = vor.u32 %v1801_v46, %v1605_v44  ;;  %v1783_v55 = vld [vmem:[%s2332_s18 + $0x34] sm:$0xf0] }
  0x9d   : > { %v1833_v50 = vld [vmem:[%s2332_s18 + $0x1c4] sm:$0xf0]  ;;  %1117 = vmatpush.bf16.msra.mxu0 %v1550_v36  ;;  %v1670_v53 = vor.u32 %v1817_v48, %v1669_v47  ;;  %v1597_v56 = vld [vmem:[%s2332_s18 + $0xb0] sm:$0xf]  ;;  %v1799_v58 = vld [vmem:[%s2332_s18 + $0xb4] sm:$0xf0]  ;;  %v1534_v63 = vor.u32 %v1783_v55, %v1533_v54 }
  0x9e   : > { %1131 = vmatpush.bf16.msra.mxu1 %v1614_v40  ;;  %v1734_v57 = vor.u32 %v1833_v50, %v1733_v49  ;;  %v1661_v59 = vld [vmem:[%s2332_s18 + $0x130] sm:$0xf]  ;;  %v1815_v60 = vld [vmem:[%s2332_s18 + $0x134] sm:$0xf0]  ;;  %v1598_v0 = vor.u32 %v1799_v58, %v1597_v56  ;;  %v1525_v2 = vld [vmem:[%s2332_s18 + $0x20] sm:$0xf] }
  0x9f   : > { %1145 = vmatpush.bf16.msra.mxu2 %v1678_v41  ;;  %v1725_v61 = vld [vmem:[%s2332_s18 + $0x1b0] sm:$0xf]  ;;  %v1831_v62 = vld [vmem:[%s2332_s18 + $0x1b4] sm:$0xf0]  ;;  %v1662_v1 = vor.u32 %v1815_v60, %v1661_v59  ;;  %v1781_v3 = vld [vmem:[%s2332_s18 + $0x24] sm:$0xf0] }
  0xa0   : > { %1159 = vmatpush.bf16.msra.mxu3 %v1742_v45  ;;  %v1589_v4 = vld [vmem:[%s2332_s18 + $0xa0] sm:$0xf]  ;;  %v1726_v5 = vor.u32 %v1831_v62, %v1725_v61  ;;  %v1797_v6 = vld [vmem:[%s2332_s18 + $0xa4] sm:$0xf0]  ;;  %v1526_v11 = vor.u32 %v1781_v3, %v1525_v2  ;;  %v1517_v14 = vld [vmem:[%s2332_s18 + $0x10] sm:$0xf] }
  0xa1   : > { %1118 = vmatpush.bf16.msra.mxu0 %v1542_v51  ;;  %v1653_v7 = vld [vmem:[%s2332_s18 + $0x120] sm:$0xf]  ;;  %v1813_v8 = vld [vmem:[%s2332_s18 + $0x124] sm:$0xf0]  ;;  %v1590_v12 = vor.u32 %v1797_v6, %v1589_v4  ;;  %v1779_v15 = vld [vmem:[%s2332_s18 + $0x14] sm:$0xf0] }
  0xa2   : > { %1132 = vmatpush.bf16.msra.mxu1 %v1606_v52  ;;  %v1717_v9 = vld [vmem:[%s2332_s18 + $0x1a0] sm:$0xf]  ;;  %v1829_v10 = vld [vmem:[%s2332_s18 + $0x1a4] sm:$0xf0]  ;;  %v1654_v13 = vor.u32 %v1813_v8, %v1653_v7  ;;  %v1581_v16 = vld [vmem:[%s2332_s18 + $0x90] sm:$0xf]  ;;  %v1518_v24 = vor.u32 %v1779_v15, %v1517_v14 }
  0xa3   : > { %1146 = vmatpush.bf16.msra.mxu2 %v1670_v53  ;;  %v1718_v17 = vor.u32 %v1829_v10, %v1717_v9  ;;  %v1795_v18 = vld [vmem:[%s2332_s18 + $0x94] sm:$0xf0]  ;;  %v1645_v19 = vld [vmem:[%s2332_s18 + $0x110] sm:$0xf]  ;;  %v1509_v23 = vld [vmem:[%s2332_s18] sm:$0xf] }
  0xa4   : > { %1160 = vmatpush.bf16.msra.mxu3 %v1734_v57  ;;  %v1811_v20 = vld [vmem:[%s2332_s18 + $0x114] sm:$0xf0]  ;;  %v1709_v21 = vld [vmem:[%s2332_s18 + $0x190] sm:$0xf]  ;;  %v1777_v25 = vld [vmem:[%s2332_s18 + $0x4] sm:$0xf0]  ;;  %v1582_v28 = vor.u32 %v1795_v18, %v1581_v16 }
  0xa5   : > { %1119 = vmatpush.bf16.msra.mxu0 %v1534_v63  ;;  %v1827_v22 = vld [vmem:[%s2332_s18 + $0x194] sm:$0xf0]  ;;  %v1573_v26 = vld [vmem:[%s2332_s18 + $0x80] sm:$0xf]  ;;  %v1793_v27 = vld [vmem:[%s2332_s18 + $0x84] sm:$0xf0]  ;;  %v1646_v29 = vor.u32 %v1811_v20, %v1645_v19  ;;  %v1510_v40 = vor.u32 %v1777_v25, %v1509_v23 }
  0xa6   : > { %1133 = vmatpush.bf16.msra.mxu1 %v1598_v0  ;;  %v1637_v30 = vld [vmem:[%s2332_s18 + $0x100] sm:$0xf]  ;;  %v1809_v31 = vld [vmem:[%s2332_s18 + $0x104] sm:$0xf0]  ;;  %v1710_v33 = vor.u32 %v1827_v22, %v1709_v21  ;;  %v1790_v35 = vld [vmem:[%s2332_s18 + $0x74] sm:$0xf]  ;;  %v1574_v44 = vor.u32 %v1793_v27, %v1573_v26 }
  0xa7   : > { %1147 = vmatpush.bf16.msra.mxu2 %v1662_v1  ;;  %v1701_v32 = vld [vmem:[%s2332_s18 + $0x180] sm:$0xf]  ;;  %v1825_v34 = vld [vmem:[%s2332_s18 + $0x184] sm:$0xf0]  ;;  %v1567_v36 = vld [vmem:[%s2332_s18 + $0x78] sm:$0xf0]  ;;  %v1638_v45 = vor.u32 %v1809_v31, %v1637_v30 }
  0xa8   : > { %1161 = vmatpush.bf16.msra.mxu3 %v1726_v5  ;;  %v1806_v37 = vld [vmem:[%s2332_s18 + $0xf4] sm:$0xf]  ;;  %v1631_v38 = vld [vmem:[%s2332_s18 + $0xf8] sm:$0xf0]  ;;  %v1788_v46 = vld [vmem:[%s2332_s18 + $0x64] sm:$0xf]  ;;  %v1702_v50 = vor.u32 %v1825_v34, %v1701_v32  ;;  %v1570_v51 = vor.u32 %v1790_v35, %v1567_v36 }
  0xa9   : > { %1120 = vmatpush.bf16.msra.mxu0 %v1526_v11  ;;  %v1822_v39 = vld [vmem:[%s2332_s18 + $0x174] sm:$0xf]  ;;  %v1695_v41 = vld [vmem:[%s2332_s18 + $0x178] sm:$0xf0]  ;;  %v1559_v47 = vld [vmem:[%s2332_s18 + $0x68] sm:$0xf0]  ;;  %v1634_v56 = vor.u32 %v1806_v37, %v1631_v38 }
  0xaa   : > { %1134 = vmatpush.bf16.msra.mxu1 %v1590_v12  ;;  %v1838_v42 = vld [vmem:[%s2332_s18 + $0x1f4] sm:$0xf]  ;;  %v1759_v43 = vld [vmem:[%s2332_s18 + $0x1f8] sm:$0xf0]  ;;  %v1501_v48 = vld [vmem:[%s2330_s12 + $0x8] sm:$0xf]  ;;  %v1698_v57 = vor.u32 %v1822_v39, %v1695_v41  ;;  %v1562_v6 = vor.u32 %v1788_v46, %v1559_v47 }
  0xab   : > { %1148 = vmatpush.bf16.msra.mxu2 %v1654_v13  ;;  %v1775_v49 = vld [vmem:[%s2330_s12 + $0x14] sm:$0xf0]  ;;  %v1804_v52 = vld [vmem:[%s2332_s18 + $0xe4] sm:$0xf]  ;;  %v1623_v53 = vld [vmem:[%s2332_s18 + $0xe8] sm:$0xf0]  ;;  %v1762_v61 = vor.u32 %v1838_v42, %v1759_v43 }
  0xac   : > { %1162 = vmatpush.bf16.msra.mxu3 %v1718_v17  ;;  %v1820_v54 = vld [vmem:[%s2332_s18 + $0x164] sm:$0xf]  ;;  %v1687_v55 = vld [vmem:[%s2332_s18 + $0x168] sm:$0xf0]  ;;  %v1503_v59 = vld [vmem:[%s2330_s12 + $0x18] sm:$0xf0]  ;;  %v2422_v62 = vor.u32 %v1775_v49, %v1501_v48  ;;  %v1626_v8 = vor.u32 %v1804_v52, %v1623_v53 }
  0xad   : > { %1121 = vmatpush.bf16.msra.mxu0 %v1518_v24  ;;  %v1773_v58 = vld [vmem:[%s2330_s12 + $0xc] sm:$0xf]  ;;  %v1493_v60 = vld [vmem:[%s2330_s12] sm:$0xf]  ;;  %v1774_v63 = vld [vmem:[%s2330_s12 + $0xc] sm:$0xf0]  ;;  %v1690_v9 = vor.u32 %v1820_v54, %v1687_v55 }
  0xae   : > { %1135 = vmatpush.bf16.msra.mxu1 %v1582_v28  ;;  %v1772_v0 = vld [vmem:[%s2330_s12 + $0x4] sm:$0xf]  ;;  %v1495_v1 = vld [vmem:[%s2330_s12 + $0x10] sm:$0xf0]  ;;  %v1751_v3 = vld [vmem:[%s2332_s18 + $0x1e8] sm:$0xf0]  ;;  %v2429_v4 = vor.u32 %v1773_v58, %v1503_v59  ;;  %v2431_v5 = vor.u32 %v1774_v63, %v1493_v60 }
  0xaf   : > { %1149 = vmatpush.bf16.msra.mxu2 %v1646_v29  ;;  %v1836_v2 = vld [vmem:[%s2332_s18 + $0x1e4] sm:$0xf]  ;;  %v2433_v7 = vor.u32 %v1772_v0, %v1495_v1  ;;  %v1786_v10 = vld [vmem:[%s2332_s18 + $0x54] sm:$0xf]  ;;  %v1551_v11 = vld [vmem:[%s2332_s18 + $0x58] sm:$0xf0] }
  0xb0   : > { %1163 = vmatpush.bf16.msra.mxu3 %v1710_v33  ;;  %v1802_v12 = vld [vmem:[%s2332_s18 + $0xd4] sm:$0xf]  ;;  %v1754_v13 = vor.u32 %v1836_v2, %v1751_v3  ;;  %v1615_v14 = vld [vmem:[%s2332_s18 + $0xd8] sm:$0xf0]  ;;  %v1554_v19 = vor.u32 %v1786_v10, %v1551_v11  ;;  %v1784_v22 = vld [vmem:[%s2332_s18 + $0x44] sm:$0xf] }
  0xb1   : > { %1122 = vmatpush.bf16.msra.mxu0 %v1510_v40  ;;  %v1818_v15 = vld [vmem:[%s2332_s18 + $0x154] sm:$0xf]  ;;  %v1679_v16 = vld [vmem:[%s2332_s18 + $0x158] sm:$0xf0]  ;;  %v1618_v20 = vor.u32 %v1802_v12, %v1615_v14  ;;  %v1543_v23 = vld [vmem:[%s2332_s18 + $0x48] sm:$0xf0] }
  0xb2   : > { %1136 = vmatpush.bf16.msra.mxu1 %v1574_v44  ;;  %v1834_v17 = vld [vmem:[%s2332_s18 + $0x1d4] sm:$0xf]  ;;  %v1743_v18 = vld [vmem:[%s2332_s18 + $0x1d8] sm:$0xf0]  ;;  %v1682_v21 = vor.u32 %v1818_v15, %v1679_v16  ;;  %v1800_v24 = vld [vmem:[%s2332_s18 + $0xc4] sm:$0xf]  ;;  %v1546_v31 = vor.u32 %v1784_v22, %v1543_v23 }
  0xb3   : > { %1150 = vmatpush.bf16.msra.mxu2 %v1638_v45  ;;  %v1746_v25 = vor.u32 %v1834_v17, %v1743_v18  ;;  %v1607_v26 = vld [vmem:[%s2332_s18 + $0xc8] sm:$0xf0]  ;;  %v1816_v27 = vld [vmem:[%s2332_s18 + $0x144] sm:$0xf]  ;;  %v1782_v34 = vld [vmem:[%s2332_s18 + $0x34] sm:$0xf] }
  0xb4   : > { %1164 = vmatpush.bf16.msra.mxu3 %v1702_v50  ;;  %1123 = vmatmul.bf16.vlgmr.msra.gmra.mxu0 %v2431_v5  ;;  %v1671_v28 = vld [vmem:[%s2332_s18 + $0x148] sm:$0xf0]  ;;  %v1832_v29 = vld [vmem:[%s2332_s18 + $0x1c4] sm:$0xf]  ;;  %v1610_v32 = vor.u32 %v1800_v24, %v1607_v26  ;;  %v1535_v35 = vld [vmem:[%s2332_s18 + $0x38] sm:$0xf0] }
  0xb5   : > { %1171 = vmatpush.bf16.msrb.mxu0 %v1570_v51  ;;  %1137 = vmatmul.bf16.vlgmr.msra.gmra.mxu1 %v2433_v7  ;;  %v1735_v30 = vld [vmem:[%s2332_s18 + $0x1c8] sm:$0xf0]  ;;  %v1674_v33 = vor.u32 %v1816_v27, %v1671_v28  ;;  %v1798_v36 = vld [vmem:[%s2332_s18 + $0xb4] sm:$0xf]  ;;  %v1599_v38 = vld [vmem:[%s2332_s18 + $0xb8] sm:$0xf0]  ;;  %v1538_v43 = vor.u32 %v1782_v34, %v1535_v35 }
  0xb6   : > { %1185 = vmatpush.bf16.msrb.mxu1 %v1634_v56  ;;  %1151 = vmatmul.bf16.vlgmr.msra.gmra.mxu2 %v2422_v62  ;;  %v1738_v37 = vor.u32 %v1832_v29, %v1735_v30  ;;  %v1814_v39 = vld [vmem:[%s2332_s18 + $0x134] sm:$0xf]  ;;  %v1663_v40 = vld [vmem:[%s2332_s18 + $0x138] sm:$0xf0]  ;;  %v1602_v44 = vor.u32 %v1798_v36, %v1599_v38  ;;  %v1780_v46 = vld [vmem:[%s2332_s18 + $0x24] sm:$0xf] }
  0xb7   : > { %1199 = vmatpush.bf16.msrb.mxu2 %v1698_v57  ;;  %1165 = vmatmul.bf16.vlgmr.msra.gmra.mxu3 %v2429_v4  ;;  %v1830_v41 = vld [vmem:[%s2332_s18 + $0x1b4] sm:$0xf]  ;;  %v1727_v42 = vld [vmem:[%s2332_s18 + $0x1b8] sm:$0xf0]  ;;  %v1666_v45 = vor.u32 %v1814_v39, %v1663_v40  ;;  %v1527_v47 = vld [vmem:[%s2332_s18 + $0x28] sm:$0xf0] }
  0xb8   : > { %1213 = vmatpush.bf16.msrb.mxu3 %v1762_v61  ;;  %v1796_v48 = vld [vmem:[%s2332_s18 + $0xa4] sm:$0xf]  ;;  %v1730_v49 = vor.u32 %v1830_v41, %v1727_v42  ;;  %v1591_v50 = vld [vmem:[%s2332_s18 + $0xa8] sm:$0xf0]  ;;  %v1530_v55 = vor.u32 %v1780_v46, %v1527_v47  ;;  %v1778_v58 = vld [vmem:[%s2332_s18 + $0x14] sm:$0xf] }
  0xb9   : > { %1172 = vmatpush.bf16.msrb.mxu0 %v1562_v6  ;;  %v1812_v51 = vld [vmem:[%s2332_s18 + $0x124] sm:$0xf]  ;;  %v1655_v52 = vld [vmem:[%s2332_s18 + $0x128] sm:$0xf0]  ;;  %v1594_v56 = vor.u32 %v1796_v48, %v1591_v50  ;;  %v1519_v59 = vld [vmem:[%s2332_s18 + $0x18] sm:$0xf0] }
  0xba   : > { %1186 = vmatpush.bf16.msrb.mxu1 %v1626_v8  ;;  %v1828_v53 = vld [vmem:[%s2332_s18 + $0x1a4] sm:$0xf]  ;;  %v1719_v54 = vld [vmem:[%s2332_s18 + $0x1a8] sm:$0xf0]  ;;  %v1658_v57 = vor.u32 %v1812_v51, %v1655_v52  ;;  %v1794_v60 = vld [vmem:[%s2332_s18 + $0x94] sm:$0xf]  ;;  %v1522_v6 = vor.u32 %v1778_v58, %v1519_v59 }
  0xbb   : > { %1200 = vmatpush.bf16.msrb.mxu2 %v1690_v9  ;;  %v1722_v61 = vor.u32 %v1828_v53, %v1719_v54  ;;  %v1583_v63 = vld [vmem:[%s2332_s18 + $0x98] sm:$0xf0]  ;;  %v1810_v0 = vld [vmem:[%s2332_s18 + $0x114] sm:$0xf]  ;;  %v1776_v10 = vld [vmem:[%s2332_s18 + $0x4] sm:$0xf] }
  0xbc   : > { %1214 = vmatpush.bf16.msrb.mxu3 %v1754_v13  ;;  %v1647_v1 = vld [vmem:[%s2332_s18 + $0x118] sm:$0xf0]  ;;  %v1826_v2 = vld [vmem:[%s2332_s18 + $0x194] sm:$0xf]  ;;  %v1586_v8 = vor.u32 %v1794_v60, %v1583_v63  ;;  %v1511_v11 = vld [vmem:[%s2332_s18 + $0x8] sm:$0xf0] }
  0xbd   : > { %1173 = vmatpush.bf16.msrb.mxu0 %v1554_v19  ;;  %v1711_v3 = vld [vmem:[%s2332_s18 + $0x198] sm:$0xf0]  ;;  %v1650_v9 = vor.u32 %v1810_v0, %v1647_v1  ;;  %v1792_v12 = vld [vmem:[%s2332_s18 + $0x84] sm:$0xf]  ;;  %v1575_v14 = vld [vmem:[%s2332_s18 + $0x88] sm:$0xf0]  ;;  %v1514_v19 = vor.u32 %v1776_v10, %v1511_v11 }
  0xbe   : > { %1187 = vmatpush.bf16.msrb.mxu1 %v1618_v20  ;;  %v1714_v13 = vor.u32 %v1826_v2, %v1711_v3  ;;  %v1808_v15 = vld [vmem:[%s2332_s18 + $0x104] sm:$0xf]  ;;  %v1639_v16 = vld [vmem:[%s2332_s18 + $0x108] sm:$0xf0]  ;;  %v1578_v20 = vor.u32 %v1792_v12, %v1575_v14  ;;  %v703_v29 = vld [vmem:[#allocation2 + $0x10] sm:$0xff]  ;;  %p1763_p6 = scmp.ne.s32.totalorder %s2000_s24, 8 }
  0xbf   : > { %1201 = vmatpush.bf16.msrb.mxu2 %v1682_v21  ;;  %v1824_v17 = vld [vmem:[%s2332_s18 + $0x184] sm:$0xf]  ;;  %v1703_v18 = vld [vmem:[%s2332_s18 + $0x188] sm:$0xf0]  ;;  %v1642_v21 = vor.u32 %v1808_v15, %v1639_v16  ;;  %v705_v36 = vld [vmem:[#allocation2 + $0x18] sm:$0xff] }
  0xc0   : > { %1215 = vmatpush.bf16.msrb.mxu3 %v1746_v25  ;;  %v1706_v22 = vor.u32 %v1824_v17, %v1703_v18  ;;  %v706_v51 = vld [vmem:[#allocation2 + $0x8] sm:$0xff] }
  0xc1   : > { %1174 = vmatpush.bf16.msrb.mxu0 %v1546_v31 }
  0xc2   : > { %1188 = vmatpush.bf16.msrb.mxu1 %v1610_v32 }
  0xc3   : > { %1202 = vmatpush.bf16.msrb.mxu2 %v1674_v33 }
  0xc4   : > { %1216 = vmatpush.bf16.msrb.mxu3 %v1738_v37 }
  0xc5   : > { %1175 = vmatpush.bf16.msrb.mxu0 %v1538_v43  ;;  %v704_v43 = vld [vmem:[#allocation2] sm:$0xff] }
  0xc6   : > { %1189 = vmatpush.bf16.msrb.mxu1 %v1602_v44 }
  0xc7   : > { %1203 = vmatpush.bf16.msrb.mxu2 %v1666_v45 }
  0xc8   : > { %1217 = vmatpush.bf16.msrb.mxu3 %v1730_v49 }
  0xc9   : > { %1176 = vmatpush.bf16.msrb.mxu0 %v1530_v55 }
  0xca   : > { %1190 = vmatpush.bf16.msrb.mxu1 %v1594_v56 }
  0xcb   : > { %1204 = vmatpush.bf16.msrb.mxu2 %v1658_v57 }
  0xcc   : > { %1218 = vmatpush.bf16.msrb.mxu3 %v1722_v61 }
  0xcd   : > { %1177 = vmatpush.bf16.msrb.mxu0 %v1522_v6 }
  0xce   : > { %1191 = vmatpush.bf16.msrb.mxu1 %v1586_v8 }
  0xcf   : > { %1205 = vmatpush.bf16.msrb.mxu2 %v1650_v9 }
  0xd0   : > { %1219 = vmatpush.bf16.msrb.mxu3 %v1714_v13 }
  0xd1   : > { %1178 = vmatpush.bf16.msrb.mxu0 %v1514_v19 }
  0xd2   : > { %1192 = vmatpush.bf16.msrb.mxu1 %v1578_v20 }
  0xd3   : > { %1206 = vmatpush.bf16.msrb.mxu2 %v1642_v21 }
  0xd4   : > { %1220 = vmatpush.bf16.msrb.mxu3 %v1706_v22  ;;  %1179 = vmatmul.bf16.vlgmr.msrb.gmra.mxu0 %v2431_v5 }
  0xd5   : > { %1193 = vmatmul.bf16.vlgmr.msrb.gmra.mxu1 %v2433_v7 }
  0xd6   : > { %1207 = vmatmul.bf16.vlgmr.msrb.gmra.mxu2 %v2422_v62 }
  0xd7   : > { %1221 = vmatmul.bf16.vlgmr.msrb.gmra.mxu3 %v2429_v4 }
 0x131   : > { %v1124_v23 = vpop.f32.mrf.mxu0 }
 0x132   : > { %v1138_v24 = vpop.f32.mrf.mxu1 }
 0x133   : > { %v1139_v25 = vadd.f32 %v1138_v24, %v1124_v23 }
 0x139   : > { %v1152_v26 = vpop.f32.mrf.mxu2  ;;  %v1126_v31 = vpop.f32.mrf.mxu0 }
 0x13a   : > { %v1153_v27 = vadd.f32 %v1152_v26, %v1139_v25  ;;  %v1166_v28 = vpop.f32.mrf.mxu3  ;;  %v1140_v32 = vpop.f32.mrf.mxu1 }
 0x13b   : > { %v1141_v34 = vadd.f32 %v1140_v32, %v1126_v31 }
 0x13c   : > { %v1167_v30 = vadd.f32 %v1166_v28, %v1153_v27 }
 0x13e   : > { %v1227_v33 = vadd.f32 %v1167_v30, %v703_v29 }
 0x140   : > { %1231 = vst [vmem:[#allocation2 + $0x10] sm:$0xff] %v1227_v33 }
 0x141   : > { %v1154_v5 = vpop.f32.mrf.mxu2 }
 0x142   : > { %v1155_v35 = vadd.f32 %v1154_v5, %v1141_v34  ;;  %v1168_v7 = vpop.f32.mrf.mxu3 }
 0x144   : > { %v1169_v62 = vadd.f32 %v1168_v7, %v1155_v35 }
 0x146   : > { %v1229_v37 = vadd.f32 %v1169_v62, %v705_v36 }
 0x148   : > { %1233 = vst [vmem:[#allocation2 + $0x18] sm:$0xff] %v1229_v37 }
 0x151   : > { %v1180_v4 = vpop.f32.mrf.mxu0 }
 0x152   : > { %v1194_v38 = vpop.f32.mrf.mxu1 }
 0x153   : > { %v1195_v39 = vadd.f32 %v1194_v38, %v1180_v4 }
 0x159   : > { %v1208_v40 = vpop.f32.mrf.mxu2  ;;  %v1182_v45 = vpop.f32.mrf.mxu0 }
 0x15a   : > { %v1209_v41 = vadd.f32 %v1208_v40, %v1195_v39  ;;  %v1222_v42 = vpop.f32.mrf.mxu3  ;;  %v1196_v46 = vpop.f32.mrf.mxu1 }
 0x15b   : > { %v1197_v48 = vadd.f32 %v1196_v46, %v1182_v45 }
 0x15c   : > { %v1223_v44 = vadd.f32 %v1222_v42, %v1209_v41 }
 0x15e   : > { %v1228_v47 = vadd.f32 %v1223_v44, %v704_v43 }
 0x160   : > { %1232 = vst [vmem:[#allocation2] sm:$0xff] %v1228_v47 }
 0x161   : > { %v1210_v49 = vpop.f32.mrf.mxu2 }
 0x162   : > { %v1211_v50 = vadd.f32 %v1210_v49, %v1197_v48  ;;  %v1224_v52 = vpop.f32.mrf.mxu3 }
 0x164   : > { %v1225_v53 = vadd.f32 %v1224_v52, %v1211_v50  ;;  %1238 = sbr.rel (%p1763_p6) target bundleno = 379 (0x17b), region = 147 }
 0x166   : > { %v1230_v54 = vadd.f32 %v1225_v53, %v706_v51 }
 0x168   : > { %1234 = vst [vmem:[#allocation2 + $0x8] sm:$0xff] %v1230_v54 }
 0x169   : > { %v1239_v55 = vld [vmem:[#allocation2 + $0x10] sm:$0xff]  ;;  %v1240_v56 = vld [vmem:[#allocation2] sm:$0xff]  ;;  %v1241_v63 = vld [vmem:[#allocation2 + $0x18] sm:$0xff] }
 0x16a   : > { %v1243_v57 = vld [vmem:[%s684_s10] sm:$0x3]  ;;  %v1264_v8 = vld [vmem:[%s637_s7 + $0x8] sm:$0xff] }
 0x16b   : > { %v1245_v58 = vperm.slane %v1243_v57, 0  ;;  %v1246_v59 = vperm.slane %v1243_v57, 1  ;;  %v1253_v60 = vld [vmem:[%s689_s20] sm:$0x3]  ;;  %v1267_v13 = vunpack.c.l.bf16 %v1264_v8  ;;  %v1268_v14 = vunpack.c.h.bf16 %v1264_v8 }
 0x16c   : > { %v1263_v61 = vld [vmem:[%s637_s7] sm:$0xff]  ;;  %v1255_v0 = vperm.slane %v1253_v60, 0  ;;  %v1256_v1 = vperm.slane %v1253_v60, 1 }
 0x16d   : > { %v1265_v2 = vunpack.c.l.bf16 %v1263_v61  ;;  %v1266_v3 = vunpack.c.h.bf16 %v1263_v61  ;;  %v1249_v9 = vmul.f32 %v1245_v58, %v1239_v55  ;;  %v1250_v10 = vmul.f32 %v1246_v59, %v1240_v56 }
 0x16e   : > { %v1251_v11 = vmul.f32 %v1245_v58, %v1241_v63 }
 0x16f   : > { %v1242_v6 = vld [vmem:[#allocation2 + $0x8] sm:$0xff]  ;;  %v1259_v15 = vadd.f32 %v1255_v0, %v1249_v9  ;;  %v1260_v16 = vadd.f32 %v1256_v1, %v1250_v10 }
 0x170   : > { %v1252_v12 = vmul.f32 %v1246_v59, %v1242_v6  ;;  %v1261_v17 = vadd.f32 %v1255_v0, %v1251_v11 }
 0x171   : > { %v1269_v19 = vadd.f32 %v1265_v2, %v1259_v15  ;;  %v1270_v20 = vadd.f32 %v1266_v3, %v1260_v16 }
 0x172   : > { %v1262_v18 = vadd.f32 %v1256_v1, %v1252_v12  ;;  %v1271_v21 = vadd.f32 %v1267_v13, %v1261_v17 }
 0x173   : > { %v1273_v23 = vmax.f32 %v1269_v19, 0.0  ;;  %v1274_v24 = vmax.f32 %v1270_v20, 0.0 }
 0x174   : > { %v1272_v22 = vadd.f32 %v1268_v14, %v1262_v18  ;;  %v1275_v25 = vmax.f32 %v1271_v21, 0.0 }
 0x175   : > { %v1277_v27 = vpack.c.bf16 %v1274_v24, %v1273_v23 }
 0x176   : > { %v1276_v26 = vmax.f32 %v1272_v22, 0.0 }
 0x177   : > { %1279 = vst [vmem:[%s2336_s15] sm:$0xff] %v1277_v27 }
 0x178   : > { %v1278_v28 = vpack.c.bf16 %v1276_v26, %v1275_v25 }
 0x17a   : > { %1280 = vst [vmem:[%s2336_s15 + $0x8] sm:$0xff] %v1278_v28 }
 0x17b PF: > { %1287 = sbr.rel (!%p2153_p13) target bundleno = 387 (0x183), region = 151  ;;  %s1840_s24 = sshll.u32 (%p2153_p13), %s2004_s25, 3 }
 0x17c   : > { %s1293_s9 = scalar_lea.vmem (%p2153_p13), %s2554_s5, %s1840_s24 }
 0x17e   : > { %v1324_v29 = vld [vmem:[%s2336_s15] sm:$0xff] (%p2153_p13) }
 0x17f   : > { %1325 = vst [vmem:[%s1293_s9] sm:$0xff] (%p2153_p13), %v1324_v29 }
 0x181   : > { %v1326_v30 = vld [vmem:[%s2336_s15 + $0x8] sm:$0xff] }
 0x182   : > { %1327 = vst [vmem:[%s1293_s9 + $0x10] sm:$0xff] %v1326_v30 }
 0x183 PF: > { %s15_s28 = sadd.s32 1, %s2016_s28   ;;  %s2566_s8 = sld [smem:[#allocation9_spill]] }
 0x184   : > { %p12_p7 = scmp.ge.s32.totalorder %s15_s28, 20   ;;  %s2567_s10 = sld [smem:[#allocation7_spill]] }
 0x185   : > { %s2568_s6 = sld [smem:[#allocation8_spill]]  ;;  %s2569_s18 = smov %s1980_s19 }
 0x186   : > { %s2570_s19 = smov %s2145_s17  ;;  %s2571_s20 = smov %s1988_s21 }
 0x187   : > { %s2572_s21 = smov %s2142_s16  ;;  %s2573_s22 = smov %s1996_s23 }
 0x188   : > { %s2575_s24 = smov %s2008_s26  ;;  %s2576_s25 = smov %s2012_s27 }
 0x189   : > { %s2574_s23 = smov %s2566_s8  ;;  %14 = sbr.rel (!%p12_p7) target bundleno = 8 (0x8), region = 242 }
 0x18a   : > { %s2577_s26 = smov %s2567_s10 }
 0x18b   : > { %s2578_s27 = smov %s2568_s6 }

// kernel: electronics_classifier_forward.41
= control target key start
LH: loop header
LB: loop body
LE: loop exit
PB: predicated region body
PF: predicated region fallthrough
CT: control target
= control target key end

     0   :  { %s2389_s0 = inlined_call_operand.vmem [shape: bf16[16,4608], index: 0, kind: input, shape index: {}]   ;;  %s2390_s1 = inlined_call_operand.vmem [shape: bf16[4608,512], index: 1, kind: input, shape index: {}]   ;;  %s2391_s2 = inlined_call_operand.vmem [shape: f32[1,512], index: 2, kind: input, shape index: {}]   ;;  %s2392_s3 = inlined_call_operand.vmem [shape: f32[1,512], index: 3, kind: input, shape index: {}]   ;;  %s2393_s4 = inlined_call_operand.vmem [shape: bf16[16,512], index: 4, kind: output, shape index: {}]  }
   0x1   :  { %2396 = sst [smem:[#allocation8_spill]] %s2389_s0 }
   0x2   :  { %2397 = sst [smem:[#allocation9_spill]] %s2390_s1 }
   0x3   :  { %s1914_s15 = smov 0   ;;  %s1916_s16 = smov 0  }
   0x4   :  { %s1918_s17 = smov 0   ;;  %s1920_s18 = smov 0  }
   0x5   :  { %s1922_s19 = smov 0   ;;  %s1924_s20 = smov 0  }
   0x6   :  { %s1926_s21 = smov 0   ;;  %s1928_s22 = smov 0  }
   0x7   :  { %s1930_s23 = smov 0   ;;  %s1932_s24 = smov 0  }
   0x8   :  { %s1934_s25 = smov 0  }
   0x9 LB: > { %s1343_s26 = sadd.s32 4294967295, %s1886_s25   ;;  %s26_s27 = sadd.s32 1, %s1878_s23  ;;  %s1886_s25 = sphi %s1934_s25, %s14_s25   ;;  %s1882_s24 = sphi %s1932_s24, %s2416_s24   ;;  %s1878_s23 = sphi %s1930_s23, %s2415_s23   ;;  %s1874_s22 = sphi %s1928_s22, %s2414_s22   ;;  %s1870_s21 = sphi %s1926_s21, %s2413_s21   ;;  %s1866_s20 = sphi %s1924_s20, %s2412_s20   ;;  %s1862_s19 = sphi %s1922_s19, %s2411_s19   ;;  %s1858_s18 = sphi %s1920_s18, %s2410_s18   ;;  %s1854_s17 = sphi %s1918_s17, %s2409_s17   ;;  %s1850_s16 = sphi %s1916_s16, %s2408_s16   ;;  %s1846_s15 = sphi %s1914_s15, %s2407_s15  }
   0xa   : > { %p27_p0 = scmp.ge.s32.totalorder %s26_s27, 9  ;;  %s29_s28 = sadd.s32 1, %s1882_s24 }
   0xb   : > { %s42_s29 = sadd.s32 1, %s1866_s20  ;;  %p49_p1 = scmp.ne.s32.totalorder %s1866_s20, %s1862_s19 }
   0xc   : > { %s2418_s27 = smov (%p27_p0, %s26_s27), 0  ;;  %s2420_s28 = smov (!%p27_p0, %s29_s28), %s1882_s24 }
   0xd   : > { %2398 = sst [smem:[#allocation6_spill]] %s2418_s27  ;;  %s38_s30 = ssub.s32 %s1878_s23, %s2418_s27 }
   0xe   : > { %p50_p2 = scmp.eq.s32.totalorder %s1886_s25, 0  ;;  %p31_p3 = scmp.ge.s32.totalorder %s2420_s28, 2 }
   0xf   : > { %p40_p4 = scmp.eq.s32.totalorder %s38_s30, 0  ;;  %s70_s6 = sadd.s32 1, %s1858_s18 }
  0x10   : > { %p1981_p5 = por %p50_p2, %p49_p1  ;;  %s2422_s28 = smov (%p31_p3, %s2420_s28), 0 }
  0x11   : > { %2400 = sst [smem:[#allocation7_spill]] %s2422_s28  ;;  %s66_s8 = ssub.s32 %s1882_s24, %s2422_s28 }
  0x12   : > { %s1989_s7 = scalar_select %p40_p4, %s1866_s20, %s42_s29  }
  0x13   : > { %p77_p6 = scmp.ne.s32.totalorder %s1858_s18, %s1854_s17  ;;  %s67_s9 = sor.u32 %s66_s8, %s38_s30 }
  0x14   : > { %p148_p7 = scmp.eq.s32.totalorder %s66_s8, 0  ;;  %p68_p8 = scmp.eq.s32.totalorder %s67_s9, 0 }
  0x15   : > { %p1995_p9 = por %p77_p6, %p50_p2  ;;  %s150_s11 = sadd.s32 1, %s1850_s16 }
  0x16   : > { %p160_p10 = scmp.ne.s32.totalorder %s1850_s16, %s1846_s15  ;;  %p161_p11 = scmp.eq.s32.totalorder %s1343_s26, 17 }
  0x17   : > { %s2003_s12 = scalar_select %p68_p8, %s1858_s18, %s70_s6  }
  0x18   : > { %s2006_s13 = scalar_select %p148_p7, %s1850_s16, %s150_s11  }
  0x19   : > { %p2008_p12 = por %p161_p11, %p160_p10  ;;  %p1346_p13 = scmp.ge.s32.totalorder %s1886_s25, 18 }
  0x1b   : > { %183 = sbr.rel (%p1346_p13) target bundleno = 120 (0x78), region = 16 }
  0x20   : > { %186 = sbr.rel (!%p1981_p5) target bundleno = 46 (0x2e), region = 20  ;;  %s188_s29 = sand.u32 (%p1981_p5), 1, %s1866_s20  }
  0x21   : > { %s1640_s30 = sshll.u32 (%p1981_p5), %s1878_s23, 4  ;;  %s1347_s8 = sshll.u32 (%p1981_p5), %s188_s29, 5 }
  0x22   : > { %s2403_s0 = sld [smem:[#allocation8_spill]] (%p1981_p5)  ;;  %s190_s26 = scalar_lea.vmem (%p1981_p5), [#allocation3], %s1347_s8 }
  0x28   : > { %s196_s11 = scalar_lea.vmem %s2403_s0, %s1640_s30 }
  0x29   : > { %v209_v0 = vld [vmem:[%s196_s11] sm:$0xff]  ;;  %v211_v1 = vld [vmem:[%s196_s11 + $0x8] sm:$0xff]  ;;  %v213_v2 = vld [vmem:[%s196_s11 + $0x90] sm:$0xff] }
  0x2a   : > { %210 = vst [vmem:[%s190_s26] sm:$0xff] %v209_v0  ;;  %v215_v3 = vld [vmem:[%s196_s11 + $0x98] sm:$0xff] }
  0x2b   : > { %212 = vst [vmem:[%s190_s26 + $0x8] sm:$0xff] %v211_v1 }
  0x2c   : > { %214 = vst [vmem:[%s190_s26 + $0x10] sm:$0xff] %v213_v2 }
  0x2d   : > { %216 = vst [vmem:[%s190_s26 + $0x18] sm:$0xff] %v215_v3 }
  0x2e PF: > { %222 = sbr.rel (!%p1995_p9) target bundleno = 120 (0x78), region = 43  ;;  %s224_s5 = sand.u32 (%p1995_p9), 1, %s1858_s18  }
  0x2f   : > { %s1352_s29 = sshll.u32 (%p1995_p9), %s1882_s24, 1  ;;  %s1350_s6 = sshll.u32 (%p1995_p9), %s224_s5, 9 }
  0x30   : > { %s1641_s30 = sshll.u32 (%p1995_p9), %s1878_s23, 8  ;;  %s2404_s1 = sld [smem:[#allocation9_spill]] (%p1995_p9) }
  0x31   : > { %s230_s9 = sadd.s32 (%p1995_p9), %s1641_s30, %s1352_s29  ;;  %s2033_s10 = scalar_lea.vmem (%p1995_p9), [#allocation4], %s1350_s6 }
  0x32   : > { %s1354_s0 = sshll.u32 (%p1995_p9), %s230_s9, 2 }
  0x36   : > { %s2028_s11 = scalar_lea.vmem %s2404_s1, %s1354_s0 }
  0x37   : > { %v387_v4 = vld [vmem:[%s2028_s11] sm:$0xff]  ;;  %v389_v5 = vld [vmem:[%s2028_s11 + $0x10] sm:$0xff] }
  0x38   : > { %v391_v6 = vld [vmem:[%s2028_s11 + $0x20] sm:$0xff]  ;;  %388 = vst [vmem:[%s2033_s10] sm:$0xff] %v387_v4  ;;  %v393_v7 = vld [vmem:[%s2028_s11 + $0x30] sm:$0xff] }
  0x39   : > { %390 = vst [vmem:[%s2033_s10 + $0x8] sm:$0xff] %v389_v5  ;;  %v395_v8 = vld [vmem:[%s2028_s11 + $0x40] sm:$0xff]  ;;  %v397_v9 = vld [vmem:[%s2028_s11 + $0x50] sm:$0xff] }
  0x3a   : > { %392 = vst [vmem:[%s2033_s10 + $0x10] sm:$0xff] %v391_v6  ;;  %v399_v10 = vld [vmem:[%s2028_s11 + $0x60] sm:$0xff]  ;;  %v401_v11 = vld [vmem:[%s2028_s11 + $0x70] sm:$0xff] }
  0x3b   : > { %394 = vst [vmem:[%s2033_s10 + $0x18] sm:$0xff] %v393_v7  ;;  %v403_v12 = vld [vmem:[%s2028_s11 + $0x80] sm:$0xff]  ;;  %v405_v13 = vld [vmem:[%s2028_s11 + $0x90] sm:$0xff] }
  0x3c   : > { %396 = vst [vmem:[%s2033_s10 + $0x20] sm:$0xff] %v395_v8  ;;  %v407_v14 = vld [vmem:[%s2028_s11 + $0xa0] sm:$0xff]  ;;  %v409_v15 = vld [vmem:[%s2028_s11 + $0xb0] sm:$0xff] }
  0x3d   : > { %398 = vst [vmem:[%s2033_s10 + $0x28] sm:$0xff] %v397_v9  ;;  %v411_v16 = vld [vmem:[%s2028_s11 + $0xc0] sm:$0xff]  ;;  %v413_v17 = vld [vmem:[%s2028_s11 + $0xd0] sm:$0xff] }
  0x3e   : > { %400 = vst [vmem:[%s2033_s10 + $0x30] sm:$0xff] %v399_v10  ;;  %v415_v18 = vld [vmem:[%s2028_s11 + $0xe0] sm:$0xff]  ;;  %v417_v19 = vld [vmem:[%s2028_s11 + $0xf0] sm:$0xff] }
  0x3f   : > { %402 = vst [vmem:[%s2033_s10 + $0x38] sm:$0xff] %v401_v11  ;;  %v419_v20 = vld [vmem:[%s2028_s11 + $0x100] sm:$0xff]  ;;  %v421_v21 = vld [vmem:[%s2028_s11 + $0x110] sm:$0xff] }
  0x40   : > { %404 = vst [vmem:[%s2033_s10 + $0x40] sm:$0xff] %v403_v12  ;;  %v423_v22 = vld [vmem:[%s2028_s11 + $0x120] sm:$0xff]  ;;  %v425_v23 = vld [vmem:[%s2028_s11 + $0x130] sm:$0xff] }
  0x41   : > { %406 = vst [vmem:[%s2033_s10 + $0x48] sm:$0xff] %v405_v13  ;;  %v427_v24 = vld [vmem:[%s2028_s11 + $0x140] sm:$0xff]  ;;  %v429_v25 = vld [vmem:[%s2028_s11 + $0x150] sm:$0xff] }
  0x42   : > { %408 = vst [vmem:[%s2033_s10 + $0x50] sm:$0xff] %v407_v14  ;;  %v431_v26 = vld [vmem:[%s2028_s11 + $0x160] sm:$0xff]  ;;  %v433_v27 = vld [vmem:[%s2028_s11 + $0x170] sm:$0xff] }
  0x43   : > { %410 = vst [vmem:[%s2033_s10 + $0x58] sm:$0xff] %v409_v15  ;;  %v435_v28 = vld [vmem:[%s2028_s11 + $0x180] sm:$0xff]  ;;  %v437_v29 = vld [vmem:[%s2028_s11 + $0x190] sm:$0xff] }
  0x44   : > { %412 = vst [vmem:[%s2033_s10 + $0x60] sm:$0xff] %v411_v16  ;;  %v439_v30 = vld [vmem:[%s2028_s11 + $0x1a0] sm:$0xff]  ;;  %v441_v31 = vld [vmem:[%s2028_s11 + $0x1b0] sm:$0xff] }
  0x45   : > { %414 = vst [vmem:[%s2033_s10 + $0x68] sm:$0xff] %v413_v17  ;;  %v443_v32 = vld [vmem:[%s2028_s11 + $0x1c0] sm:$0xff]  ;;  %v445_v33 = vld [vmem:[%s2028_s11 + $0x1d0] sm:$0xff] }
  0x46   : > { %416 = vst [vmem:[%s2033_s10 + $0x70] sm:$0xff] %v415_v18  ;;  %v447_v34 = vld [vmem:[%s2028_s11 + $0x1e0] sm:$0xff]  ;;  %v449_v35 = vld [vmem:[%s2028_s11 + $0x1f0] sm:$0xff] }
  0x47   : > { %418 = vst [vmem:[%s2033_s10 + $0x78] sm:$0xff] %v417_v19  ;;  %v451_v36 = vld [vmem:[%s2028_s11 + $0x200] sm:$0xff]  ;;  %v453_v37 = vld [vmem:[%s2028_s11 + $0x210] sm:$0xff] }
  0x48   : > { %420 = vst [vmem:[%s2033_s10 + $0x80] sm:$0xff] %v419_v20  ;;  %v455_v38 = vld [vmem:[%s2028_s11 + $0x220] sm:$0xff]  ;;  %v457_v39 = vld [vmem:[%s2028_s11 + $0x230] sm:$0xff] }
  0x49   : > { %422 = vst [vmem:[%s2033_s10 + $0x88] sm:$0xff] %v421_v21  ;;  %v459_v40 = vld [vmem:[%s2028_s11 + $0x240] sm:$0xff]  ;;  %v461_v41 = vld [vmem:[%s2028_s11 + $0x250] sm:$0xff] }
  0x4a   : > { %424 = vst [vmem:[%s2033_s10 + $0x90] sm:$0xff] %v423_v22  ;;  %v463_v42 = vld [vmem:[%s2028_s11 + $0x260] sm:$0xff]  ;;  %v465_v43 = vld [vmem:[%s2028_s11 + $0x270] sm:$0xff] }
  0x4b   : > { %426 = vst [vmem:[%s2033_s10 + $0x98] sm:$0xff] %v425_v23  ;;  %v467_v44 = vld [vmem:[%s2028_s11 + $0x280] sm:$0xff]  ;;  %v469_v45 = vld [vmem:[%s2028_s11 + $0x290] sm:$0xff] }
  0x4c   : > { %428 = vst [vmem:[%s2033_s10 + $0xa0] sm:$0xff] %v427_v24  ;;  %v471_v46 = vld [vmem:[%s2028_s11 + $0x2a0] sm:$0xff]  ;;  %v473_v47 = vld [vmem:[%s2028_s11 + $0x2b0] sm:$0xff] }
  0x4d   : > { %430 = vst [vmem:[%s2033_s10 + $0xa8] sm:$0xff] %v429_v25  ;;  %v475_v48 = vld [vmem:[%s2028_s11 + $0x2c0] sm:$0xff]  ;;  %v477_v49 = vld [vmem:[%s2028_s11 + $0x2d0] sm:$0xff] }
  0x4e   : > { %432 = vst [vmem:[%s2033_s10 + $0xb0] sm:$0xff] %v431_v26  ;;  %v479_v50 = vld [vmem:[%s2028_s11 + $0x2e0] sm:$0xff]  ;;  %v481_v51 = vld [vmem:[%s2028_s11 + $0x2f0] sm:$0xff] }
  0x4f   : > { %434 = vst [vmem:[%s2033_s10 + $0xb8] sm:$0xff] %v433_v27  ;;  %v483_v52 = vld [vmem:[%s2028_s11 + $0x300] sm:$0xff]  ;;  %v485_v53 = vld [vmem:[%s2028_s11 + $0x310] sm:$0xff] }
  0x50   : > { %436 = vst [vmem:[%s2033_s10 + $0xc0] sm:$0xff] %v435_v28  ;;  %v487_v54 = vld [vmem:[%s2028_s11 + $0x320] sm:$0xff]  ;;  %v489_v55 = vld [vmem:[%s2028_s11 + $0x330] sm:$0xff] }
  0x51   : > { %438 = vst [vmem:[%s2033_s10 + $0xc8] sm:$0xff] %v437_v29  ;;  %v491_v56 = vld [vmem:[%s2028_s11 + $0x340] sm:$0xff]  ;;  %v493_v57 = vld [vmem:[%s2028_s11 + $0x350] sm:$0xff] }
  0x52   : > { %440 = vst [vmem:[%s2033_s10 + $0xd0] sm:$0xff] %v439_v30  ;;  %v495_v58 = vld [vmem:[%s2028_s11 + $0x360] sm:$0xff]  ;;  %v497_v59 = vld [vmem:[%s2028_s11 + $0x370] sm:$0xff] }
  0x53   : > { %442 = vst [vmem:[%s2033_s10 + $0xd8] sm:$0xff] %v441_v31  ;;  %v499_v60 = vld [vmem:[%s2028_s11 + $0x380] sm:$0xff]  ;;  %v501_v61 = vld [vmem:[%s2028_s11 + $0x390] sm:$0xff] }
  0x54   : > { %444 = vst [vmem:[%s2033_s10 + $0xe0] sm:$0xff] %v443_v32  ;;  %v503_v62 = vld [vmem:[%s2028_s11 + $0x3a0] sm:$0xff]  ;;  %v505_v63 = vld [vmem:[%s2028_s11 + $0x3b0] sm:$0xff] }
  0x55   : > { %446 = vst [vmem:[%s2033_s10 + $0xe8] sm:$0xff] %v445_v33  ;;  %v507_v0 = vld [vmem:[%s2028_s11 + $0x3c0] sm:$0xff]  ;;  %v509_v1 = vld [vmem:[%s2028_s11 + $0x3d0] sm:$0xff] }
  0x56   : > { %448 = vst [vmem:[%s2033_s10 + $0xf0] sm:$0xff] %v447_v34  ;;  %v511_v2 = vld [vmem:[%s2028_s11 + $0x3e0] sm:$0xff]  ;;  %v513_v3 = vld [vmem:[%s2028_s11 + $0x3f0] sm:$0xff] }
  0x57   : > { %450 = vst [vmem:[%s2033_s10 + $0xf8] sm:$0xff] %v449_v35 }
  0x58   : > { %452 = vst [vmem:[%s2033_s10 + $0x100] sm:$0xff] %v451_v36 }
  0x59   : > { %454 = vst [vmem:[%s2033_s10 + $0x108] sm:$0xff] %v453_v37 }
  0x5a   : > { %456 = vst [vmem:[%s2033_s10 + $0x110] sm:$0xff] %v455_v38 }
  0x5b   : > { %458 = vst [vmem:[%s2033_s10 + $0x118] sm:$0xff] %v457_v39 }
  0x5c   : > { %460 = vst [vmem:[%s2033_s10 + $0x120] sm:$0xff] %v459_v40 }
  0x5d   : > { %462 = vst [vmem:[%s2033_s10 + $0x128] sm:$0xff] %v461_v41 }
  0x5e   : > { %464 = vst [vmem:[%s2033_s10 + $0x130] sm:$0xff] %v463_v42 }
  0x5f   : > { %466 = vst [vmem:[%s2033_s10 + $0x138] sm:$0xff] %v465_v43 }
  0x60   : > { %468 = vst [vmem:[%s2033_s10 + $0x140] sm:$0xff] %v467_v44 }
  0x61   : > { %470 = vst [vmem:[%s2033_s10 + $0x148] sm:$0xff] %v469_v45 }
  0x62   : > { %472 = vst [vmem:[%s2033_s10 + $0x150] sm:$0xff] %v471_v46 }
  0x63   : > { %474 = vst [vmem:[%s2033_s10 + $0x158] sm:$0xff] %v473_v47 }
  0x64   : > { %476 = vst [vmem:[%s2033_s10 + $0x160] sm:$0xff] %v475_v48 }
  0x65   : > { %478 = vst [vmem:[%s2033_s10 + $0x168] sm:$0xff] %v477_v49 }
  0x66   : > { %480 = vst [vmem:[%s2033_s10 + $0x170] sm:$0xff] %v479_v50 }
  0x67   : > { %482 = vst [vmem:[%s2033_s10 + $0x178] sm:$0xff] %v481_v51 }
  0x68   : > { %484 = vst [vmem:[%s2033_s10 + $0x180] sm:$0xff] %v483_v52 }
  0x69   : > { %486 = vst [vmem:[%s2033_s10 + $0x188] sm:$0xff] %v485_v53 }
  0x6a   : > { %488 = vst [vmem:[%s2033_s10 + $0x190] sm:$0xff] %v487_v54 }
  0x6b   : > { %490 = vst [vmem:[%s2033_s10 + $0x198] sm:$0xff] %v489_v55 }
  0x6c   : > { %492 = vst [vmem:[%s2033_s10 + $0x1a0] sm:$0xff] %v491_v56 }
  0x6d   : > { %494 = vst [vmem:[%s2033_s10 + $0x1a8] sm:$0xff] %v493_v57 }
  0x6e   : > { %496 = vst [vmem:[%s2033_s10 + $0x1b0] sm:$0xff] %v495_v58 }
  0x6f   : > { %498 = vst [vmem:[%s2033_s10 + $0x1b8] sm:$0xff] %v497_v59 }
  0x70   : > { %500 = vst [vmem:[%s2033_s10 + $0x1c0] sm:$0xff] %v499_v60 }
  0x71   : > { %502 = vst [vmem:[%s2033_s10 + $0x1c8] sm:$0xff] %v501_v61 }
  0x72   : > { %504 = vst [vmem:[%s2033_s10 + $0x1d0] sm:$0xff] %v503_v62 }
  0x73   : > { %506 = vst [vmem:[%s2033_s10 + $0x1d8] sm:$0xff] %v505_v63 }
  0x74   : > { %508 = vst [vmem:[%s2033_s10 + $0x1e0] sm:$0xff] %v507_v0 }
  0x75   : > { %510 = vst [vmem:[%s2033_s10 + $0x1e8] sm:$0xff] %v509_v1 }
  0x76   : > { %512 = vst [vmem:[%s2033_s10 + $0x1f0] sm:$0xff] %v511_v2 }
  0x77   : > { %514 = vst [vmem:[%s2033_s10 + $0x1f8] sm:$0xff] %v513_v3 }
  0x78 PF: > { %p1355_p0 = scmp.ge.s32.totalorder %s1886_s25, 1  ;;  %p535_p1 = scmp.lt.s32.totalorder %s1886_s25, 19 }
  0x7a   : > { %p536_p2 = pnand %p1355_p0, %p535_p1 }
  0x7b   : > { %s542_s0 = sand.u32 (!%p536_p2), 1, %s1862_s19   ;;  %s549_s28 = sand.u32 (!%p536_p2), 1, %s1854_s17  }
  0x7c   : > { %539 = sbr.rel (%p536_p2) target bundleno = 380 (0x17c), region = 89  ;;  %s1356_s26 = sshll.u32 (!%p536_p2), %s542_s0, 5 }
  0x7d   : > { %s1357_s5 = sshll.u32 (!%p536_p2), %s549_s28, 9  ;;  %s582_s29 = sand.u32 (!%p536_p2), 1, %s1846_s15  }
  0x7e   : > { %s1359_s6 = sshll.u32 (!%p536_p2), %s1874_s22, 1  ;;  %s1358_s30 = sshll.u32 (!%p536_p2), %s582_s29, 4 }
  0x7f   : > { %p590_p3 = scmp.lt.s32.totalorder (!%p536_p2), %s1359_s6, 3  ;;  %s2176_s19 = scalar_lea.vmem (!%p536_p2), [#allocation3], %s1356_s26 }
  0x80   : > { %s2178_s17 = scalar_lea.vmem (!%p536_p2), [#allocation4], %s1357_s5  ;;  %s2180_s15 = scalar_lea.vmem (!%p536_p2), [#allocation5], %s1358_s30 }
  0x81   : > { %s2424_s6 = smov (!%p590_p3, %s1359_s6), 3  ;;  %p1361_p4 = scmp.ne.s32.totalorder %s1870_s21, 0 }
  0x82   : > { %s592_s11 = scalar_lea.vmem %s2391_s2, %s2424_s6  ;;  %s597_s27 = scalar_lea.vmem %s2392_s3, %s2424_s6 }
  0x83   : > { %604 = sbr.rel (%p1361_p4) target bundleno = 141 (0x8d), region = 101 }
  0x88   : > { %v1888_v4 = vmov 0.0  }
  0x89   : > { %605 = vst [vmem:[#allocation2 + $0x10] sm:$0xff] %v1888_v4 }
  0x8a   : > { %606 = vst [vmem:[#allocation2] sm:$0xff] %v1888_v4 }
  0x8b   : > { %607 = vst [vmem:[#allocation2 + $0x18] sm:$0xff] %v1888_v4 }
  0x8c   : > { %608 = vst [vmem:[#allocation2 + $0x8] sm:$0xff] %v1888_v4 }
  0x8d PF: > { %v1436_v5 = vld [vmem:[%s2178_s17 + $0x70] sm:$0xf]  ;;  %v1661_v6 = vld [vmem:[%s2178_s17 + $0x74] sm:$0xf0]  ;;  %v1428_v16 = vld [vmem:[%s2178_s17 + $0x60] sm:$0xf] }
  0x8e   : > { %v1500_v7 = vld [vmem:[%s2178_s17 + $0xf0] sm:$0xf]  ;;  %v1437_v8 = vor.u32 %v1661_v6, %v1436_v5  ;;  %v1677_v9 = vld [vmem:[%s2178_s17 + $0xf4] sm:$0xf0]  ;;  %v1659_v18 = vld [vmem:[%s2178_s17 + $0x64] sm:$0xf0] }
  0x8f   : > { %v1564_v10 = vld [vmem:[%s2178_s17 + $0x170] sm:$0xf]  ;;  %v1693_v11 = vld [vmem:[%s2178_s17 + $0x174] sm:$0xf0]  ;;  %v1501_v12 = vor.u32 %v1677_v9, %v1500_v7  ;;  %v1492_v19 = vld [vmem:[%s2178_s17 + $0xe0] sm:$0xf]  ;;  %v1429_v21 = vor.u32 %v1659_v18, %v1428_v16 }
  0x90   : > { %v1565_v13 = vor.u32 %v1693_v11, %v1564_v10  ;;  %v1628_v14 = vld [vmem:[%s2178_s17 + $0x1f0] sm:$0xf]  ;;  %v1709_v15 = vld [vmem:[%s2178_s17 + $0x1f4] sm:$0xf0]  ;;  %1021 = vmatpush.bf16.msra.mxu0 %v1437_v8  ;;  %v1675_v20 = vld [vmem:[%s2178_s17 + $0xe4] sm:$0xf0] }
  0x91   : > { %v1629_v17 = vor.u32 %v1709_v15, %v1628_v14  ;;  %1035 = vmatpush.bf16.msra.mxu1 %v1501_v12  ;;  %v1493_v22 = vor.u32 %v1675_v20, %v1492_v19  ;;  %v1556_v23 = vld [vmem:[%s2178_s17 + $0x160] sm:$0xf]  ;;  %v1691_v24 = vld [vmem:[%s2178_s17 + $0x164] sm:$0xf0]  ;;  %v1420_v28 = vld [vmem:[%s2178_s17 + $0x50] sm:$0xf] }
  0x92   : > { %1049 = vmatpush.bf16.msra.mxu2 %v1565_v13  ;;  %v1620_v25 = vld [vmem:[%s2178_s17 + $0x1e0] sm:$0xf]  ;;  %v1557_v26 = vor.u32 %v1691_v24, %v1556_v23  ;;  %v1707_v27 = vld [vmem:[%s2178_s17 + $0x1e4] sm:$0xf0]  ;;  %v1657_v29 = vld [vmem:[%s2178_s17 + $0x54] sm:$0xf0] }
  0x93   : > { %1063 = vmatpush.bf16.msra.mxu3 %v1629_v17  ;;  %v1621_v30 = vor.u32 %v1707_v27, %v1620_v25  ;;  %v1484_v31 = vld [vmem:[%s2178_s17 + $0xd0] sm:$0xf]  ;;  %v1673_v32 = vld [vmem:[%s2178_s17 + $0xd4] sm:$0xf0]  ;;  %v1421_v34 = vor.u32 %v1657_v29, %v1420_v28  ;;  %v1412_v40 = vld [vmem:[%s2178_s17 + $0x40] sm:$0xf] }
  0x94   : > { %v1548_v33 = vld [vmem:[%s2178_s17 + $0x150] sm:$0xf]  ;;  %1022 = vmatpush.bf16.msra.mxu0 %v1429_v21  ;;  %v1689_v35 = vld [vmem:[%s2178_s17 + $0x154] sm:$0xf0]  ;;  %v1485_v38 = vor.u32 %v1673_v32, %v1484_v31  ;;  %v1655_v41 = vld [vmem:[%s2178_s17 + $0x44] sm:$0xf0] }
  0x95   : > { %v1612_v36 = vld [vmem:[%s2178_s17 + $0x1d0] sm:$0xf]  ;;  %v1705_v37 = vld [vmem:[%s2178_s17 + $0x1d4] sm:$0xf0]  ;;  %1036 = vmatpush.bf16.msra.mxu1 %v1493_v22  ;;  %v1549_v39 = vor.u32 %v1689_v35, %v1548_v33  ;;  %v1476_v42 = vld [vmem:[%s2178_s17 + $0xc0] sm:$0xf]  ;;  %v1413_v49 = vor.u32 %v1655_v41, %v1412_v40 }
  0x96   : > { %1050 = vmatpush.bf16.msra.mxu2 %v1557_v26  ;;  %v1613_v43 = vor.u32 %v1705_v37, %v1612_v36  ;;  %v1671_v44 = vld [vmem:[%s2178_s17 + $0xc4] sm:$0xf0]  ;;  %v1540_v45 = vld [vmem:[%s2178_s17 + $0x140] sm:$0xf]  ;;  %v1404_v52 = vld [vmem:[%s2178_s17 + $0x30] sm:$0xf] }
  0x97   : > { %1064 = vmatpush.bf16.msra.mxu3 %v1621_v30  ;;  %v1687_v46 = vld [vmem:[%s2178_s17 + $0x144] sm:$0xf0]  ;;  %v1604_v47 = vld [vmem:[%s2178_s17 + $0x1c0] sm:$0xf]  ;;  %v1477_v50 = vor.u32 %v1671_v44, %v1476_v42  ;;  %v1653_v53 = vld [vmem:[%s2178_s17 + $0x34] sm:$0xf0] }
  0x98   : > { %v1703_v48 = vld [vmem:[%s2178_s17 + $0x1c4] sm:$0xf0]  ;;  %1023 = vmatpush.bf16.msra.mxu0 %v1421_v34  ;;  %v1541_v51 = vor.u32 %v1687_v46, %v1540_v45  ;;  %v1468_v54 = vld [vmem:[%s2178_s17 + $0xb0] sm:$0xf]  ;;  %v1669_v56 = vld [vmem:[%s2178_s17 + $0xb4] sm:$0xf0]  ;;  %v1405_v61 = vor.u32 %v1653_v53, %v1404_v52 }
  0x99   : > { %1037 = vmatpush.bf16.msra.mxu1 %v1485_v38  ;;  %v1605_v55 = vor.u32 %v1703_v48, %v1604_v47  ;;  %v1532_v57 = vld [vmem:[%s2178_s17 + $0x130] sm:$0xf]  ;;  %v1685_v58 = vld [vmem:[%s2178_s17 + $0x134] sm:$0xf0]  ;;  %v1469_v62 = vor.u32 %v1669_v56, %v1468_v54  ;;  %v1396_v0 = vld [vmem:[%s2178_s17 + $0x20] sm:$0xf] }
  0x9a   : > { %1051 = vmatpush.bf16.msra.mxu2 %v1549_v39  ;;  %v1596_v59 = vld [vmem:[%s2178_s17 + $0x1b0] sm:$0xf]  ;;  %v1701_v60 = vld [vmem:[%s2178_s17 + $0x1b4] sm:$0xf0]  ;;  %v1533_v63 = vor.u32 %v1685_v58, %v1532_v57  ;;  %v1651_v1 = vld [vmem:[%s2178_s17 + $0x24] sm:$0xf0] }
  0x9b   : > { %1065 = vmatpush.bf16.msra.mxu3 %v1613_v43  ;;  %v1460_v2 = vld [vmem:[%s2178_s17 + $0xa0] sm:$0xf]  ;;  %v1597_v3 = vor.u32 %v1701_v60, %v1596_v59  ;;  %v1667_v4 = vld [vmem:[%s2178_s17 + $0xa4] sm:$0xf0]  ;;  %v1397_v9 = vor.u32 %v1651_v1, %v1396_v0  ;;  %v1388_v12 = vld [vmem:[%s2178_s17 + $0x10] sm:$0xf] }
  0x9c   : > { %1024 = vmatpush.bf16.msra.mxu0 %v1413_v49  ;;  %v1524_v5 = vld [vmem:[%s2178_s17 + $0x120] sm:$0xf]  ;;  %v1683_v6 = vld [vmem:[%s2178_s17 + $0x124] sm:$0xf0]  ;;  %v1461_v10 = vor.u32 %v1667_v4, %v1460_v2  ;;  %v1649_v13 = vld [vmem:[%s2178_s17 + $0x14] sm:$0xf0] }
  0x9d   : > { %1038 = vmatpush.bf16.msra.mxu1 %v1477_v50  ;;  %v1588_v7 = vld [vmem:[%s2178_s17 + $0x1a0] sm:$0xf]  ;;  %v1699_v8 = vld [vmem:[%s2178_s17 + $0x1a4] sm:$0xf0]  ;;  %v1525_v11 = vor.u32 %v1683_v6, %v1524_v5  ;;  %v1452_v14 = vld [vmem:[%s2178_s17 + $0x90] sm:$0xf]  ;;  %v1389_v22 = vor.u32 %v1649_v13, %v1388_v12 }
  0x9e   : > { %1052 = vmatpush.bf16.msra.mxu2 %v1541_v51  ;;  %v1589_v15 = vor.u32 %v1699_v8, %v1588_v7  ;;  %v1665_v16 = vld [vmem:[%s2178_s17 + $0x94] sm:$0xf0]  ;;  %v1516_v17 = vld [vmem:[%s2178_s17 + $0x110] sm:$0xf]  ;;  %v1380_v21 = vld [vmem:[%s2178_s17] sm:$0xf] }
  0x9f   : > { %1066 = vmatpush.bf16.msra.mxu3 %v1605_v55  ;;  %v1681_v18 = vld [vmem:[%s2178_s17 + $0x114] sm:$0xf0]  ;;  %v1580_v19 = vld [vmem:[%s2178_s17 + $0x190] sm:$0xf]  ;;  %v1647_v23 = vld [vmem:[%s2178_s17 + $0x4] sm:$0xf0]  ;;  %v1453_v26 = vor.u32 %v1665_v16, %v1452_v14 }
  0xa0   : > { %1025 = vmatpush.bf16.msra.mxu0 %v1405_v61  ;;  %v1697_v20 = vld [vmem:[%s2178_s17 + $0x194] sm:$0xf0]  ;;  %v1444_v24 = vld [vmem:[%s2178_s17 + $0x80] sm:$0xf]  ;;  %v1663_v25 = vld [vmem:[%s2178_s17 + $0x84] sm:$0xf0]  ;;  %v1517_v27 = vor.u32 %v1681_v18, %v1516_v17  ;;  %v1381_v38 = vor.u32 %v1647_v23, %v1380_v21 }
  0xa1   : > { %1039 = vmatpush.bf16.msra.mxu1 %v1469_v62  ;;  %v1508_v28 = vld [vmem:[%s2178_s17 + $0x100] sm:$0xf]  ;;  %v1679_v29 = vld [vmem:[%s2178_s17 + $0x104] sm:$0xf0]  ;;  %v1581_v31 = vor.u32 %v1697_v20, %v1580_v19  ;;  %v1660_v33 = vld [vmem:[%s2178_s17 + $0x74] sm:$0xf]  ;;  %v1445_v42 = vor.u32 %v1663_v25, %v1444_v24 }
  0xa2   : > { %1053 = vmatpush.bf16.msra.mxu2 %v1533_v63  ;;  %v1572_v30 = vld [vmem:[%s2178_s17 + $0x180] sm:$0xf]  ;;  %v1695_v32 = vld [vmem:[%s2178_s17 + $0x184] sm:$0xf0]  ;;  %v1438_v34 = vld [vmem:[%s2178_s17 + $0x78] sm:$0xf0]  ;;  %v1509_v43 = vor.u32 %v1679_v29, %v1508_v28 }
  0xa3   : > { %1067 = vmatpush.bf16.msra.mxu3 %v1597_v3  ;;  %v1676_v35 = vld [vmem:[%s2178_s17 + $0xf4] sm:$0xf]  ;;  %v1502_v36 = vld [vmem:[%s2178_s17 + $0xf8] sm:$0xf0]  ;;  %v1658_v44 = vld [vmem:[%s2178_s17 + $0x64] sm:$0xf]  ;;  %v1573_v48 = vor.u32 %v1695_v32, %v1572_v30  ;;  %v1441_v49 = vor.u32 %v1660_v33, %v1438_v34 }
  0xa4   : > { %1026 = vmatpush.bf16.msra.mxu0 %v1397_v9  ;;  %v1692_v37 = vld [vmem:[%s2178_s17 + $0x174] sm:$0xf]  ;;  %v1566_v39 = vld [vmem:[%s2178_s17 + $0x178] sm:$0xf0]  ;;  %v1430_v45 = vld [vmem:[%s2178_s17 + $0x68] sm:$0xf0]  ;;  %v1505_v54 = vor.u32 %v1676_v35, %v1502_v36 }
  0xa5   : > { %1040 = vmatpush.bf16.msra.mxu1 %v1461_v10  ;;  %v1708_v40 = vld [vmem:[%s2178_s17 + $0x1f4] sm:$0xf]  ;;  %v1630_v41 = vld [vmem:[%s2178_s17 + $0x1f8] sm:$0xf0]  ;;  %v1372_v46 = vld [vmem:[%s2176_s19 + $0x8] sm:$0xf]  ;;  %v1569_v55 = vor.u32 %v1692_v37, %v1566_v39  ;;  %v1433_v4 = vor.u32 %v1658_v44, %v1430_v45 }
  0xa6   : > { %1054 = vmatpush.bf16.msra.mxu2 %v1525_v11  ;;  %v1645_v47 = vld [vmem:[%s2176_s19 + $0x14] sm:$0xf0]  ;;  %v1674_v50 = vld [vmem:[%s2178_s17 + $0xe4] sm:$0xf]  ;;  %v1494_v51 = vld [vmem:[%s2178_s17 + $0xe8] sm:$0xf0]  ;;  %v1633_v59 = vor.u32 %v1708_v40, %v1630_v41 }
  0xa7   : > { %1068 = vmatpush.bf16.msra.mxu3 %v1589_v15  ;;  %v1690_v52 = vld [vmem:[%s2178_s17 + $0x164] sm:$0xf]  ;;  %v1558_v53 = vld [vmem:[%s2178_s17 + $0x168] sm:$0xf0]  ;;  %v1374_v57 = vld [vmem:[%s2176_s19 + $0x18] sm:$0xf0]  ;;  %v2266_v60 = vor.u32 %v1645_v47, %v1372_v46  ;;  %v1497_v6 = vor.u32 %v1674_v50, %v1494_v51 }
  0xa8   : > { %1027 = vmatpush.bf16.msra.mxu0 %v1389_v22  ;;  %v1643_v56 = vld [vmem:[%s2176_s19 + $0xc] sm:$0xf]  ;;  %v1364_v58 = vld [vmem:[%s2176_s19] sm:$0xf]  ;;  %v1644_v61 = vld [vmem:[%s2176_s19 + $0xc] sm:$0xf0]  ;;  %v1561_v7 = vor.u32 %v1690_v52, %v1558_v53 }
  0xa9   : > { %1041 = vmatpush.bf16.msra.mxu1 %v1453_v26  ;;  %v1642_v62 = vld [vmem:[%s2176_s19 + $0x4] sm:$0xf]  ;;  %v1366_v63 = vld [vmem:[%s2176_s19 + $0x10] sm:$0xf0]  ;;  %v1622_v1 = vld [vmem:[%s2178_s17 + $0x1e8] sm:$0xf0]  ;;  %v2273_v2 = vor.u32 %v1643_v56, %v1374_v57  ;;  %v2275_v3 = vor.u32 %v1644_v61, %v1364_v58 }
  0xaa   : > { %1055 = vmatpush.bf16.msra.mxu2 %v1517_v27  ;;  %v1706_v0 = vld [vmem:[%s2178_s17 + $0x1e4] sm:$0xf]  ;;  %v2277_v5 = vor.u32 %v1642_v62, %v1366_v63  ;;  %v1656_v8 = vld [vmem:[%s2178_s17 + $0x54] sm:$0xf]  ;;  %v1422_v9 = vld [vmem:[%s2178_s17 + $0x58] sm:$0xf0] }
  0xab   : > { %1069 = vmatpush.bf16.msra.mxu3 %v1581_v31  ;;  %v1672_v10 = vld [vmem:[%s2178_s17 + $0xd4] sm:$0xf]  ;;  %v1625_v11 = vor.u32 %v1706_v0, %v1622_v1  ;;  %v1486_v12 = vld [vmem:[%s2178_s17 + $0xd8] sm:$0xf0]  ;;  %v1425_v17 = vor.u32 %v1656_v8, %v1422_v9  ;;  %v1654_v20 = vld [vmem:[%s2178_s17 + $0x44] sm:$0xf] }
  0xac   : > { %1028 = vmatpush.bf16.msra.mxu0 %v1381_v38  ;;  %v1688_v13 = vld [vmem:[%s2178_s17 + $0x154] sm:$0xf]  ;;  %v1550_v14 = vld [vmem:[%s2178_s17 + $0x158] sm:$0xf0]  ;;  %v1489_v18 = vor.u32 %v1672_v10, %v1486_v12  ;;  %v1414_v21 = vld [vmem:[%s2178_s17 + $0x48] sm:$0xf0] }
  0xad   : > { %1042 = vmatpush.bf16.msra.mxu1 %v1445_v42  ;;  %v1704_v15 = vld [vmem:[%s2178_s17 + $0x1d4] sm:$0xf]  ;;  %v1614_v16 = vld [vmem:[%s2178_s17 + $0x1d8] sm:$0xf0]  ;;  %v1553_v19 = vor.u32 %v1688_v13, %v1550_v14  ;;  %v1670_v22 = vld [vmem:[%s2178_s17 + $0xc4] sm:$0xf]  ;;  %v1417_v29 = vor.u32 %v1654_v20, %v1414_v21 }
  0xae   : > { %1056 = vmatpush.bf16.msra.mxu2 %v1509_v43  ;;  %v1617_v23 = vor.u32 %v1704_v15, %v1614_v16  ;;  %v1478_v24 = vld [vmem:[%s2178_s17 + $0xc8] sm:$0xf0]  ;;  %v1686_v25 = vld [vmem:[%s2178_s17 + $0x144] sm:$0xf]  ;;  %v1652_v32 = vld [vmem:[%s2178_s17 + $0x34] sm:$0xf] }
  0xaf   : > { %1070 = vmatpush.bf16.msra.mxu3 %v1573_v48  ;;  %1029 = vmatmul.bf16.vlgmr.msra.gmra.mxu0 %v2275_v3  ;;  %v1542_v26 = vld [vmem:[%s2178_s17 + $0x148] sm:$0xf0]  ;;  %v1702_v27 = vld [vmem:[%s2178_s17 + $0x1c4] sm:$0xf]  ;;  %v1481_v30 = vor.u32 %v1670_v22, %v1478_v24  ;;  %v1406_v33 = vld [vmem:[%s2178_s17 + $0x38] sm:$0xf0] }
  0xb0   : > { %1077 = vmatpush.bf16.msrb.mxu0 %v1441_v49  ;;  %1043 = vmatmul.bf16.vlgmr.msra.gmra.mxu1 %v2277_v5  ;;  %v1606_v28 = vld [vmem:[%s2178_s17 + $0x1c8] sm:$0xf0]  ;;  %v1545_v31 = vor.u32 %v1686_v25, %v1542_v26  ;;  %v1668_v34 = vld [vmem:[%s2178_s17 + $0xb4] sm:$0xf]  ;;  %v1470_v36 = vld [vmem:[%s2178_s17 + $0xb8] sm:$0xf0]  ;;  %v1409_v41 = vor.u32 %v1652_v32, %v1406_v33 }
  0xb1   : > { %1091 = vmatpush.bf16.msrb.mxu1 %v1505_v54  ;;  %1057 = vmatmul.bf16.vlgmr.msra.gmra.mxu2 %v2266_v60  ;;  %v1609_v35 = vor.u32 %v1702_v27, %v1606_v28  ;;  %v1684_v37 = vld [vmem:[%s2178_s17 + $0x134] sm:$0xf]  ;;  %v1534_v38 = vld [vmem:[%s2178_s17 + $0x138] sm:$0xf0]  ;;  %v1473_v42 = vor.u32 %v1668_v34, %v1470_v36  ;;  %v1650_v44 = vld [vmem:[%s2178_s17 + $0x24] sm:$0xf] }
  0xb2   : > { %1105 = vmatpush.bf16.msrb.mxu2 %v1569_v55  ;;  %1071 = vmatmul.bf16.vlgmr.msra.gmra.mxu3 %v2273_v2  ;;  %v1700_v39 = vld [vmem:[%s2178_s17 + $0x1b4] sm:$0xf]  ;;  %v1598_v40 = vld [vmem:[%s2178_s17 + $0x1b8] sm:$0xf0]  ;;  %v1537_v43 = vor.u32 %v1684_v37, %v1534_v38  ;;  %v1398_v45 = vld [vmem:[%s2178_s17 + $0x28] sm:$0xf0] }
  0xb3   : > { %1119 = vmatpush.bf16.msrb.mxu3 %v1633_v59  ;;  %v1666_v46 = vld [vmem:[%s2178_s17 + $0xa4] sm:$0xf]  ;;  %v1601_v47 = vor.u32 %v1700_v39, %v1598_v40  ;;  %v1462_v48 = vld [vmem:[%s2178_s17 + $0xa8] sm:$0xf0]  ;;  %v1401_v53 = vor.u32 %v1650_v44, %v1398_v45  ;;  %v1648_v56 = vld [vmem:[%s2178_s17 + $0x14] sm:$0xf] }
  0xb4   : > { %1078 = vmatpush.bf16.msrb.mxu0 %v1433_v4  ;;  %v1682_v49 = vld [vmem:[%s2178_s17 + $0x124] sm:$0xf]  ;;  %v1526_v50 = vld [vmem:[%s2178_s17 + $0x128] sm:$0xf0]  ;;  %v1465_v54 = vor.u32 %v1666_v46, %v1462_v48  ;;  %v1390_v57 = vld [vmem:[%s2178_s17 + $0x18] sm:$0xf0] }
  0xb5   : > { %1092 = vmatpush.bf16.msrb.mxu1 %v1497_v6  ;;  %v1698_v51 = vld [vmem:[%s2178_s17 + $0x1a4] sm:$0xf]  ;;  %v1590_v52 = vld [vmem:[%s2178_s17 + $0x1a8] sm:$0xf0]  ;;  %v1529_v55 = vor.u32 %v1682_v49, %v1526_v50  ;;  %v1664_v58 = vld [vmem:[%s2178_s17 + $0x94] sm:$0xf]  ;;  %v1393_v4 = vor.u32 %v1648_v56, %v1390_v57 }
  0xb6   : > { %1106 = vmatpush.bf16.msrb.mxu2 %v1561_v7  ;;  %v1593_v59 = vor.u32 %v1698_v51, %v1590_v52  ;;  %v1454_v61 = vld [vmem:[%s2178_s17 + $0x98] sm:$0xf0]  ;;  %v1680_v62 = vld [vmem:[%s2178_s17 + $0x114] sm:$0xf]  ;;  %v1646_v8 = vld [vmem:[%s2178_s17 + $0x4] sm:$0xf] }
  0xb7   : > { %1120 = vmatpush.bf16.msrb.mxu3 %v1625_v11  ;;  %v1518_v63 = vld [vmem:[%s2178_s17 + $0x118] sm:$0xf0]  ;;  %v1696_v0 = vld [vmem:[%s2178_s17 + $0x194] sm:$0xf]  ;;  %v1457_v6 = vor.u32 %v1664_v58, %v1454_v61  ;;  %v1382_v9 = vld [vmem:[%s2178_s17 + $0x8] sm:$0xf0] }
  0xb8   : > { %1079 = vmatpush.bf16.msrb.mxu0 %v1425_v17  ;;  %v1582_v1 = vld [vmem:[%s2178_s17 + $0x198] sm:$0xf0]  ;;  %v1521_v7 = vor.u32 %v1680_v62, %v1518_v63  ;;  %v1662_v10 = vld [vmem:[%s2178_s17 + $0x84] sm:$0xf]  ;;  %v1446_v12 = vld [vmem:[%s2178_s17 + $0x88] sm:$0xf0]  ;;  %v1385_v17 = vor.u32 %v1646_v8, %v1382_v9 }
  0xb9   : > { %1093 = vmatpush.bf16.msrb.mxu1 %v1489_v18  ;;  %v1585_v11 = vor.u32 %v1696_v0, %v1582_v1  ;;  %v1678_v13 = vld [vmem:[%s2178_s17 + $0x104] sm:$0xf]  ;;  %v1510_v14 = vld [vmem:[%s2178_s17 + $0x108] sm:$0xf0]  ;;  %v1449_v18 = vor.u32 %v1662_v10, %v1446_v12  ;;  %v609_v27 = vld [vmem:[#allocation2 + $0x10] sm:$0xff]  ;;  %p1634_p5 = scmp.ne.s32.totalorder %s1870_s21, 8 }
  0xba   : > { %1107 = vmatpush.bf16.msrb.mxu2 %v1553_v19  ;;  %v1694_v15 = vld [vmem:[%s2178_s17 + $0x184] sm:$0xf]  ;;  %v1574_v16 = vld [vmem:[%s2178_s17 + $0x188] sm:$0xf0]  ;;  %v1513_v19 = vor.u32 %v1678_v13, %v1510_v14  ;;  %v611_v34 = vld [vmem:[#allocation2 + $0x18] sm:$0xff] }
  0xbb   : > { %1121 = vmatpush.bf16.msrb.mxu3 %v1617_v23  ;;  %v1577_v20 = vor.u32 %v1694_v15, %v1574_v16  ;;  %v612_v49 = vld [vmem:[#allocation2 + $0x8] sm:$0xff] }
  0xbc   : > { %1080 = vmatpush.bf16.msrb.mxu0 %v1417_v29 }
  0xbd   : > { %1094 = vmatpush.bf16.msrb.mxu1 %v1481_v30 }
  0xbe   : > { %1108 = vmatpush.bf16.msrb.mxu2 %v1545_v31 }
  0xbf   : > { %1122 = vmatpush.bf16.msrb.mxu3 %v1609_v35 }
  0xc0   : > { %1081 = vmatpush.bf16.msrb.mxu0 %v1409_v41  ;;  %v610_v41 = vld [vmem:[#allocation2] sm:$0xff] }
  0xc1   : > { %1095 = vmatpush.bf16.msrb.mxu1 %v1473_v42 }
  0xc2   : > { %1109 = vmatpush.bf16.msrb.mxu2 %v1537_v43 }
  0xc3   : > { %1123 = vmatpush.bf16.msrb.mxu3 %v1601_v47 }
  0xc4   : > { %1082 = vmatpush.bf16.msrb.mxu0 %v1401_v53 }
  0xc5   : > { %1096 = vmatpush.bf16.msrb.mxu1 %v1465_v54 }
  0xc6   : > { %1110 = vmatpush.bf16.msrb.mxu2 %v1529_v55 }
  0xc7   : > { %1124 = vmatpush.bf16.msrb.mxu3 %v1593_v59 }
  0xc8   : > { %1083 = vmatpush.bf16.msrb.mxu0 %v1393_v4 }
  0xc9   : > { %1097 = vmatpush.bf16.msrb.mxu1 %v1457_v6 }
  0xca   : > { %1111 = vmatpush.bf16.msrb.mxu2 %v1521_v7 }
  0xcb   : > { %1125 = vmatpush.bf16.msrb.mxu3 %v1585_v11 }
  0xcc   : > { %1084 = vmatpush.bf16.msrb.mxu0 %v1385_v17 }
  0xcd   : > { %1098 = vmatpush.bf16.msrb.mxu1 %v1449_v18 }
  0xce   : > { %1112 = vmatpush.bf16.msrb.mxu2 %v1513_v19 }
  0xcf   : > { %1126 = vmatpush.bf16.msrb.mxu3 %v1577_v20  ;;  %1085 = vmatmul.bf16.vlgmr.msrb.gmra.mxu0 %v2275_v3 }
  0xd0   : > { %1099 = vmatmul.bf16.vlgmr.msrb.gmra.mxu1 %v2277_v5 }
  0xd1   : > { %1113 = vmatmul.bf16.vlgmr.msrb.gmra.mxu2 %v2266_v60 }
  0xd2   : > { %1127 = vmatmul.bf16.vlgmr.msrb.gmra.mxu3 %v2273_v2 }
 0x12c   : > { %v1030_v21 = vpop.f32.mrf.mxu0 }
 0x12d   : > { %v1044_v22 = vpop.f32.mrf.mxu1 }
 0x12e   : > { %v1045_v23 = vadd.f32 %v1044_v22, %v1030_v21 }
 0x134   : > { %v1058_v24 = vpop.f32.mrf.mxu2  ;;  %v1032_v29 = vpop.f32.mrf.mxu0 }
 0x135   : > { %v1059_v25 = vadd.f32 %v1058_v24, %v1045_v23  ;;  %v1072_v26 = vpop.f32.mrf.mxu3  ;;  %v1046_v30 = vpop.f32.mrf.mxu1 }
 0x136   : > { %v1047_v32 = vadd.f32 %v1046_v30, %v1032_v29 }
 0x137   : > { %v1073_v28 = vadd.f32 %v1072_v26, %v1059_v25 }
 0x139   : > { %v1133_v31 = vadd.f32 %v1073_v28, %v609_v27 }
 0x13b   : > { %1137 = vst [vmem:[#allocation2 + $0x10] sm:$0xff] %v1133_v31 }
 0x13c   : > { %v1060_v3 = vpop.f32.mrf.mxu2 }
 0x13d   : > { %v1061_v33 = vadd.f32 %v1060_v3, %v1047_v32  ;;  %v1074_v5 = vpop.f32.mrf.mxu3 }
 0x13f   : > { %v1075_v60 = vadd.f32 %v1074_v5, %v1061_v33 }
 0x141   : > { %v1135_v35 = vadd.f32 %v1075_v60, %v611_v34 }
 0x143   : > { %1139 = vst [vmem:[#allocation2 + $0x18] sm:$0xff] %v1135_v35 }
 0x14c   : > { %v1086_v2 = vpop.f32.mrf.mxu0 }
 0x14d   : > { %v1100_v36 = vpop.f32.mrf.mxu1 }
 0x14e   : > { %v1101_v37 = vadd.f32 %v1100_v36, %v1086_v2 }
 0x154   : > { %v1114_v38 = vpop.f32.mrf.mxu2  ;;  %v1088_v43 = vpop.f32.mrf.mxu0 }
 0x155   : > { %v1115_v39 = vadd.f32 %v1114_v38, %v1101_v37  ;;  %v1128_v40 = vpop.f32.mrf.mxu3  ;;  %v1102_v44 = vpop.f32.mrf.mxu1 }
 0x156   : > { %v1103_v46 = vadd.f32 %v1102_v44, %v1088_v43 }
 0x157   : > { %v1129_v42 = vadd.f32 %v1128_v40, %v1115_v39 }
 0x159   : > { %v1134_v45 = vadd.f32 %v1129_v42, %v610_v41 }
 0x15b   : > { %1138 = vst [vmem:[#allocation2] sm:$0xff] %v1134_v45 }
 0x15c   : > { %v1116_v47 = vpop.f32.mrf.mxu2 }
 0x15d   : > { %v1117_v48 = vadd.f32 %v1116_v47, %v1103_v46  ;;  %v1130_v50 = vpop.f32.mrf.mxu3 }
 0x15f   : > { %v1131_v51 = vadd.f32 %v1130_v50, %v1117_v48  ;;  %1144 = sbr.rel (%p1634_p5) target bundleno = 372 (0x174), region = 105 }
 0x161   : > { %v1136_v52 = vadd.f32 %v1131_v51, %v612_v49 }
 0x163   : > { %1140 = vst [vmem:[#allocation2 + $0x8] sm:$0xff] %v1136_v52 }
 0x164   : > { %v1145_v53 = vld [vmem:[#allocation2 + $0x10] sm:$0xff]  ;;  %v1146_v54 = vld [vmem:[#allocation2] sm:$0xff]  ;;  %v1147_v59 = vld [vmem:[#allocation2 + $0x18] sm:$0xff] }
 0x165   : > { %v1149_v55 = vld [vmem:[%s592_s11] sm:$0x3] }
 0x166   : > { %v1151_v56 = vperm.slane %v1149_v55, 0  ;;  %v1152_v57 = vperm.slane %v1149_v55, 1  ;;  %v1159_v58 = vld [vmem:[%s597_s27] sm:$0x3] }
 0x167   : > { %v1161_v62 = vperm.slane %v1159_v58, 0  ;;  %v1162_v63 = vperm.slane %v1159_v58, 1 }
 0x168   : > { %v1155_v0 = vmul.f32 %v1151_v56, %v1145_v53  ;;  %v1156_v1 = vmul.f32 %v1152_v57, %v1146_v54  ;;  %v1157_v4 = vmul.f32 %v1151_v56, %v1147_v59 }
 0x16a   : > { %v1148_v61 = vld [vmem:[#allocation2 + $0x8] sm:$0xff]  ;;  %v1165_v7 = vadd.f32 %v1161_v62, %v1155_v0  ;;  %v1166_v8 = vadd.f32 %v1162_v63, %v1156_v1  ;;  %v1167_v9 = vadd.f32 %v1161_v62, %v1157_v4 }
 0x16b   : > { %v1158_v6 = vmul.f32 %v1152_v57, %v1148_v61 }
 0x16c   : > { %v1169_v11 = vmax.f32 %v1165_v7, 0.0  ;;  %v1170_v12 = vmax.f32 %v1166_v8, 0.0  ;;  %v1171_v13 = vmax.f32 %v1167_v9, 0.0 }
 0x16d   : > { %v1168_v10 = vadd.f32 %v1162_v63, %v1158_v6 }
 0x16e   : > { %v1173_v15 = vpack.c.bf16 %v1170_v12, %v1169_v11 }
 0x16f   : > { %v1172_v14 = vmax.f32 %v1168_v10, 0.0 }
 0x170   : > { %1175 = vst [vmem:[%s2180_s15] sm:$0xff] %v1173_v15 }
 0x171   : > { %v1174_v16 = vpack.c.bf16 %v1172_v14, %v1171_v13 }
 0x173   : > { %1176 = vst [vmem:[%s2180_s15 + $0x8] sm:$0xff] %v1174_v16 }
 0x174 PF: > { %1183 = sbr.rel (!%p2008_p12) target bundleno = 380 (0x17c), region = 109  ;;  %s1710_s21 = sshll.u32 (%p2008_p12), %s1874_s22, 3 }
 0x175   : > { %s1189_s29 = scalar_lea.vmem (%p2008_p12), %s2393_s4, %s1710_s21 }
 0x177   : > { %v1220_v17 = vld [vmem:[%s2180_s15] sm:$0xff] (%p2008_p12) }
 0x178   : > { %1221 = vst [vmem:[%s1189_s29] sm:$0xff] (%p2008_p12), %v1220_v17 }
 0x17a   : > { %v1222_v18 = vld [vmem:[%s2180_s15 + $0x8] sm:$0xff] }
 0x17b   : > { %1223 = vst [vmem:[%s1189_s29 + $0x10] sm:$0xff] %v1222_v18 }
 0x17c PF: > { %s14_s25 = sadd.s32 1, %s1886_s25   ;;  %s2405_s14 = sld [smem:[#allocation6_spill]] }
 0x17d   : > { %p11_p6 = scmp.ge.s32.totalorder %s14_s25, 20   ;;  %s2406_s6 = sld [smem:[#allocation7_spill]] }
 0x17e   : > { %s2407_s15 = smov %s1850_s16  ;;  %s2408_s16 = smov %s2006_s13 }
 0x17f   : > { %s2409_s17 = smov %s1858_s18  ;;  %s2410_s18 = smov %s2003_s12 }
 0x180   : > { %s2411_s19 = smov %s1866_s20  ;;  %s2412_s20 = smov %s1989_s7 }
 0x181   : > { %s2413_s21 = smov %s1878_s23  ;;  %s2414_s22 = smov %s1882_s24 }
 0x182   : > { %s2415_s23 = smov %s2405_s14  ;;  %13 = sbr.rel (!%p11_p6) target bundleno = 9 (0x9), region = 192 }
 0x183   : > { %s2416_s24 = smov %s2406_s6 }

// kernel: electronics_classifier_forward.43
= control target key start
LH: loop header
LB: loop body
LE: loop exit
PB: predicated region body
PF: predicated region fallthrough
CT: control target
= control target key end

     0   :  { %s731_s0 = inlined_call_operand.vmem [shape: bf16[2,1,512], index: 0, kind: input, shape index: {}]   ;;  %s732_s1 = inlined_call_operand.vmem [shape: bf16[512,128], index: 1, kind: input, shape index: {}]   ;;  %s733_s2 = inlined_call_operand.vmem [shape: f32[1,128], index: 2, kind: input, shape index: {}]   ;;  %s734_s3 = inlined_call_operand.hbm [shape: f32[2,128], index: 3, kind: output, shape index: {}]  }
   0x1   :  { %v544_v0 = vld [vmem:[%s732_s1 + $0x38] sm:$0xff]  ;;  %v543_v4 = vld [vmem:[%s732_s1 + $0x30] sm:$0xff]  ;;  %v542_v8 = vld [vmem:[%s732_s1 + $0x28] sm:$0xff] }
   0x2   :  { %v552_v1 = vld [vmem:[%s732_s1 + $0x78] sm:$0xff]  ;;  %340 = vmatpush.bf16.msra.mxu0 %v544_v0  ;;  %v551_v5 = vld [vmem:[%s732_s1 + $0x70] sm:$0xff]  ;;  %v550_v9 = vld [vmem:[%s732_s1 + $0x68] sm:$0xff] }
   0x3   :  { %v560_v2 = vld [vmem:[%s732_s1 + $0xb8] sm:$0xff]  ;;  %353 = vmatpush.bf16.msra.mxu1 %v552_v1  ;;  %v559_v6 = vld [vmem:[%s732_s1 + $0xb0] sm:$0xff]  ;;  %v558_v10 = vld [vmem:[%s732_s1 + $0xa8] sm:$0xff] }
   0x4   :  { %v568_v3 = vld [vmem:[%s732_s1 + $0xf8] sm:$0xff]  ;;  %366 = vmatpush.bf16.msra.mxu2 %v560_v2  ;;  %v567_v7 = vld [vmem:[%s732_s1 + $0xf0] sm:$0xff]  ;;  %v566_v11 = vld [vmem:[%s732_s1 + $0xe8] sm:$0xff] }
   0x5   :  { %379 = vmatpush.bf16.msra.mxu3 %v568_v3  ;;  %v541_v12 = vld [vmem:[%s732_s1 + $0x20] sm:$0xff] }
   0x6   :  { %341 = vmatpush.bf16.msra.mxu0 %v543_v4  ;;  %v549_v13 = vld [vmem:[%s732_s1 + $0x60] sm:$0xff] }
   0x7   :  { %354 = vmatpush.bf16.msra.mxu1 %v551_v5  ;;  %v557_v14 = vld [vmem:[%s732_s1 + $0xa0] sm:$0xff] }
   0x8   :  { %367 = vmatpush.bf16.msra.mxu2 %v559_v6  ;;  %v570_v15 = vld [vmem:[%s731_s0] sm:$0xff]  }
   0x9   :  { %380 = vmatpush.bf16.msra.mxu3 %v567_v7  ;;  %v565_v16 = vld [vmem:[%s732_s1 + $0xe0] sm:$0xff]  ;;  %v571_v17 = vunpack.c.l.bf16 %v570_v15  ;;  %v572_v18 = vunpack.c.h.bf16 %v570_v15 }
   0xa   :  { %342 = vmatpush.bf16.msra.mxu0 %v542_v8 }
   0xb   :  { %355 = vmatpush.bf16.msra.mxu1 %v550_v9 }
   0xc   :  { %368 = vmatpush.bf16.msra.mxu2 %v558_v10 }
   0xd   :  { %381 = vmatpush.bf16.msra.mxu3 %v566_v11 }
   0xe   :  { %8 = vsyncpa [#allocation3], 0  ;;  %v27_v19 = vperm.slane %v572_v18, 0  ;;  %v28_v20 = vperm.slane %v572_v18, 2  ;;  %343 = vmatpush.bf16.msra.mxu0 %v541_v12  ;;  %v540_v21 = vld [vmem:[%s732_s1 + $0x18] sm:$0xff]  ;;  %v23_v23 = vperm.slane %v571_v17, 0 }
   0xf   :  { %356 = vmatpush.bf16.msra.mxu1 %v549_v13  ;;  %v548_v22 = vld [vmem:[%s732_s1 + $0x58] sm:$0xff]  ;;  %v24_v24 = vperm.slane %v571_v17, 2  ;;  %v29_v25 = vperm.slane %v572_v18, 4  ;;  %v30_v26 = vperm.slane %v572_v18, 6  ;;  %v25_v30 = vperm.slane %v571_v17, 4  ;;  %v539_v35 = vld [vmem:[%s732_s1 + $0x10] sm:$0xff] }
  0x10   :  { %369 = vmatpush.bf16.msra.mxu2 %v557_v14  ;;  %v556_v27 = vld [vmem:[%s732_s1 + $0x98] sm:$0xff]  ;;  %v43_v29 = vpack.c.bf16 %v27_v19, %v27_v19  ;;  %v26_v31 = vperm.slane %v571_v17, 6  ;;  %v44_v32 = vpack.c.bf16 %v28_v20, %v28_v20  ;;  %v547_v36 = vld [vmem:[%s732_s1 + $0x50] sm:$0xff]  ;;  %v39_v37 = vpack.c.bf16 %v23_v23, %v23_v23  ;;  %v538_v47 = vld [vmem:[%s732_s1 + $0x8] sm:$0xff]  ;;  %s400_s27 = sshll.u32 %s734_s3, 4  ;;  %s401_s27 = int_to_ptr.hbm [resolvable:$true] %s400_s27 }
  0x11   :  { %382 = vmatpush.bf16.msra.mxu3 %v565_v16  ;;  %v564_v28 = vld [vmem:[%s732_s1 + $0xd8] sm:$0xff]  ;;  %v45_v33 = vpack.c.bf16 %v29_v25, %v29_v25  ;;  %v46_v34 = vpack.c.bf16 %v30_v26, %v30_v26  ;;  %v40_v39 = vpack.c.bf16 %v24_v24, %v24_v24  ;;  %v555_v41 = vld [vmem:[%s732_s1 + $0x90] sm:$0xff]  ;;  %v41_v43 = vpack.c.bf16 %v25_v30, %v25_v30  ;;  %v546_v48 = vld [vmem:[%s732_s1 + $0x48] sm:$0xff] }
  0x12   :  { %344 = vmatpush.bf16.msra.mxu0 %v540_v21  ;;  %v127_v38 = vunpack.c.l.b16 %v43_v29  ;;  %v128_v40 = vunpack.c.l.b16 %v44_v32  ;;  %v563_v42 = vld [vmem:[%s732_s1 + $0xd0] sm:$0xff]  ;;  %v42_v45 = vpack.c.bf16 %v26_v31, %v26_v31  ;;  %vm132_vm0 = vcmask 1041409   ;;  %v554_v53 = vld [vmem:[%s732_s1 + $0x88] sm:$0xff]  ;;  %v537_v59 = vld [vmem:[%s732_s1] sm:$0xff] }
  0x13   :  { %357 = vmatpush.bf16.msra.mxu1 %v548_v22  ;;  %v129_v44 = vunpack.c.l.b16 %v45_v33  ;;  %v130_v46 = vunpack.c.l.b16 %v46_v34  ;;  %v123_v49 = vunpack.c.l.b16 %v39_v37  ;;  %v124_v51 = vunpack.c.l.b16 %v40_v39  ;;  %v562_v54 = vld [vmem:[%s732_s1 + $0xc8] sm:$0xff]  ;;  %v545_v60 = vld [vmem:[%s732_s1 + $0x40] sm:$0xff] }
  0x14   :  { %370 = vmatpush.bf16.msra.mxu2 %v556_v27  ;;  %v131_v50 = vrot.slane %v127_v38, 7  ;;  %v134_v52 = vrot.slane %v128_v40, 7  ;;  %v125_v55 = vunpack.c.l.b16 %v41_v43  ;;  %v126_v57 = vunpack.c.l.b16 %v42_v45  ;;  %v553_v63 = vld [vmem:[%s732_s1 + $0x80] sm:$0xff] }
  0x15   :  { %383 = vmatpush.bf16.msra.mxu3 %v564_v28  ;;  %v136_v56 = vrot.slane %v129_v44, 7  ;;  %v138_v58 = vrot.slane %v130_v46, 7  ;;  %v561_v0 = vld [vmem:[%s732_s1 + $0xc0] sm:$0xff]  ;;  %s601_s1 = smov [#allocation2]  }
  0x16   :  { %345 = vmatpush.bf16.msra.mxu0 %v539_v35  ;;  %v133_v61 = vsel %vm132_vm0, %v131_v50, %v123_v49  ;;  %v135_v62 = vsel %vm132_vm0, %v134_v52, %v124_v51  ;;  %v574_v7 = vld [vmem:[%s733_s2] ss:$0 sm:$0xff]  ;;  %s398_s24 = sshll.u32 %s601_s1, 4  ;;  %s399_s24 = int_to_ptr.vmem [resolvable:$true] %s398_s24 }
  0x17   :  { %358 = vmatpush.bf16.msra.mxu1 %v547_v36  ;;  %v137_v1 = vsel %vm132_vm0, %v136_v56, %v125_v55  ;;  %v139_v2 = vsel %vm132_vm0, %v138_v58, %v126_v57  ;;  %v140_v3 = vpack.c.b16 %v133_v61, %v133_v61  ;;  %v141_v4 = vpack.c.b16 %v135_v62, %v135_v62 }
  0x18   :  { %371 = vmatpush.bf16.msra.mxu2 %v555_v41  ;;  %v142_v5 = vpack.c.b16 %v137_v1, %v137_v1  ;;  %v143_v6 = vpack.c.b16 %v139_v2, %v139_v2 }
  0x19   :  { %384 = vmatpush.bf16.msra.mxu3 %v563_v42 }
  0x1a   :  { %346 = vmatpush.bf16.msra.mxu0 %v538_v47 }
  0x1b   :  { %359 = vmatpush.bf16.msra.mxu1 %v546_v48 }
  0x1c   :  { %372 = vmatpush.bf16.msra.mxu2 %v554_v53 }
  0x1d   :  { %385 = vmatpush.bf16.msra.mxu3 %v562_v54 }
  0x1e   :  { %347 = vmatpush.bf16.msra.mxu0 %v537_v59 }
  0x1f   :  { %360 = vmatpush.bf16.msra.mxu1 %v545_v60 }
  0x20   :  { %373 = vmatpush.bf16.msra.mxu2 %v553_v63 }
  0x21   :  { %386 = vmatpush.bf16.msra.mxu3 %v561_v0  ;;  %348 = vmatmul.bf16.vlgmr.msra.gmra.mxu0 %v140_v3 }
  0x22   :  { %361 = vmatmul.bf16.vlgmr.msra.gmra.mxu1 %v141_v4 }
  0x23   :  { %374 = vmatmul.bf16.vlgmr.msra.gmra.mxu2 %v142_v5 }
  0x24   :  { %387 = vmatmul.bf16.vlgmr.msra.gmra.mxu3 %v143_v6 }
  0x9e   :  { %v349_v8 = vpop.f32.mrf.mxu0 }
  0x9f   :  { %v362_v9 = vpop.f32.mrf.mxu1  ;;  %v350_v10 = vadd.f32 %v574_v7, %v349_v8 }
  0xa1   :  { %v363_v11 = vadd.f32 %v362_v9, %v350_v10 }
  0xa6   :  { %v375_v12 = vpop.f32.mrf.mxu2  ;;  %v351_v15 = vpop.f32.mrf.mxu0 }
  0xa7   :  { %v388_v13 = vpop.f32.mrf.mxu3  ;;  %v376_v14 = vadd.f32 %v375_v12, %v363_v11  ;;  %v364_v16 = vpop.f32.mrf.mxu1 }
  0xa9   :  { %v389_v17 = vadd.f32 %v388_v13, %v376_v14 }
  0xab   :  { %392 = vst [vmem:[#allocation2] sm:$0x3] %v389_v17 }
  0xac   :  { %403 = dma.vmem_to_hbm [thread:$0]  %s399_s24, 32, %s401_s27, [#allocation3]  }
  0xae   :  { %v377_v18 = vpop.f32.mrf.mxu2 }
  0xaf   :  { %v390_v19 = vpop.f32.mrf.mxu3 }
  0xb0   :  { %599 = dma.done.wait [#allocation3], 32  }
  0xb1   :  { %600 = vsyncadd [#allocation3], 4294967264 }
  0xb2   :  { %408 = vsyncpa [#allocation3], 1 }

</bundles_post_ra>
